<compile_context>
chip_gen: v7x
topology: tpu7x:2x2x1
jax: 0.10.0
libtpu: 0.0.40
codegen_flags: <defaults>
</compile_context>

<pallas_src>
import jax
import jax.numpy as jnp
from jax.experimental import pallas as pl
from jax.experimental.pallas import tpu as pltpu


# ---------------------------------------------------------------------------
# Pallas kernels
# ---------------------------------------------------------------------------
def _conv_pool_kernel(cols_ref, w_ref, b_ref, o_ref):
    """Fused conv3x3 + bias + ReLU + 2x2 maxpool.

    cols_ref: (tm, 16*Cin)  -- 4x4 stride-2 patches at pooled resolution
    w_ref:    (4, 16*Cin, Cout) -- 3x3 kernel embedded at the 4 pool offsets
    b_ref:    (1, Cout)
    o_ref:    (tm, Cout)    -- pooled activations
    """
    cols = cols_ref[...]
    bias = b_ref[...]
    acc = None
    for p in range(4):  # static unroll over the 2x2 pool window
        y = jnp.dot(cols, w_ref[p], preferred_element_type=jnp.float32) + bias
        y = jnp.maximum(y, 0.0)
        acc = y if acc is None else jnp.maximum(acc, y)
    o_ref[...] = acc.astype(o_ref.dtype)


def _lc_chain_kernel(x_ref, w1_ref, b1_ref, w2_ref, b2_ref, w3_ref, b3_ref,
                     o_ref):
    """Fused last_conv1 -> last_conv2 -> last_conv3 (ReLU between 1/2 and 2/3).

    M is tiny (batch * spatial positions), so this chain is pure
    weight-streaming; all intermediates stay in vregs/VMEM.  Weights are bf16
    (MXU-native) with f32 accumulation; bias/ReLU in f32.
    """
    h = jnp.dot(x_ref[...].astype(jnp.bfloat16), w1_ref[...],
                preferred_element_type=jnp.float32) + b1_ref[...]
    h = jnp.maximum(h, 0.0)
    h = jnp.dot(h.astype(jnp.bfloat16), w2_ref[...],
                preferred_element_type=jnp.float32) + b2_ref[...]
    h = jnp.maximum(h, 0.0)
    h = jnp.dot(h.astype(jnp.bfloat16), w3_ref[...],
                preferred_element_type=jnp.float32) + b3_ref[...]
    o_ref[...] = h.astype(o_ref.dtype)


# ---------------------------------------------------------------------------
# Wrappers
# ---------------------------------------------------------------------------
def conv_relu_pool(x, w4, b, pad=1):
    """x: (N,H,W,Cin) NHWC -> pooled (N,H//2,W//2,Cout). Conv3x3 stride1."""
    xp = jnp.pad(x, ((0, 0), (pad, pad), (pad, pad), (0, 0)))
    n, hp, wp_, c = xp.shape
    hop, wop = (hp - 2) // 2, (wp_ - 2) // 2          # pooled output size
    # 4x4 stride-2 patches at pooled resolution (memory-order-preserving K).
    cols = jnp.stack(
        [xp[:, ri:ri + 2 * hop:2, rj:rj + 2 * wop:2, :]
         for ri in range(4) for rj in range(4)],
        axis=3)                                        # (n, hop, wop, 16, c)
    mp = n * hop * wop
    cols = cols.reshape(mp, 16 * c)
    k = w4.shape[1]
    cout = w4.shape[2]
    tm = mp if mp <= 1024 else 512                     # single block at 28x28
    out = pl.pallas_call(
        _conv_pool_kernel,
        out_shape=jax.ShapeDtypeStruct((mp, cout), jnp.float32),
        grid=(pl.cdiv(mp, tm),),
        in_specs=[
            pl.BlockSpec((tm, k), lambda i: (i, 0)),
            pl.BlockSpec((4, k, cout), lambda i: (0, 0, 0)),
            pl.BlockSpec((1, cout), lambda i: (0, 0)),
        ],
        out_specs=pl.BlockSpec((tm, cout), lambda i: (i, 0)),
        compiler_params=pltpu.CompilerParams(
            dimension_semantics=("parallel",)),
    )(cols, w4, b)
    return out.reshape(n, hop, wop, cout)


def _lc1_patches(x, k=7):
    """NHWC -> (N*Ho*Wo, k*k*C) patches flattened in (kh, kw, C) order."""
    n, h, w, c = x.shape
    if h == k and w == k:                 # canonical 28x28 case -> free reshape
        return x.reshape(n, k * k * c), (n, 1, 1)
    ho, wo = h - k + 1, w - k + 1
    cols = jnp.stack([x[:, i:i + ho, j:j + wo, :]
                      for i in range(k) for j in range(k)], axis=3)
    return cols.reshape(n * ho * wo, k * k * c), (n, ho, wo)


def lc_chain(x2d, p):
    """Fused last_conv1/2/3 as one pallas_call. x2d: (M, 7*7*32)."""
    m, k1 = x2d.shape
    n1 = p["lc1_w"].shape[1]
    n2 = p["lc2_w"].shape[1]
    n3 = p["lc3_w"].shape[1]
    return pl.pallas_call(
        _lc_chain_kernel,
        out_shape=jax.ShapeDtypeStruct((m, n3), jnp.float32),
        grid=(1,),
        in_specs=[
            pl.BlockSpec((m, k1), lambda i: (0, 0)),
            pl.BlockSpec((k1, n1), lambda i: (0, 0)),
            pl.BlockSpec((1, n1), lambda i: (0, 0)),
            pl.BlockSpec((n1, n2), lambda i: (0, 0)),
            pl.BlockSpec((1, n2), lambda i: (0, 0)),
            pl.BlockSpec((n2, n3), lambda i: (0, 0)),
            pl.BlockSpec((1, n3), lambda i: (0, 0)),
        ],
        out_specs=pl.BlockSpec((m, n3), lambda i: (0, 0)),
    )(x2d, p["lc1_w"], p["lc1_b"], p["lc2_w"], p["lc2_b"],
      p["lc3_w"], p["lc3_b"])


# ---------------------------------------------------------------------------
# Parameter preparation (one-time repacking into kernel-ready layouts)
# ---------------------------------------------------------------------------
def prepare_params(raw):
    def pool_conv_w(w_oihw):
        # Embed the 3x3 kernel at each of the 4 pool offsets inside 4x4 zeros.
        cout, cin, kh, kw = w_oihw.shape
        w_k = jnp.transpose(w_oihw, (2, 3, 1, 0))        # (3,3,cin,cout)
        wp = jnp.zeros((2, 2, 4, 4, cin, cout), jnp.float32)
        for pi in range(2):
            for pj in range(2):
                wp = wp.at[pi, pj, pi:pi + 3, pj:pj + 3].set(w_k)
        return wp.reshape(4, 16 * cin, cout)

    def conv_as_mat(w_oihw):
        cout, cin, kh, kw = w_oihw.shape
        return jnp.transpose(w_oihw, (2, 3, 1, 0)).reshape(kh * kw * cin, cout)

    f32 = jnp.float32
    return {
        "c1_w": pool_conv_w(raw["conv1_w"].astype(f32)),
        "c1_b": raw["conv1_b"].reshape(1, -1).astype(f32),
        "c2_w": pool_conv_w(raw["conv2_w"].astype(f32)),
        "c2_b": raw["conv2_b"].reshape(1, -1).astype(f32),
        "lc1_w": conv_as_mat(raw["lc1_w"]).astype(jnp.bfloat16),
        "lc1_b": raw["lc1_b"].reshape(1, -1).astype(f32),
        "lc2_w": conv_as_mat(raw["lc2_w"]).astype(jnp.bfloat16),
        "lc2_b": raw["lc2_b"].reshape(1, -1).astype(f32),
        "lc3_w": conv_as_mat(raw["lc3_w"]).astype(jnp.bfloat16),
        "lc3_b": raw["lc3_b"].reshape(1, -1).astype(f32),
    }


# ---------------------------------------------------------------------------
# ProductionCNN2 forward
# ---------------------------------------------------------------------------
def production_cnn2_forward(params, x_nchw):
    x = jnp.transpose(x_nchw, (0, 2, 3, 1)).astype(jnp.float32)  # NCHW -> NHWC
    x = conv_relu_pool(x, params["c1_w"], params["c1_b"], pad=1)  # conv1+pool
    x = conv_relu_pool(x, params["c2_w"], params["c2_b"], pad=1)  # conv2+pool
    x2d, (n, ho, wo) = _lc1_patches(x, k=7)                       # 7x7 head
    out = lc_chain(x2d, params)                                   # (M, 10)
    out = out.reshape(n, ho, wo, 10)
    return jnp.transpose(out, (0, 3, 1, 2))                       # NHWC -> NCHW


def init_params(key):
    """Deterministic synthetic weights with the exact module shapes."""
    ks = jax.random.split(key, 10)

    def rand(k, shape, fan_in):
        return jax.random.normal(k, shape, jnp.float32) / jnp.sqrt(fan_in)

    conv1_w = rand(ks[0], (16, 1, 3, 3), 1 * 3 * 3)
    conv1_b = rand(ks[1], (16,), 1 * 3 * 3)
    conv2_w = rand(ks[2], (32, 16, 3, 3), 16 * 3 * 3)
    conv2_b = rand(ks[3], (32,), 16 * 3 * 3)
    fc1_w = rand(ks[4], (784, 1568), 1568)
    fc1_b = rand(ks[5], (784,), 1568)
    fc2_w = rand(ks[6], (392, 784), 784)
    fc2_b = rand(ks[7], (392,), 784)
    fc3_w = rand(ks[8], (10, 392), 392)
    fc3_b = rand(ks[9], (10,), 392)
    return {
        "conv1_w": conv1_w, "conv1_b": conv1_b,
        "conv2_w": conv2_w, "conv2_b": conv2_b,
        # last_conv1.weight = fc1.weight.view(784, 32, 7, 7), etc.
        "lc1_w": fc1_w.reshape(784, 32, 7, 7), "lc1_b": fc1_b,
        "lc2_w": fc2_w.reshape(392, 784, 1, 1), "lc2_b": fc2_b,
        "lc3_w": fc3_w.reshape(10, 392, 1, 1), "lc3_b": fc3_b,
    }


if __name__ == "__main__":
    key = jax.random.PRNGKey(0)
    k_param, k_x = jax.random.split(key)
    params = prepare_params(init_params(k_param))
    # smallest spatial size that supports the 7x7 head after two 2x2 pools
    x = jax.random.normal(k_x, (2, 1, 28, 28), jnp.float32)  # NCHW, grayscale

    out = jax.jit(production_cnn2_forward)(params, x)
    out = jax.block_until_ready(out)
    assert out.shape == (2, 10, 1, 1), out.shape
    assert out.dtype == jnp.float32
    print("KERNEL_OK")
</pallas_src>

<mosaic_0001>
module attributes {stable_mosaic.version = 11 : i64} {
  func.func @_conv_pool_kernel(%arg0: i32, %arg1: memref<392x16xf32, #tpu.memory_space<vmem>>, %arg2: memref<4x16x16xf32, #tpu.memory_space<vmem>>, %arg3: memref<1x16xf32, #tpu.memory_space<vmem>>, %arg4: memref<392x16xf32, #tpu.memory_space<vmem>>) attributes {dimension_semantics = [#tpu.dimension_semantics<parallel>], iteration_bounds = array<i64: 1>, scalar_prefetch = 0 : i64, scratch_operands = 0 : i64, tpu.core_type = #tpu.core_type<tc>, window_params = [{transform_indices = @transform_0, window_bounds = array<i64: 392, 16>}, {pipeline_mode = #tpu.pipeline_mode<synchronous>, transform_indices = @transform_1, window_bounds = array<i64: 4, 16, 16>}, {pipeline_mode = #tpu.pipeline_mode<synchronous>, transform_indices = @transform_2, window_bounds = array<i64: 1, 16>}, {transform_indices = @transform_3, window_bounds = array<i64: 392, 16>}]} {
    %c0 = arith.constant 0 : index
    %c0_0 = arith.constant 0 : index
    %0 = vector.load %arg1[%c0, %c0_0] : memref<392x16xf32, #tpu.memory_space<vmem>>, vector<392x16xf32>
    %c0_1 = arith.constant 0 : index
    %c0_2 = arith.constant 0 : index
    %1 = vector.load %arg3[%c0_1, %c0_2] : memref<1x16xf32, #tpu.memory_space<vmem>>, vector<1x16xf32>
    %c0_3 = arith.constant 0 : index
    %c0_4 = arith.constant 0 : index
    %c0_5 = arith.constant 0 : index
    %2 = vector.load %arg2[%c0_3, %c0_4, %c0_5] : memref<4x16x16xf32, #tpu.memory_space<vmem>>, vector<1x16x16xf32>
    %3 = vector.shape_cast %2 : vector<1x16x16xf32> to vector<16x16xf32>
    %cst = arith.constant dense<0.000000e+00> : vector<392x16xf32>
    %4 = tpu.matmul %0, %3, %cst {dimension_numbers = #tpu.dot_dimension_numbers<[1], [0], [0], [1], [0, 0, 1, 1], [], []>} : vector<392x16xf32>, vector<16x16xf32>, vector<392x16xf32> -> vector<392x16xf32>
    %5 = vector.broadcast %1 : vector<1x16xf32> to vector<392x16xf32>
    %6 = arith.addf %4, %5 : vector<392x16xf32>
    %cst_6 = arith.constant 0.000000e+00 : f32
    %7 = vector.broadcast %cst_6 : f32 to vector<392x16xf32>
    %8 = arith.maximumf %6, %7 : vector<392x16xf32>
    %c1 = arith.constant 1 : index
    %c0_7 = arith.constant 0 : index
    %c0_8 = arith.constant 0 : index
    %9 = vector.load %arg2[%c1, %c0_7, %c0_8] : memref<4x16x16xf32, #tpu.memory_space<vmem>>, vector<1x16x16xf32>
    %10 = vector.shape_cast %9 : vector<1x16x16xf32> to vector<16x16xf32>
    %cst_9 = arith.constant dense<0.000000e+00> : vector<392x16xf32>
    %11 = tpu.matmul %0, %10, %cst_9 {dimension_numbers = #tpu.dot_dimension_numbers<[1], [0], [0], [1], [0, 0, 1, 1], [], []>} : vector<392x16xf32>, vector<16x16xf32>, vector<392x16xf32> -> vector<392x16xf32>
    %12 = vector.broadcast %1 : vector<1x16xf32> to vector<392x16xf32>
    %13 = arith.addf %11, %12 : vector<392x16xf32>
    %cst_10 = arith.constant 0.000000e+00 : f32
    %14 = vector.broadcast %cst_10 : f32 to vector<392x16xf32>
    %15 = arith.maximumf %13, %14 : vector<392x16xf32>
    %16 = arith.maximumf %8, %15 : vector<392x16xf32>
    %c2 = arith.constant 2 : index
    %c0_11 = arith.constant 0 : index
    %c0_12 = arith.constant 0 : index
    %17 = vector.load %arg2[%c2, %c0_11, %c0_12] : memref<4x16x16xf32, #tpu.memory_space<vmem>>, vector<1x16x16xf32>
    %18 = vector.shape_cast %17 : vector<1x16x16xf32> to vector<16x16xf32>
    %cst_13 = arith.constant dense<0.000000e+00> : vector<392x16xf32>
    %19 = tpu.matmul %0, %18, %cst_13 {dimension_numbers = #tpu.dot_dimension_numbers<[1], [0], [0], [1], [0, 0, 1, 1], [], []>} : vector<392x16xf32>, vector<16x16xf32>, vector<392x16xf32> -> vector<392x16xf32>
    %20 = vector.broadcast %1 : vector<1x16xf32> to vector<392x16xf32>
    %21 = arith.addf %19, %20 : vector<392x16xf32>
    %cst_14 = arith.constant 0.000000e+00 : f32
    %22 = vector.broadcast %cst_14 : f32 to vector<392x16xf32>
    %23 = arith.maximumf %21, %22 : vector<392x16xf32>
    %24 = arith.maximumf %16, %23 : vector<392x16xf32>
    %c3 = arith.constant 3 : index
    %c0_15 = arith.constant 0 : index
    %c0_16 = arith.constant 0 : index
    %25 = vector.load %arg2[%c3, %c0_15, %c0_16] : memref<4x16x16xf32, #tpu.memory_space<vmem>>, vector<1x16x16xf32>
    %26 = vector.shape_cast %25 : vector<1x16x16xf32> to vector<16x16xf32>
    %cst_17 = arith.constant dense<0.000000e+00> : vector<392x16xf32>
    %27 = tpu.matmul %0, %26, %cst_17 {dimension_numbers = #tpu.dot_dimension_numbers<[1], [0], [0], [1], [0, 0, 1, 1], [], []>} : vector<392x16xf32>, vector<16x16xf32>, vector<392x16xf32> -> vector<392x16xf32>
    %28 = vector.broadcast %1 : vector<1x16xf32> to vector<392x16xf32>
    %29 = arith.addf %27, %28 : vector<392x16xf32>
    %cst_18 = arith.constant 0.000000e+00 : f32
    %30 = vector.broadcast %cst_18 : f32 to vector<392x16xf32>
    %31 = arith.maximumf %29, %30 : vector<392x16xf32>
    %32 = arith.maximumf %24, %31 : vector<392x16xf32>
    %c0_19 = arith.constant 0 : index
    %c0_20 = arith.constant 0 : index
    %33 = vector.load %arg4[%c0_19, %c0_20] : memref<392x16xf32, #tpu.memory_space<vmem>>, vector<392x16xf32>
    tpu.vector_store %arg4[%c0_19, %c0_20], %32 {strides = array<i32>} : memref<392x16xf32, #tpu.memory_space<vmem>>, vector<392x16xf32>,
    return
  }
  func.func @transform_0(%arg0: i32) -> (i32, i32) {
    %c0_i32 = arith.constant 0 : i32
    %c0_i32_0 = arith.constant 0 : i32
    return %arg0, %c0_i32 : i32, i32
  }
  func.func @transform_1(%arg0: i32) -> (i32, i32, i32) {
    %c0_i32 = arith.constant 0 : i32
    %c0_i32_0 = arith.constant 0 : i32
    %c0_i32_1 = arith.constant 0 : i32
    %c0_i32_2 = arith.constant 0 : i32
    return %c0_i32, %c0_i32_0, %c0_i32_1 : i32, i32, i32
  }
  func.func @transform_2(%arg0: i32) -> (i32, i32) {
    %c0_i32 = arith.constant 0 : i32
    %c0_i32_0 = arith.constant 0 : i32
    %c0_i32_1 = arith.constant 0 : i32
    return %c0_i32, %c0_i32_0 : i32, i32
  }
  func.func @transform_3(%arg0: i32) -> (i32, i32) {
    %c0_i32 = arith.constant 0 : i32
    %c0_i32_0 = arith.constant 0 : i32
    return %arg0, %c0_i32 : i32, i32
  }
}

module attributes {stable_mosaic.version = 11 : i64} {
  func.func @_conv_pool_kernel(%arg0: i32, %arg1: memref<98x256xf32, #tpu.memory_space<vmem>>, %arg2: memref<4x256x32xf32, #tpu.memory_space<vmem>>, %arg3: memref<1x32xf32, #tpu.memory_space<vmem>>, %arg4: memref<98x32xf32, #tpu.memory_space<vmem>>) attributes {dimension_semantics = [#tpu.dimension_semantics<parallel>], iteration_bounds = array<i64: 1>, scalar_prefetch = 0 : i64, scratch_operands = 0 : i64, tpu.core_type = #tpu.core_type<tc>, window_params = [{transform_indices = @transform_0, window_bounds = array<i64: 98, 256>}, {pipeline_mode = #tpu.pipeline_mode<synchronous>, transform_indices = @transform_1, window_bounds = array<i64: 4, 256, 32>}, {pipeline_mode = #tpu.pipeline_mode<synchronous>, transform_indices = @transform_2, window_bounds = array<i64: 1, 32>}, {transform_indices = @transform_3, window_bounds = array<i64: 98, 32>}]} {
    %c0 = arith.constant 0 : index
    %c0_0 = arith.constant 0 : index
    %0 = vector.load %arg1[%c0, %c0_0] : memref<98x256xf32, #tpu.memory_space<vmem>>, vector<98x256xf32>
    %c0_1 = arith.constant 0 : index
    %c0_2 = arith.constant 0 : index
    %1 = vector.load %arg3[%c0_1, %c0_2] : memref<1x32xf32, #tpu.memory_space<vmem>>, vector<1x32xf32>
    %c0_3 = arith.constant 0 : index
    %c0_4 = arith.constant 0 : index
    %c0_5 = arith.constant 0 : index
    %2 = vector.load %arg2[%c0_3, %c0_4, %c0_5] : memref<4x256x32xf32, #tpu.memory_space<vmem>>, vector<1x256x32xf32>
    %3 = vector.shape_cast %2 : vector<1x256x32xf32> to vector<256x32xf32>
    %cst = arith.constant dense<0.000000e+00> : vector<98x32xf32>
    %4 = tpu.matmul %0, %3, %cst {dimension_numbers = #tpu.dot_dimension_numbers<[1], [0], [0], [1], [0, 0, 1, 1], [], []>} : vector<98x256xf32>, vector<256x32xf32>, vector<98x32xf32> -> vector<98x32xf32>
    %5 = vector.broadcast %1 : vector<1x32xf32> to vector<98x32xf32>
    %6 = arith.addf %4, %5 : vector<98x32xf32>
    %cst_6 = arith.constant 0.000000e+00 : f32
    %7 = vector.broadcast %cst_6 : f32 to vector<98x32xf32>
    %8 = arith.maximumf %6, %7 : vector<98x32xf32>
    %c1 = arith.constant 1 : index
    %c0_7 = arith.constant 0 : index
    %c0_8 = arith.constant 0 : index
    %9 = vector.load %arg2[%c1, %c0_7, %c0_8] : memref<4x256x32xf32, #tpu.memory_space<vmem>>, vector<1x256x32xf32>
    %10 = vector.shape_cast %9 : vector<1x256x32xf32> to vector<256x32xf32>
    %cst_9 = arith.constant dense<0.000000e+00> : vector<98x32xf32>
    %11 = tpu.matmul %0, %10, %cst_9 {dimension_numbers = #tpu.dot_dimension_numbers<[1], [0], [0], [1], [0, 0, 1, 1], [], []>} : vector<98x256xf32>, vector<256x32xf32>, vector<98x32xf32> -> vector<98x32xf32>
    %12 = vector.broadcast %1 : vector<1x32xf32> to vector<98x32xf32>
    %13 = arith.addf %11, %12 : vector<98x32xf32>
    %cst_10 = arith.constant 0.000000e+00 : f32
    %14 = vector.broadcast %cst_10 : f32 to vector<98x32xf32>
    %15 = arith.maximumf %13, %14 : vector<98x32xf32>
    %16 = arith.maximumf %8, %15 : vector<98x32xf32>
    %c2 = arith.constant 2 : index
    %c0_11 = arith.constant 0 : index
    %c0_12 = arith.constant 0 : index
    %17 = vector.load %arg2[%c2, %c0_11, %c0_12] : memref<4x256x32xf32, #tpu.memory_space<vmem>>, vector<1x256x32xf32>
    %18 = vector.shape_cast %17 : vector<1x256x32xf32> to vector<256x32xf32>
    %cst_13 = arith.constant dense<0.000000e+00> : vector<98x32xf32>
    %19 = tpu.matmul %0, %18, %cst_13 {dimension_numbers = #tpu.dot_dimension_numbers<[1], [0], [0], [1], [0, 0, 1, 1], [], []>} : vector<98x256xf32>, vector<256x32xf32>, vector<98x32xf32> -> vector<98x32xf32>
    %20 = vector.broadcast %1 : vector<1x32xf32> to vector<98x32xf32>
    %21 = arith.addf %19, %20 : vector<98x32xf32>
    %cst_14 = arith.constant 0.000000e+00 : f32
    %22 = vector.broadcast %cst_14 : f32 to vector<98x32xf32>
    %23 = arith.maximumf %21, %22 : vector<98x32xf32>
    %24 = arith.maximumf %16, %23 : vector<98x32xf32>
    %c3 = arith.constant 3 : index
    %c0_15 = arith.constant 0 : index
    %c0_16 = arith.constant 0 : index
    %25 = vector.load %arg2[%c3, %c0_15, %c0_16] : memref<4x256x32xf32, #tpu.memory_space<vmem>>, vector<1x256x32xf32>
    %26 = vector.shape_cast %25 : vector<1x256x32xf32> to vector<256x32xf32>
    %cst_17 = arith.constant dense<0.000000e+00> : vector<98x32xf32>
    %27 = tpu.matmul %0, %26, %cst_17 {dimension_numbers = #tpu.dot_dimension_numbers<[1], [0], [0], [1], [0, 0, 1, 1], [], []>} : vector<98x256xf32>, vector<256x32xf32>, vector<98x32xf32> -> vector<98x32xf32>
    %28 = vector.broadcast %1 : vector<1x32xf32> to vector<98x32xf32>
    %29 = arith.addf %27, %28 : vector<98x32xf32>
    %cst_18 = arith.constant 0.000000e+00 : f32
    %30 = vector.broadcast %cst_18 : f32 to vector<98x32xf32>
    %31 = arith.maximumf %29, %30 : vector<98x32xf32>
    %32 = arith.maximumf %24, %31 : vector<98x32xf32>
    %c0_19 = arith.constant 0 : index
    %c0_20 = arith.constant 0 : index
    %33 = vector.load %arg4[%c0_19, %c0_20] : memref<98x32xf32, #tpu.memory_space<vmem>>, vector<98x32xf32>
    tpu.vector_store %arg4[%c0_19, %c0_20], %32 {strides = array<i32>} : memref<98x32xf32, #tpu.memory_space<vmem>>, vector<98x32xf32>,
    return
  }
  func.func @transform_0(%arg0: i32) -> (i32, i32) {
    %c0_i32 = arith.constant 0 : i32
    %c0_i32_0 = arith.constant 0 : i32
    return %arg0, %c0_i32 : i32, i32
  }
  func.func @transform_1(%arg0: i32) -> (i32, i32, i32) {
    %c0_i32 = arith.constant 0 : i32
    %c0_i32_0 = arith.constant 0 : i32
    %c0_i32_1 = arith.constant 0 : i32
    %c0_i32_2 = arith.constant 0 : i32
    return %c0_i32, %c0_i32_0, %c0_i32_1 : i32, i32, i32
  }
  func.func @transform_2(%arg0: i32) -> (i32, i32) {
    %c0_i32 = arith.constant 0 : i32
    %c0_i32_0 = arith.constant 0 : i32
    %c0_i32_1 = arith.constant 0 : i32
    return %c0_i32, %c0_i32_0 : i32, i32
  }
  func.func @transform_3(%arg0: i32) -> (i32, i32) {
    %c0_i32 = arith.constant 0 : i32
    %c0_i32_0 = arith.constant 0 : i32
    return %arg0, %c0_i32 : i32, i32
  }
}

module attributes {stable_mosaic.version = 11 : i64} {
  func.func @_lc_chain_kernel(%arg0: i32, %arg1: memref<2x1568xf32, #tpu.memory_space<vmem>>, %arg2: memref<1568x784xbf16, #tpu.memory_space<vmem>>, %arg3: memref<1x784xf32, #tpu.memory_space<vmem>>, %arg4: memref<784x392xbf16, #tpu.memory_space<vmem>>, %arg5: memref<1x392xf32, #tpu.memory_space<vmem>>, %arg6: memref<392x10xbf16, #tpu.memory_space<vmem>>, %arg7: memref<1x10xf32, #tpu.memory_space<vmem>>, %arg8: memref<2x10xf32, #tpu.memory_space<vmem>>) attributes {dimension_semantics = [#tpu.dimension_semantics<arbitrary>], iteration_bounds = array<i64: 1>, scalar_prefetch = 0 : i64, scratch_operands = 0 : i64, tpu.core_type = #tpu.core_type<tc>, window_params = [{pipeline_mode = #tpu.pipeline_mode<synchronous>, transform_indices = @transform_0, window_bounds = array<i64: 2, 1568>}, {pipeline_mode = #tpu.pipeline_mode<synchronous>, transform_indices = @transform_1, window_bounds = array<i64: 1568, 784>}, {pipeline_mode = #tpu.pipeline_mode<synchronous>, transform_indices = @transform_2, window_bounds = array<i64: 1, 784>}, {pipeline_mode = #tpu.pipeline_mode<synchronous>, transform_indices = @transform_3, window_bounds = array<i64: 784, 392>}, {pipeline_mode = #tpu.pipeline_mode<synchronous>, transform_indices = @transform_4, window_bounds = array<i64: 1, 392>}, {pipeline_mode = #tpu.pipeline_mode<synchronous>, transform_indices = @transform_5, window_bounds = array<i64: 392, 10>}, {pipeline_mode = #tpu.pipeline_mode<synchronous>, transform_indices = @transform_6, window_bounds = array<i64: 1, 10>}, {pipeline_mode = #tpu.pipeline_mode<synchronous>, transform_indices = @transform_7, window_bounds = array<i64: 2, 10>}]} {
    %c0 = arith.constant 0 : index
    %c0_0 = arith.constant 0 : index
    %0 = vector.load %arg1[%c0, %c0_0] : memref<2x1568xf32, #tpu.memory_space<vmem>>, vector<2x1568xf32>
    %1 = arith.truncf %0 : vector<2x1568xf32> to vector<2x1568xbf16>
    %c0_1 = arith.constant 0 : index
    %c0_2 = arith.constant 0 : index
    %2 = vector.load %arg2[%c0_1, %c0_2] : memref<1568x784xbf16, #tpu.memory_space<vmem>>, vector<1568x784xbf16>
    %cst = arith.constant dense<0.000000e+00> : vector<2x784xf32>
    %3 = tpu.matmul %1, %2, %cst {dimension_numbers = #tpu.dot_dimension_numbers<[1], [0], [0], [1], [0, 0, 1, 1], [], []>} : vector<2x1568xbf16>, vector<1568x784xbf16>, vector<2x784xf32> -> vector<2x784xf32>
    %c0_3 = arith.constant 0 : index
    %c0_4 = arith.constant 0 : index
    %4 = vector.load %arg3[%c0_3, %c0_4] : memref<1x784xf32, #tpu.memory_space<vmem>>, vector<1x784xf32>
    %5 = vector.broadcast %4 : vector<1x784xf32> to vector<2x784xf32>
    %6 = arith.addf %3, %5 : vector<2x784xf32>
    %cst_5 = arith.constant 0.000000e+00 : f32
    %7 = vector.broadcast %cst_5 : f32 to vector<2x784xf32>
    %8 = arith.maximumf %6, %7 : vector<2x784xf32>
    %9 = arith.truncf %8 : vector<2x784xf32> to vector<2x784xbf16>
    %c0_6 = arith.constant 0 : index
    %c0_7 = arith.constant 0 : index
    %10 = vector.load %arg4[%c0_6, %c0_7] : memref<784x392xbf16, #tpu.memory_space<vmem>>, vector<784x392xbf16>
    %cst_8 = arith.constant dense<0.000000e+00> : vector<2x392xf32>
    %11 = tpu.matmul %9, %10, %cst_8 {dimension_numbers = #tpu.dot_dimension_numbers<[1], [0], [0], [1], [0, 0, 1, 1], [], []>} : vector<2x784xbf16>, vector<784x392xbf16>, vector<2x392xf32> -> vector<2x392xf32>
    %c0_9 = arith.constant 0 : index
    %c0_10 = arith.constant 0 : index
    %12 = vector.load %arg5[%c0_9, %c0_10] : memref<1x392xf32, #tpu.memory_space<vmem>>, vector<1x392xf32>
    %13 = vector.broadcast %12 : vector<1x392xf32> to vector<2x392xf32>
    %14 = arith.addf %11, %13 : vector<2x392xf32>
    %cst_11 = arith.constant 0.000000e+00 : f32
    %15 = vector.broadcast %cst_11 : f32 to vector<2x392xf32>
    %16 = arith.maximumf %14, %15 : vector<2x392xf32>
    %17 = arith.truncf %16 : vector<2x392xf32> to vector<2x392xbf16>
    %c0_12 = arith.constant 0 : index
    %c0_13 = arith.constant 0 : index
    %18 = vector.load %arg6[%c0_12, %c0_13] : memref<392x10xbf16, #tpu.memory_space<vmem>>, vector<392x10xbf16>
    %cst_14 = arith.constant dense<0.000000e+00> : vector<2x10xf32>
    %19 = tpu.matmul %17, %18, %cst_14 {dimension_numbers = #tpu.dot_dimension_numbers<[1], [0], [0], [1], [0, 0, 1, 1], [], []>} : vector<2x392xbf16>, vector<392x10xbf16>, vector<2x10xf32> -> vector<2x10xf32>
    %c0_15 = arith.constant 0 : index
    %c0_16 = arith.constant 0 : index
    %20 = vector.load %arg7[%c0_15, %c0_16] : memref<1x10xf32, #tpu.memory_space<vmem>>, vector<1x10xf32>
    %21 = vector.broadcast %20 : vector<1x10xf32> to vector<2x10xf32>
    %22 = arith.addf %19, %21 : vector<2x10xf32>
    %c0_17 = arith.constant 0 : index
    %c0_18 = arith.constant 0 : index
    %23 = vector.load %arg8[%c0_17, %c0_18] : memref<2x10xf32, #tpu.memory_space<vmem>>, vector<2x10xf32>
    tpu.vector_store %arg8[%c0_17, %c0_18], %22 {strides = array<i32>} : memref<2x10xf32, #tpu.memory_space<vmem>>, vector<2x10xf32>,
    return
  }
  func.func @transform_0(%arg0: i32) -> (i32, i32) {
    %c0_i32 = arith.constant 0 : i32
    %c0_i32_0 = arith.constant 0 : i32
    %c0_i32_1 = arith.constant 0 : i32
    return %c0_i32, %c0_i32_0 : i32, i32
  }
  func.func @transform_1(%arg0: i32) -> (i32, i32) {
    %c0_i32 = arith.constant 0 : i32
    %c0_i32_0 = arith.constant 0 : i32
    %c0_i32_1 = arith.constant 0 : i32
    return %c0_i32, %c0_i32_0 : i32, i32
  }
  func.func @transform_2(%arg0: i32) -> (i32, i32) {
    %c0_i32 = arith.constant 0 : i32
    %c0_i32_0 = arith.constant 0 : i32
    %c0_i32_1 = arith.constant 0 : i32
    return %c0_i32, %c0_i32_0 : i32, i32
  }
  func.func @transform_3(%arg0: i32) -> (i32, i32) {
    %c0_i32 = arith.constant 0 : i32
    %c0_i32_0 = arith.constant 0 : i32
    %c0_i32_1 = arith.constant 0 : i32
    return %c0_i32, %c0_i32_0 : i32, i32
  }
  func.func @transform_4(%arg0: i32) -> (i32, i32) {
    %c0_i32 = arith.constant 0 : i32
    %c0_i32_0 = arith.constant 0 : i32
    %c0_i32_1 = arith.constant 0 : i32
    return %c0_i32, %c0_i32_0 : i32, i32
  }
  func.func @transform_5(%arg0: i32) -> (i32, i32) {
    %c0_i32 = arith.constant 0 : i32
    %c0_i32_0 = arith.constant 0 : i32
    %c0_i32_1 = arith.constant 0 : i32
    return %c0_i32, %c0_i32_0 : i32, i32
  }
  func.func @transform_6(%arg0: i32) -> (i32, i32) {
    %c0_i32 = arith.constant 0 : i32
    %c0_i32_0 = arith.constant 0 : i32
    %c0_i32_1 = arith.constant 0 : i32
    return %c0_i32, %c0_i32_0 : i32, i32
  }
  func.func @transform_7(%arg0: i32) -> (i32, i32) {
    %c0_i32 = arith.constant 0 : i32
    %c0_i32_0 = arith.constant 0 : i32
    %c0_i32_1 = arith.constant 0 : i32
    return %c0_i32, %c0_i32_0 : i32, i32
  }
}

</mosaic_0001>

<bundles_post_ra>
// kernel: production_cnn2_forward.3
= control target key start
LH: loop header
LB: loop body
LE: loop exit
PB: predicated region body
PF: predicated region fallthrough
CT: control target
= control target key end

     0   :  { %8 = vsyncpa [#allocation3], 0  ;;  %s4573_s0 = inlined_call_operand.vmem [shape: f32[392,16], index: 0, kind: input, shape index: {}]   ;;  %s4574_s1 = inlined_call_operand.hbm [shape: f32[4,16,16], index: 1, kind: input, shape index: {}]   ;;  %s4575_s2 = inlined_call_operand.hbm [shape: f32[1,16], index: 2, kind: input, shape index: {}]   ;;  %s4576_s3 = inlined_call_operand.vmem [shape: f32[392,16], index: 3, kind: output, shape index: {}]  }
   0x1   :  { %9 = vsyncpa [#allocation5], 0  ;;  %s2979_s12 = smov [#allocation2]   ;;  %s2931_s16 = scalar_lea.hbm %s4574_s1, 1024 }
   0x2   :  { %s17_s13 = sshll.u32 %s2979_s12, 4  ;;  %p2932_p0 = scmp.ne.s32.totalorder %s4574_s1, %s2931_s16  ;;  %s18_s13 = int_to_ptr.vmem [resolvable:$true] %s17_s13 }
   0x3   :  { %p2935_p1 = scmp.lt.u32.totalorder %s2931_s16, %s4574_s1 }
   0x5   :  { %p2937_p2 = pnand %p2935_p1, %p2932_p0 }
   0x7   :  { %2940 = shalt.err (!%p2937_p2)
}
   0x8   :  { %s2941_s21 = scalar_lea.vmem %s18_s13, 1024  ;;  %p2946_p4 = scmp.lt.s32.totalorder %s18_s13, %s18_s13 }
   0x9   :  { %p2942_p3 = scmp.ne.s32.totalorder %s18_s13, %s2941_s21  ;;  %p2947_p5 = scmp.lt.s32.totalorder %s2941_s21, %s2941_s21 }
   0xb   :  { %p2948_p6 = por %p2947_p5, %p2946_p4 }
   0xd   :  { %p2949_p7 = pnand %p2948_p6, %p2942_p3 }
   0xf   :  { %2952 = shalt.err (!%p2949_p7)
}
  0x10   :  { %s2980_s22 = smov 128   ;;  %s2981_s23 = smov 8  }
  0x11   :  { %23 = dma.hbm_to_vmem [thread:$0]  %s4574_s1, 1024, %s18_s13, [#allocation3], %s2980_s22, %s2980_s22, %s2981_s23  }
  0x12   :  { %s2982_s26 = smov [#allocation4]   ;;  %s2953_s30 = scalar_lea.hbm %s4575_s2, 16 }
  0x13   :  { %s30_s27 = sshll.u32 %s2982_s26, 4  ;;  %p2954_p8 = scmp.ne.s32.totalorder %s4575_s2, %s2953_s30  ;;  %s31_s27 = int_to_ptr.vmem [resolvable:$true] %s30_s27 }
  0x14   :  { %p2957_p9 = scmp.lt.u32.totalorder %s2953_s30, %s4575_s2 }
  0x16   :  { %p2959_p10 = pnand %p2957_p9, %p2954_p8 }
  0x18   :  { %2962 = shalt.err (!%p2959_p10)
}
  0x19   :  { %s2963_s8 = scalar_lea.vmem %s31_s27, 16  ;;  %s2967_s1 = scalar_lea.vmem %s31_s27, 32 }
  0x1a   :  { %p2964_p11 = scmp.ne.s32.totalorder %s31_s27, %s2963_s8  ;;  %p2968_p12 = scmp.lt.s32.totalorder %s31_s27, %s31_s27 }
  0x1b   :  { %p2969_p13 = scmp.lt.s32.totalorder %s2967_s1, %s2963_s8 }
  0x1d   :  { %p2970_p0 = por %p2969_p13, %p2968_p12 }
  0x1f   :  { %p2971_p1 = pnand %p2970_p0, %p2964_p11 }
  0x21   :  { %2974 = shalt.err (!%p2971_p1)
}
  0x22   :  { %33 = dma.hbm_to_vmem [thread:$0]  %s4575_s2, 16, %s31_s27, [#allocation5]  }
  0x23   :  { %2975 = dma.done.wait [#allocation3], 1024  }
  0x24   :  { %2976 = vsyncadd [#allocation3], 4294966272 }
  0x25   :  { %2977 = dma.done.wait [#allocation5], 16  }
  0x26   :  { %2978 = vsyncadd [#allocation5], 4294967280  ;;  %v2983_v0 = vmov 0.0|0.0   ;;  %vm2984_vm0 = vmmov 0   ;;  %v2985_v1 = vmov 0.0   ;;  %v90_v2 = vld [vmem:[#allocation2] sm:$0xff] }
  0x27   :  { %2898 = vmatprep.subr.bf16.mxu0 %v2983_v0  ;;  %2901 = vmatprep.subr.bf16.mxu1 %v2983_v0  ;;  %v91_v3 = vld [vmem:[#allocation2 + $0x8] sm:$0xff]  ;;  %v606_v4 = vld [vmem:[#allocation2 + $0x10] sm:$0xff]  ;;  %v607_v6 = vld [vmem:[#allocation2 + $0x18] sm:$0xff]  ;;  %vm98_vm1 = vcmask 130048  }
  0x28   :  { %2298 = vmatprep.mubr.msk.f32.mxu0 %vm2984_vm0, %v2985_v1  ;;  %2449 = vmatprep.mubr.msk.f32.mxu1 %vm2984_vm0, %v2985_v1  ;;  %v2899_v5 = vpack.c.bf16 %v91_v3, %v90_v2  ;;  %v1017_v7 = vld [vmem:[#allocation2 + $0x20] sm:$0xff]  ;;  %v2902_v8 = vpack.c.bf16 %v607_v6, %v606_v4  ;;  %v1018_v9 = vld [vmem:[#allocation2 + $0x28] sm:$0xff]  ;;  %v1428_v10 = vld [vmem:[#allocation2 + $0x30] sm:$0xff] }
  0x29   :  { %v1429_v11 = vld [vmem:[#allocation2 + $0x38] sm:$0xff]  ;;  %v3037_v12 = vld [vmem:[%s4573_s0] sm:$0xff]  ;;  %v2905_v13 = vpack.c.bf16 %v1018_v9, %v1017_v7  ;;  %v3046_v15 = vld [vmem:[%s4573_s0 + $0x8] sm:$0xff] }
  0x2a   :  { %2900 = vmatpush3.bf16.msra.mxu0 %v2899_v5  ;;  %2903 = vmatpush3.bf16.msra.mxu1 %v2902_v8  ;;  %v2908_v14 = vpack.c.bf16 %v1429_v11, %v1428_v10  ;;  %v3061_v16 = vld [vmem:[%s4573_s0 + $0x10] sm:$0xff]  ;;  %v3074_v17 = vld [vmem:[%s4573_s0 + $0x18] sm:$0xff]  ;;  %v3087_v18 = vld [vmem:[%s4573_s0 + $0x20] sm:$0xff] }
  0x2b   :  { %2904 = vmatprep.subr.bf16.mxu0 %v2983_v0  ;;  %2907 = vmatprep.subr.bf16.mxu1 %v2983_v0  ;;  %v3100_v19 = vld [vmem:[%s4573_s0 + $0x28] sm:$0xff]  ;;  %v3113_v20 = vld [vmem:[%s4573_s0 + $0x30] sm:$0xff]  ;;  %v3126_v21 = vld [vmem:[%s4573_s0 + $0x38] sm:$0xff] }
  0x2c   :  { %v3139_v22 = vld [vmem:[%s4573_s0 + $0x40] sm:$0xff]  ;;  %v3152_v23 = vld [vmem:[%s4573_s0 + $0x48] sm:$0xff]  ;;  %v3165_v24 = vld [vmem:[%s4573_s0 + $0x50] sm:$0xff] }
  0x2d   :  { %2299 = vmatmul.mubr.msk.f32.vlgmr.msra.gmra.mrb[0].mxu0 %vm98_vm1, %v3037_v12  ;;  %2450 = vmatmul.mubr.msk.f32.vlgmr.msra.gmra.mrb[0].mxu1 %vm98_vm1, %v3037_v12  ;;  %v3178_v25 = vld [vmem:[%s4573_s0 + $0x58] sm:$0xff]  ;;  %v3191_v26 = vld [vmem:[%s4573_s0 + $0x60] sm:$0xff]  ;;  %v3204_v27 = vld [vmem:[%s4573_s0 + $0x68] sm:$0xff] }
  0x2e   :  { %2906 = vmatpush3.bf16.msra.mxu0 %v2905_v13  ;;  %2301 = vmatprep.mubr.msk.f32.mxu0 %vm2984_vm0, %v2985_v1  ;;  %v3217_v28 = vld [vmem:[%s4573_s0 + $0x70] sm:$0xff]  ;;  %v3230_v29 = vld [vmem:[%s4573_s0 + $0x78] sm:$0xff]  ;;  %v3243_v30 = vld [vmem:[%s4573_s0 + $0x80] sm:$0xff] }
  0x2f   :  { %2909 = vmatpush3.bf16.msra.mxu1 %v2908_v14  ;;  %2452 = vmatprep.mubr.msk.f32.mxu1 %vm2984_vm0, %v2985_v1  ;;  %v3256_v31 = vld [vmem:[%s4573_s0 + $0x88] sm:$0xff]  ;;  %v3269_v32 = vld [vmem:[%s4573_s0 + $0x90] sm:$0xff]  ;;  %v3282_v33 = vld [vmem:[%s4573_s0 + $0x98] sm:$0xff] }
  0x30   :  { %v3295_v34 = vld [vmem:[%s4573_s0 + $0xa0] sm:$0xff]  ;;  %v3308_v35 = vld [vmem:[%s4573_s0 + $0xa8] sm:$0xff]  ;;  %v3321_v36 = vld [vmem:[%s4573_s0 + $0xb0] sm:$0xff] }
  0x31   :  { %2302 = vmatmul.mubr.msk.f32.gmra.mrb[2].mxu0 %vm98_vm1, %v3046_v15  ;;  %2453 = vmatmul.mubr.msk.f32.gmra.mrb[2].mxu1 %vm98_vm1, %v3046_v15  ;;  %v3334_v37 = vld [vmem:[%s4573_s0 + $0xb8] sm:$0xff]  ;;  %v3347_v38 = vld [vmem:[%s4573_s0 + $0xc0] sm:$0xff]  ;;  %v3360_v39 = vld [vmem:[%s4573_s0 + $0xc8] sm:$0xff] }
  0x32   :  { %2304 = vmatprep.mubr.msk.f32.mxu0 %vm2984_vm0, %v2985_v1  ;;  %2455 = vmatprep.mubr.msk.f32.mxu1 %vm2984_vm0, %v2985_v1  ;;  %v3373_v40 = vld [vmem:[%s4573_s0 + $0xd0] sm:$0xff]  ;;  %v3386_v41 = vld [vmem:[%s4573_s0 + $0xd8] sm:$0xff]  ;;  %v3399_v42 = vld [vmem:[%s4573_s0 + $0xe0] sm:$0xff] }
  0x33   :  { %v3412_v43 = vld [vmem:[%s4573_s0 + $0xe8] sm:$0xff]  ;;  %v3425_v44 = vld [vmem:[%s4573_s0 + $0xf0] sm:$0xff]  ;;  %v3438_v45 = vld [vmem:[%s4573_s0 + $0xf8] sm:$0xff] }
  0x34   :  { %v3451_v46 = vld [vmem:[%s4573_s0 + $0x100] sm:$0xff]  ;;  %v3464_v47 = vld [vmem:[%s4573_s0 + $0x108] sm:$0xff]  ;;  %v3477_v48 = vld [vmem:[%s4573_s0 + $0x110] sm:$0xff] }
  0x35   :  { %2305 = vmatmul.mubr.msk.f32.gmra.mrb[4].mxu0 %vm98_vm1, %v3061_v16  ;;  %2456 = vmatmul.mubr.msk.f32.gmra.mrb[4].mxu1 %vm98_vm1, %v3061_v16  ;;  %v3490_v49 = vld [vmem:[%s4573_s0 + $0x118] sm:$0xff]  ;;  %v3503_v50 = vld [vmem:[%s4573_s0 + $0x120] sm:$0xff]  ;;  %v3516_v51 = vld [vmem:[%s4573_s0 + $0x128] sm:$0xff] }
  0x36   :  { %2307 = vmatprep.mubr.msk.f32.mxu0 %vm2984_vm0, %v2985_v1  ;;  %2458 = vmatprep.mubr.msk.f32.mxu1 %vm2984_vm0, %v2985_v1  ;;  %v78_v52 = vld [vmem:[%s4573_s0 + $0x130] sm:$0xff]  ;;  %v79_v53 = vld [vmem:[%s4573_s0 + $0x138] sm:$0xff]  ;;  %v80_v54 = vld [vmem:[%s4573_s0 + $0x140] sm:$0xff] }
  0x37   :  { %v81_v55 = vld [vmem:[%s4573_s0 + $0x148] sm:$0xff]  ;;  %v82_v56 = vld [vmem:[%s4573_s0 + $0x150] sm:$0xff]  ;;  %v83_v57 = vld [vmem:[%s4573_s0 + $0x158] sm:$0xff] }
  0x38   :  { %v84_v58 = vld [vmem:[%s4573_s0 + $0x160] sm:$0xff]  ;;  %v85_v59 = vld [vmem:[%s4573_s0 + $0x168] sm:$0xff]  ;;  %v86_v60 = vld [vmem:[%s4573_s0 + $0x170] sm:$0xff] }
  0x39   :  { %2308 = vmatmul.mubr.msk.f32.gmra.mrb[6].mxu0 %vm98_vm1, %v3074_v17  ;;  %2459 = vmatmul.mubr.msk.f32.gmra.mrb[6].mxu1 %vm98_vm1, %v3074_v17  ;;  %v87_v61 = vld [vmem:[%s4573_s0 + $0x178] sm:$0xff]  ;;  %v88_v62 = vld [vmem:[%s4573_s0 + $0x180] sm:$0xff] }
  0x3a   :  { %2310 = vmatprep.mubr.msk.f32.mxu0 %vm2984_vm0, %v2985_v1  ;;  %2461 = vmatprep.mubr.msk.f32.mxu1 %vm2984_vm0, %v2985_v1  ;;  %v3655_v63 = vld [vmem:[#allocation4] ss:$0 sm:$0xff] }
  0x3d   :  { %2311 = vmatmul.mubr.msk.f32.gmra.mrb[8].mxu0 %vm98_vm1, %v3087_v18  ;;  %2462 = vmatmul.mubr.msk.f32.gmra.mrb[8].mxu1 %vm98_vm1, %v3087_v18 }
  0x3e   :  { %2313 = vmatprep.mubr.msk.f32.mxu0 %vm2984_vm0, %v2985_v1  ;;  %2464 = vmatprep.mubr.msk.f32.mxu1 %vm2984_vm0, %v2985_v1 }
  0x41   :  { %2314 = vmatmul.mubr.msk.f32.gmra.mrb[10].mxu0 %vm98_vm1, %v3100_v19  ;;  %2465 = vmatmul.mubr.msk.f32.gmra.mrb[10].mxu1 %vm98_vm1, %v3100_v19 }
  0x42   :  { %2316 = vmatprep.mubr.msk.f32.mxu0 %vm2984_vm0, %v2985_v1  ;;  %2467 = vmatprep.mubr.msk.f32.mxu1 %vm2984_vm0, %v2985_v1 }
  0x45   :  { %2317 = vmatmul.mubr.msk.f32.gmra.mrb[12].mxu0 %vm98_vm1, %v3113_v20  ;;  %2468 = vmatmul.mubr.msk.f32.gmra.mrb[12].mxu1 %vm98_vm1, %v3113_v20 }
  0x46   :  { %2319 = vmatprep.mubr.msk.f32.mxu0 %vm2984_vm0, %v2985_v1  ;;  %2470 = vmatprep.mubr.msk.f32.mxu1 %vm2984_vm0, %v2985_v1 }
  0x49   :  { %2320 = vmatmul.mubr.msk.f32.gmra.mrb[14].mxu0 %vm98_vm1, %v3126_v21  ;;  %2471 = vmatmul.mubr.msk.f32.gmra.mrb[14].mxu1 %vm98_vm1, %v3126_v21 }
  0x4a   :  { %2322 = vmatprep.mubr.msk.f32.mxu0 %vm2984_vm0, %v2985_v1  ;;  %2473 = vmatprep.mubr.msk.f32.mxu1 %vm2984_vm0, %v2985_v1 }
  0x4d   :  { %2323 = vmatmul.mubr.msk.f32.gmra.mrb[16].mxu0 %vm98_vm1, %v3139_v22  ;;  %2474 = vmatmul.mubr.msk.f32.gmra.mrb[16].mxu1 %vm98_vm1, %v3139_v22 }
  0x4e   :  { %2325 = vmatprep.mubr.msk.f32.mxu0 %vm2984_vm0, %v2985_v1  ;;  %2476 = vmatprep.mubr.msk.f32.mxu1 %vm2984_vm0, %v2985_v1 }
  0x51   :  { %2326 = vmatmul.mubr.msk.f32.gmra.mrb[18].mxu0 %vm98_vm1, %v3152_v23  ;;  %2477 = vmatmul.mubr.msk.f32.gmra.mrb[18].mxu1 %vm98_vm1, %v3152_v23 }
  0x52   :  { %2328 = vmatprep.mubr.msk.f32.mxu0 %vm2984_vm0, %v2985_v1  ;;  %2479 = vmatprep.mubr.msk.f32.mxu1 %vm2984_vm0, %v2985_v1 }
  0x55   :  { %2329 = vmatmul.mubr.msk.f32.gmra.mrb[20].mxu0 %vm98_vm1, %v3165_v24  ;;  %2480 = vmatmul.mubr.msk.f32.gmra.mrb[20].mxu1 %vm98_vm1, %v3165_v24 }
  0x56   :  { %2331 = vmatprep.mubr.msk.f32.mxu0 %vm2984_vm0, %v2985_v1  ;;  %2482 = vmatprep.mubr.msk.f32.mxu1 %vm2984_vm0, %v2985_v1 }
  0x59   :  { %2332 = vmatmul.mubr.msk.f32.gmra.mrb[22].mxu0 %vm98_vm1, %v3178_v25  ;;  %2483 = vmatmul.mubr.msk.f32.gmra.mrb[22].mxu1 %vm98_vm1, %v3178_v25 }
  0x5a   :  { %2334 = vmatprep.mubr.msk.f32.mxu0 %vm2984_vm0, %v2985_v1  ;;  %2485 = vmatprep.mubr.msk.f32.mxu1 %vm2984_vm0, %v2985_v1 }
  0x5d   :  { %2335 = vmatmul.mubr.msk.f32.gmra.mrb[24].mxu0 %vm98_vm1, %v3191_v26  ;;  %2486 = vmatmul.mubr.msk.f32.gmra.mrb[24].mxu1 %vm98_vm1, %v3191_v26 }
  0x5e   :  { %2337 = vmatprep.mubr.msk.f32.mxu0 %vm2984_vm0, %v2985_v1  ;;  %2488 = vmatprep.mubr.msk.f32.mxu1 %vm2984_vm0, %v2985_v1 }
  0x61   :  { %2338 = vmatmul.mubr.msk.f32.gmra.mrb[26].mxu0 %vm98_vm1, %v3204_v27  ;;  %2489 = vmatmul.mubr.msk.f32.gmra.mrb[26].mxu1 %vm98_vm1, %v3204_v27 }
  0x62   :  { %2340 = vmatprep.mubr.msk.f32.mxu0 %vm2984_vm0, %v2985_v1  ;;  %2491 = vmatprep.mubr.msk.f32.mxu1 %vm2984_vm0, %v2985_v1 }
  0x65   :  { %2341 = vmatmul.mubr.msk.f32.gmra.mrb[28].mxu0 %vm98_vm1, %v3217_v28  ;;  %2492 = vmatmul.mubr.msk.f32.gmra.mrb[28].mxu1 %vm98_vm1, %v3217_v28 }
  0x66   :  { %2343 = vmatprep.mubr.msk.f32.mxu0 %vm2984_vm0, %v2985_v1  ;;  %2494 = vmatprep.mubr.msk.f32.mxu1 %vm2984_vm0, %v2985_v1 }
  0x69   :  { %2344 = vmatmul.mubr.msk.f32.gmra.mrb[30].mxu0 %vm98_vm1, %v3230_v29  ;;  %2495 = vmatmul.mubr.msk.f32.gmra.mrb[30].mxu1 %vm98_vm1, %v3230_v29 }
  0x6a   :  { %2346 = vmatprep.mubr.msk.f32.mxu0 %vm2984_vm0, %v2985_v1  ;;  %2497 = vmatprep.mubr.msk.f32.mxu1 %vm2984_vm0, %v2985_v1 }
  0x6d   :  { %2347 = vmatmul.mubr.msk.f32.gmra.mrb[32].mxu0 %vm98_vm1, %v3243_v30  ;;  %2498 = vmatmul.mubr.msk.f32.gmra.mrb[32].mxu1 %vm98_vm1, %v3243_v30 }
  0x6e   :  { %2349 = vmatprep.mubr.msk.f32.mxu0 %vm2984_vm0, %v2985_v1  ;;  %2500 = vmatprep.mubr.msk.f32.mxu1 %vm2984_vm0, %v2985_v1 }
  0x71   :  { %2350 = vmatmul.mubr.msk.f32.gmra.mrb[34].mxu0 %vm98_vm1, %v3256_v31  ;;  %2501 = vmatmul.mubr.msk.f32.gmra.mrb[34].mxu1 %vm98_vm1, %v3256_v31 }
  0x72   :  { %2352 = vmatprep.mubr.msk.f32.mxu0 %vm2984_vm0, %v2985_v1  ;;  %2503 = vmatprep.mubr.msk.f32.mxu1 %vm2984_vm0, %v2985_v1 }
  0x75   :  { %2353 = vmatmul.mubr.msk.f32.gmra.mrb[36].mxu0 %vm98_vm1, %v3269_v32  ;;  %2504 = vmatmul.mubr.msk.f32.gmra.mrb[36].mxu1 %vm98_vm1, %v3269_v32 }
  0x76   :  { %2355 = vmatprep.mubr.msk.f32.mxu0 %vm2984_vm0, %v2985_v1  ;;  %2506 = vmatprep.mubr.msk.f32.mxu1 %vm2984_vm0, %v2985_v1 }
  0x79   :  { %2356 = vmatmul.mubr.msk.f32.gmra.mrb[38].mxu0 %vm98_vm1, %v3282_v33  ;;  %2507 = vmatmul.mubr.msk.f32.gmra.mrb[38].mxu1 %vm98_vm1, %v3282_v33 }
  0x7a   :  { %2358 = vmatprep.mubr.msk.f32.mxu0 %vm2984_vm0, %v2985_v1  ;;  %2509 = vmatprep.mubr.msk.f32.mxu1 %vm2984_vm0, %v2985_v1 }
  0x7d   :  { %2359 = vmatmul.mubr.msk.f32.gmra.mrb[40].mxu0 %vm98_vm1, %v3295_v34  ;;  %2510 = vmatmul.mubr.msk.f32.gmra.mrb[40].mxu1 %vm98_vm1, %v3295_v34 }
  0x7e   :  { %2361 = vmatprep.mubr.msk.f32.mxu0 %vm2984_vm0, %v2985_v1  ;;  %2512 = vmatprep.mubr.msk.f32.mxu1 %vm2984_vm0, %v2985_v1 }
  0x81   :  { %2362 = vmatmul.mubr.msk.f32.gmra.mrb[42].mxu0 %vm98_vm1, %v3308_v35  ;;  %2513 = vmatmul.mubr.msk.f32.gmra.mrb[42].mxu1 %vm98_vm1, %v3308_v35 }
  0x82   :  { %2364 = vmatprep.mubr.msk.f32.mxu0 %vm2984_vm0, %v2985_v1  ;;  %2515 = vmatprep.mubr.msk.f32.mxu1 %vm2984_vm0, %v2985_v1 }
  0x85   :  { %2365 = vmatmul.mubr.msk.f32.gmra.mrb[44].mxu0 %vm98_vm1, %v3321_v36  ;;  %2516 = vmatmul.mubr.msk.f32.gmra.mrb[44].mxu1 %vm98_vm1, %v3321_v36 }
  0x86   :  { %2367 = vmatprep.mubr.msk.f32.mxu0 %vm2984_vm0, %v2985_v1  ;;  %2518 = vmatprep.mubr.msk.f32.mxu1 %vm2984_vm0, %v2985_v1 }
  0x89   :  { %2368 = vmatmul.mubr.msk.f32.gmra.mrb[46].mxu0 %vm98_vm1, %v3334_v37  ;;  %2519 = vmatmul.mubr.msk.f32.gmra.mrb[46].mxu1 %vm98_vm1, %v3334_v37 }
  0x8a   :  { %2370 = vmatprep.mubr.msk.f32.mxu0 %vm2984_vm0, %v2985_v1  ;;  %2521 = vmatprep.mubr.msk.f32.mxu1 %vm2984_vm0, %v2985_v1 }
  0x8d   :  { %2371 = vmatmul.mubr.msk.f32.gmra.mrb[48].mxu0 %vm98_vm1, %v3347_v38  ;;  %2522 = vmatmul.mubr.msk.f32.gmra.mrb[48].mxu1 %vm98_vm1, %v3347_v38 }
  0x8e   :  { %2373 = vmatprep.mubr.msk.f32.mxu0 %vm2984_vm0, %v2985_v1  ;;  %2524 = vmatprep.mubr.msk.f32.mxu1 %vm2984_vm0, %v2985_v1 }
  0x91   :  { %2374 = vmatmul.mubr.msk.f32.gmra.mrb[50].mxu0 %vm98_vm1, %v3360_v39  ;;  %2525 = vmatmul.mubr.msk.f32.gmra.mrb[50].mxu1 %vm98_vm1, %v3360_v39 }
  0x92   :  { %2376 = vmatprep.mubr.msk.f32.mxu0 %vm2984_vm0, %v2985_v1  ;;  %2527 = vmatprep.mubr.msk.f32.mxu1 %vm2984_vm0, %v2985_v1 }
  0x95   :  { %2377 = vmatmul.mubr.msk.f32.gmra.mrb[52].mxu0 %vm98_vm1, %v3373_v40  ;;  %2528 = vmatmul.mubr.msk.f32.gmra.mrb[52].mxu1 %vm98_vm1, %v3373_v40 }
  0x96   :  { %2379 = vmatprep.mubr.msk.f32.mxu0 %vm2984_vm0, %v2985_v1  ;;  %2530 = vmatprep.mubr.msk.f32.mxu1 %vm2984_vm0, %v2985_v1 }
  0x99   :  { %2380 = vmatmul.mubr.msk.f32.gmra.mrb[54].mxu0 %vm98_vm1, %v3386_v41  ;;  %2531 = vmatmul.mubr.msk.f32.gmra.mrb[54].mxu1 %vm98_vm1, %v3386_v41 }
  0x9a   :  { %2382 = vmatprep.mubr.msk.f32.mxu0 %vm2984_vm0, %v2985_v1  ;;  %2533 = vmatprep.mubr.msk.f32.mxu1 %vm2984_vm0, %v2985_v1 }
  0x9d   :  { %2383 = vmatmul.mubr.msk.f32.gmra.mrb[56].mxu0 %vm98_vm1, %v3399_v42  ;;  %2534 = vmatmul.mubr.msk.f32.gmra.mrb[56].mxu1 %vm98_vm1, %v3399_v42 }
  0x9e   :  { %2385 = vmatprep.mubr.msk.f32.mxu0 %vm2984_vm0, %v2985_v1  ;;  %2536 = vmatprep.mubr.msk.f32.mxu1 %vm2984_vm0, %v2985_v1 }
  0xa1   :  { %2386 = vmatmul.mubr.msk.f32.gmra.mrb[58].mxu0 %vm98_vm1, %v3412_v43  ;;  %2537 = vmatmul.mubr.msk.f32.gmra.mrb[58].mxu1 %vm98_vm1, %v3412_v43 }
  0xa2   :  { %2388 = vmatprep.mubr.msk.f32.mxu0 %vm2984_vm0, %v2985_v1  ;;  %2539 = vmatprep.mubr.msk.f32.mxu1 %vm2984_vm0, %v2985_v1 }
  0xa5   :  { %2389 = vmatmul.mubr.msk.f32.gmra.mrb[60].mxu0 %vm98_vm1, %v3425_v44  ;;  %2540 = vmatmul.mubr.msk.f32.gmra.mrb[60].mxu1 %vm98_vm1, %v3425_v44 }
  0xa6   :  { %2391 = vmatprep.mubr.msk.f32.mxu0 %vm2984_vm0, %v2985_v1  ;;  %2542 = vmatprep.mubr.msk.f32.mxu1 %vm2984_vm0, %v2985_v1 }
  0xa9   :  { %2392 = vmatmul.mubr.msk.f32.gmra.mrb[62].mxu0 %vm98_vm1, %v3438_v45  ;;  %2543 = vmatmul.mubr.msk.f32.gmra.mrb[62].mxu1 %vm98_vm1, %v3438_v45 }
  0xaa   :  { %2394 = vmatprep.mubr.msk.f32.mxu0 %vm2984_vm0, %v2985_v1  ;;  %2545 = vmatprep.mubr.msk.f32.mxu1 %vm2984_vm0, %v2985_v1 }
  0xad   :  { %2395 = vmatmul.mubr.msk.f32.gmra.mrb[64].mxu0 %vm98_vm1, %v3451_v46  ;;  %2546 = vmatmul.mubr.msk.f32.gmra.mrb[64].mxu1 %vm98_vm1, %v3451_v46 }
  0xae   :  { %2397 = vmatprep.mubr.msk.f32.mxu0 %vm2984_vm0, %v2985_v1  ;;  %2548 = vmatprep.mubr.msk.f32.mxu1 %vm2984_vm0, %v2985_v1 }
  0xb1   :  { %2398 = vmatmul.mubr.msk.f32.gmra.mrb[66].mxu0 %vm98_vm1, %v3464_v47  ;;  %2549 = vmatmul.mubr.msk.f32.gmra.mrb[66].mxu1 %vm98_vm1, %v3464_v47 }
  0xb2   :  { %2400 = vmatprep.mubr.msk.f32.mxu0 %vm2984_vm0, %v2985_v1  ;;  %2551 = vmatprep.mubr.msk.f32.mxu1 %vm2984_vm0, %v2985_v1 }
  0xb5   :  { %2401 = vmatmul.mubr.msk.f32.gmra.mrb[68].mxu0 %vm98_vm1, %v3477_v48  ;;  %2552 = vmatmul.mubr.msk.f32.gmra.mrb[68].mxu1 %vm98_vm1, %v3477_v48 }
  0xb6   :  { %2403 = vmatprep.mubr.msk.f32.mxu0 %vm2984_vm0, %v2985_v1  ;;  %2554 = vmatprep.mubr.msk.f32.mxu1 %vm2984_vm0, %v2985_v1 }
  0xb9   :  { %2404 = vmatmul.mubr.msk.f32.gmra.mrb[70].mxu0 %vm98_vm1, %v3490_v49  ;;  %2555 = vmatmul.mubr.msk.f32.gmra.mrb[70].mxu1 %vm98_vm1, %v3490_v49 }
  0xba   :  { %2406 = vmatprep.mubr.msk.f32.mxu0 %vm2984_vm0, %v2985_v1  ;;  %2557 = vmatprep.mubr.msk.f32.mxu1 %vm2984_vm0, %v2985_v1 }
  0xbd   :  { %2407 = vmatmul.mubr.msk.f32.gmra.mrb[72].mxu0 %vm98_vm1, %v3503_v50  ;;  %2558 = vmatmul.mubr.msk.f32.gmra.mrb[72].mxu1 %vm98_vm1, %v3503_v50 }
  0xbe   :  { %2409 = vmatprep.mubr.msk.f32.mxu0 %vm2984_vm0, %v2985_v1  ;;  %2560 = vmatprep.mubr.msk.f32.mxu1 %vm2984_vm0, %v2985_v1 }
  0xc1   :  { %2410 = vmatmul.mubr.msk.f32.gmra.mrb[74].mxu0 %vm98_vm1, %v3516_v51  ;;  %2561 = vmatmul.mubr.msk.f32.gmra.mrb[74].mxu1 %vm98_vm1, %v3516_v51 }
  0xc2   :  { %2412 = vmatprep.mubr.msk.f32.mxu0 %vm2984_vm0, %v2985_v1  ;;  %2563 = vmatprep.mubr.msk.f32.mxu1 %vm2984_vm0, %v2985_v1 }
  0xc5   :  { %2413 = vmatmul.mubr.msk.f32.gmra.mrb[76].mxu0 %vm98_vm1, %v78_v52  ;;  %2564 = vmatmul.mubr.msk.f32.gmra.mrb[76].mxu1 %vm98_vm1, %v78_v52 }
  0xc6   :  { %2415 = vmatprep.mubr.msk.f32.mxu0 %vm2984_vm0, %v2985_v1  ;;  %2566 = vmatprep.mubr.msk.f32.mxu1 %vm2984_vm0, %v2985_v1 }
  0xc9   :  { %2416 = vmatmul.mubr.msk.f32.gmra.mrb[78].mxu0 %vm98_vm1, %v79_v53  ;;  %2567 = vmatmul.mubr.msk.f32.gmra.mrb[78].mxu1 %vm98_vm1, %v79_v53 }
  0xca   :  { %2418 = vmatprep.mubr.msk.f32.mxu0 %vm2984_vm0, %v2985_v1  ;;  %2569 = vmatprep.mubr.msk.f32.mxu1 %vm2984_vm0, %v2985_v1 }
  0xcd   :  { %2419 = vmatmul.mubr.msk.f32.gmra.mrb[80].mxu0 %vm98_vm1, %v80_v54  ;;  %2570 = vmatmul.mubr.msk.f32.gmra.mrb[80].mxu1 %vm98_vm1, %v80_v54 }
  0xce   :  { %2421 = vmatprep.mubr.msk.f32.mxu0 %vm2984_vm0, %v2985_v1  ;;  %2572 = vmatprep.mubr.msk.f32.mxu1 %vm2984_vm0, %v2985_v1 }
  0xd1   :  { %2422 = vmatmul.mubr.msk.f32.gmra.mrb[82].mxu0 %vm98_vm1, %v81_v55  ;;  %2573 = vmatmul.mubr.msk.f32.gmra.mrb[82].mxu1 %vm98_vm1, %v81_v55 }
  0xd2   :  { %2424 = vmatprep.mubr.msk.f32.mxu0 %vm2984_vm0, %v2985_v1  ;;  %2575 = vmatprep.mubr.msk.f32.mxu1 %vm2984_vm0, %v2985_v1 }
  0xd5   :  { %2425 = vmatmul.mubr.msk.f32.gmra.mrb[84].mxu0 %vm98_vm1, %v82_v56  ;;  %2576 = vmatmul.mubr.msk.f32.gmra.mrb[84].mxu1 %vm98_vm1, %v82_v56 }
  0xd6   :  { %2427 = vmatprep.mubr.msk.f32.mxu0 %vm2984_vm0, %v2985_v1  ;;  %2578 = vmatprep.mubr.msk.f32.mxu1 %vm2984_vm0, %v2985_v1 }
  0xd9   :  { %2428 = vmatmul.mubr.msk.f32.gmra.mrb[86].mxu0 %vm98_vm1, %v83_v57  ;;  %2579 = vmatmul.mubr.msk.f32.gmra.mrb[86].mxu1 %vm98_vm1, %v83_v57 }
  0xda   :  { %2430 = vmatprep.mubr.msk.f32.mxu0 %vm2984_vm0, %v2985_v1  ;;  %2581 = vmatprep.mubr.msk.f32.mxu1 %vm2984_vm0, %v2985_v1 }
  0xdd   :  { %2431 = vmatmul.mubr.msk.f32.gmra.mrb[88].mxu0 %vm98_vm1, %v84_v58  ;;  %2582 = vmatmul.mubr.msk.f32.gmra.mrb[88].mxu1 %vm98_vm1, %v84_v58 }
  0xde   :  { %2433 = vmatprep.mubr.msk.f32.mxu0 %vm2984_vm0, %v2985_v1  ;;  %2584 = vmatprep.mubr.msk.f32.mxu1 %vm2984_vm0, %v2985_v1 }
  0xe1   :  { %2434 = vmatmul.mubr.msk.f32.gmra.mrb[90].mxu0 %vm98_vm1, %v85_v59  ;;  %2585 = vmatmul.mubr.msk.f32.gmra.mrb[90].mxu1 %vm98_vm1, %v85_v59 }
  0xe2   :  { %2436 = vmatprep.mubr.msk.f32.mxu0 %vm2984_vm0, %v2985_v1  ;;  %2587 = vmatprep.mubr.msk.f32.mxu1 %vm2984_vm0, %v2985_v1 }
  0xe5   :  { %2437 = vmatmul.mubr.msk.f32.gmra.mrb[92].mxu0 %vm98_vm1, %v86_v60  ;;  %2588 = vmatmul.mubr.msk.f32.gmra.mrb[92].mxu1 %vm98_vm1, %v86_v60 }
  0xe6   :  { %2439 = vmatprep.mubr.msk.f32.mxu0 %vm2984_vm0, %v2985_v1  ;;  %2590 = vmatprep.mubr.msk.f32.mxu1 %vm2984_vm0, %v2985_v1 }
  0xe9   :  { %2440 = vmatmul.mubr.msk.f32.gmra.mrb[94].mxu0 %vm98_vm1, %v87_v61  ;;  %2591 = vmatmul.mubr.msk.f32.gmra.mrb[94].mxu1 %vm98_vm1, %v87_v61 }
  0xea   :  { %2442 = vmatprep.mubr.msk.f32.mxu0 %vm2984_vm0, %v2985_v1  ;;  %2593 = vmatprep.mubr.msk.f32.mxu1 %vm2984_vm0, %v2985_v1 }
  0xed   :  { %2443 = vmatmul.mubr.msk.f32.gmra.mrb[96].mxu0 %vm98_vm1, %v88_v62  ;;  %2594 = vmatmul.mubr.msk.f32.gmra.mrb[96].mxu1 %vm98_vm1, %v88_v62 }
  0xee   :  { %2600 = vmatprep.mubr.msk.f32.mxu0 %vm2984_vm0, %v2985_v1  ;;  %2751 = vmatprep.mubr.msk.f32.mxu1 %vm2984_vm0, %v2985_v1 }
  0xf1   :  { %2601 = vmatmul.mubr.msk.f32.vlgmr.msra.gmra.mrb[98].mxu0 %vm98_vm1, %v3037_v12  ;;  %2752 = vmatmul.mubr.msk.f32.vlgmr.msra.gmra.mrb[98].mxu1 %vm98_vm1, %v3037_v12 }
  0xf2   :  { %2603 = vmatprep.mubr.msk.f32.mxu0 %vm2984_vm0, %v2985_v1  ;;  %2754 = vmatprep.mubr.msk.f32.mxu1 %vm2984_vm0, %v2985_v1 }
  0xf5   :  { %2604 = vmatmul.mubr.msk.f32.gmra.mrb[100].mxu0 %vm98_vm1, %v3046_v15  ;;  %2755 = vmatmul.mubr.msk.f32.gmra.mrb[100].mxu1 %vm98_vm1, %v3046_v15 }
  0xf6   :  { %2606 = vmatprep.mubr.msk.f32.mxu0 %vm2984_vm0, %v2985_v1  ;;  %2757 = vmatprep.mubr.msk.f32.mxu1 %vm2984_vm0, %v2985_v1 }
  0xf9   :  { %2607 = vmatmul.mubr.msk.f32.gmra.mrb[102].mxu0 %vm98_vm1, %v3061_v16  ;;  %2758 = vmatmul.mubr.msk.f32.gmra.mrb[102].mxu1 %vm98_vm1, %v3061_v16 }
  0xfa   :  { %2609 = vmatprep.mubr.msk.f32.mxu0 %vm2984_vm0, %v2985_v1  ;;  %2760 = vmatprep.mubr.msk.f32.mxu1 %vm2984_vm0, %v2985_v1 }
  0xfd   :  { %2610 = vmatmul.mubr.msk.f32.gmra.mrb[104].mxu0 %vm98_vm1, %v3074_v17  ;;  %2761 = vmatmul.mubr.msk.f32.gmra.mrb[104].mxu1 %vm98_vm1, %v3074_v17 }
  0xfe   :  { %2612 = vmatprep.mubr.msk.f32.mxu0 %vm2984_vm0, %v2985_v1  ;;  %2763 = vmatprep.mubr.msk.f32.mxu1 %vm2984_vm0, %v2985_v1 }
 0x100   :  { %v312_v0 = vpop.f32.mrb[0].mxu0  ;;  %v674_v4 = vpop.f32.mrb[0].mxu1 }
 0x101   :  { %v313_v2 = vadd.f32 %v3655_v63, %v312_v0  ;;  %v2300_v3 = vpop.f32.mrb[1].mxu0  ;;  %2613 = vmatmul.mubr.msk.f32.gmra.mrb[106].mxu0 %vm98_vm1, %v3087_v18  ;;  %v675_v5 = vadd.f32 %v3655_v63, %v674_v4  ;;  %v2451_v6 = vpop.f32.mrb[1].mxu1  ;;  %2764 = vmatmul.mubr.msk.f32.gmra.mrb[106].mxu1 %vm98_vm1, %v3087_v18 }
 0x102   :  { %2615 = vmatprep.mubr.msk.f32.mxu0 %vm2984_vm0, %v2985_v1  ;;  %2766 = vmatprep.mubr.msk.f32.mxu1 %vm2984_vm0, %v2985_v1 }
 0x103   :  { %v556_v7 = vmax.f32 %v313_v2, 0.0  ;;  %v918_v8 = vmax.f32 %v675_v5, 0.0 }
 0x104   :  { %v317_v9 = vpop.f32.mrb[2].mxu0  ;;  %v679_v12 = vpop.f32.mrb[2].mxu1 }
 0x105   :  { %v318_v10 = vadd.f32 %v3655_v63, %v317_v9  ;;  %v2303_v11 = vpop.f32.mrb[3].mxu0  ;;  %2616 = vmatmul.mubr.msk.f32.gmra.mrb[108].mxu0 %vm98_vm1, %v3100_v19  ;;  %v3674_v13 = vmax.f32 %v556_v7, %v918_v8  ;;  %v680_v14 = vadd.f32 %v3655_v63, %v679_v12  ;;  %v2454_v15 = vpop.f32.mrb[3].mxu1  ;;  %2767 = vmatmul.mubr.msk.f32.gmra.mrb[108].mxu1 %vm98_vm1, %v3100_v19 }
 0x106   :  { %2618 = vmatprep.mubr.msk.f32.mxu0 %vm2984_vm0, %v2985_v1  ;;  %2769 = vmatprep.mubr.msk.f32.mxu1 %vm2984_vm0, %v2985_v1 }
 0x107   :  { %v557_v16 = vmax.f32 %v318_v10, 0.0  ;;  %v919_v17 = vmax.f32 %v680_v14, 0.0 }
 0x108   :  { %v322_v18 = vpop.f32.mrb[4].mxu0  ;;  %v684_v54 = vpop.f32.mrb[4].mxu1 }
 0x109   :  { %v323_v52 = vadd.f32 %v3655_v63, %v322_v18  ;;  %v2306_v53 = vpop.f32.mrb[5].mxu0  ;;  %2619 = vmatmul.mubr.msk.f32.gmra.mrb[110].mxu0 %vm98_vm1, %v3113_v20  ;;  %v3686_v55 = vmax.f32 %v557_v16, %v919_v17  ;;  %v685_v19 = vadd.f32 %v3655_v63, %v684_v54  ;;  %v2457_v56 = vpop.f32.mrb[5].mxu1  ;;  %2770 = vmatmul.mubr.msk.f32.gmra.mrb[110].mxu1 %vm98_vm1, %v3113_v20 }
 0x10a   :  { %2621 = vmatprep.mubr.msk.f32.mxu0 %vm2984_vm0, %v2985_v1  ;;  %2772 = vmatprep.mubr.msk.f32.mxu1 %vm2984_vm0, %v2985_v1 }
 0x10b   :  { %v558_v57 = vmax.f32 %v323_v52, 0.0  ;;  %v920_v58 = vmax.f32 %v685_v19, 0.0 }
 0x10c   :  { %v327_v59 = vpop.f32.mrb[6].mxu0  ;;  %v689_v62 = vpop.f32.mrb[6].mxu1 }
 0x10d   :  { %v328_v60 = vadd.f32 %v3655_v63, %v327_v59  ;;  %v2309_v61 = vpop.f32.mrb[7].mxu0  ;;  %2622 = vmatmul.mubr.msk.f32.gmra.mrb[112].mxu0 %vm98_vm1, %v3126_v21  ;;  %v3698_v0 = vmax.f32 %v558_v57, %v920_v58  ;;  %v690_v20 = vadd.f32 %v3655_v63, %v689_v62  ;;  %v2460_v2 = vpop.f32.mrb[7].mxu1  ;;  %2773 = vmatmul.mubr.msk.f32.gmra.mrb[112].mxu1 %vm98_vm1, %v3126_v21 }
 0x10e   :  { %2624 = vmatprep.mubr.msk.f32.mxu0 %vm2984_vm0, %v2985_v1  ;;  %2775 = vmatprep.mubr.msk.f32.mxu1 %vm2984_vm0, %v2985_v1 }
 0x10f   :  { %v559_v3 = vmax.f32 %v328_v60, 0.0  ;;  %v921_v4 = vmax.f32 %v690_v20, 0.0 }
 0x110   :  { %v332_v5 = vpop.f32.mrb[8].mxu0  ;;  %v694_v8 = vpop.f32.mrb[8].mxu1 }
 0x111   :  { %v333_v6 = vadd.f32 %v3655_v63, %v332_v5  ;;  %v2312_v7 = vpop.f32.mrb[9].mxu0  ;;  %2625 = vmatmul.mubr.msk.f32.gmra.mrb[114].mxu0 %vm98_vm1, %v3139_v22  ;;  %v3710_v9 = vmax.f32 %v559_v3, %v921_v4  ;;  %v695_v21 = vadd.f32 %v3655_v63, %v694_v8  ;;  %v2463_v10 = vpop.f32.mrb[9].mxu1  ;;  %2776 = vmatmul.mubr.msk.f32.gmra.mrb[114].mxu1 %vm98_vm1, %v3139_v22 }
 0x112   :  { %2627 = vmatprep.mubr.msk.f32.mxu0 %vm2984_vm0, %v2985_v1  ;;  %2778 = vmatprep.mubr.msk.f32.mxu1 %vm2984_vm0, %v2985_v1 }
 0x113   :  { %v560_v11 = vmax.f32 %v333_v6, 0.0  ;;  %v922_v12 = vmax.f32 %v695_v21, 0.0 }
 0x114   :  { %v337_v14 = vpop.f32.mrb[10].mxu0  ;;  %v699_v17 = vpop.f32.mrb[10].mxu1 }
 0x115   :  { %v338_v15 = vadd.f32 %v3655_v63, %v337_v14  ;;  %v2315_v16 = vpop.f32.mrb[11].mxu0  ;;  %2628 = vmatmul.mubr.msk.f32.gmra.mrb[116].mxu0 %vm98_vm1, %v3152_v23  ;;  %v3722_v18 = vmax.f32 %v560_v11, %v922_v12  ;;  %v700_v22 = vadd.f32 %v3655_v63, %v699_v17  ;;  %v2466_v52 = vpop.f32.mrb[11].mxu1  ;;  %2779 = vmatmul.mubr.msk.f32.gmra.mrb[116].mxu1 %vm98_vm1, %v3152_v23 }
 0x116   :  { %2630 = vmatprep.mubr.msk.f32.mxu0 %vm2984_vm0, %v2985_v1  ;;  %2781 = vmatprep.mubr.msk.f32.mxu1 %vm2984_vm0, %v2985_v1 }
 0x117   :  { %v561_v53 = vmax.f32 %v338_v15, 0.0  ;;  %v923_v54 = vmax.f32 %v700_v22, 0.0 }
 0x118   :  { %v342_v19 = vpop.f32.mrb[12].mxu0  ;;  %v704_v58 = vpop.f32.mrb[12].mxu1 }
 0x119   :  { %v343_v56 = vadd.f32 %v3655_v63, %v342_v19  ;;  %v2318_v57 = vpop.f32.mrb[13].mxu0  ;;  %2631 = vmatmul.mubr.msk.f32.gmra.mrb[118].mxu0 %vm98_vm1, %v3165_v24  ;;  %v3734_v59 = vmax.f32 %v561_v53, %v923_v54  ;;  %v705_v23 = vadd.f32 %v3655_v63, %v704_v58  ;;  %v2469_v60 = vpop.f32.mrb[13].mxu1  ;;  %2782 = vmatmul.mubr.msk.f32.gmra.mrb[118].mxu1 %vm98_vm1, %v3165_v24 }
 0x11a   :  { %2633 = vmatprep.mubr.msk.f32.mxu0 %vm2984_vm0, %v2985_v1  ;;  %2784 = vmatprep.mubr.msk.f32.mxu1 %vm2984_vm0, %v2985_v1 }
 0x11b   :  { %v562_v61 = vmax.f32 %v343_v56, 0.0  ;;  %v924_v62 = vmax.f32 %v705_v23, 0.0 }
 0x11c   :  { %v347_v20 = vpop.f32.mrb[14].mxu0  ;;  %v709_v4 = vpop.f32.mrb[14].mxu1 }
 0x11d   :  { %v348_v2 = vadd.f32 %v3655_v63, %v347_v20  ;;  %v2321_v3 = vpop.f32.mrb[15].mxu0  ;;  %2634 = vmatmul.mubr.msk.f32.gmra.mrb[120].mxu0 %vm98_vm1, %v3178_v25  ;;  %v3746_v5 = vmax.f32 %v562_v61, %v924_v62  ;;  %v710_v24 = vadd.f32 %v3655_v63, %v709_v4  ;;  %v2472_v6 = vpop.f32.mrb[15].mxu1  ;;  %2785 = vmatmul.mubr.msk.f32.gmra.mrb[120].mxu1 %vm98_vm1, %v3178_v25 }
 0x11e   :  { %2636 = vmatprep.mubr.msk.f32.mxu0 %vm2984_vm0, %v2985_v1  ;;  %2787 = vmatprep.mubr.msk.f32.mxu1 %vm2984_vm0, %v2985_v1 }
 0x11f   :  { %v563_v7 = vmax.f32 %v348_v2, 0.0  ;;  %v925_v8 = vmax.f32 %v710_v24, 0.0 }
 0x120   :  { %v352_v21 = vpop.f32.mrb[16].mxu0  ;;  %v714_v12 = vpop.f32.mrb[16].mxu1 }
 0x121   :  { %v353_v10 = vadd.f32 %v3655_v63, %v352_v21  ;;  %v2324_v11 = vpop.f32.mrb[17].mxu0  ;;  %2637 = vmatmul.mubr.msk.f32.gmra.mrb[122].mxu0 %vm98_vm1, %v3191_v26  ;;  %v3758_v14 = vmax.f32 %v563_v7, %v925_v8  ;;  %v715_v25 = vadd.f32 %v3655_v63, %v714_v12  ;;  %v2475_v15 = vpop.f32.mrb[17].mxu1  ;;  %2788 = vmatmul.mubr.msk.f32.gmra.mrb[122].mxu1 %vm98_vm1, %v3191_v26 }
 0x122   :  { %2639 = vmatprep.mubr.msk.f32.mxu0 %vm2984_vm0, %v2985_v1  ;;  %2790 = vmatprep.mubr.msk.f32.mxu1 %vm2984_vm0, %v2985_v1 }
 0x123   :  { %v564_v16 = vmax.f32 %v353_v10, 0.0  ;;  %v926_v17 = vmax.f32 %v715_v25, 0.0 }
 0x124   :  { %v357_v22 = vpop.f32.mrb[18].mxu0  ;;  %v719_v54 = vpop.f32.mrb[18].mxu1 }
 0x125   :  { %v358_v52 = vadd.f32 %v3655_v63, %v357_v22  ;;  %v2327_v53 = vpop.f32.mrb[19].mxu0  ;;  %2640 = vmatmul.mubr.msk.f32.gmra.mrb[124].mxu0 %vm98_vm1, %v3204_v27  ;;  %v3770_v19 = vmax.f32 %v564_v16, %v926_v17  ;;  %v720_v26 = vadd.f32 %v3655_v63, %v719_v54  ;;  %v2478_v56 = vpop.f32.mrb[19].mxu1  ;;  %2791 = vmatmul.mubr.msk.f32.gmra.mrb[124].mxu1 %vm98_vm1, %v3204_v27 }
 0x126   :  { %2642 = vmatprep.mubr.msk.f32.mxu0 %vm2984_vm0, %v2985_v1  ;;  %2793 = vmatprep.mubr.msk.f32.mxu1 %vm2984_vm0, %v2985_v1 }
 0x127   :  { %v565_v57 = vmax.f32 %v358_v52, 0.0  ;;  %v927_v58 = vmax.f32 %v720_v26, 0.0 }
 0x128   :  { %v362_v23 = vpop.f32.mrb[20].mxu0  ;;  %v724_v62 = vpop.f32.mrb[20].mxu1 }
 0x129   :  { %v363_v60 = vadd.f32 %v3655_v63, %v362_v23  ;;  %v2330_v61 = vpop.f32.mrb[21].mxu0  ;;  %2643 = vmatmul.mubr.msk.f32.gmra.mrb[126].mxu0 %vm98_vm1, %v3217_v28  ;;  %v3782_v20 = vmax.f32 %v565_v57, %v927_v58  ;;  %v725_v27 = vadd.f32 %v3655_v63, %v724_v62  ;;  %v2481_v2 = vpop.f32.mrb[21].mxu1  ;;  %2794 = vmatmul.mubr.msk.f32.gmra.mrb[126].mxu1 %vm98_vm1, %v3217_v28 }
 0x12a   :  { %2645 = vmatprep.mubr.msk.f32.mxu0 %vm2984_vm0, %v2985_v1  ;;  %2796 = vmatprep.mubr.msk.f32.mxu1 %vm2984_vm0, %v2985_v1 }
 0x12b   :  { %v566_v3 = vmax.f32 %v363_v60, 0.0  ;;  %v928_v4 = vmax.f32 %v725_v27, 0.0 }
 0x12c   :  { %v367_v24 = vpop.f32.mrb[22].mxu0  ;;  %v729_v8 = vpop.f32.mrb[22].mxu1 }
 0x12d   :  { %v368_v6 = vadd.f32 %v3655_v63, %v367_v24  ;;  %v2333_v7 = vpop.f32.mrb[23].mxu0  ;;  %2646 = vmatmul.mubr.msk.f32.gmra.mrb[128].mxu0 %vm98_vm1, %v3230_v29  ;;  %v3794_v21 = vmax.f32 %v566_v3, %v928_v4  ;;  %v730_v28 = vadd.f32 %v3655_v63, %v729_v8  ;;  %v2484_v10 = vpop.f32.mrb[23].mxu1  ;;  %2797 = vmatmul.mubr.msk.f32.gmra.mrb[128].mxu1 %vm98_vm1, %v3230_v29 }
 0x12e   :  { %2648 = vmatprep.mubr.msk.f32.mxu0 %vm2984_vm0, %v2985_v1  ;;  %2799 = vmatprep.mubr.msk.f32.mxu1 %vm2984_vm0, %v2985_v1 }
 0x12f   :  { %v567_v11 = vmax.f32 %v368_v6, 0.0  ;;  %v929_v12 = vmax.f32 %v730_v28, 0.0 }
 0x130   :  { %v372_v25 = vpop.f32.mrb[24].mxu0  ;;  %v734_v17 = vpop.f32.mrb[24].mxu1 }
 0x131   :  { %v373_v15 = vadd.f32 %v3655_v63, %v372_v25  ;;  %v2336_v16 = vpop.f32.mrb[25].mxu0  ;;  %2649 = vmatmul.mubr.msk.f32.gmra.mrb[130].mxu0 %vm98_vm1, %v3243_v30  ;;  %v3806_v22 = vmax.f32 %v567_v11, %v929_v12  ;;  %v735_v29 = vadd.f32 %v3655_v63, %v734_v17  ;;  %v2487_v52 = vpop.f32.mrb[25].mxu1  ;;  %2800 = vmatmul.mubr.msk.f32.gmra.mrb[130].mxu1 %vm98_vm1, %v3243_v30 }
 0x132   :  { %2651 = vmatprep.mubr.msk.f32.mxu0 %vm2984_vm0, %v2985_v1  ;;  %2802 = vmatprep.mubr.msk.f32.mxu1 %vm2984_vm0, %v2985_v1 }
 0x133   :  { %v568_v53 = vmax.f32 %v373_v15, 0.0  ;;  %v930_v54 = vmax.f32 %v735_v29, 0.0 }
 0x134   :  { %v377_v26 = vpop.f32.mrb[26].mxu0  ;;  %v739_v58 = vpop.f32.mrb[26].mxu1 }
 0x135   :  { %v378_v56 = vadd.f32 %v3655_v63, %v377_v26  ;;  %v2339_v57 = vpop.f32.mrb[27].mxu0  ;;  %2652 = vmatmul.mubr.msk.f32.gmra.mrb[132].mxu0 %vm98_vm1, %v3256_v31  ;;  %v3818_v23 = vmax.f32 %v568_v53, %v930_v54  ;;  %v740_v30 = vadd.f32 %v3655_v63, %v739_v58  ;;  %v2490_v60 = vpop.f32.mrb[27].mxu1  ;;  %2803 = vmatmul.mubr.msk.f32.gmra.mrb[132].mxu1 %vm98_vm1, %v3256_v31 }
 0x136   :  { %2654 = vmatprep.mubr.msk.f32.mxu0 %vm2984_vm0, %v2985_v1  ;;  %2805 = vmatprep.mubr.msk.f32.mxu1 %vm2984_vm0, %v2985_v1 }
 0x137   :  { %v569_v61 = vmax.f32 %v378_v56, 0.0  ;;  %v931_v62 = vmax.f32 %v740_v30, 0.0 }
 0x138   :  { %v382_v27 = vpop.f32.mrb[28].mxu0  ;;  %v744_v4 = vpop.f32.mrb[28].mxu1 }
 0x139   :  { %v383_v2 = vadd.f32 %v3655_v63, %v382_v27  ;;  %v2342_v3 = vpop.f32.mrb[29].mxu0  ;;  %2655 = vmatmul.mubr.msk.f32.gmra.mrb[134].mxu0 %vm98_vm1, %v3269_v32  ;;  %v3830_v24 = vmax.f32 %v569_v61, %v931_v62  ;;  %v745_v31 = vadd.f32 %v3655_v63, %v744_v4  ;;  %v2493_v6 = vpop.f32.mrb[29].mxu1  ;;  %2806 = vmatmul.mubr.msk.f32.gmra.mrb[134].mxu1 %vm98_vm1, %v3269_v32 }
 0x13a   :  { %2657 = vmatprep.mubr.msk.f32.mxu0 %vm2984_vm0, %v2985_v1  ;;  %2808 = vmatprep.mubr.msk.f32.mxu1 %vm2984_vm0, %v2985_v1 }
 0x13b   :  { %v570_v7 = vmax.f32 %v383_v2, 0.0  ;;  %v932_v8 = vmax.f32 %v745_v31, 0.0 }
 0x13c   :  { %v387_v28 = vpop.f32.mrb[30].mxu0  ;;  %v749_v12 = vpop.f32.mrb[30].mxu1 }
 0x13d   :  { %v388_v10 = vadd.f32 %v3655_v63, %v387_v28  ;;  %v2345_v11 = vpop.f32.mrb[31].mxu0  ;;  %2658 = vmatmul.mubr.msk.f32.gmra.mrb[136].mxu0 %vm98_vm1, %v3282_v33  ;;  %v3842_v25 = vmax.f32 %v570_v7, %v932_v8  ;;  %v750_v32 = vadd.f32 %v3655_v63, %v749_v12  ;;  %v2496_v15 = vpop.f32.mrb[31].mxu1  ;;  %2809 = vmatmul.mubr.msk.f32.gmra.mrb[136].mxu1 %vm98_vm1, %v3282_v33 }
 0x13e   :  { %2660 = vmatprep.mubr.msk.f32.mxu0 %vm2984_vm0, %v2985_v1  ;;  %2811 = vmatprep.mubr.msk.f32.mxu1 %vm2984_vm0, %v2985_v1 }
 0x13f   :  { %v571_v16 = vmax.f32 %v388_v10, 0.0  ;;  %v933_v17 = vmax.f32 %v750_v32, 0.0 }
 0x140   :  { %v392_v29 = vpop.f32.mrb[32].mxu0  ;;  %v754_v54 = vpop.f32.mrb[32].mxu1 }
 0x141   :  { %v393_v52 = vadd.f32 %v3655_v63, %v392_v29  ;;  %v2348_v53 = vpop.f32.mrb[33].mxu0  ;;  %2661 = vmatmul.mubr.msk.f32.gmra.mrb[138].mxu0 %vm98_vm1, %v3295_v34  ;;  %v3854_v26 = vmax.f32 %v571_v16, %v933_v17  ;;  %v755_v33 = vadd.f32 %v3655_v63, %v754_v54  ;;  %v2499_v56 = vpop.f32.mrb[33].mxu1  ;;  %2812 = vmatmul.mubr.msk.f32.gmra.mrb[138].mxu1 %vm98_vm1, %v3295_v34 }
 0x142   :  { %2663 = vmatprep.mubr.msk.f32.mxu0 %vm2984_vm0, %v2985_v1  ;;  %2814 = vmatprep.mubr.msk.f32.mxu1 %vm2984_vm0, %v2985_v1 }
 0x143   :  { %v572_v57 = vmax.f32 %v393_v52, 0.0  ;;  %v934_v58 = vmax.f32 %v755_v33, 0.0 }
 0x144   :  { %v397_v30 = vpop.f32.mrb[34].mxu0  ;;  %v759_v62 = vpop.f32.mrb[34].mxu1 }
 0x145   :  { %v398_v60 = vadd.f32 %v3655_v63, %v397_v30  ;;  %v2351_v61 = vpop.f32.mrb[35].mxu0  ;;  %2664 = vmatmul.mubr.msk.f32.gmra.mrb[140].mxu0 %vm98_vm1, %v3308_v35  ;;  %v3866_v27 = vmax.f32 %v572_v57, %v934_v58  ;;  %v760_v34 = vadd.f32 %v3655_v63, %v759_v62  ;;  %v2502_v2 = vpop.f32.mrb[35].mxu1  ;;  %2815 = vmatmul.mubr.msk.f32.gmra.mrb[140].mxu1 %vm98_vm1, %v3308_v35 }
 0x146   :  { %2666 = vmatprep.mubr.msk.f32.mxu0 %vm2984_vm0, %v2985_v1  ;;  %2817 = vmatprep.mubr.msk.f32.mxu1 %vm2984_vm0, %v2985_v1 }
 0x147   :  { %v573_v3 = vmax.f32 %v398_v60, 0.0  ;;  %v935_v4 = vmax.f32 %v760_v34, 0.0 }
 0x148   :  { %v402_v31 = vpop.f32.mrb[36].mxu0  ;;  %v764_v8 = vpop.f32.mrb[36].mxu1 }
 0x149   :  { %v403_v6 = vadd.f32 %v3655_v63, %v402_v31  ;;  %v2354_v7 = vpop.f32.mrb[37].mxu0  ;;  %2667 = vmatmul.mubr.msk.f32.gmra.mrb[142].mxu0 %vm98_vm1, %v3321_v36  ;;  %v3878_v28 = vmax.f32 %v573_v3, %v935_v4  ;;  %v765_v35 = vadd.f32 %v3655_v63, %v764_v8  ;;  %v2505_v10 = vpop.f32.mrb[37].mxu1  ;;  %2818 = vmatmul.mubr.msk.f32.gmra.mrb[142].mxu1 %vm98_vm1, %v3321_v36 }
 0x14a   :  { %2669 = vmatprep.mubr.msk.f32.mxu0 %vm2984_vm0, %v2985_v1  ;;  %2820 = vmatprep.mubr.msk.f32.mxu1 %vm2984_vm0, %v2985_v1 }
 0x14b   :  { %v574_v11 = vmax.f32 %v403_v6, 0.0  ;;  %v936_v12 = vmax.f32 %v765_v35, 0.0 }
 0x14c   :  { %v407_v32 = vpop.f32.mrb[38].mxu0  ;;  %v769_v17 = vpop.f32.mrb[38].mxu1 }
 0x14d   :  { %v408_v15 = vadd.f32 %v3655_v63, %v407_v32  ;;  %v2357_v16 = vpop.f32.mrb[39].mxu0  ;;  %2670 = vmatmul.mubr.msk.f32.gmra.mrb[144].mxu0 %vm98_vm1, %v3334_v37  ;;  %v3890_v29 = vmax.f32 %v574_v11, %v936_v12  ;;  %v770_v36 = vadd.f32 %v3655_v63, %v769_v17  ;;  %v2508_v52 = vpop.f32.mrb[39].mxu1  ;;  %2821 = vmatmul.mubr.msk.f32.gmra.mrb[144].mxu1 %vm98_vm1, %v3334_v37 }
 0x14e   :  { %2672 = vmatprep.mubr.msk.f32.mxu0 %vm2984_vm0, %v2985_v1  ;;  %2823 = vmatprep.mubr.msk.f32.mxu1 %vm2984_vm0, %v2985_v1 }
 0x14f   :  { %v575_v53 = vmax.f32 %v408_v15, 0.0  ;;  %v937_v54 = vmax.f32 %v770_v36, 0.0 }
 0x150   :  { %v412_v33 = vpop.f32.mrb[40].mxu0  ;;  %v774_v58 = vpop.f32.mrb[40].mxu1 }
 0x151   :  { %v413_v56 = vadd.f32 %v3655_v63, %v412_v33  ;;  %v2360_v57 = vpop.f32.mrb[41].mxu0  ;;  %2673 = vmatmul.mubr.msk.f32.gmra.mrb[146].mxu0 %vm98_vm1, %v3347_v38  ;;  %v3902_v30 = vmax.f32 %v575_v53, %v937_v54  ;;  %v775_v37 = vadd.f32 %v3655_v63, %v774_v58  ;;  %v2511_v60 = vpop.f32.mrb[41].mxu1  ;;  %2824 = vmatmul.mubr.msk.f32.gmra.mrb[146].mxu1 %vm98_vm1, %v3347_v38 }
 0x152   :  { %2675 = vmatprep.mubr.msk.f32.mxu0 %vm2984_vm0, %v2985_v1  ;;  %2826 = vmatprep.mubr.msk.f32.mxu1 %vm2984_vm0, %v2985_v1 }
 0x153   :  { %v576_v61 = vmax.f32 %v413_v56, 0.0  ;;  %v938_v62 = vmax.f32 %v775_v37, 0.0 }
 0x154   :  { %v417_v34 = vpop.f32.mrb[42].mxu0  ;;  %v779_v4 = vpop.f32.mrb[42].mxu1 }
 0x155   :  { %v418_v2 = vadd.f32 %v3655_v63, %v417_v34  ;;  %v2363_v3 = vpop.f32.mrb[43].mxu0  ;;  %2676 = vmatmul.mubr.msk.f32.gmra.mrb[148].mxu0 %vm98_vm1, %v3360_v39  ;;  %v3914_v31 = vmax.f32 %v576_v61, %v938_v62  ;;  %v780_v38 = vadd.f32 %v3655_v63, %v779_v4  ;;  %v2514_v6 = vpop.f32.mrb[43].mxu1  ;;  %2827 = vmatmul.mubr.msk.f32.gmra.mrb[148].mxu1 %vm98_vm1, %v3360_v39 }
 0x156   :  { %2678 = vmatprep.mubr.msk.f32.mxu0 %vm2984_vm0, %v2985_v1  ;;  %2829 = vmatprep.mubr.msk.f32.mxu1 %vm2984_vm0, %v2985_v1 }
 0x157   :  { %v577_v7 = vmax.f32 %v418_v2, 0.0  ;;  %v939_v8 = vmax.f32 %v780_v38, 0.0 }
 0x158   :  { %v422_v35 = vpop.f32.mrb[44].mxu0  ;;  %v784_v12 = vpop.f32.mrb[44].mxu1 }
 0x159   :  { %v423_v10 = vadd.f32 %v3655_v63, %v422_v35  ;;  %v2366_v11 = vpop.f32.mrb[45].mxu0  ;;  %2679 = vmatmul.mubr.msk.f32.gmra.mrb[150].mxu0 %vm98_vm1, %v3373_v40  ;;  %v3926_v32 = vmax.f32 %v577_v7, %v939_v8  ;;  %v785_v39 = vadd.f32 %v3655_v63, %v784_v12  ;;  %v2517_v15 = vpop.f32.mrb[45].mxu1  ;;  %2830 = vmatmul.mubr.msk.f32.gmra.mrb[150].mxu1 %vm98_vm1, %v3373_v40 }
 0x15a   :  { %2681 = vmatprep.mubr.msk.f32.mxu0 %vm2984_vm0, %v2985_v1  ;;  %2832 = vmatprep.mubr.msk.f32.mxu1 %vm2984_vm0, %v2985_v1 }
 0x15b   :  { %v578_v16 = vmax.f32 %v423_v10, 0.0  ;;  %v940_v17 = vmax.f32 %v785_v39, 0.0 }
 0x15c   :  { %v427_v36 = vpop.f32.mrb[46].mxu0  ;;  %v789_v54 = vpop.f32.mrb[46].mxu1 }
 0x15d   :  { %v428_v52 = vadd.f32 %v3655_v63, %v427_v36  ;;  %v2369_v53 = vpop.f32.mrb[47].mxu0  ;;  %2682 = vmatmul.mubr.msk.f32.gmra.mrb[152].mxu0 %vm98_vm1, %v3386_v41  ;;  %v3938_v33 = vmax.f32 %v578_v16, %v940_v17  ;;  %v790_v40 = vadd.f32 %v3655_v63, %v789_v54  ;;  %v2520_v56 = vpop.f32.mrb[47].mxu1  ;;  %2833 = vmatmul.mubr.msk.f32.gmra.mrb[152].mxu1 %vm98_vm1, %v3386_v41 }
 0x15e   :  { %2684 = vmatprep.mubr.msk.f32.mxu0 %vm2984_vm0, %v2985_v1  ;;  %2835 = vmatprep.mubr.msk.f32.mxu1 %vm2984_vm0, %v2985_v1 }
 0x15f   :  { %v579_v57 = vmax.f32 %v428_v52, 0.0  ;;  %v941_v58 = vmax.f32 %v790_v40, 0.0 }
 0x160   :  { %v432_v37 = vpop.f32.mrb[48].mxu0  ;;  %v794_v62 = vpop.f32.mrb[48].mxu1 }
 0x161   :  { %v433_v60 = vadd.f32 %v3655_v63, %v432_v37  ;;  %v2372_v61 = vpop.f32.mrb[49].mxu0  ;;  %2685 = vmatmul.mubr.msk.f32.gmra.mrb[154].mxu0 %vm98_vm1, %v3399_v42  ;;  %v3950_v34 = vmax.f32 %v579_v57, %v941_v58  ;;  %v795_v41 = vadd.f32 %v3655_v63, %v794_v62  ;;  %v2523_v2 = vpop.f32.mrb[49].mxu1  ;;  %2836 = vmatmul.mubr.msk.f32.gmra.mrb[154].mxu1 %vm98_vm1, %v3399_v42 }
 0x162   :  { %2687 = vmatprep.mubr.msk.f32.mxu0 %vm2984_vm0, %v2985_v1  ;;  %2838 = vmatprep.mubr.msk.f32.mxu1 %vm2984_vm0, %v2985_v1 }
 0x163   :  { %v580_v3 = vmax.f32 %v433_v60, 0.0  ;;  %v942_v4 = vmax.f32 %v795_v41, 0.0 }
 0x164   :  { %v437_v38 = vpop.f32.mrb[50].mxu0  ;;  %v799_v8 = vpop.f32.mrb[50].mxu1 }
 0x165   :  { %v438_v6 = vadd.f32 %v3655_v63, %v437_v38  ;;  %v2375_v7 = vpop.f32.mrb[51].mxu0  ;;  %2688 = vmatmul.mubr.msk.f32.gmra.mrb[156].mxu0 %vm98_vm1, %v3412_v43  ;;  %v3962_v35 = vmax.f32 %v580_v3, %v942_v4  ;;  %v800_v42 = vadd.f32 %v3655_v63, %v799_v8  ;;  %v2526_v10 = vpop.f32.mrb[51].mxu1  ;;  %2839 = vmatmul.mubr.msk.f32.gmra.mrb[156].mxu1 %vm98_vm1, %v3412_v43 }
 0x166   :  { %2690 = vmatprep.mubr.msk.f32.mxu0 %vm2984_vm0, %v2985_v1  ;;  %2841 = vmatprep.mubr.msk.f32.mxu1 %vm2984_vm0, %v2985_v1 }
 0x167   :  { %v581_v11 = vmax.f32 %v438_v6, 0.0  ;;  %v943_v12 = vmax.f32 %v800_v42, 0.0 }
 0x168   :  { %v442_v39 = vpop.f32.mrb[52].mxu0  ;;  %v804_v17 = vpop.f32.mrb[52].mxu1 }
 0x169   :  { %v443_v15 = vadd.f32 %v3655_v63, %v442_v39  ;;  %v2378_v16 = vpop.f32.mrb[53].mxu0  ;;  %2691 = vmatmul.mubr.msk.f32.gmra.mrb[158].mxu0 %vm98_vm1, %v3425_v44  ;;  %v3974_v36 = vmax.f32 %v581_v11, %v943_v12  ;;  %v805_v43 = vadd.f32 %v3655_v63, %v804_v17  ;;  %v2529_v52 = vpop.f32.mrb[53].mxu1  ;;  %2842 = vmatmul.mubr.msk.f32.gmra.mrb[158].mxu1 %vm98_vm1, %v3425_v44 }
 0x16a   :  { %2693 = vmatprep.mubr.msk.f32.mxu0 %vm2984_vm0, %v2985_v1  ;;  %2844 = vmatprep.mubr.msk.f32.mxu1 %vm2984_vm0, %v2985_v1 }
 0x16b   :  { %v582_v53 = vmax.f32 %v443_v15, 0.0  ;;  %v944_v54 = vmax.f32 %v805_v43, 0.0 }
 0x16c   :  { %v447_v40 = vpop.f32.mrb[54].mxu0  ;;  %v809_v58 = vpop.f32.mrb[54].mxu1 }
 0x16d   :  { %v448_v56 = vadd.f32 %v3655_v63, %v447_v40  ;;  %v2381_v57 = vpop.f32.mrb[55].mxu0  ;;  %2694 = vmatmul.mubr.msk.f32.gmra.mrb[160].mxu0 %vm98_vm1, %v3438_v45  ;;  %v3986_v37 = vmax.f32 %v582_v53, %v944_v54  ;;  %v810_v44 = vadd.f32 %v3655_v63, %v809_v58  ;;  %v2532_v60 = vpop.f32.mrb[55].mxu1  ;;  %2845 = vmatmul.mubr.msk.f32.gmra.mrb[160].mxu1 %vm98_vm1, %v3438_v45 }
 0x16e   :  { %2696 = vmatprep.mubr.msk.f32.mxu0 %vm2984_vm0, %v2985_v1  ;;  %2847 = vmatprep.mubr.msk.f32.mxu1 %vm2984_vm0, %v2985_v1 }
 0x16f   :  { %v583_v61 = vmax.f32 %v448_v56, 0.0  ;;  %v945_v62 = vmax.f32 %v810_v44, 0.0 }
 0x170   :  { %v452_v41 = vpop.f32.mrb[56].mxu0  ;;  %v814_v4 = vpop.f32.mrb[56].mxu1 }
 0x171   :  { %v453_v2 = vadd.f32 %v3655_v63, %v452_v41  ;;  %v2384_v3 = vpop.f32.mrb[57].mxu0  ;;  %2697 = vmatmul.mubr.msk.f32.gmra.mrb[162].mxu0 %vm98_vm1, %v3451_v46  ;;  %v3998_v38 = vmax.f32 %v583_v61, %v945_v62  ;;  %v815_v45 = vadd.f32 %v3655_v63, %v814_v4  ;;  %v2535_v6 = vpop.f32.mrb[57].mxu1  ;;  %2848 = vmatmul.mubr.msk.f32.gmra.mrb[162].mxu1 %vm98_vm1, %v3451_v46 }
 0x172   :  { %2699 = vmatprep.mubr.msk.f32.mxu0 %vm2984_vm0, %v2985_v1  ;;  %2850 = vmatprep.mubr.msk.f32.mxu1 %vm2984_vm0, %v2985_v1 }
 0x173   :  { %v584_v7 = vmax.f32 %v453_v2, 0.0  ;;  %v946_v8 = vmax.f32 %v815_v45, 0.0 }
 0x174   :  { %v457_v42 = vpop.f32.mrb[58].mxu0  ;;  %v819_v12 = vpop.f32.mrb[58].mxu1 }
 0x175   :  { %v458_v10 = vadd.f32 %v3655_v63, %v457_v42  ;;  %v2387_v11 = vpop.f32.mrb[59].mxu0  ;;  %2700 = vmatmul.mubr.msk.f32.gmra.mrb[164].mxu0 %vm98_vm1, %v3464_v47  ;;  %v4010_v39 = vmax.f32 %v584_v7, %v946_v8  ;;  %v820_v46 = vadd.f32 %v3655_v63, %v819_v12  ;;  %v2538_v15 = vpop.f32.mrb[59].mxu1  ;;  %2851 = vmatmul.mubr.msk.f32.gmra.mrb[164].mxu1 %vm98_vm1, %v3464_v47 }
 0x176   :  { %2702 = vmatprep.mubr.msk.f32.mxu0 %vm2984_vm0, %v2985_v1  ;;  %2853 = vmatprep.mubr.msk.f32.mxu1 %vm2984_vm0, %v2985_v1 }
 0x177   :  { %v585_v16 = vmax.f32 %v458_v10, 0.0  ;;  %v947_v17 = vmax.f32 %v820_v46, 0.0 }
 0x178   :  { %v462_v43 = vpop.f32.mrb[60].mxu0  ;;  %v824_v54 = vpop.f32.mrb[60].mxu1 }
 0x179   :  { %v463_v52 = vadd.f32 %v3655_v63, %v462_v43  ;;  %v2390_v53 = vpop.f32.mrb[61].mxu0  ;;  %2703 = vmatmul.mubr.msk.f32.gmra.mrb[166].mxu0 %vm98_vm1, %v3477_v48  ;;  %v4022_v40 = vmax.f32 %v585_v16, %v947_v17  ;;  %v825_v47 = vadd.f32 %v3655_v63, %v824_v54  ;;  %v2541_v56 = vpop.f32.mrb[61].mxu1  ;;  %2854 = vmatmul.mubr.msk.f32.gmra.mrb[166].mxu1 %vm98_vm1, %v3477_v48 }
 0x17a   :  { %2705 = vmatprep.mubr.msk.f32.mxu0 %vm2984_vm0, %v2985_v1  ;;  %2856 = vmatprep.mubr.msk.f32.mxu1 %vm2984_vm0, %v2985_v1  ;;  %v2917_v53 = vld [vmem:[%s4573_s0 + $0x128] sm:$0xff] }
 0x17b   :  { %v586_v57 = vmax.f32 %v463_v52, 0.0  ;;  %v948_v58 = vmax.f32 %v825_v47, 0.0 }
 0x17c   :  { %v467_v44 = vpop.f32.mrb[62].mxu0  ;;  %v829_v62 = vpop.f32.mrb[62].mxu1 }
 0x17d   :  { %v468_v60 = vadd.f32 %v3655_v63, %v467_v44  ;;  %v2393_v61 = vpop.f32.mrb[63].mxu0  ;;  %2706 = vmatmul.mubr.msk.f32.gmra.mrb[168].mxu0 %vm98_vm1, %v3490_v49  ;;  %v4034_v41 = vmax.f32 %v586_v57, %v948_v58  ;;  %v830_v48 = vadd.f32 %v3655_v63, %v829_v62  ;;  %v2544_v2 = vpop.f32.mrb[63].mxu1  ;;  %2857 = vmatmul.mubr.msk.f32.gmra.mrb[168].mxu1 %vm98_vm1, %v3490_v49  ;;  %v2918_v44 = vld [vmem:[%s4573_s0 + $0x130] sm:$0xff] }
 0x17e   :  { %2708 = vmatprep.mubr.msk.f32.mxu0 %vm2984_vm0, %v2985_v1  ;;  %2859 = vmatprep.mubr.msk.f32.mxu1 %vm2984_vm0, %v2985_v1 }
 0x17f   :  { %v587_v3 = vmax.f32 %v468_v60, 0.0  ;;  %v949_v4 = vmax.f32 %v830_v48, 0.0 }
 0x180   :  { %v472_v45 = vpop.f32.mrb[64].mxu0  ;;  %v834_v8 = vpop.f32.mrb[64].mxu1 }
 0x181   :  { %v473_v6 = vadd.f32 %v3655_v63, %v472_v45  ;;  %v2396_v7 = vpop.f32.mrb[65].mxu0  ;;  %2709 = vmatmul.mubr.msk.f32.gmra.mrb[170].mxu0 %vm98_vm1, %v3503_v50  ;;  %v4046_v42 = vmax.f32 %v587_v3, %v949_v4  ;;  %v835_v49 = vadd.f32 %v3655_v63, %v834_v8  ;;  %v2547_v10 = vpop.f32.mrb[65].mxu1  ;;  %2860 = vmatmul.mubr.msk.f32.gmra.mrb[170].mxu1 %vm98_vm1, %v3503_v50 }
 0x182   :  { %2711 = vmatprep.mubr.msk.f32.mxu0 %vm2984_vm0, %v2985_v1  ;;  %2862 = vmatprep.mubr.msk.f32.mxu1 %vm2984_vm0, %v2985_v1  ;;  %v2919_v7 = vld [vmem:[%s4573_s0 + $0x138] sm:$0xff] }
 0x183   :  { %v588_v11 = vmax.f32 %v473_v6, 0.0  ;;  %v950_v12 = vmax.f32 %v835_v49, 0.0 }
 0x184   :  { %v477_v46 = vpop.f32.mrb[66].mxu0  ;;  %v839_v17 = vpop.f32.mrb[66].mxu1 }
 0x185   :  { %v478_v15 = vadd.f32 %v3655_v63, %v477_v46  ;;  %v2399_v16 = vpop.f32.mrb[67].mxu0  ;;  %2712 = vmatmul.mubr.msk.f32.gmra.mrb[172].mxu0 %vm98_vm1, %v3516_v51  ;;  %v4058_v43 = vmax.f32 %v588_v11, %v950_v12  ;;  %v840_v50 = vadd.f32 %v3655_v63, %v839_v17  ;;  %v2550_v52 = vpop.f32.mrb[67].mxu1  ;;  %2863 = vmatmul.mubr.msk.f32.gmra.mrb[172].mxu1 %vm98_vm1, %v2917_v53 }
 0x186   :  { %2714 = vmatprep.mubr.msk.f32.mxu0 %vm2984_vm0, %v2985_v1  ;;  %2865 = vmatprep.mubr.msk.f32.mxu1 %vm2984_vm0, %v2985_v1 }
 0x187   :  { %v589_v54 = vmax.f32 %v478_v15, 0.0  ;;  %v951_v47 = vmax.f32 %v840_v50, 0.0  ;;  %v2920_v50 = vld [vmem:[%s4573_s0 + $0x140] sm:$0xff] }
 0x188   :  { %v482_v51 = vpop.f32.mrb[68].mxu0  ;;  %v844_v58 = vpop.f32.mrb[68].mxu1 }
 0x189   :  { %v483_v56 = vadd.f32 %v3655_v63, %v482_v51  ;;  %v2402_v57 = vpop.f32.mrb[69].mxu0  ;;  %2715 = vmatmul.mubr.msk.f32.gmra.mrb[174].mxu0 %vm98_vm1, %v2918_v44  ;;  %v4074_v60 = vmax.f32 %v589_v54, %v951_v47  ;;  %v845_v61 = vadd.f32 %v3655_v63, %v844_v58  ;;  %v2553_v62 = vpop.f32.mrb[69].mxu1  ;;  %2866 = vmatmul.mubr.msk.f32.gmra.mrb[174].mxu1 %vm98_vm1, %v2918_v44 }
 0x18a   :  { %2717 = vmatprep.mubr.msk.f32.mxu0 %vm2984_vm0, %v2985_v1  ;;  %2868 = vmatprep.mubr.msk.f32.mxu1 %vm2984_vm0, %v2985_v1 }
 0x18b   :  { %v590_v48 = vmax.f32 %v483_v56, 0.0  ;;  %v952_v2 = vmax.f32 %v845_v61, 0.0  ;;  %v2921_v61 = vld [vmem:[%s4573_s0 + $0x148] sm:$0xff] }
 0x18c   :  { %v487_v3 = vpop.f32.mrb[70].mxu0  ;;  %v849_v6 = vpop.f32.mrb[70].mxu1 }
 0x18d   :  { %v488_v4 = vadd.f32 %v3655_v63, %v487_v3  ;;  %v2405_v45 = vpop.f32.mrb[71].mxu0  ;;  %2718 = vmatmul.mubr.msk.f32.gmra.mrb[176].mxu0 %vm98_vm1, %v2919_v7  ;;  %v4087_v8 = vmax.f32 %v590_v48, %v952_v2  ;;  %v850_v49 = vadd.f32 %v3655_v63, %v849_v6  ;;  %v2556_v10 = vpop.f32.mrb[71].mxu1  ;;  %2869 = vmatmul.mubr.msk.f32.gmra.mrb[176].mxu1 %vm98_vm1, %v2919_v7 }
 0x18e   :  { %2720 = vmatprep.mubr.msk.f32.mxu0 %vm2984_vm0, %v2985_v1  ;;  %2871 = vmatprep.mubr.msk.f32.mxu1 %vm2984_vm0, %v2985_v1  ;;  %v2922_v10 = vld [vmem:[%s4573_s0 + $0x150] sm:$0xff] }
 0x18f   :  { %v591_v11 = vmax.f32 %v488_v4, 0.0  ;;  %v953_v12 = vmax.f32 %v850_v49, 0.0 }
 0x190   :  { %v492_v46 = vpop.f32.mrb[72].mxu0  ;;  %v854_v17 = vpop.f32.mrb[72].mxu1 }
 0x191   :  { %v493_v15 = vadd.f32 %v3655_v63, %v492_v46  ;;  %v2408_v16 = vpop.f32.mrb[73].mxu0  ;;  %2721 = vmatmul.mubr.msk.f32.gmra.mrb[178].mxu0 %vm98_vm1, %v2920_v50  ;;  %v4100_v52 = vmax.f32 %v591_v11, %v953_v12  ;;  %v855_v53 = vadd.f32 %v3655_v63, %v854_v17  ;;  %v2559_v54 = vpop.f32.mrb[73].mxu1  ;;  %2872 = vmatmul.mubr.msk.f32.gmra.mrb[178].mxu1 %vm98_vm1, %v2920_v50 }
 0x192   :  { %2723 = vmatprep.mubr.msk.f32.mxu0 %vm2984_vm0, %v2985_v1  ;;  %2874 = vmatprep.mubr.msk.f32.mxu1 %vm2984_vm0, %v2985_v1 }
 0x193   :  { %v592_v47 = vmax.f32 %v493_v15, 0.0  ;;  %v954_v51 = vmax.f32 %v855_v53, 0.0 }
 0x194   :  { %v497_v56 = vpop.f32.mrb[74].mxu0  ;;  %v859_v44 = vpop.f32.mrb[74].mxu1 }
 0x195   :  { %v498_v57 = vadd.f32 %v3655_v63, %v497_v56  ;;  %v2411_v58 = vpop.f32.mrb[75].mxu0  ;;  %2724 = vmatmul.mubr.msk.f32.gmra.mrb[180].mxu0 %vm98_vm1, %v2921_v61  ;;  %v4113_v62 = vmax.f32 %v592_v47, %v954_v51  ;;  %v860_v48 = vadd.f32 %v3655_v63, %v859_v44  ;;  %v2562_v2 = vpop.f32.mrb[75].mxu1  ;;  %2875 = vmatmul.mubr.msk.f32.gmra.mrb[180].mxu1 %vm98_vm1, %v2921_v61  ;;  %v2923_v47 = vld [vmem:[%s4573_s0 + $0x158] sm:$0xff]  ;;  %v4141_v56 = vld [vmem:[#allocation4] ss:$0 sm:$0xff] }
 0x196   :  { %2726 = vmatprep.mubr.msk.f32.mxu0 %vm2984_vm0, %v2985_v1  ;;  %2877 = vmatprep.mubr.msk.f32.mxu1 %vm2984_vm0, %v2985_v1 }
 0x197   :  { %v593_v3 = vmax.f32 %v498_v57, 0.0  ;;  %v955_v4 = vmax.f32 %v860_v48, 0.0 }
 0x198   :  { %v502_v45 = vpop.f32.mrb[76].mxu0  ;;  %v864_v49 = vpop.f32.mrb[76].mxu1 }
 0x199   :  { %v503_v6 = vadd.f32 %v3655_v63, %v502_v45  ;;  %v2414_v7 = vpop.f32.mrb[77].mxu0  ;;  %2727 = vmatmul.mubr.msk.f32.gmra.mrb[182].mxu0 %vm98_vm1, %v2922_v10  ;;  %v4126_v11 = vmax.f32 %v593_v3, %v955_v4  ;;  %v865_v12 = vadd.f32 %v3655_v63, %v864_v49  ;;  %v2565_v46 = vpop.f32.mrb[77].mxu1  ;;  %2878 = vmatmul.mubr.msk.f32.gmra.mrb[182].mxu1 %vm98_vm1, %v2922_v10  ;;  %v2925_v4 = vld [vmem:[%s4573_s0 + $0x160] sm:$0xff] }
 0x19a   :  { %2729 = vmatprep.mubr.msk.f32.mxu0 %vm2984_vm0, %v2985_v1  ;;  %2880 = vmatprep.mubr.msk.f32.mxu1 %vm2984_vm0, %v2985_v1 }
 0x19b   :  { %v594_v15 = vmax.f32 %v503_v6, 0.0  ;;  %v956_v16 = vmax.f32 %v865_v12, 0.0 }
 0x19c   :  { %v507_v17 = vpop.f32.mrb[78].mxu0  ;;  %v869_v54 = vpop.f32.mrb[78].mxu1 }
 0x19d   :  { %v508_v50 = vadd.f32 %v3655_v63, %v507_v17  ;;  %v2417_v53 = vpop.f32.mrb[79].mxu0  ;;  %2730 = vmatmul.mubr.msk.f32.gmra.mrb[184].mxu0 %vm98_vm1, %v2923_v47  ;;  %v4139_v51 = vmax.f32 %v594_v15, %v956_v16  ;;  %v870_v57 = vadd.f32 %v4141_v56, %v869_v54  ;;  %v2568_v58 = vpop.f32.mrb[79].mxu1  ;;  %2881 = vmatmul.mubr.msk.f32.gmra.mrb[184].mxu1 %vm98_vm1, %v2923_v47  ;;  %v2926_v17 = vld [vmem:[%s4573_s0 + $0x168] sm:$0xff] }
 0x19e   :  { %2732 = vmatprep.mubr.msk.f32.mxu0 %vm2984_vm0, %v2985_v1  ;;  %2883 = vmatprep.mubr.msk.f32.mxu1 %vm2984_vm0, %v2985_v1 }
 0x19f   :  { %v595_v63 = vmax.f32 %v508_v50, 0.0  ;;  %v957_v44 = vmax.f32 %v870_v57, 0.0 }
 0x1a0   :  { %v512_v61 = vpop.f32.mrb[80].mxu0  ;;  %v874_v3 = vpop.f32.mrb[80].mxu1 }
 0x1a1   :  { %v513_v48 = vadd.f32 %v4141_v56, %v512_v61  ;;  %v2420_v2 = vpop.f32.mrb[81].mxu0  ;;  %2733 = vmatmul.mubr.msk.f32.gmra.mrb[186].mxu0 %vm98_vm1, %v2925_v4  ;;  %v4154_v45 = vmax.f32 %v595_v63, %v957_v44  ;;  %v875_v6 = vadd.f32 %v4141_v56, %v874_v3  ;;  %v2571_v7 = vpop.f32.mrb[81].mxu1  ;;  %2884 = vmatmul.mubr.msk.f32.gmra.mrb[186].mxu1 %vm98_vm1, %v2925_v4 }
 0x1a2   :  { %2735 = vmatprep.mubr.msk.f32.mxu0 %vm2984_vm0, %v2985_v1  ;;  %2886 = vmatprep.mubr.msk.f32.mxu1 %vm2984_vm0, %v2985_v1 }
 0x1a3   :  { %v596_v49 = vmax.f32 %v513_v48, 0.0  ;;  %v958_v10 = vmax.f32 %v875_v6, 0.0  ;;  %v2927_v48 = vld [vmem:[%s4573_s0 + $0x170] sm:$0xff] }
 0x1a4   :  { %v517_v12 = vpop.f32.mrb[82].mxu0  ;;  %v879_v16 = vpop.f32.mrb[82].mxu1 }
 0x1a5   :  { %v518_v46 = vadd.f32 %v4141_v56, %v517_v12  ;;  %v2423_v15 = vpop.f32.mrb[83].mxu0  ;;  %2736 = vmatmul.mubr.msk.f32.gmra.mrb[188].mxu0 %vm98_vm1, %v2926_v17  ;;  %v4167_v50 = vmax.f32 %v596_v49, %v958_v10  ;;  %v880_v53 = vadd.f32 %v4141_v56, %v879_v16  ;;  %v2574_v54 = vpop.f32.mrb[83].mxu1  ;;  %2887 = vmatmul.mubr.msk.f32.gmra.mrb[188].mxu1 %vm98_vm1, %v2926_v17 }
 0x1a6   :  { %2738 = vmatprep.mubr.msk.f32.mxu0 %vm2984_vm0, %v2985_v1  ;;  %2889 = vmatprep.mubr.msk.f32.mxu1 %vm2984_vm0, %v2985_v1  ;;  %v2928_v15 = vld [vmem:[%s4573_s0 + $0x178] sm:$0xff] }
 0x1a7   :  { %v597_v47 = vmax.f32 %v518_v46, 0.0  ;;  %v959_v57 = vmax.f32 %v880_v53, 0.0 }
 0x1a8   :  { %v522_v58 = vpop.f32.mrb[84].mxu0  ;;  %v884_v61 = vpop.f32.mrb[84].mxu1 }
 0x1a9   :  { %v523_v63 = vadd.f32 %v4141_v56, %v522_v58  ;;  %v2426_v44 = vpop.f32.mrb[85].mxu0  ;;  %2739 = vmatmul.mubr.msk.f32.gmra.mrb[190].mxu0 %vm98_vm1, %v2927_v48  ;;  %v4180_v2 = vmax.f32 %v597_v47, %v959_v57  ;;  %v885_v3 = vadd.f32 %v4141_v56, %v884_v61  ;;  %v2577_v4 = vpop.f32.mrb[85].mxu1  ;;  %2890 = vmatmul.mubr.msk.f32.gmra.mrb[190].mxu1 %vm98_vm1, %v2927_v48  ;;  %v2929_v61 = vld [vmem:[%s4573_s0 + $0x180] sm:$0xff] }
 0x1aa   :  { %2741 = vmatprep.mubr.msk.f32.mxu0 %vm2984_vm0, %v2985_v1  ;;  %2892 = vmatprep.mubr.msk.f32.mxu1 %vm2984_vm0, %v2985_v1 }
 0x1ab   :  { %v598_v6 = vmax.f32 %v523_v63, 0.0  ;;  %v960_v7 = vmax.f32 %v885_v3, 0.0 }
 0x1ac   :  { %v527_v49 = vpop.f32.mrb[86].mxu0  ;;  %v889_v46 = vpop.f32.mrb[86].mxu1 }
 0x1ad   :  { %v528_v10 = vadd.f32 %v4141_v56, %v527_v49  ;;  %v2429_v12 = vpop.f32.mrb[87].mxu0  ;;  %2742 = vmatmul.mubr.msk.f32.gmra.mrb[192].mxu0 %vm98_vm1, %v2928_v15  ;;  %v4193_v16 = vmax.f32 %v598_v6, %v960_v7  ;;  %v890_v17 = vadd.f32 %v4141_v56, %v889_v46  ;;  %v2580_v53 = vpop.f32.mrb[87].mxu1  ;;  %2893 = vmatmul.mubr.msk.f32.gmra.mrb[192].mxu1 %vm98_vm1, %v2928_v15 }
 0x1ae   :  { %2744 = vmatprep.mubr.msk.f32.mxu0 %vm2984_vm0, %v2985_v1  ;;  %2895 = vmatprep.mubr.msk.f32.mxu1 %vm2984_vm0, %v2985_v1 }
 0x1af   :  { %v599_v54 = vmax.f32 %v528_v10, 0.0  ;;  %v961_v47 = vmax.f32 %v890_v17, 0.0 }
 0x1b0   :  { %v532_v57 = vpop.f32.mrb[88].mxu0  ;;  %v894_v44 = vpop.f32.mrb[88].mxu1 }
 0x1b1   :  { %v533_v58 = vadd.f32 %v4141_v56, %v532_v57  ;;  %v2432_v63 = vpop.f32.mrb[89].mxu0  ;;  %2745 = vmatmul.mubr.msk.f32.gmra.mrb[194].mxu0 %vm98_vm1, %v2929_v61  ;;  %v4206_v48 = vmax.f32 %v599_v54, %v961_v47  ;;  %v895_v3 = vadd.f32 %v4141_v56, %v894_v44  ;;  %v2583_v4 = vpop.f32.mrb[89].mxu1  ;;  %2896 = vmatmul.mubr.msk.f32.gmra.mrb[194].mxu1 %vm98_vm1, %v2929_v61 }
 0x1b3   :  { %v600_v1 = vmax.f32 %v533_v58, 0.0  ;;  %v962_v6 = vmax.f32 %v895_v3, 0.0 }
 0x1b4   :  { %v537_v7 = vpop.f32.mrb[90].mxu0  ;;  %v899_v12 = vpop.f32.mrb[90].mxu1 }
 0x1b5   :  { %v538_v49 = vadd.f32 %v4141_v56, %v537_v7  ;;  %v2435_v10 = vpop.f32.mrb[91].mxu0  ;;  %v4211_v46 = vmax.f32 %v600_v1, %v962_v6  ;;  %v900_v15 = vadd.f32 %v4141_v56, %v899_v12  ;;  %v2586_v17 = vpop.f32.mrb[91].mxu1 }
 0x1b7   :  { %4577 = vst [vmem:[#allocation8_spill] sm:$0xff] %v4211_v46  ;;  %v601_v53 = vmax.f32 %v538_v49, 0.0  ;;  %v963_v54 = vmax.f32 %v900_v15, 0.0 }
 0x1b8   :  { %v542_v47 = vpop.f32.mrb[92].mxu0  ;;  %v904_v44 = vpop.f32.mrb[92].mxu1 }
 0x1b9   :  { %v543_v57 = vadd.f32 %v4141_v56, %v542_v47  ;;  %v2438_v63 = vpop.f32.mrb[93].mxu0  ;;  %v4215_v61 = vmax.f32 %v601_v53, %v963_v54  ;;  %v905_v58 = vadd.f32 %v4141_v56, %v904_v44  ;;  %v2589_v3 = vpop.f32.mrb[93].mxu1 }
 0x1bb   :  { %4578 = vst [vmem:[#allocation9_spill] sm:$0xff] %v4215_v61  ;;  %v602_v4 = vmax.f32 %v543_v57, 0.0  ;;  %v964_v7 = vmax.f32 %v905_v58, 0.0 }
 0x1bc   :  { %v547_v10 = vpop.f32.mrb[94].mxu0  ;;  %v909_v12 = vpop.f32.mrb[94].mxu1 }
 0x1bd   :  { %v548_v1 = vadd.f32 %v4141_v56, %v547_v10  ;;  %v2441_v6 = vpop.f32.mrb[95].mxu0  ;;  %v4219_v17 = vmax.f32 %v602_v4, %v964_v7  ;;  %v910_v49 = vadd.f32 %v4141_v56, %v909_v12  ;;  %v2592_v15 = vpop.f32.mrb[95].mxu1 }
 0x1bf   :  { %4579 = vst [vmem:[#allocation10_spill] sm:$0xff] %v4219_v17  ;;  %v603_v47 = vmax.f32 %v548_v1, 0.0  ;;  %v965_v63 = vmax.f32 %v910_v49, 0.0 }
 0x1c0   :  { %v552_v46 = vpop.f32.mrb[96].mxu0  ;;  %v914_v44 = vpop.f32.mrb[96].mxu1 }
 0x1c1   :  { %v553_v53 = vadd.f32 %v4141_v56, %v552_v46  ;;  %v2444_v54 = vpop.f32.mrb[97].mxu0  ;;  %v4223_v3 = vmax.f32 %v603_v47, %v965_v63  ;;  %v915_v57 = vadd.f32 %v4141_v56, %v914_v44  ;;  %v2595_v58 = vpop.f32.mrb[97].mxu1 }
 0x1c3   :  { %4580 = vst [vmem:[#allocation11_spill] sm:$0xff] %v4223_v3  ;;  %v604_v10 = vmax.f32 %v553_v53, 0.0  ;;  %v966_v6 = vmax.f32 %v915_v57, 0.0 }
 0x1c4   :  { %v1085_v61 = vpop.f32.mrb[98].mxu0  ;;  %v1496_v12 = vpop.f32.mrb[98].mxu1 }
 0x1c5   :  { %v1086_v4 = vadd.f32 %v4141_v56, %v1085_v61  ;;  %v2602_v7 = vpop.f32.mrb[99].mxu0  ;;  %v4227_v15 = vmax.f32 %v604_v10, %v966_v6  ;;  %v1497_v1 = vadd.f32 %v4141_v56, %v1496_v12  ;;  %v2753_v49 = vpop.f32.mrb[99].mxu1 }
 0x1c7   :  { %v1329_v46 = vmax.f32 %v1086_v4, 0.0  ;;  %v1740_v54 = vmax.f32 %v1497_v1, 0.0 }
 0x1c8   :  { %v1090_v17 = vpop.f32.mrb[100].mxu0  ;;  %v1501_v53 = vpop.f32.mrb[100].mxu1 }
 0x1c9   :  { %v1378_v47 = vmax.f32 %v3674_v13, %v1329_v46  ;;  %v1091_v63 = vadd.f32 %v4141_v56, %v1090_v17  ;;  %v2605_v44 = vpop.f32.mrb[101].mxu0  ;;  %v1502_v57 = vadd.f32 %v4141_v56, %v1501_v53  ;;  %v2756_v58 = vpop.f32.mrb[101].mxu1 }
 0x1cb   :  { %v1789_v61 = vmax.f32 %v1378_v47, %v1740_v54  ;;  %v1330_v7 = vmax.f32 %v1091_v63, 0.0  ;;  %v1741_v3 = vmax.f32 %v1502_v57, 0.0 }
 0x1cc   :  { %v1095_v10 = vpop.f32.mrb[102].mxu0  ;;  %v1506_v17 = vpop.f32.mrb[102].mxu1 }
 0x1cd   :  { %1838 = vst.msk [vmem:[%s4576_s3] sm:$0xff] %vm98_vm1, %v1789_v61  ;;  %v1379_v6 = vmax.f32 %v3686_v55, %v1330_v7  ;;  %v1096_v13 = vadd.f32 %v4141_v56, %v1095_v10  ;;  %v2608_v4 = vpop.f32.mrb[103].mxu0  ;;  %v1507_v12 = vadd.f32 %v4141_v56, %v1506_v17  ;;  %v2759_v1 = vpop.f32.mrb[103].mxu1 }
 0x1cf   :  { %v1790_v49 = vmax.f32 %v1379_v6, %v1741_v3  ;;  %v1331_v46 = vmax.f32 %v1096_v13, 0.0  ;;  %v1742_v54 = vmax.f32 %v1507_v12, 0.0 }
 0x1d0   :  { %v1100_v47 = vpop.f32.mrb[104].mxu0  ;;  %v1511_v53 = vpop.f32.mrb[104].mxu1 }
 0x1d1   :  { %1839 = vst.msk [vmem:[%s4576_s3 + $0x8] sm:$0xff] %vm98_vm1, %v1790_v49  ;;  %v1380_v63 = vmax.f32 %v3698_v0, %v1331_v46  ;;  %v1101_v55 = vadd.f32 %v4141_v56, %v1100_v47  ;;  %v2611_v44 = vpop.f32.mrb[105].mxu0  ;;  %v1512_v57 = vadd.f32 %v4141_v56, %v1511_v53  ;;  %v2762_v58 = vpop.f32.mrb[105].mxu1 }
 0x1d3   :  { %v1791_v61 = vmax.f32 %v1380_v63, %v1742_v54  ;;  %v1332_v7 = vmax.f32 %v1101_v55, 0.0  ;;  %v1743_v3 = vmax.f32 %v1512_v57, 0.0 }
 0x1d4   :  { %v1105_v10 = vpop.f32.mrb[106].mxu0  ;;  %v1516_v4 = vpop.f32.mrb[106].mxu1 }
 0x1d5   :  { %1840 = vst.msk [vmem:[%s4576_s3 + $0x10] sm:$0xff] %vm98_vm1, %v1791_v61  ;;  %v1381_v6 = vmax.f32 %v3710_v9, %v1332_v7  ;;  %v1106_v0 = vadd.f32 %v4141_v56, %v1105_v10  ;;  %v2614_v13 = vpop.f32.mrb[107].mxu0  ;;  %v1517_v17 = vadd.f32 %v4141_v56, %v1516_v4  ;;  %v2765_v12 = vpop.f32.mrb[107].mxu1 }
 0x1d7   :  { %v1792_v1 = vmax.f32 %v1381_v6, %v1743_v3  ;;  %v1333_v49 = vmax.f32 %v1106_v0, 0.0  ;;  %v1744_v46 = vmax.f32 %v1517_v17, 0.0 }
 0x1d8   :  { %v1110_v54 = vpop.f32.mrb[108].mxu0  ;;  %v1521_v55 = vpop.f32.mrb[108].mxu1 }
 0x1d9   :  { %1841 = vst.msk [vmem:[%s4576_s3 + $0x18] sm:$0xff] %vm98_vm1, %v1792_v1  ;;  %v1382_v47 = vmax.f32 %v3722_v18, %v1333_v49  ;;  %v1111_v9 = vadd.f32 %v4141_v56, %v1110_v54  ;;  %v2617_v63 = vpop.f32.mrb[109].mxu0  ;;  %v1522_v44 = vadd.f32 %v4141_v56, %v1521_v55  ;;  %v2768_v53 = vpop.f32.mrb[109].mxu1 }
 0x1db   :  { %v1793_v57 = vmax.f32 %v1382_v47, %v1744_v46  ;;  %v1334_v58 = vmax.f32 %v1111_v9, 0.0  ;;  %v1745_v61 = vmax.f32 %v1522_v44, 0.0 }
 0x1dc   :  { %v1115_v7 = vpop.f32.mrb[110].mxu0  ;;  %v1526_v6 = vpop.f32.mrb[110].mxu1 }
 0x1dd   :  { %1842 = vst.msk [vmem:[%s4576_s3 + $0x20] sm:$0xff] %vm98_vm1, %v1793_v57  ;;  %v1383_v3 = vmax.f32 %v3734_v59, %v1334_v58  ;;  %v1116_v18 = vadd.f32 %v4141_v56, %v1115_v7  ;;  %v2620_v10 = vpop.f32.mrb[111].mxu0  ;;  %v1527_v0 = vadd.f32 %v4141_v56, %v1526_v6  ;;  %v2771_v13 = vpop.f32.mrb[111].mxu1 }
 0x1df   :  { %v1794_v4 = vmax.f32 %v1383_v3, %v1745_v61  ;;  %v1335_v17 = vmax.f32 %v1116_v18, 0.0  ;;  %v1746_v12 = vmax.f32 %v1527_v0, 0.0 }
 0x1e0   :  { %v1120_v1 = vpop.f32.mrb[112].mxu0  ;;  %v1531_v54 = vpop.f32.mrb[112].mxu1 }
 0x1e1   :  { %1843 = vst.msk [vmem:[%s4576_s3 + $0x28] sm:$0xff] %vm98_vm1, %v1794_v4  ;;  %v1384_v49 = vmax.f32 %v3746_v5, %v1335_v17  ;;  %v1121_v59 = vadd.f32 %v4141_v56, %v1120_v1  ;;  %v2623_v46 = vpop.f32.mrb[113].mxu0  ;;  %v1532_v47 = vadd.f32 %v4141_v56, %v1531_v54  ;;  %v2774_v9 = vpop.f32.mrb[113].mxu1 }
 0x1e3   :  { %v1795_v63 = vmax.f32 %v1384_v49, %v1746_v12  ;;  %v1336_v55 = vmax.f32 %v1121_v59, 0.0  ;;  %v1747_v44 = vmax.f32 %v1532_v47, 0.0 }
 0x1e4   :  { %v1125_v53 = vpop.f32.mrb[114].mxu0  ;;  %v1536_v61 = vpop.f32.mrb[114].mxu1 }
 0x1e5   :  { %1844 = vst.msk [vmem:[%s4576_s3 + $0x30] sm:$0xff] %vm98_vm1, %v1795_v63  ;;  %v1385_v57 = vmax.f32 %v3758_v14, %v1336_v55  ;;  %v1126_v5 = vadd.f32 %v4141_v56, %v1125_v53  ;;  %v2626_v58 = vpop.f32.mrb[115].mxu0  ;;  %v1537_v7 = vadd.f32 %v4141_v56, %v1536_v61  ;;  %v2777_v3 = vpop.f32.mrb[115].mxu1 }
 0x1e7   :  { %v1796_v18 = vmax.f32 %v1385_v57, %v1747_v44  ;;  %v1337_v10 = vmax.f32 %v1126_v5, 0.0  ;;  %v1748_v6 = vmax.f32 %v1537_v7, 0.0 }
 0x1e8   :  { %v1130_v0 = vpop.f32.mrb[116].mxu0  ;;  %v1541_v17 = vpop.f32.mrb[116].mxu1 }
 0x1e9   :  { %1845 = vst.msk [vmem:[%s4576_s3 + $0x38] sm:$0xff] %vm98_vm1, %v1796_v18  ;;  %v1386_v13 = vmax.f32 %v3770_v19, %v1337_v10  ;;  %v1131_v14 = vadd.f32 %v4141_v56, %v1130_v0  ;;  %v2629_v4 = vpop.f32.mrb[117].mxu0  ;;  %v1542_v12 = vadd.f32 %v4141_v56, %v1541_v17  ;;  %v2780_v1 = vpop.f32.mrb[117].mxu1 }
 0x1eb   :  { %v1797_v49 = vmax.f32 %v1386_v13, %v1748_v6  ;;  %v1338_v59 = vmax.f32 %v1131_v14, 0.0  ;;  %v1749_v46 = vmax.f32 %v1542_v12, 0.0 }
 0x1ec   :  { %v1135_v54 = vpop.f32.mrb[118].mxu0  ;;  %v1546_v63 = vpop.f32.mrb[118].mxu1 }
 0x1ed   :  { %1846 = vst.msk [vmem:[%s4576_s3 + $0x40] sm:$0xff] %vm98_vm1, %v1797_v49  ;;  %v1387_v47 = vmax.f32 %v3782_v20, %v1338_v59  ;;  %v1136_v19 = vadd.f32 %v4141_v56, %v1135_v54  ;;  %v2632_v9 = vpop.f32.mrb[119].mxu0  ;;  %v1547_v55 = vadd.f32 %v4141_v56, %v1546_v63  ;;  %v2783_v44 = vpop.f32.mrb[119].mxu1 }
 0x1ef   :  { %v1798_v53 = vmax.f32 %v1387_v47, %v1749_v46  ;;  %v1339_v57 = vmax.f32 %v1136_v19, 0.0  ;;  %v1750_v5 = vmax.f32 %v1547_v55, 0.0 }
 0x1f0   :  { %v1140_v58 = vpop.f32.mrb[120].mxu0  ;;  %v1551_v3 = vpop.f32.mrb[120].mxu1 }
 0x1f1   :  { %1847 = vst.msk [vmem:[%s4576_s3 + $0x48] sm:$0xff] %vm98_vm1, %v1798_v53  ;;  %v1388_v61 = vmax.f32 %v3794_v21, %v1339_v57  ;;  %v1141_v20 = vadd.f32 %v4141_v56, %v1140_v58  ;;  %v2635_v7 = vpop.f32.mrb[121].mxu0  ;;  %v1552_v18 = vadd.f32 %v4141_v56, %v1551_v3  ;;  %v2786_v10 = vpop.f32.mrb[121].mxu1 }
 0x1f3   :  { %v1799_v6 = vmax.f32 %v1388_v61, %v1750_v5  ;;  %v1340_v0 = vmax.f32 %v1141_v20, 0.0  ;;  %v1751_v13 = vmax.f32 %v1552_v18, 0.0 }
 0x1f4   :  { %v1145_v14 = vpop.f32.mrb[122].mxu0  ;;  %v1556_v12 = vpop.f32.mrb[122].mxu1 }
 0x1f5   :  { %1848 = vst.msk [vmem:[%s4576_s3 + $0x50] sm:$0xff] %vm98_vm1, %v1799_v6  ;;  %v1389_v4 = vmax.f32 %v3806_v22, %v1340_v0  ;;  %v1146_v21 = vadd.f32 %v4141_v56, %v1145_v14  ;;  %v2638_v17 = vpop.f32.mrb[123].mxu0  ;;  %v1557_v1 = vadd.f32 %v4141_v56, %v1556_v12  ;;  %v2789_v49 = vpop.f32.mrb[123].mxu1 }
 0x1f7   :  { %v1800_v59 = vmax.f32 %v1389_v4, %v1751_v13  ;;  %v1341_v46 = vmax.f32 %v1146_v21, 0.0  ;;  %v1752_v54 = vmax.f32 %v1557_v1, 0.0 }
 0x1f8   :  { %v1150_v47 = vpop.f32.mrb[124].mxu0  ;;  %v1561_v63 = vpop.f32.mrb[124].mxu1 }
 0x1f9   :  { %1849 = vst.msk [vmem:[%s4576_s3 + $0x58] sm:$0xff] %vm98_vm1, %v1800_v59  ;;  %v1390_v19 = vmax.f32 %v3818_v23, %v1341_v46  ;;  %v1151_v22 = vadd.f32 %v4141_v56, %v1150_v47  ;;  %v2641_v9 = vpop.f32.mrb[125].mxu0  ;;  %v1562_v55 = vadd.f32 %v4141_v56, %v1561_v63  ;;  %v2792_v44 = vpop.f32.mrb[125].mxu1 }
 0x1fb   :  { %v1801_v53 = vmax.f32 %v1390_v19, %v1752_v54  ;;  %v1342_v57 = vmax.f32 %v1151_v22, 0.0  ;;  %v1753_v5 = vmax.f32 %v1562_v55, 0.0 }
 0x1fc   :  { %v1155_v58 = vpop.f32.mrb[126].mxu0  ;;  %v1566_v7 = vpop.f32.mrb[126].mxu1 }
 0x1fd   :  { %1850 = vst.msk [vmem:[%s4576_s3 + $0x60] sm:$0xff] %vm98_vm1, %v1801_v53  ;;  %v1391_v61 = vmax.f32 %v3830_v24, %v1342_v57  ;;  %v1156_v23 = vadd.f32 %v4141_v56, %v1155_v58  ;;  %v2644_v20 = vpop.f32.mrb[127].mxu0  ;;  %v1567_v3 = vadd.f32 %v4141_v56, %v1566_v7  ;;  %v2795_v18 = vpop.f32.mrb[127].mxu1 }
 0x1ff   :  { %v1802_v10 = vmax.f32 %v1391_v61, %v1753_v5  ;;  %v1343_v6 = vmax.f32 %v1156_v23, 0.0  ;;  %v1754_v0 = vmax.f32 %v1567_v3, 0.0 }
 0x200   :  { %v1160_v13 = vpop.f32.mrb[128].mxu0  ;;  %v1571_v21 = vpop.f32.mrb[128].mxu1 }
 0x201   :  { %1851 = vst.msk [vmem:[%s4576_s3 + $0x68] sm:$0xff] %vm98_vm1, %v1802_v10  ;;  %v1392_v14 = vmax.f32 %v3842_v25, %v1343_v6  ;;  %v1161_v24 = vadd.f32 %v4141_v56, %v1160_v13  ;;  %v2647_v4 = vpop.f32.mrb[129].mxu0  ;;  %v1572_v17 = vadd.f32 %v4141_v56, %v1571_v21  ;;  %v2798_v12 = vpop.f32.mrb[129].mxu1 }
 0x203   :  { %v1803_v1 = vmax.f32 %v1392_v14, %v1754_v0  ;;  %v1344_v49 = vmax.f32 %v1161_v24, 0.0  ;;  %v1755_v59 = vmax.f32 %v1572_v17, 0.0 }
 0x204   :  { %v1165_v46 = vpop.f32.mrb[130].mxu0  ;;  %v1576_v19 = vpop.f32.mrb[130].mxu1 }
 0x205   :  { %1852 = vst.msk [vmem:[%s4576_s3 + $0x70] sm:$0xff] %vm98_vm1, %v1803_v1  ;;  %v1393_v54 = vmax.f32 %v3854_v26, %v1344_v49  ;;  %v1166_v25 = vadd.f32 %v4141_v56, %v1165_v46  ;;  %v2650_v47 = vpop.f32.mrb[131].mxu0  ;;  %v1577_v22 = vadd.f32 %v4141_v56, %v1576_v19  ;;  %v2801_v9 = vpop.f32.mrb[131].mxu1 }
 0x207   :  { %v1804_v63 = vmax.f32 %v1393_v54, %v1755_v59  ;;  %v1345_v55 = vmax.f32 %v1166_v25, 0.0  ;;  %v1756_v44 = vmax.f32 %v1577_v22, 0.0 }
 0x208   :  { %v1170_v53 = vpop.f32.mrb[132].mxu0  ;;  %v1581_v58 = vpop.f32.mrb[132].mxu1 }
 0x209   :  { %1853 = vst.msk [vmem:[%s4576_s3 + $0x78] sm:$0xff] %vm98_vm1, %v1804_v63  ;;  %v1394_v57 = vmax.f32 %v3866_v27, %v1345_v55  ;;  %v1171_v26 = vadd.f32 %v4141_v56, %v1170_v53  ;;  %v2653_v5 = vpop.f32.mrb[133].mxu0  ;;  %v1582_v61 = vadd.f32 %v4141_v56, %v1581_v58  ;;  %v2804_v23 = vpop.f32.mrb[133].mxu1 }
 0x20b   :  { %v1805_v20 = vmax.f32 %v1394_v57, %v1756_v44  ;;  %v1346_v7 = vmax.f32 %v1171_v26, 0.0  ;;  %v1757_v3 = vmax.f32 %v1582_v61, 0.0 }
 0x20c   :  { %v1175_v18 = vpop.f32.mrb[134].mxu0  ;;  %v1586_v0 = vpop.f32.mrb[134].mxu1 }
 0x20d   :  { %1854 = vst.msk [vmem:[%s4576_s3 + $0x80] sm:$0xff] %vm98_vm1, %v1805_v20  ;;  %v1395_v10 = vmax.f32 %v3878_v28, %v1346_v7  ;;  %v1176_v27 = vadd.f32 %v4141_v56, %v1175_v18  ;;  %v2656_v6 = vpop.f32.mrb[135].mxu0  ;;  %v1587_v13 = vadd.f32 %v4141_v56, %v1586_v0  ;;  %v2807_v14 = vpop.f32.mrb[135].mxu1 }
 0x20f   :  { %v1806_v24 = vmax.f32 %v1395_v10, %v1757_v3  ;;  %v1347_v4 = vmax.f32 %v1176_v27, 0.0  ;;  %v1758_v21 = vmax.f32 %v1587_v13, 0.0 }
 0x210   :  { %v1180_v17 = vpop.f32.mrb[136].mxu0  ;;  %v1591_v49 = vpop.f32.mrb[136].mxu1 }
 0x211   :  { %1855 = vst.msk [vmem:[%s4576_s3 + $0x88] sm:$0xff] %vm98_vm1, %v1806_v24  ;;  %v1396_v12 = vmax.f32 %v3890_v29, %v1347_v4  ;;  %v1181_v28 = vadd.f32 %v4141_v56, %v1180_v17  ;;  %v2659_v1 = vpop.f32.mrb[137].mxu0  ;;  %v1592_v59 = vadd.f32 %v4141_v56, %v1591_v49  ;;  %v2810_v46 = vpop.f32.mrb[137].mxu1 }
 0x213   :  { %v1807_v54 = vmax.f32 %v1396_v12, %v1758_v21  ;;  %v1348_v25 = vmax.f32 %v1181_v28, 0.0  ;;  %v1759_v47 = vmax.f32 %v1592_v59, 0.0 }
 0x214   :  { %v1185_v19 = vpop.f32.mrb[138].mxu0  ;;  %v1596_v63 = vpop.f32.mrb[138].mxu1 }
 0x215   :  { %1856 = vst.msk [vmem:[%s4576_s3 + $0x90] sm:$0xff] %vm98_vm1, %v1807_v54  ;;  %v1397_v22 = vmax.f32 %v3902_v30, %v1348_v25  ;;  %v1186_v29 = vadd.f32 %v4141_v56, %v1185_v19  ;;  %v2662_v9 = vpop.f32.mrb[139].mxu0  ;;  %v1597_v55 = vadd.f32 %v4141_v56, %v1596_v63  ;;  %v2813_v44 = vpop.f32.mrb[139].mxu1 }
 0x217   :  { %v1808_v53 = vmax.f32 %v1397_v22, %v1759_v47  ;;  %v1349_v57 = vmax.f32 %v1186_v29, 0.0  ;;  %v1760_v26 = vmax.f32 %v1597_v55, 0.0 }
 0x218   :  { %v1190_v5 = vpop.f32.mrb[140].mxu0  ;;  %v1601_v23 = vpop.f32.mrb[140].mxu1 }
 0x219   :  { %1857 = vst.msk [vmem:[%s4576_s3 + $0x98] sm:$0xff] %vm98_vm1, %v1808_v53  ;;  %v1398_v58 = vmax.f32 %v3914_v31, %v1349_v57  ;;  %v1191_v30 = vadd.f32 %v4141_v56, %v1190_v5  ;;  %v2665_v61 = vpop.f32.mrb[141].mxu0  ;;  %v1602_v20 = vadd.f32 %v4141_v56, %v1601_v23  ;;  %v2816_v7 = vpop.f32.mrb[141].mxu1 }
 0x21b   :  { %v1809_v3 = vmax.f32 %v1398_v58, %v1760_v26  ;;  %v1350_v18 = vmax.f32 %v1191_v30, 0.0  ;;  %v1761_v10 = vmax.f32 %v1602_v20, 0.0 }
 0x21c   :  { %v1195_v27 = vpop.f32.mrb[142].mxu0  ;;  %v1606_v13 = vpop.f32.mrb[142].mxu1 }
 0x21d   :  { %1858 = vst.msk [vmem:[%s4576_s3 + $0xa0] sm:$0xff] %vm98_vm1, %v1809_v3  ;;  %v1399_v6 = vmax.f32 %v3926_v32, %v1350_v18  ;;  %v1196_v31 = vadd.f32 %v4141_v56, %v1195_v27  ;;  %v2668_v0 = vpop.f32.mrb[143].mxu0  ;;  %v1607_v14 = vadd.f32 %v4141_v56, %v1606_v13  ;;  %v2819_v24 = vpop.f32.mrb[143].mxu1 }
 0x21f   :  { %v1810_v4 = vmax.f32 %v1399_v6, %v1761_v10  ;;  %v1351_v21 = vmax.f32 %v1196_v31, 0.0  ;;  %v1762_v17 = vmax.f32 %v1607_v14, 0.0 }
 0x220   :  { %v1200_v12 = vpop.f32.mrb[144].mxu0  ;;  %v1611_v49 = vpop.f32.mrb[144].mxu1 }
 0x221   :  { %1859 = vst.msk [vmem:[%s4576_s3 + $0xa8] sm:$0xff] %vm98_vm1, %v1810_v4  ;;  %v1400_v28 = vmax.f32 %v3938_v33, %v1351_v21  ;;  %v1201_v32 = vadd.f32 %v4141_v56, %v1200_v12  ;;  %v2671_v1 = vpop.f32.mrb[145].mxu0  ;;  %v1612_v59 = vadd.f32 %v4141_v56, %v1611_v49  ;;  %v2822_v46 = vpop.f32.mrb[145].mxu1 }
 0x223   :  { %v1811_v54 = vmax.f32 %v1400_v28, %v1762_v17  ;;  %v1352_v25 = vmax.f32 %v1201_v32, 0.0  ;;  %v1763_v47 = vmax.f32 %v1612_v59, 0.0 }
 0x224   :  { %v1205_v19 = vpop.f32.mrb[146].mxu0  ;;  %v1616_v9 = vpop.f32.mrb[146].mxu1 }
 0x225   :  { %1860 = vst.msk [vmem:[%s4576_s3 + $0xb0] sm:$0xff] %vm98_vm1, %v1811_v54  ;;  %v1401_v22 = vmax.f32 %v3950_v34, %v1352_v25  ;;  %v1206_v33 = vadd.f32 %v4141_v56, %v1205_v19  ;;  %v2674_v29 = vpop.f32.mrb[147].mxu0  ;;  %v1617_v63 = vadd.f32 %v4141_v56, %v1616_v9  ;;  %v2825_v55 = vpop.f32.mrb[147].mxu1 }
 0x227   :  { %v1812_v44 = vmax.f32 %v1401_v22, %v1763_v47  ;;  %v1353_v53 = vmax.f32 %v1206_v33, 0.0  ;;  %v1764_v57 = vmax.f32 %v1617_v63, 0.0 }
 0x228   :  { %v1210_v26 = vpop.f32.mrb[148].mxu0  ;;  %v1621_v30 = vpop.f32.mrb[148].mxu1 }
 0x229   :  { %1861 = vst.msk [vmem:[%s4576_s3 + $0xb8] sm:$0xff] %vm98_vm1, %v1812_v44  ;;  %v1402_v5 = vmax.f32 %v3962_v35, %v1353_v53  ;;  %v1211_v34 = vadd.f32 %v4141_v56, %v1210_v26  ;;  %v2677_v58 = vpop.f32.mrb[149].mxu0  ;;  %v1622_v61 = vadd.f32 %v4141_v56, %v1621_v30  ;;  %v2828_v23 = vpop.f32.mrb[149].mxu1 }
 0x22b   :  { %v1813_v20 = vmax.f32 %v1402_v5, %v1764_v57  ;;  %v1354_v7 = vmax.f32 %v1211_v34, 0.0  ;;  %v1765_v3 = vmax.f32 %v1622_v61, 0.0 }
 0x22c   :  { %v1215_v18 = vpop.f32.mrb[150].mxu0  ;;  %v1626_v6 = vpop.f32.mrb[150].mxu1 }
 0x22d   :  { %1862 = vst.msk [vmem:[%s4576_s3 + $0xc0] sm:$0xff] %vm98_vm1, %v1813_v20  ;;  %v1403_v10 = vmax.f32 %v3974_v36, %v1354_v7  ;;  %v1216_v35 = vadd.f32 %v4141_v56, %v1215_v18  ;;  %v2680_v27 = vpop.f32.mrb[151].mxu0  ;;  %v1627_v31 = vadd.f32 %v4141_v56, %v1626_v6  ;;  %v2831_v0 = vpop.f32.mrb[151].mxu1 }
 0x22f   :  { %v1814_v13 = vmax.f32 %v1403_v10, %v1765_v3  ;;  %v1355_v14 = vmax.f32 %v1216_v35, 0.0  ;;  %v1766_v24 = vmax.f32 %v1627_v31, 0.0 }
 0x230   :  { %v1220_v4 = vpop.f32.mrb[152].mxu0  ;;  %v1631_v12 = vpop.f32.mrb[152].mxu1 }
 0x231   :  { %1863 = vst.msk [vmem:[%s4576_s3 + $0xc8] sm:$0xff] %vm98_vm1, %v1814_v13  ;;  %v1404_v21 = vmax.f32 %v3986_v37, %v1355_v14  ;;  %v1221_v36 = vadd.f32 %v4141_v56, %v1220_v4  ;;  %v2683_v17 = vpop.f32.mrb[153].mxu0  ;;  %v1632_v28 = vadd.f32 %v4141_v56, %v1631_v12  ;;  %v2834_v32 = vpop.f32.mrb[153].mxu1 }
 0x233   :  { %v1815_v1 = vmax.f32 %v1404_v21, %v1766_v24  ;;  %v1356_v49 = vmax.f32 %v1221_v36, 0.0  ;;  %v1767_v59 = vmax.f32 %v1632_v28, 0.0 }
 0x234   :  { %v1225_v46 = vpop.f32.mrb[154].mxu0  ;;  %v1636_v47 = vpop.f32.mrb[154].mxu1 }
 0x235   :  { %1864 = vst.msk [vmem:[%s4576_s3 + $0xd0] sm:$0xff] %vm98_vm1, %v1815_v1  ;;  %v1405_v54 = vmax.f32 %v3998_v38, %v1356_v49  ;;  %v1226_v37 = vadd.f32 %v4141_v56, %v1225_v46  ;;  %v2686_v25 = vpop.f32.mrb[155].mxu0  ;;  %v1637_v19 = vadd.f32 %v4141_v56, %v1636_v47  ;;  %v2837_v22 = vpop.f32.mrb[155].mxu1 }
 0x237   :  { %v1816_v33 = vmax.f32 %v1405_v54, %v1767_v59  ;;  %v1357_v29 = vmax.f32 %v1226_v37, 0.0  ;;  %v1768_v9 = vmax.f32 %v1637_v19, 0.0 }
 0x238   :  { %v1230_v63 = vpop.f32.mrb[156].mxu0  ;;  %v1641_v53 = vpop.f32.mrb[156].mxu1 }
 0x239   :  { %1865 = vst.msk [vmem:[%s4576_s3 + $0xd8] sm:$0xff] %vm98_vm1, %v1816_v33  ;;  %v1406_v55 = vmax.f32 %v4010_v39, %v1357_v29  ;;  %v1231_v38 = vadd.f32 %v4141_v56, %v1230_v63  ;;  %v2689_v44 = vpop.f32.mrb[157].mxu0  ;;  %v1642_v57 = vadd.f32 %v4141_v56, %v1641_v53  ;;  %v2840_v26 = vpop.f32.mrb[157].mxu1 }
 0x23b   :  { %v1817_v5 = vmax.f32 %v1406_v55, %v1768_v9  ;;  %v1358_v34 = vmax.f32 %v1231_v38, 0.0  ;;  %v1769_v58 = vmax.f32 %v1642_v57, 0.0 }
 0x23c   :  { %v1235_v30 = vpop.f32.mrb[158].mxu0  ;;  %v1646_v20 = vpop.f32.mrb[158].mxu1 }
 0x23d   :  { %1866 = vst.msk [vmem:[%s4576_s3 + $0xe0] sm:$0xff] %vm98_vm1, %v1817_v5  ;;  %v1407_v61 = vmax.f32 %v4022_v40, %v1358_v34  ;;  %v1236_v39 = vadd.f32 %v4141_v56, %v1235_v30  ;;  %v2692_v23 = vpop.f32.mrb[159].mxu0  ;;  %v1647_v7 = vadd.f32 %v4141_v56, %v1646_v20  ;;  %v2843_v3 = vpop.f32.mrb[159].mxu1 }
 0x23f   :  { %v1818_v18 = vmax.f32 %v1407_v61, %v1769_v58  ;;  %v1359_v10 = vmax.f32 %v1236_v39, 0.0  ;;  %v1770_v35 = vmax.f32 %v1647_v7, 0.0 }
 0x240   :  { %v1240_v27 = vpop.f32.mrb[160].mxu0  ;;  %v1651_v0 = vpop.f32.mrb[160].mxu1 }
 0x241   :  { %1867 = vst.msk [vmem:[%s4576_s3 + $0xe8] sm:$0xff] %vm98_vm1, %v1818_v18  ;;  %v1408_v6 = vmax.f32 %v4034_v41, %v1359_v10  ;;  %v1241_v40 = vadd.f32 %v4141_v56, %v1240_v27  ;;  %v2695_v31 = vpop.f32.mrb[161].mxu0  ;;  %v1652_v13 = vadd.f32 %v4141_v56, %v1651_v0  ;;  %v2846_v14 = vpop.f32.mrb[161].mxu1 }
 0x243   :  { %v1819_v24 = vmax.f32 %v1408_v6, %v1770_v35  ;;  %v1360_v4 = vmax.f32 %v1241_v40, 0.0  ;;  %v1771_v21 = vmax.f32 %v1652_v13, 0.0 }
 0x244   :  { %v1245_v36 = vpop.f32.mrb[162].mxu0  ;;  %v1656_v28 = vpop.f32.mrb[162].mxu1 }
 0x245   :  { %1868 = vst.msk [vmem:[%s4576_s3 + $0xf0] sm:$0xff] %vm98_vm1, %v1819_v24  ;;  %v1409_v17 = vmax.f32 %v4046_v42, %v1360_v4  ;;  %v1246_v41 = vadd.f32 %v4141_v56, %v1245_v36  ;;  %v2698_v12 = vpop.f32.mrb[163].mxu0  ;;  %v1657_v32 = vadd.f32 %v4141_v56, %v1656_v28  ;;  %v2849_v1 = vpop.f32.mrb[163].mxu1 }
 0x247   :  { %v1820_v49 = vmax.f32 %v1409_v17, %v1771_v21  ;;  %v1361_v59 = vmax.f32 %v1246_v41, 0.0  ;;  %v1772_v46 = vmax.f32 %v1657_v32, 0.0  ;;  %v4483_v21 = vld [vmem:[#allocation4] ss:$0 sm:$0xff] }
 0x248   :  { %v1250_v54 = vpop.f32.mrb[164].mxu0  ;;  %v1661_v47 = vpop.f32.mrb[164].mxu1 }
 0x249   :  { %1869 = vst.msk [vmem:[%s4576_s3 + $0xf8] sm:$0xff] %vm98_vm1, %v1820_v49  ;;  %v1410_v37 = vmax.f32 %v4058_v43, %v1361_v59  ;;  %v1251_v42 = vadd.f32 %v4141_v56, %v1250_v54  ;;  %v2701_v25 = vpop.f32.mrb[165].mxu0  ;;  %v1662_v19 = vadd.f32 %v4141_v56, %v1661_v47  ;;  %v2852_v22 = vpop.f32.mrb[165].mxu1 }
 0x24b   :  { %v1821_v33 = vmax.f32 %v1410_v37, %v1772_v46  ;;  %v1362_v29 = vmax.f32 %v1251_v42, 0.0  ;;  %v1773_v9 = vmax.f32 %v1662_v19, 0.0 }
 0x24c   :  { %v1255_v63 = vpop.f32.mrb[166].mxu0  ;;  %v1666_v44 = vpop.f32.mrb[166].mxu1 }
 0x24d   :  { %1870 = vst.msk [vmem:[%s4576_s3 + $0x100] sm:$0xff] %vm98_vm1, %v1821_v33  ;;  %v1411_v55 = vmax.f32 %v4074_v60, %v1362_v29  ;;  %v1256_v43 = vadd.f32 %v4141_v56, %v1255_v63  ;;  %v2704_v38 = vpop.f32.mrb[167].mxu0  ;;  %v1667_v53 = vadd.f32 %v4141_v56, %v1666_v44  ;;  %v2855_v57 = vpop.f32.mrb[167].mxu1 }
 0x24f   :  { %v1822_v26 = vmax.f32 %v1411_v55, %v1773_v9  ;;  %v1363_v5 = vmax.f32 %v1256_v43, 0.0  ;;  %v1774_v34 = vmax.f32 %v1667_v53, 0.0 }
 0x250   :  { %v1260_v58 = vpop.f32.mrb[168].mxu0  ;;  %v1671_v39 = vpop.f32.mrb[168].mxu1 }
 0x251   :  { %1871 = vst.msk [vmem:[%s4576_s3 + $0x108] sm:$0xff] %vm98_vm1, %v1822_v26  ;;  %v1412_v30 = vmax.f32 %v4087_v8, %v1363_v5  ;;  %v1261_v60 = vadd.f32 %v4141_v56, %v1260_v58  ;;  %v2707_v61 = vpop.f32.mrb[169].mxu0  ;;  %v1672_v23 = vadd.f32 %v4141_v56, %v1671_v39  ;;  %v2858_v20 = vpop.f32.mrb[169].mxu1 }
 0x253   :  { %v1823_v7 = vmax.f32 %v1412_v30, %v1774_v34  ;;  %v1364_v3 = vmax.f32 %v1261_v60, 0.0  ;;  %v1775_v18 = vmax.f32 %v1672_v23, 0.0 }
 0x254   :  { %v1265_v10 = vpop.f32.mrb[170].mxu0  ;;  %v1676_v6 = vpop.f32.mrb[170].mxu1 }
 0x255   :  { %1872 = vst.msk [vmem:[%s4576_s3 + $0x110] sm:$0xff] %vm98_vm1, %v1823_v7  ;;  %v1413_v35 = vmax.f32 %v4100_v52, %v1364_v3  ;;  %v1266_v8 = vadd.f32 %v4141_v56, %v1265_v10  ;;  %v2710_v27 = vpop.f32.mrb[171].mxu0  ;;  %v1677_v40 = vadd.f32 %v4141_v56, %v1676_v6  ;;  %v2861_v31 = vpop.f32.mrb[171].mxu1 }
 0x257   :  { %v1824_v0 = vmax.f32 %v1413_v35, %v1775_v18  ;;  %v1365_v13 = vmax.f32 %v1266_v8, 0.0  ;;  %v1776_v14 = vmax.f32 %v1677_v40, 0.0 }
 0x258   :  { %v1270_v24 = vpop.f32.mrb[172].mxu0  ;;  %v1681_v17 = vpop.f32.mrb[172].mxu1 }
 0x259   :  { %1873 = vst.msk [vmem:[%s4576_s3 + $0x118] sm:$0xff] %vm98_vm1, %v1824_v0  ;;  %v1414_v4 = vmax.f32 %v4113_v62, %v1365_v13  ;;  %v1271_v52 = vadd.f32 %v4483_v21, %v1270_v24  ;;  %v2713_v36 = vpop.f32.mrb[173].mxu0  ;;  %v1682_v56 = vadd.f32 %v4483_v21, %v1681_v17  ;;  %v2864_v41 = vpop.f32.mrb[173].mxu1 }
 0x25b   :  { %v1825_v12 = vmax.f32 %v1414_v4, %v1776_v14  ;;  %v1366_v28 = vmax.f32 %v1271_v52, 0.0  ;;  %v1777_v32 = vmax.f32 %v1682_v56, 0.0 }
 0x25c   :  { %v1275_v1 = vpop.f32.mrb[174].mxu0  ;;  %v1686_v46 = vpop.f32.mrb[174].mxu1 }
 0x25d   :  { %1874 = vst.msk [vmem:[%s4576_s3 + $0x120] sm:$0xff] %vm98_vm1, %v1825_v12  ;;  %v1415_v62 = vmax.f32 %v4126_v11, %v1366_v28  ;;  %v1276_v49 = vadd.f32 %v4483_v21, %v1275_v1  ;;  %v2716_v59 = vpop.f32.mrb[175].mxu0  ;;  %v1687_v54 = vadd.f32 %v4483_v21, %v1686_v46  ;;  %v2867_v37 = vpop.f32.mrb[175].mxu1 }
 0x25f   :  { %v1826_v42 = vmax.f32 %v1415_v62, %v1777_v32  ;;  %v1367_v25 = vmax.f32 %v1276_v49, 0.0  ;;  %v1778_v47 = vmax.f32 %v1687_v54, 0.0 }
 0x260   :  { %v1280_v19 = vpop.f32.mrb[176].mxu0  ;;  %v1691_v29 = vpop.f32.mrb[176].mxu1 }
 0x261   :  { %1875 = vst.msk [vmem:[%s4576_s3 + $0x128] sm:$0xff] %vm98_vm1, %v1826_v42  ;;  %v1416_v22 = vmax.f32 %v4139_v51, %v1367_v25  ;;  %v1281_v11 = vadd.f32 %v4483_v21, %v1280_v19  ;;  %v2719_v33 = vpop.f32.mrb[177].mxu0  ;;  %v1692_v9 = vadd.f32 %v4483_v21, %v1691_v29  ;;  %v2870_v63 = vpop.f32.mrb[177].mxu1  ;;  %v4581_v19 = vld [vmem:[#allocation8_spill] sm:$0xff] }
 0x263   :  { %v1827_v55 = vmax.f32 %v1416_v22, %v1778_v47  ;;  %v1368_v43 = vmax.f32 %v1281_v11, 0.0  ;;  %v1779_v38 = vmax.f32 %v1692_v9, 0.0 }
 0x264   :  { %v1285_v44 = vpop.f32.mrb[178].mxu0  ;;  %v1696_v26 = vpop.f32.mrb[178].mxu1 }
 0x265   :  { %1876 = vst.msk [vmem:[%s4576_s3 + $0x130] sm:$0xff] %vm98_vm1, %v1827_v55  ;;  %v1417_v53 = vmax.f32 %v4154_v45, %v1368_v43  ;;  %v1286_v51 = vadd.f32 %v4483_v21, %v1285_v44  ;;  %v2722_v57 = vpop.f32.mrb[179].mxu0  ;;  %v1697_v5 = vadd.f32 %v4483_v21, %v1696_v26  ;;  %v2873_v34 = vpop.f32.mrb[179].mxu1  ;;  %v4582_v44 = vld [vmem:[#allocation9_spill] sm:$0xff] }
 0x267   :  { %v1828_v58 = vmax.f32 %v1417_v53, %v1779_v38  ;;  %v1369_v30 = vmax.f32 %v1286_v51, 0.0  ;;  %v1780_v60 = vmax.f32 %v1697_v5, 0.0 }
 0x268   :  { %v1290_v61 = vpop.f32.mrb[180].mxu0  ;;  %v1701_v20 = vpop.f32.mrb[180].mxu1 }
 0x269   :  { %1877 = vst.msk [vmem:[%s4576_s3 + $0x138] sm:$0xff] %vm98_vm1, %v1828_v58  ;;  %v1418_v39 = vmax.f32 %v4167_v50, %v1369_v30  ;;  %v1291_v45 = vadd.f32 %v4483_v21, %v1290_v61  ;;  %v2725_v23 = vpop.f32.mrb[181].mxu0  ;;  %v1702_v7 = vadd.f32 %v4483_v21, %v1701_v20  ;;  %v2876_v3 = vpop.f32.mrb[181].mxu1 }
 0x26b   :  { %v1829_v18 = vmax.f32 %v1418_v39, %v1780_v60  ;;  %v1370_v10 = vmax.f32 %v1291_v45, 0.0  ;;  %v1781_v35 = vmax.f32 %v1702_v7, 0.0  ;;  %v4583_v39 = vld [vmem:[#allocation10_spill] sm:$0xff] }
 0x26c   :  { %v1295_v8 = vpop.f32.mrb[182].mxu0  ;;  %v1706_v40 = vpop.f32.mrb[182].mxu1 }
 0x26d   :  { %1878 = vst.msk [vmem:[%s4576_s3 + $0x140] sm:$0xff] %vm98_vm1, %v1829_v18  ;;  %v1419_v27 = vmax.f32 %v4180_v2, %v1370_v10  ;;  %v1296_v50 = vadd.f32 %v4483_v21, %v1295_v8  ;;  %v2728_v6 = vpop.f32.mrb[183].mxu0  ;;  %v1707_v31 = vadd.f32 %v4483_v21, %v1706_v40  ;;  %v2879_v0 = vpop.f32.mrb[183].mxu1 }
 0x26f   :  { %v1830_v13 = vmax.f32 %v1419_v27, %v1781_v35  ;;  %v1371_v14 = vmax.f32 %v1296_v50, 0.0  ;;  %v1782_v24 = vmax.f32 %v1707_v31, 0.0  ;;  %v4584_v50 = vld [vmem:[#allocation11_spill] sm:$0xff] }
 0x270   :  { %v1300_v4 = vpop.f32.mrb[184].mxu0  ;;  %v1711_v17 = vpop.f32.mrb[184].mxu1 }
 0x271   :  { %1879 = vst.msk [vmem:[%s4576_s3 + $0x148] sm:$0xff] %vm98_vm1, %v1830_v13  ;;  %v1420_v52 = vmax.f32 %v4193_v16, %v1371_v14  ;;  %v1301_v2 = vadd.f32 %v4483_v21, %v1300_v4  ;;  %v2731_v36 = vpop.f32.mrb[185].mxu0  ;;  %v1712_v56 = vadd.f32 %v4483_v21, %v1711_v17  ;;  %v2882_v41 = vpop.f32.mrb[185].mxu1 }
 0x273   :  { %v1831_v12 = vmax.f32 %v1420_v52, %v1782_v24  ;;  %v1372_v28 = vmax.f32 %v1301_v2, 0.0  ;;  %v1783_v32 = vmax.f32 %v1712_v56, 0.0 }
 0x274   :  { %v1305_v1 = vpop.f32.mrb[186].mxu0  ;;  %v1716_v59 = vpop.f32.mrb[186].mxu1 }
 0x275   :  { %1880 = vst.msk [vmem:[%s4576_s3 + $0x150] sm:$0xff] %vm98_vm1, %v1831_v12  ;;  %v1421_v62 = vmax.f32 %v4206_v48, %v1372_v28  ;;  %v1306_v16 = vadd.f32 %v4483_v21, %v1305_v1  ;;  %v2734_v49 = vpop.f32.mrb[187].mxu0  ;;  %v1717_v46 = vadd.f32 %v4483_v21, %v1716_v59  ;;  %v2885_v54 = vpop.f32.mrb[187].mxu1 }
 0x277   :  { %v1832_v37 = vmax.f32 %v1421_v62, %v1783_v32  ;;  %v1373_v42 = vmax.f32 %v1306_v16, 0.0  ;;  %v1784_v25 = vmax.f32 %v1717_v46, 0.0 }
 0x278   :  { %v1310_v47 = vpop.f32.mrb[188].mxu0  ;;  %v1721_v33 = vpop.f32.mrb[188].mxu1 }
 0x279   :  { %1881 = vst.msk [vmem:[%s4576_s3 + $0x158] sm:$0xff] %vm98_vm1, %v1832_v37  ;;  %v1422_v22 = vmax.f32 %v4581_v19, %v1373_v42  ;;  %v1311_v48 = vadd.f32 %v4483_v21, %v1310_v47  ;;  %v2737_v11 = vpop.f32.mrb[189].mxu0  ;;  %v1722_v29 = vadd.f32 %v4483_v21, %v1721_v33  ;;  %v2888_v9 = vpop.f32.mrb[189].mxu1 }
 0x27b   :  { %v1833_v63 = vmax.f32 %v1422_v22, %v1784_v25  ;;  %v1374_v55 = vmax.f32 %v1311_v48, 0.0  ;;  %v1785_v43 = vmax.f32 %v1722_v29, 0.0 }
 0x27c   :  { %v1315_v38 = vpop.f32.mrb[190].mxu0  ;;  %v1726_v26 = vpop.f32.mrb[190].mxu1 }
 0x27d   :  { %1882 = vst.msk [vmem:[%s4576_s3 + $0x160] sm:$0xff] %vm98_vm1, %v1833_v63  ;;  %v1423_v53 = vmax.f32 %v4582_v44, %v1374_v55  ;;  %v1316_v51 = vadd.f32 %v4483_v21, %v1315_v38  ;;  %v2740_v57 = vpop.f32.mrb[191].mxu0  ;;  %v1727_v5 = vadd.f32 %v4483_v21, %v1726_v26  ;;  %v2891_v34 = vpop.f32.mrb[191].mxu1 }
 0x27f   :  { %v1834_v58 = vmax.f32 %v1423_v53, %v1785_v43  ;;  %v1375_v30 = vmax.f32 %v1316_v51, 0.0  ;;  %v1786_v60 = vmax.f32 %v1727_v5, 0.0 }
 0x280   :  { %v1320_v61 = vpop.f32.mrb[192].mxu0  ;;  %v1731_v7 = vpop.f32.mrb[192].mxu1 }
 0x281   :  { %1883 = vst.msk [vmem:[%s4576_s3 + $0x168] sm:$0xff] %vm98_vm1, %v1834_v58  ;;  %v1424_v45 = vmax.f32 %v4583_v39, %v1375_v30  ;;  %v1321_v23 = vadd.f32 %v4483_v21, %v1320_v61  ;;  %v2743_v20 = vpop.f32.mrb[193].mxu0  ;;  %v1732_v3 = vadd.f32 %v4483_v21, %v1731_v7  ;;  %v2894_v18 = vpop.f32.mrb[193].mxu1 }
 0x283   :  { %v1835_v10 = vmax.f32 %v1424_v45, %v1786_v60  ;;  %v1376_v35 = vmax.f32 %v1321_v23, 0.0  ;;  %v1787_v8 = vmax.f32 %v1732_v3, 0.0 }
 0x284   :  { %v1325_v27 = vpop.f32.mrb[194].mxu0  ;;  %v1736_v0 = vpop.f32.mrb[194].mxu1 }
 0x285   :  { %1884 = vst.msk [vmem:[%s4576_s3 + $0x170] sm:$0xff] %vm98_vm1, %v1835_v10  ;;  %v1425_v6 = vmax.f32 %v4584_v50, %v1376_v35  ;;  %v1326_v40 = vadd.f32 %v4483_v21, %v1325_v27  ;;  %v2746_v31 = vpop.f32.mrb[195].mxu0  ;;  %v1737_v13 = vadd.f32 %v4483_v21, %v1736_v0  ;;  %v2897_v14 = vpop.f32.mrb[195].mxu1 }
 0x287   :  { %v1836_v24 = vmax.f32 %v1425_v6, %v1787_v8  ;;  %v1377_v4 = vmax.f32 %v1326_v40, 0.0  ;;  %v1788_v52 = vmax.f32 %v1737_v13, 0.0 }
 0x289   :  { %1885 = vst.msk [vmem:[%s4576_s3 + $0x178] sm:$0xff] %vm98_vm1, %v1836_v24  ;;  %v1426_v2 = vmax.f32 %v4227_v15, %v1377_v4 }
 0x28b   :  { %v1837_v36 = vmax.f32 %v1426_v2, %v1788_v52 }
 0x28d   :  { %1886 = vst.msk [vmem:[%s4576_s3 + $0x180] sm:$0xff] %vm98_vm1, %v1837_v36 }
 0x28e   :  { %1891 = vsyncpa [#allocation3], 1 }
 0x28f   :  { %1892 = vsyncpa [#allocation5], 1 }

// kernel: production_cnn2_forward.4
= control target key start
LH: loop header
LB: loop body
LE: loop exit
PB: predicated region body
PF: predicated region fallthrough
CT: control target
= control target key end

     0   :  { %vm789_vm0 = vcmask 261120   ;;  %vm802_vm1 = vcmask 254976   ;;  %s2060_s1 = inlined_call_operand.vmem [shape: f32[4,256,32], index: 1, kind: input, shape index: {}]   ;;  %s2061_s0 = inlined_call_operand.vmem [shape: f32[98,256], index: 0, kind: input, shape index: {}]   ;;  %s2062_s2 = inlined_call_operand.vmem [shape: f32[1,32], index: 2, kind: input, shape index: {}]   ;;  %s2063_s3 = inlined_call_operand.vmem [shape: f32[98,32], index: 3, kind: output, shape index: {}]  }
   0x1   :  { %v57_v0 = vld [vmem:[%s2060_s1 + $0x80] sm:$0xff]  ;;  %v58_v1 = vld [vmem:[%s2060_s1 + $0x88] sm:$0xff]  ;;  %v59_v11 = vld [vmem:[%s2060_s1 + $0x90] sm:$0xff] }
   0x2   :  { %v825_v2 = vld [vmem:[%s2060_s1 + $0x180] sm:$0xff]  ;;  %v1189_v3 = vpack.c.bf16 %v58_v1, %v57_v0  ;;  %v826_v4 = vld [vmem:[%s2060_s1 + $0x188] sm:$0xff]  ;;  %v60_v13 = vld [vmem:[%s2060_s1 + $0x98] sm:$0xff] }
   0x3   :  { %v41_v5 = vld [vmem:[%s2060_s1] sm:$0xff]  ;;  %v42_v6 = vld [vmem:[%s2060_s1 + $0x8] sm:$0xff]  ;;  %v1221_v7 = vpack.c.bf16 %v826_v4, %v825_v2  ;;  %v827_v14 = vld [vmem:[%s2060_s1 + $0x190] sm:$0xff]  ;;  %v1193_v16 = vpack.c.bf16 %v60_v13, %v59_v11 }
   0x4   :  { %v1191_v8 = vpack.c.bf16 %v42_v6, %v41_v5  ;;  %v809_v9 = vld [vmem:[%s2060_s1 + $0x100] sm:$0xff]  ;;  %v810_v10 = vld [vmem:[%s2060_s1 + $0x108] sm:$0xff]  ;;  %1190 = vmatprep.subr.bf16.mxu0 %v1189_v3  ;;  %v828_v15 = vld [vmem:[%s2060_s1 + $0x198] sm:$0xff] }
   0x5   :  { %v1223_v12 = vpack.c.bf16 %v810_v10, %v809_v9  ;;  %1222 = vmatprep.subr.bf16.mxu1 %v1221_v7  ;;  %v1225_v17 = vpack.c.bf16 %v828_v15, %v827_v14  ;;  %v43_v18 = vld [vmem:[%s2060_s1 + $0x10] sm:$0xff]  ;;  %v44_v19 = vld [vmem:[%s2060_s1 + $0x18] sm:$0xff]  ;;  %v61_v23 = vld [vmem:[%s2060_s1 + $0xa0] sm:$0xff] }
   0x6   :  { %1192 = vmatpush3.bf16.msra.mxu0 %v1191_v8  ;;  %v811_v20 = vld [vmem:[%s2060_s1 + $0x110] sm:$0xff]  ;;  %v1195_v21 = vpack.c.bf16 %v44_v19, %v43_v18  ;;  %v812_v22 = vld [vmem:[%s2060_s1 + $0x118] sm:$0xff]  ;;  %v62_v24 = vld [vmem:[%s2060_s1 + $0xa8] sm:$0xff] }
   0x7   :  { %1224 = vmatpush3.bf16.msra.mxu1 %v1223_v12  ;;  %1194 = vmatprep.subr.bf16.mxu0 %v1193_v16  ;;  %v1227_v25 = vpack.c.bf16 %v812_v22, %v811_v20  ;;  %v1197_v26 = vpack.c.bf16 %v62_v24, %v61_v23  ;;  %v829_v27 = vld [vmem:[%s2060_s1 + $0x1a0] sm:$0xff]  ;;  %v830_v28 = vld [vmem:[%s2060_s1 + $0x1a8] sm:$0xff]  ;;  %v63_v35 = vld [vmem:[%s2060_s1 + $0xb0] sm:$0xff] }
   0x8   :  { %1226 = vmatprep.subr.bf16.mxu1 %v1225_v17  ;;  %v45_v29 = vld [vmem:[%s2060_s1 + $0x20] sm:$0xff]  ;;  %v1229_v30 = vpack.c.bf16 %v830_v28, %v829_v27  ;;  %v46_v31 = vld [vmem:[%s2060_s1 + $0x28] sm:$0xff]  ;;  %v64_v36 = vld [vmem:[%s2060_s1 + $0xb8] sm:$0xff] }
   0x9   :  { %v813_v32 = vld [vmem:[%s2060_s1 + $0x120] sm:$0xff]  ;;  %v814_v33 = vld [vmem:[%s2060_s1 + $0x128] sm:$0xff]  ;;  %v1199_v34 = vpack.c.bf16 %v46_v31, %v45_v29  ;;  %v831_v37 = vld [vmem:[%s2060_s1 + $0x1b0] sm:$0xff]  ;;  %v1201_v39 = vpack.c.bf16 %v64_v36, %v63_v35 }
   0xa   :  { %1196 = vmatpush3.bf16.msra.mxu0 %v1195_v21  ;;  %v1231_v38 = vpack.c.bf16 %v814_v33, %v813_v32  ;;  %v832_v40 = vld [vmem:[%s2060_s1 + $0x1b8] sm:$0xff]  ;;  %v47_v41 = vld [vmem:[%s2060_s1 + $0x30] sm:$0xff]  ;;  %v65_v46 = vld [vmem:[%s2060_s1 + $0xc0] sm:$0xff] }
   0xb   :  { %1228 = vmatpush3.bf16.msra.mxu1 %v1227_v25  ;;  %1198 = vmatprep.subr.bf16.mxu0 %v1197_v26  ;;  %v48_v42 = vld [vmem:[%s2060_s1 + $0x38] sm:$0xff]  ;;  %v1233_v43 = vpack.c.bf16 %v832_v40, %v831_v37  ;;  %v815_v44 = vld [vmem:[%s2060_s1 + $0x130] sm:$0xff]  ;;  %v66_v47 = vld [vmem:[%s2060_s1 + $0xc8] sm:$0xff] }
   0xc   :  { %1230 = vmatprep.subr.bf16.mxu1 %v1229_v30  ;;  %v816_v45 = vld [vmem:[%s2060_s1 + $0x138] sm:$0xff]  ;;  %v833_v48 = vld [vmem:[%s2060_s1 + $0x1c0] sm:$0xff]  ;;  %v834_v49 = vld [vmem:[%s2060_s1 + $0x1c8] sm:$0xff]  ;;  %v1203_v50 = vpack.c.bf16 %v48_v42, %v47_v41  ;;  %v1205_v52 = vpack.c.bf16 %v66_v47, %v65_v46 }
   0xd   :  { %v1235_v51 = vpack.c.bf16 %v816_v45, %v815_v44  ;;  %v49_v53 = vld [vmem:[%s2060_s1 + $0x40] sm:$0xff]  ;;  %v50_v54 = vld [vmem:[%s2060_s1 + $0x48] sm:$0xff]  ;;  %v1237_v56 = vpack.c.bf16 %v834_v49, %v833_v48  ;;  %v67_v58 = vld [vmem:[%s2060_s1 + $0xd0] sm:$0xff] }
   0xe   :  { %1200 = vmatpush3.bf16.msra.mxu0 %v1199_v34  ;;  %v817_v55 = vld [vmem:[%s2060_s1 + $0x140] sm:$0xff]  ;;  %v818_v57 = vld [vmem:[%s2060_s1 + $0x148] sm:$0xff]  ;;  %v68_v59 = vld [vmem:[%s2060_s1 + $0xd8] sm:$0xff]  ;;  %v1207_v62 = vpack.c.bf16 %v50_v54, %v49_v53 }
   0xf   :  { %1232 = vmatpush3.bf16.msra.mxu1 %v1231_v38  ;;  %1202 = vmatprep.subr.bf16.mxu0 %v1201_v39  ;;  %v835_v60 = vld [vmem:[%s2060_s1 + $0x1d0] sm:$0xff]  ;;  %v836_v61 = vld [vmem:[%s2060_s1 + $0x1d8] sm:$0xff]  ;;  %v1239_v63 = vpack.c.bf16 %v818_v57, %v817_v55  ;;  %v1209_v0 = vpack.c.bf16 %v68_v59, %v67_v58  ;;  %v69_v6 = vld [vmem:[%s2060_s1 + $0xe0] sm:$0xff] }
  0x10   :  { %1234 = vmatprep.subr.bf16.mxu1 %v1233_v43  ;;  %v51_v1 = vld [vmem:[%s2060_s1 + $0x50] sm:$0xff]  ;;  %v52_v2 = vld [vmem:[%s2060_s1 + $0x58] sm:$0xff]  ;;  %v1241_v4 = vpack.c.bf16 %v836_v61, %v835_v60  ;;  %v70_v7 = vld [vmem:[%s2060_s1 + $0xe8] sm:$0xff] }
  0x11   :  { %v819_v3 = vld [vmem:[%s2060_s1 + $0x150] sm:$0xff]  ;;  %v820_v5 = vld [vmem:[%s2060_s1 + $0x158] sm:$0xff]  ;;  %v837_v8 = vld [vmem:[%s2060_s1 + $0x1e0] sm:$0xff]  ;;  %v1211_v10 = vpack.c.bf16 %v52_v2, %v51_v1  ;;  %v1213_v13 = vpack.c.bf16 %v70_v7, %v69_v6 }
  0x12   :  { %1204 = vmatpush3.bf16.msra.mxu0 %v1203_v50  ;;  %v838_v9 = vld [vmem:[%s2060_s1 + $0x1e8] sm:$0xff]  ;;  %v53_v11 = vld [vmem:[%s2060_s1 + $0x60] sm:$0xff]  ;;  %v1243_v12 = vpack.c.bf16 %v820_v5, %v819_v3  ;;  %v71_v19 = vld [vmem:[%s2060_s1 + $0xf0] sm:$0xff] }
  0x13   :  { %1236 = vmatpush3.bf16.msra.mxu1 %v1235_v51  ;;  %1206 = vmatprep.subr.bf16.mxu0 %v1205_v52  ;;  %v54_v14 = vld [vmem:[%s2060_s1 + $0x68] sm:$0xff]  ;;  %v821_v15 = vld [vmem:[%s2060_s1 + $0x160] sm:$0xff]  ;;  %v1245_v17 = vpack.c.bf16 %v838_v9, %v837_v8  ;;  %v72_v20 = vld [vmem:[%s2060_s1 + $0xf8] sm:$0xff] }
  0x14   :  { %1238 = vmatprep.subr.bf16.mxu1 %v1237_v56  ;;  %v1505_v16 = vld [vmem:[%s2061_s0 + $0x8] sm:$0xff]  ;;  %v839_v21 = vld [vmem:[%s2060_s1 + $0x1f0] sm:$0xff]  ;;  %v840_v22 = vld [vmem:[%s2060_s1 + $0x1f8] sm:$0xff]  ;;  %v1215_v23 = vpack.c.bf16 %v54_v14, %v53_v11  ;;  %v1217_v25 = vpack.c.bf16 %v72_v20, %v71_v19 }
  0x15   :  { %v822_v18 = vld [vmem:[%s2060_s1 + $0x168] sm:$0xff]  ;;  %143 = vmatprep.mubr.f32.mxu0 %v1505_v16  ;;  %319 = vmatprep.mubr.f32.mxu1 %v1505_v16  ;;  %v55_v26 = vld [vmem:[%s2060_s1 + $0x70] sm:$0xff]  ;;  %v56_v27 = vld [vmem:[%s2060_s1 + $0x78] sm:$0xff]  ;;  %v1249_v29 = vpack.c.bf16 %v840_v22, %v839_v21 }
  0x16   :  { %1208 = vmatpush3.bf16.msra.mxu0 %v1207_v62  ;;  %v1247_v24 = vpack.c.bf16 %v822_v18, %v821_v15  ;;  %v823_v28 = vld [vmem:[%s2060_s1 + $0x170] sm:$0xff]  ;;  %v824_v30 = vld [vmem:[%s2060_s1 + $0x178] sm:$0xff]  ;;  %v857_v31 = vld [vmem:[%s2060_s1 + $0x280] sm:$0xff]  ;;  %v1219_v35 = vpack.c.bf16 %v56_v27, %v55_v26 }
  0x17   :  { %1240 = vmatpush3.bf16.msra.mxu1 %v1239_v63  ;;  %1210 = vmatprep.subr.bf16.mxu0 %v1209_v0  ;;  %v858_v32 = vld [vmem:[%s2060_s1 + $0x288] sm:$0xff]  ;;  %v889_v33 = vld [vmem:[%s2060_s1 + $0x380] sm:$0xff]  ;;  %v1251_v36 = vpack.c.bf16 %v824_v30, %v823_v28  ;;  %v859_v43 = vld [vmem:[%s2060_s1 + $0x290] sm:$0xff] }
  0x18   :  { %1242 = vmatprep.subr.bf16.mxu1 %v1241_v4  ;;  %v890_v34 = vld [vmem:[%s2060_s1 + $0x388] sm:$0xff]  ;;  %v1253_v37 = vpack.c.bf16 %v858_v32, %v857_v31  ;;  %v841_v38 = vld [vmem:[%s2060_s1 + $0x200] sm:$0xff]  ;;  %v860_v44 = vld [vmem:[%s2060_s1 + $0x298] sm:$0xff] }
  0x19   :  { %v842_v39 = vld [vmem:[%s2060_s1 + $0x208] sm:$0xff]  ;;  %v1285_v40 = vpack.c.bf16 %v890_v34, %v889_v33  ;;  %v873_v41 = vld [vmem:[%s2060_s1 + $0x300] sm:$0xff]  ;;  %v891_v47 = vld [vmem:[%s2060_s1 + $0x390] sm:$0xff]  ;;  %v1257_v51 = vpack.c.bf16 %v860_v44, %v859_v43 }
  0x1a   :  { %1212 = vmatpush3.bf16.msra.mxu0 %v1211_v10  ;;  %v874_v42 = vld [vmem:[%s2060_s1 + $0x308] sm:$0xff]  ;;  %v1569_v45 = vld [vmem:[%s2061_s0] sm:$0xff]  ;;  %v1255_v46 = vpack.c.bf16 %v842_v39, %v841_v38  ;;  %v892_v48 = vld [vmem:[%s2060_s1 + $0x398] sm:$0xff] }
  0x1b   :  { %1244 = vmatpush3.bf16.msra.mxu1 %v1243_v12  ;;  %1214 = vmatprep.subr.bf16.mxu0 %v1213_v13  ;;  %v1580_v49 = vld [vmem:[%s2061_s0 + $0x18] sm:$0xff]  ;;  %v1287_v50 = vpack.c.bf16 %v874_v42, %v873_v41  ;;  %v843_v52 = vld [vmem:[%s2060_s1 + $0x210] sm:$0xff]  ;;  %v1289_v55 = vpack.c.bf16 %v892_v48, %v891_v47  ;;  %v861_v57 = vld [vmem:[%s2060_s1 + $0x2a0] sm:$0xff] }
  0x1c   :  { %1246 = vmatprep.subr.bf16.mxu1 %v1245_v17  ;;  %v844_v53 = vld [vmem:[%s2060_s1 + $0x218] sm:$0xff]  ;;  %v875_v54 = vld [vmem:[%s2060_s1 + $0x310] sm:$0xff]  ;;  %v862_v58 = vld [vmem:[%s2060_s1 + $0x2a8] sm:$0xff] }
  0x1d   :  { %v876_v56 = vld [vmem:[%s2060_s1 + $0x318] sm:$0xff]  ;;  %v1605_v59 = vld [vmem:[%s2061_s0 + $0x10] sm:$0xff]  ;;  %v893_v60 = vld [vmem:[%s2060_s1 + $0x3a0] sm:$0xff]  ;;  %v1259_v63 = vpack.c.bf16 %v844_v53, %v843_v52  ;;  %v1261_v1 = vpack.c.bf16 %v862_v58, %v861_v57 }
  0x1e   :  { %1216 = vmatpush3.bf16.msra.mxu0 %v1215_v23  ;;  %v894_v61 = vld [vmem:[%s2060_s1 + $0x3a8] sm:$0xff]  ;;  %v1291_v0 = vpack.c.bf16 %v876_v56, %v875_v54  ;;  %v845_v2 = vld [vmem:[%s2060_s1 + $0x220] sm:$0xff]  ;;  %v863_v7 = vld [vmem:[%s2060_s1 + $0x2b0] sm:$0xff] }
  0x1f   :  { %1248 = vmatpush3.bf16.msra.mxu1 %v1247_v24  ;;  %1218 = vmatprep.subr.bf16.mxu0 %v1217_v25  ;;  %v1618_v62 = vld [vmem:[%s2061_s0 + $0x28] sm:$0xff]  ;;  %v877_v4 = vld [vmem:[%s2060_s1 + $0x320] sm:$0xff]  ;;  %v1293_v5 = vpack.c.bf16 %v894_v61, %v893_v60  ;;  %v864_v8 = vld [vmem:[%s2060_s1 + $0x2b8] sm:$0xff] }
  0x20   :  { %1250 = vmatprep.subr.bf16.mxu1 %v1249_v29  ;;  %v846_v3 = vld [vmem:[%s2060_s1 + $0x228] sm:$0xff]  ;;  %v1644_v9 = vld [vmem:[%s2061_s0 + $0x20] sm:$0xff]  ;;  %v895_v10 = vld [vmem:[%s2060_s1 + $0x3b0] sm:$0xff]  ;;  %v1265_v15 = vpack.c.bf16 %v864_v8, %v863_v7 }
  0x21   :  { %v878_v6 = vld [vmem:[%s2060_s1 + $0x328] sm:$0xff]  ;;  %v896_v11 = vld [vmem:[%s2060_s1 + $0x3b8] sm:$0xff]  ;;  %v1263_v13 = vpack.c.bf16 %v846_v3, %v845_v2  ;;  %v847_v17 = vld [vmem:[%s2060_s1 + $0x230] sm:$0xff] }
  0x22   :  { %1220 = vmatpush3.bf16.msra.mxu0 %v1219_v35  ;;  %v1656_v12 = vld [vmem:[%s2061_s0 + $0x38] sm:$0xff]  ;;  %v1295_v14 = vpack.c.bf16 %v878_v6, %v877_v4  ;;  %v879_v19 = vld [vmem:[%s2060_s1 + $0x330] sm:$0xff]  ;;  %v1297_v20 = vpack.c.bf16 %v896_v11, %v895_v10  ;;  %v865_v22 = vld [vmem:[%s2060_s1 + $0x2c0] sm:$0xff] }
  0x23   :  { %1252 = vmatpush3.bf16.msra.mxu1 %v1251_v36  ;;  %1254 = vmatprep.subr.bf16.mxu0 %v1253_v37  ;;  %v848_v18 = vld [vmem:[%s2060_s1 + $0x238] sm:$0xff]  ;;  %v866_v23 = vld [vmem:[%s2060_s1 + $0x2c8] sm:$0xff]  ;;  %v1682_v24 = vld [vmem:[%s2061_s0 + $0x30] sm:$0xff] }
  0x24   :  { %1286 = vmatprep.subr.bf16.mxu1 %v1285_v40  ;;  %v880_v21 = vld [vmem:[%s2060_s1 + $0x338] sm:$0xff]  ;;  %v897_v25 = vld [vmem:[%s2060_s1 + $0x3c0] sm:$0xff]  ;;  %v898_v26 = vld [vmem:[%s2060_s1 + $0x3c8] sm:$0xff]  ;;  %v1267_v28 = vpack.c.bf16 %v848_v18, %v847_v17  ;;  %v1269_v30 = vpack.c.bf16 %v866_v23, %v865_v22 }
  0x25   :  { %144 = vmatmul.mubr.f32.vlgmr.msra.gmra.mrb[0].mxu0 %v1569_v45  ;;  %v1694_v27 = vld [vmem:[%s2061_s0 + $0x48] sm:$0xff]  ;;  %v1299_v29 = vpack.c.bf16 %v880_v21, %v879_v19  ;;  %v849_v31 = vld [vmem:[%s2060_s1 + $0x240] sm:$0xff]  ;;  %v1301_v34 = vpack.c.bf16 %v898_v26, %v897_v25  ;;  %v867_v36 = vld [vmem:[%s2060_s1 + $0x2d0] sm:$0xff] }
  0x26   :  { %320 = vmatmul.mubr.f32.vlgmr.msra.gmra.mrb[0].mxu1 %v1569_v45  ;;  %1256 = vmatpush3.bf16.msra.mxu0 %v1255_v46  ;;  %v850_v32 = vld [vmem:[%s2060_s1 + $0x248] sm:$0xff]  ;;  %v881_v33 = vld [vmem:[%s2060_s1 + $0x340] sm:$0xff]  ;;  %v868_v37 = vld [vmem:[%s2060_s1 + $0x2d8] sm:$0xff] }
  0x27   :  { %148 = vmatprep.mubr.f32.mxu0 %v1580_v49  ;;  %324 = vmatprep.mubr.f32.mxu1 %v1580_v49  ;;  %v882_v35 = vld [vmem:[%s2060_s1 + $0x348] sm:$0xff]  ;;  %v1720_v38 = vld [vmem:[%s2061_s0 + $0x40] sm:$0xff]  ;;  %v899_v39 = vld [vmem:[%s2060_s1 + $0x3d0] sm:$0xff]  ;;  %v1271_v42 = vpack.c.bf16 %v850_v32, %v849_v31  ;;  %v1273_v44 = vpack.c.bf16 %v868_v37, %v867_v36 }
  0x28   :  { %1288 = vmatpush3.bf16.msra.mxu1 %v1287_v50  ;;  %1258 = vmatprep.subr.bf16.mxu0 %v1257_v51  ;;  %v900_v40 = vld [vmem:[%s2060_s1 + $0x3d8] sm:$0xff]  ;;  %v1303_v43 = vpack.c.bf16 %v882_v35, %v881_v33  ;;  %v851_v46 = vld [vmem:[%s2060_s1 + $0x250] sm:$0xff]  ;;  %v869_v52 = vld [vmem:[%s2060_s1 + $0x2e0] sm:$0xff] }
  0x29   :  { %149 = vmatmul.mubr.f32.gmra.mrb[2].mxu0 %v1605_v59  ;;  %1290 = vmatprep.subr.bf16.mxu1 %v1289_v55  ;;  %v1732_v41 = vld [vmem:[%s2061_s0 + $0x58] sm:$0xff]  ;;  %v883_v48 = vld [vmem:[%s2060_s1 + $0x350] sm:$0xff]  ;;  %v1305_v50 = vpack.c.bf16 %v900_v40, %v899_v39  ;;  %v870_v53 = vld [vmem:[%s2060_s1 + $0x2e8] sm:$0xff] }
  0x2a   :  { %325 = vmatmul.mubr.f32.gmra.mrb[2].mxu1 %v1605_v59  ;;  %153 = vmatprep.mubr.f32.mxu0 %v1618_v62  ;;  %v852_v47 = vld [vmem:[%s2060_s1 + $0x258] sm:$0xff]  ;;  %v1758_v54 = vld [vmem:[%s2061_s0 + $0x50] sm:$0xff]  ;;  %v901_v55 = vld [vmem:[%s2060_s1 + $0x3e0] sm:$0xff]  ;;  %v1277_v61 = vpack.c.bf16 %v870_v53, %v869_v52 }
  0x2b   :  { %329 = vmatprep.mubr.f32.mxu1 %v1618_v62  ;;  %1260 = vmatpush3.bf16.msra.mxu0 %v1259_v63  ;;  %v884_v51 = vld [vmem:[%s2060_s1 + $0x358] sm:$0xff]  ;;  %v902_v56 = vld [vmem:[%s2060_s1 + $0x3e8] sm:$0xff]  ;;  %v1275_v58 = vpack.c.bf16 %v852_v47, %v851_v46  ;;  %v853_v63 = vld [vmem:[%s2060_s1 + $0x260] sm:$0xff] }
  0x2c   :  { %1292 = vmatpush3.bf16.msra.mxu1 %v1291_v0  ;;  %1262 = vmatprep.subr.bf16.mxu0 %v1261_v1  ;;  %v1770_v57 = vld [vmem:[%s2061_s0 + $0x68] sm:$0xff]  ;;  %v1307_v60 = vpack.c.bf16 %v884_v51, %v883_v48  ;;  %v885_v1 = vld [vmem:[%s2060_s1 + $0x360] sm:$0xff]  ;;  %v1309_v2 = vpack.c.bf16 %v902_v56, %v901_v55  ;;  %v871_v4 = vld [vmem:[%s2060_s1 + $0x2f0] sm:$0xff] }
  0x2d   :  { %154 = vmatmul.mubr.f32.gmra.mrb[4].mxu0 %v1644_v9  ;;  %1294 = vmatprep.subr.bf16.mxu1 %v1293_v5  ;;  %v854_v0 = vld [vmem:[%s2060_s1 + $0x268] sm:$0xff]  ;;  %v872_v5 = vld [vmem:[%s2060_s1 + $0x2f8] sm:$0xff]  ;;  %v1796_v6 = vld [vmem:[%s2061_s0 + $0x60] sm:$0xff] }
  0x2e   :  { %330 = vmatmul.mubr.f32.gmra.mrb[4].mxu1 %v1644_v9  ;;  %158 = vmatprep.mubr.f32.mxu0 %v1656_v12  ;;  %v886_v3 = vld [vmem:[%s2060_s1 + $0x368] sm:$0xff]  ;;  %v903_v7 = vld [vmem:[%s2060_s1 + $0x3f0] sm:$0xff]  ;;  %v904_v8 = vld [vmem:[%s2060_s1 + $0x3f8] sm:$0xff]  ;;  %v1279_v11 = vpack.c.bf16 %v854_v0, %v853_v63 }
  0x2f   :  { %334 = vmatprep.mubr.f32.mxu1 %v1656_v12  ;;  %1264 = vmatpush3.bf16.msra.mxu0 %v1263_v13  ;;  %v1808_v10 = vld [vmem:[%s2061_s0 + $0x78] sm:$0xff]  ;;  %v1311_v13 = vpack.c.bf16 %v886_v3, %v885_v1  ;;  %v1313_v18 = vpack.c.bf16 %v904_v8, %v903_v7  ;;  %v887_v19 = vld [vmem:[%s2060_s1 + $0x370] sm:$0xff]  ;;  %v1834_v22 = vld [vmem:[%s2061_s0 + $0x88] sm:$0xff] }
  0x30   :  { %1296 = vmatpush3.bf16.msra.mxu1 %v1295_v14  ;;  %1266 = vmatprep.subr.bf16.mxu0 %v1265_v15  ;;  %v1281_v14 = vpack.c.bf16 %v872_v5, %v871_v4  ;;  %v855_v15 = vld [vmem:[%s2060_s1 + $0x270] sm:$0xff]  ;;  %v856_v17 = vld [vmem:[%s2060_s1 + $0x278] sm:$0xff]  ;;  %v1842_v26 = vld [vmem:[%s2061_s0 + $0x80] sm:$0xff] }
  0x31   :  { %159 = vmatmul.mubr.f32.gmra.mrb[6].mxu0 %v1682_v24  ;;  %1298 = vmatprep.subr.bf16.mxu1 %v1297_v20  ;;  %v888_v20 = vld [vmem:[%s2060_s1 + $0x378] sm:$0xff]  ;;  %v1828_v21 = vld [vmem:[%s2061_s0 + $0x70] sm:$0xff]  ;;  %v1283_v23 = vpack.c.bf16 %v856_v17, %v855_v15  ;;  %v34_v31 = vld [vmem:[%s2061_s0 + $0xa0] sm:$0xff] }
  0x32   :  { %335 = vmatmul.mubr.f32.gmra.mrb[6].mxu1 %v1682_v24  ;;  %163 = vmatprep.mubr.f32.mxu0 %v1694_v27  ;;  %v1315_v25 = vpack.c.bf16 %v888_v20, %v887_v19  ;;  %v37_v32 = vld [vmem:[%s2061_s0 + $0xb8] sm:$0xff]  ;;  %v36_v33 = vld [vmem:[%s2061_s0 + $0xb0] sm:$0xff]  ;;  %v38_v35 = vld [vmem:[%s2061_s0 + $0xc0] sm:$0x3] }
  0x33   :  { %339 = vmatprep.mubr.f32.mxu1 %v1694_v27  ;;  %1268 = vmatpush3.bf16.msra.mxu0 %v1267_v28  ;;  %v1848_v28 = vld [vmem:[%s2061_s0 + $0x98] sm:$0xff] }
  0x34   :  { %1300 = vmatpush3.bf16.msra.mxu1 %v1299_v29  ;;  %1270 = vmatprep.subr.bf16.mxu0 %v1269_v30  ;;  %v32_v29 = vld [vmem:[%s2061_s0 + $0x90] sm:$0xff]  ;;  %v35_v30 = vld [vmem:[%s2061_s0 + $0xa8] sm:$0xff] }
  0x35   :  { %164 = vmatmul.mubr.f32.gmra.mrb[8].mxu0 %v1720_v38  ;;  %1302 = vmatprep.subr.bf16.mxu1 %v1301_v34  ;;  %v39_v34 = vld [vmem:[%s2061_s0 + $0xc8] sm:$0x3] }
  0x36   :  { %340 = vmatmul.mubr.f32.gmra.mrb[8].mxu1 %v1720_v38  ;;  %168 = vmatprep.mubr.f32.mxu0 %v1732_v41 }
  0x37   :  { %344 = vmatprep.mubr.f32.mxu1 %v1732_v41  ;;  %1272 = vmatpush3.bf16.msra.mxu0 %v1271_v42 }
  0x38   :  { %1304 = vmatpush3.bf16.msra.mxu1 %v1303_v43  ;;  %1274 = vmatprep.subr.bf16.mxu0 %v1273_v44 }
  0x39   :  { %169 = vmatmul.mubr.f32.gmra.mrb[10].mxu0 %v1758_v54  ;;  %1306 = vmatprep.subr.bf16.mxu1 %v1305_v50 }
  0x3a   :  { %345 = vmatmul.mubr.f32.gmra.mrb[10].mxu1 %v1758_v54  ;;  %173 = vmatprep.mubr.f32.mxu0 %v1770_v57 }
  0x3b   :  { %349 = vmatprep.mubr.f32.mxu1 %v1770_v57  ;;  %1276 = vmatpush3.bf16.msra.mxu0 %v1275_v58 }
  0x3c   :  { %1308 = vmatpush3.bf16.msra.mxu1 %v1307_v60  ;;  %1278 = vmatprep.subr.bf16.mxu0 %v1277_v61 }
  0x3d   :  { %174 = vmatmul.mubr.f32.gmra.mrb[12].mxu0 %v1796_v6  ;;  %1310 = vmatprep.subr.bf16.mxu1 %v1309_v2 }
  0x3e   :  { %350 = vmatmul.mubr.f32.gmra.mrb[12].mxu1 %v1796_v6  ;;  %178 = vmatprep.mubr.f32.mxu0 %v1808_v10 }
  0x3f   :  { %354 = vmatprep.mubr.f32.mxu1 %v1808_v10  ;;  %1280 = vmatpush3.bf16.msra.mxu0 %v1279_v11 }
  0x40   :  { %1312 = vmatpush3.bf16.msra.mxu1 %v1311_v13  ;;  %1282 = vmatprep.subr.bf16.mxu0 %v1281_v14 }
  0x41   :  { %179 = vmatmul.mubr.f32.gmra.mrb[14].mxu0 %v1828_v21  ;;  %1314 = vmatprep.subr.bf16.mxu1 %v1313_v18 }
  0x42   :  { %355 = vmatmul.mubr.f32.gmra.mrb[14].mxu1 %v1828_v21  ;;  %183 = vmatprep.mubr.f32.mxu0 %v1834_v22 }
  0x43   :  { %359 = vmatprep.mubr.f32.mxu1 %v1834_v22  ;;  %1284 = vmatpush3.bf16.msra.mxu0 %v1283_v23 }
  0x44   :  { %1316 = vmatpush3.bf16.msra.mxu1 %v1315_v25 }
  0x45   :  { %184 = vmatmul.mubr.f32.gmra.mrb[16].mxu0 %v1842_v26 }
  0x46   :  { %360 = vmatmul.mubr.f32.gmra.mrb[16].mxu1 %v1842_v26  ;;  %188 = vmatprep.mubr.f32.mxu0 %v1848_v28 }
  0x47   :  { %364 = vmatprep.mubr.f32.mxu1 %v1848_v28 }
  0x49   :  { %189 = vmatmul.mubr.f32.gmra.mrb[18].mxu0 %v32_v29 }
  0x4a   :  { %365 = vmatmul.mubr.f32.gmra.mrb[18].mxu1 %v32_v29  ;;  %193 = vmatprep.mubr.f32.mxu0 %v35_v30 }
  0x4b   :  { %369 = vmatprep.mubr.f32.mxu1 %v35_v30 }
  0x4d   :  { %194 = vmatmul.mubr.f32.gmra.mrb[20].mxu0 %v34_v31 }
  0x4e   :  { %370 = vmatmul.mubr.f32.gmra.mrb[20].mxu1 %v34_v31  ;;  %198 = vmatprep.mubr.f32.mxu0 %v37_v32 }
  0x4f   :  { %374 = vmatprep.mubr.f32.mxu1 %v37_v32 }
  0x51   :  { %199 = vmatmul.mubr.f32.gmra.mrb[22].mxu0 %v36_v33 }
  0x52   :  { %375 = vmatmul.mubr.f32.gmra.mrb[22].mxu1 %v36_v33  ;;  %203 = vmatprep.mubr.f32.mxu0 %v39_v34 }
  0x53   :  { %379 = vmatprep.mubr.f32.mxu1 %v39_v34 }
  0x55   :  { %204 = vmatmul.mubr.f32.gmra.mrb[24].mxu0 %v38_v35 }
  0x56   :  { %380 = vmatmul.mubr.f32.gmra.mrb[24].mxu1 %v38_v35  ;;  %508 = vmatprep.mubr.f32.mxu0 %v1505_v16 }
  0x57   :  { %697 = vmatprep.mubr.f32.mxu1 %v1505_v16 }
  0x59   :  { %509 = vmatmul.mubr.f32.vlgmr.msra.gmra.mrb[26].mxu0 %v1569_v45 }
  0x5a   :  { %698 = vmatmul.mubr.f32.vlgmr.msra.gmra.mrb[26].mxu1 %v1569_v45  ;;  %513 = vmatprep.mubr.f32.mxu0 %v1580_v49 }
  0x5b   :  { %702 = vmatprep.mubr.f32.mxu1 %v1580_v49  ;;  %v1916_v49 = vld [vmem:[%s2062_s2] ss:$0 sm:$0xff] }
  0x5d   :  { %514 = vmatmul.mubr.f32.gmra.mrb[28].mxu0 %v1605_v59 }
  0x5e   :  { %703 = vmatmul.mubr.f32.gmra.mrb[28].mxu1 %v1605_v59  ;;  %518 = vmatprep.mubr.f32.mxu0 %v1618_v62 }
  0x5f   :  { %707 = vmatprep.mubr.f32.mxu1 %v1618_v62 }
  0x61   :  { %519 = vmatmul.mubr.f32.gmra.mrb[30].mxu0 %v1644_v9 }
  0x62   :  { %708 = vmatmul.mubr.f32.gmra.mrb[30].mxu1 %v1644_v9  ;;  %523 = vmatprep.mubr.f32.mxu0 %v1656_v12 }
  0x63   :  { %712 = vmatprep.mubr.f32.mxu1 %v1656_v12 }
  0x65   :  { %524 = vmatmul.mubr.f32.gmra.mrb[32].mxu0 %v1682_v24 }
  0x66   :  { %713 = vmatmul.mubr.f32.gmra.mrb[32].mxu1 %v1682_v24  ;;  %528 = vmatprep.mubr.f32.mxu0 %v1694_v27 }
  0x67   :  { %717 = vmatprep.mubr.f32.mxu1 %v1694_v27 }
  0x69   :  { %529 = vmatmul.mubr.f32.gmra.mrb[34].mxu0 %v1720_v38 }
  0x6a   :  { %718 = vmatmul.mubr.f32.gmra.mrb[34].mxu1 %v1720_v38  ;;  %533 = vmatprep.mubr.f32.mxu0 %v1732_v41 }
  0x6b   :  { %722 = vmatprep.mubr.f32.mxu1 %v1732_v41 }
  0x6d   :  { %534 = vmatmul.mubr.f32.gmra.mrb[36].mxu0 %v1758_v54 }
  0x6e   :  { %723 = vmatmul.mubr.f32.gmra.mrb[36].mxu1 %v1758_v54  ;;  %538 = vmatprep.mubr.f32.mxu0 %v1770_v57 }
  0x6f   :  { %727 = vmatprep.mubr.f32.mxu1 %v1770_v57 }
  0x71   :  { %539 = vmatmul.mubr.f32.gmra.mrb[38].mxu0 %v1796_v6 }
  0x72   :  { %728 = vmatmul.mubr.f32.gmra.mrb[38].mxu1 %v1796_v6  ;;  %543 = vmatprep.mubr.f32.mxu0 %v1808_v10 }
  0x73   :  { %732 = vmatprep.mubr.f32.mxu1 %v1808_v10 }
  0x75   :  { %544 = vmatmul.mubr.f32.gmra.mrb[40].mxu0 %v1828_v21 }
  0x76   :  { %733 = vmatmul.mubr.f32.gmra.mrb[40].mxu1 %v1828_v21  ;;  %548 = vmatprep.mubr.f32.mxu0 %v1834_v22 }
  0x77   :  { %737 = vmatprep.mubr.f32.mxu1 %v1834_v22 }
  0x79   :  { %549 = vmatmul.mubr.f32.gmra.mrb[42].mxu0 %v1842_v26 }
  0x7a   :  { %738 = vmatmul.mubr.f32.gmra.mrb[42].mxu1 %v1842_v26  ;;  %553 = vmatprep.mubr.f32.mxu0 %v1848_v28 }
  0x7b   :  { %742 = vmatprep.mubr.f32.mxu1 %v1848_v28 }
  0x7d   :  { %554 = vmatmul.mubr.f32.gmra.mrb[44].mxu0 %v32_v29 }
  0x7e   :  { %743 = vmatmul.mubr.f32.gmra.mrb[44].mxu1 %v32_v29  ;;  %558 = vmatprep.mubr.f32.mxu0 %v35_v30 }
  0x7f   :  { %747 = vmatprep.mubr.f32.mxu1 %v35_v30 }
  0x81   :  { %559 = vmatmul.mubr.f32.gmra.mrb[46].mxu0 %v34_v31 }
  0x82   :  { %748 = vmatmul.mubr.f32.gmra.mrb[46].mxu1 %v34_v31  ;;  %563 = vmatprep.mubr.f32.mxu0 %v37_v32 }
  0x83   :  { %752 = vmatprep.mubr.f32.mxu1 %v37_v32 }
  0x85   :  { %564 = vmatmul.mubr.f32.gmra.mrb[48].mxu0 %v36_v33 }
  0x86   :  { %753 = vmatmul.mubr.f32.gmra.mrb[48].mxu1 %v36_v33  ;;  %568 = vmatprep.mubr.f32.mxu0 %v39_v34 }
  0x87   :  { %757 = vmatprep.mubr.f32.mxu1 %v39_v34 }
  0x89   :  { %569 = vmatmul.mubr.f32.gmra.mrb[50].mxu0 %v38_v35 }
  0x8a   :  { %758 = vmatmul.mubr.f32.gmra.mrb[50].mxu1 %v38_v35 }
  0xf8   :  { %v937_v16 = vpop.f32.mrb[0].mxu0 }
  0xf9   :  { %v1008_v45 = vpop.f32.mrb[0].mxu1  ;;  %v938_v59 = vpop.f32.mrb[1].mxu0 }
  0xfa   :  { %v939_v62 = vadd.f32 %v938_v59, %v937_v16  ;;  %v1009_v9 = vpop.f32.mrb[1].mxu1 }
  0xfb   :  { %v1010_v12 = vadd.f32 %v1009_v9, %v1008_v45 }
  0xfc   :  { %v146_v24 = vadd.f32 %v939_v62, %v1916_v49  ;;  %v940_v27 = vpop.f32.mrb[2].mxu0 }
  0xfd   :  { %v322_v36 = vadd.f32 %v1010_v12, %v1916_v49  ;;  %v1011_v37 = vpop.f32.mrb[2].mxu1  ;;  %v941_v38 = vpop.f32.mrb[3].mxu0 }
  0xfe   :  { %v209_v39 = vmax.f32 %v146_v24, 0.0  ;;  %v942_v40 = vadd.f32 %v941_v38, %v940_v27  ;;  %v1012_v41 = vpop.f32.mrb[3].mxu1 }
  0xff   :  { %v385_v42 = vmax.f32 %v322_v36, 0.0  ;;  %v1013_v43 = vadd.f32 %v1012_v41, %v1011_v37 }
 0x100   :  { %v151_v44 = vadd.f32 %v942_v40, %v1916_v49  ;;  %v943_v46 = vpop.f32.mrb[4].mxu0 }
 0x101   :  { %v1921_v47 = vmax.f32 %v209_v39, %v385_v42  ;;  %v327_v48 = vadd.f32 %v1013_v43, %v1916_v49  ;;  %v1014_v50 = vpop.f32.mrb[4].mxu1  ;;  %v944_v51 = vpop.f32.mrb[5].mxu0 }
 0x102   :  { %v210_v52 = vmax.f32 %v151_v44, 0.0  ;;  %v945_v53 = vadd.f32 %v944_v51, %v943_v46  ;;  %v1015_v54 = vpop.f32.mrb[5].mxu1 }
 0x103   :  { %v386_v55 = vmax.f32 %v327_v48, 0.0  ;;  %v1016_v56 = vadd.f32 %v1015_v54, %v1014_v50 }
 0x104   :  { %v156_v57 = vadd.f32 %v945_v53, %v1916_v49  ;;  %v946_v58 = vpop.f32.mrb[6].mxu0 }
 0x105   :  { %v1925_v60 = vmax.f32 %v210_v52, %v386_v55  ;;  %v332_v61 = vadd.f32 %v1016_v56, %v1916_v49  ;;  %v1017_v63 = vpop.f32.mrb[6].mxu1  ;;  %v947_v0 = vpop.f32.mrb[7].mxu0 }
 0x106   :  { %v211_v1 = vmax.f32 %v156_v57, 0.0  ;;  %v948_v2 = vadd.f32 %v947_v0, %v946_v58  ;;  %v1018_v3 = vpop.f32.mrb[7].mxu1 }
 0x107   :  { %v387_v4 = vmax.f32 %v332_v61, 0.0  ;;  %v1019_v5 = vadd.f32 %v1018_v3, %v1017_v63 }
 0x108   :  { %v161_v6 = vadd.f32 %v948_v2, %v1916_v49  ;;  %v949_v7 = vpop.f32.mrb[8].mxu0 }
 0x109   :  { %v1929_v8 = vmax.f32 %v211_v1, %v387_v4  ;;  %v337_v10 = vadd.f32 %v1019_v5, %v1916_v49  ;;  %v1020_v11 = vpop.f32.mrb[8].mxu1  ;;  %v950_v13 = vpop.f32.mrb[9].mxu0 }
 0x10a   :  { %v212_v14 = vmax.f32 %v161_v6, 0.0  ;;  %v951_v15 = vadd.f32 %v950_v13, %v949_v7  ;;  %v1021_v17 = vpop.f32.mrb[9].mxu1 }
 0x10b   :  { %v388_v18 = vmax.f32 %v337_v10, 0.0  ;;  %v1022_v19 = vadd.f32 %v1021_v17, %v1020_v11 }
 0x10c   :  { %v166_v20 = vadd.f32 %v951_v15, %v1916_v49  ;;  %v952_v21 = vpop.f32.mrb[10].mxu0 }
 0x10d   :  { %v1933_v22 = vmax.f32 %v212_v14, %v388_v18  ;;  %v342_v23 = vadd.f32 %v1022_v19, %v1916_v49  ;;  %v1023_v25 = vpop.f32.mrb[10].mxu1  ;;  %v953_v26 = vpop.f32.mrb[11].mxu0 }
 0x10e   :  { %v213_v28 = vmax.f32 %v166_v20, 0.0  ;;  %v954_v29 = vadd.f32 %v953_v26, %v952_v21  ;;  %v1024_v30 = vpop.f32.mrb[11].mxu1 }
 0x10f   :  { %v389_v31 = vmax.f32 %v342_v23, 0.0  ;;  %v1025_v32 = vadd.f32 %v1024_v30, %v1023_v25 }
 0x110   :  { %v171_v33 = vadd.f32 %v954_v29, %v1916_v49  ;;  %v955_v34 = vpop.f32.mrb[12].mxu0 }
 0x111   :  { %v1937_v35 = vmax.f32 %v213_v28, %v389_v31  ;;  %v347_v16 = vadd.f32 %v1025_v32, %v1916_v49  ;;  %v1026_v45 = vpop.f32.mrb[12].mxu1  ;;  %v956_v59 = vpop.f32.mrb[13].mxu0 }
 0x112   :  { %v214_v62 = vmax.f32 %v171_v33, 0.0  ;;  %v957_v9 = vadd.f32 %v956_v59, %v955_v34  ;;  %v1027_v12 = vpop.f32.mrb[13].mxu1 }
 0x113   :  { %v390_v24 = vmax.f32 %v347_v16, 0.0  ;;  %v1028_v27 = vadd.f32 %v1027_v12, %v1026_v45 }
 0x114   :  { %v176_v36 = vadd.f32 %v957_v9, %v1916_v49  ;;  %v958_v37 = vpop.f32.mrb[14].mxu0 }
 0x115   :  { %v1941_v38 = vmax.f32 %v214_v62, %v390_v24  ;;  %v352_v39 = vadd.f32 %v1028_v27, %v1916_v49  ;;  %v1029_v40 = vpop.f32.mrb[14].mxu1  ;;  %v959_v41 = vpop.f32.mrb[15].mxu0 }
 0x116   :  { %v215_v42 = vmax.f32 %v176_v36, 0.0  ;;  %v960_v43 = vadd.f32 %v959_v41, %v958_v37  ;;  %v1030_v44 = vpop.f32.mrb[15].mxu1 }
 0x117   :  { %v391_v46 = vmax.f32 %v352_v39, 0.0  ;;  %v1031_v48 = vadd.f32 %v1030_v44, %v1029_v40 }
 0x118   :  { %v181_v50 = vadd.f32 %v960_v43, %v1916_v49  ;;  %v961_v51 = vpop.f32.mrb[16].mxu0 }
 0x119   :  { %v1945_v52 = vmax.f32 %v215_v42, %v391_v46  ;;  %v357_v53 = vadd.f32 %v1031_v48, %v1916_v49  ;;  %v1032_v54 = vpop.f32.mrb[16].mxu1  ;;  %v962_v55 = vpop.f32.mrb[17].mxu0 }
 0x11a   :  { %v216_v56 = vmax.f32 %v181_v50, 0.0  ;;  %v963_v57 = vadd.f32 %v962_v55, %v961_v51  ;;  %v1033_v58 = vpop.f32.mrb[17].mxu1 }
 0x11b   :  { %v392_v61 = vmax.f32 %v357_v53, 0.0  ;;  %v1034_v63 = vadd.f32 %v1033_v58, %v1032_v54 }
 0x11c   :  { %v186_v0 = vadd.f32 %v963_v57, %v1916_v49  ;;  %v964_v1 = vpop.f32.mrb[18].mxu0 }
 0x11d   :  { %v1949_v2 = vmax.f32 %v216_v56, %v392_v61  ;;  %v362_v3 = vadd.f32 %v1034_v63, %v1916_v49  ;;  %v1035_v4 = vpop.f32.mrb[18].mxu1  ;;  %v965_v5 = vpop.f32.mrb[19].mxu0 }
 0x11e   :  { %v217_v6 = vmax.f32 %v186_v0, 0.0  ;;  %v966_v7 = vadd.f32 %v965_v5, %v964_v1  ;;  %v1036_v10 = vpop.f32.mrb[19].mxu1 }
 0x11f   :  { %v393_v11 = vmax.f32 %v362_v3, 0.0  ;;  %v1037_v13 = vadd.f32 %v1036_v10, %v1035_v4 }
 0x120   :  { %v191_v14 = vadd.f32 %v966_v7, %v1916_v49  ;;  %v967_v15 = vpop.f32.mrb[20].mxu0 }
 0x121   :  { %v1953_v17 = vmax.f32 %v217_v6, %v393_v11  ;;  %v367_v18 = vadd.f32 %v1037_v13, %v1916_v49  ;;  %v1038_v19 = vpop.f32.mrb[20].mxu1  ;;  %v968_v20 = vpop.f32.mrb[21].mxu0 }
 0x122   :  { %v218_v21 = vmax.f32 %v191_v14, 0.0  ;;  %v969_v23 = vadd.f32 %v968_v20, %v967_v15  ;;  %v1039_v25 = vpop.f32.mrb[21].mxu1 }
 0x123   :  { %v394_v26 = vmax.f32 %v367_v18, 0.0  ;;  %v1040_v28 = vadd.f32 %v1039_v25, %v1038_v19 }
 0x124   :  { %v196_v29 = vadd.f32 %v969_v23, %v1916_v49  ;;  %v970_v30 = vpop.f32.mrb[22].mxu0 }
 0x125   :  { %v1957_v31 = vmax.f32 %v218_v21, %v394_v26  ;;  %v372_v32 = vadd.f32 %v1040_v28, %v1916_v49  ;;  %v1041_v33 = vpop.f32.mrb[22].mxu1  ;;  %v971_v34 = vpop.f32.mrb[23].mxu0 }
 0x126   :  { %v219_v16 = vmax.f32 %v196_v29, 0.0  ;;  %v972_v45 = vadd.f32 %v971_v34, %v970_v30  ;;  %v1042_v59 = vpop.f32.mrb[23].mxu1 }
 0x127   :  { %v395_v62 = vmax.f32 %v372_v32, 0.0  ;;  %v1043_v9 = vadd.f32 %v1042_v59, %v1041_v33 }
 0x128   :  { %v201_v12 = vadd.f32 %v972_v45, %v1916_v49  ;;  %v973_v24 = vpop.f32.mrb[24].mxu0 }
 0x129   :  { %v1961_v27 = vmax.f32 %v219_v16, %v395_v62  ;;  %v377_v36 = vadd.f32 %v1043_v9, %v1916_v49  ;;  %v1044_v37 = vpop.f32.mrb[24].mxu1  ;;  %v974_v39 = vpop.f32.mrb[25].mxu0 }
 0x12a   :  { %v220_v40 = vmax.f32 %v201_v12, 0.0  ;;  %v975_v41 = vadd.f32 %v974_v39, %v973_v24  ;;  %v1045_v42 = vpop.f32.mrb[25].mxu1 }
 0x12b   :  { %v396_v43 = vmax.f32 %v377_v36, 0.0  ;;  %v1046_v44 = vadd.f32 %v1045_v42, %v1044_v37 }
 0x12c   :  { %v206_v46 = vadd.f32 %v975_v41, %v1916_v49  ;;  %v1079_v48 = vpop.f32.mrb[26].mxu0 }
 0x12d   :  { %v1965_v50 = vmax.f32 %v220_v40, %v396_v43  ;;  %v382_v51 = vadd.f32 %v1046_v44, %v1916_v49  ;;  %v1080_v53 = vpop.f32.mrb[27].mxu0  ;;  %v1150_v54 = vpop.f32.mrb[26].mxu1 }
 0x12e   :  { %v221_v55 = vmax.f32 %v206_v46, 0.0  ;;  %v1081_v56 = vadd.f32 %v1080_v53, %v1079_v48  ;;  %v1151_v57 = vpop.f32.mrb[27].mxu1 }
 0x12f   :  { %v397_v58 = vmax.f32 %v382_v51, 0.0  ;;  %v1152_v61 = vadd.f32 %v1151_v57, %v1150_v54 }
 0x130   :  { %v511_v63 = vadd.f32 %v1081_v56, %v1916_v49  ;;  %v1082_v0 = vpop.f32.mrb[28].mxu0 }
 0x131   :  { %v1969_v1 = vmax.f32 %v221_v55, %v397_v58  ;;  %v700_v3 = vadd.f32 %v1152_v61, %v1916_v49  ;;  %v1083_v4 = vpop.f32.mrb[29].mxu0  ;;  %v1153_v5 = vpop.f32.mrb[28].mxu1 }
 0x132   :  { %v574_v6 = vmax.f32 %v511_v63, 0.0  ;;  %v1084_v7 = vadd.f32 %v1083_v4, %v1082_v0  ;;  %v1154_v10 = vpop.f32.mrb[29].mxu1 }
 0x133   :  { %v763_v11 = vmax.f32 %v700_v3, 0.0  ;;  %v1155_v13 = vadd.f32 %v1154_v10, %v1153_v5 }
 0x134   :  { %v587_v14 = vmax.f32 %v1921_v47, %v574_v6  ;;  %v516_v15 = vadd.f32 %v1084_v7, %v1916_v49  ;;  %v1085_v18 = vpop.f32.mrb[30].mxu0 }
 0x135   :  { %v705_v19 = vadd.f32 %v1155_v13, %v1916_v49  ;;  %v1086_v20 = vpop.f32.mrb[31].mxu0  ;;  %v1156_v21 = vpop.f32.mrb[30].mxu1 }
 0x136   :  { %v776_v23 = vmax.f32 %v587_v14, %v763_v11  ;;  %v575_v25 = vmax.f32 %v516_v15, 0.0  ;;  %v1087_v26 = vadd.f32 %v1086_v20, %v1085_v18  ;;  %v1157_v28 = vpop.f32.mrb[31].mxu1 }
 0x137   :  { %v764_v29 = vmax.f32 %v705_v19, 0.0  ;;  %v1158_v30 = vadd.f32 %v1157_v28, %v1156_v21 }
 0x138   :  { %790 = vst.msk [vmem:[%s2063_s3] sm:$0xff] %vm789_vm0, %v776_v23  ;;  %v588_v47 = vmax.f32 %v1925_v60, %v575_v25  ;;  %v521_v32 = vadd.f32 %v1087_v26, %v1916_v49  ;;  %v1088_v33 = vpop.f32.mrb[32].mxu0 }
 0x139   :  { %v710_v34 = vadd.f32 %v1158_v30, %v1916_v49  ;;  %v1089_v16 = vpop.f32.mrb[33].mxu0  ;;  %v1159_v45 = vpop.f32.mrb[32].mxu1 }
 0x13a   :  { %v777_v59 = vmax.f32 %v588_v47, %v764_v29  ;;  %v576_v62 = vmax.f32 %v521_v32, 0.0  ;;  %v1090_v9 = vadd.f32 %v1089_v16, %v1088_v33  ;;  %v1160_v12 = vpop.f32.mrb[33].mxu1 }
 0x13b   :  { %v765_v24 = vmax.f32 %v710_v34, 0.0  ;;  %v1161_v36 = vadd.f32 %v1160_v12, %v1159_v45 }
 0x13c   :  { %791 = vst.msk [vmem:[%s2063_s3 + $0x8] sm:$0xff] %vm789_vm0, %v777_v59  ;;  %v589_v60 = vmax.f32 %v1929_v8, %v576_v62  ;;  %v526_v37 = vadd.f32 %v1090_v9, %v1916_v49  ;;  %v1091_v39 = vpop.f32.mrb[34].mxu0 }
 0x13d   :  { %v715_v40 = vadd.f32 %v1161_v36, %v1916_v49  ;;  %v1092_v41 = vpop.f32.mrb[35].mxu0  ;;  %v1162_v42 = vpop.f32.mrb[34].mxu1 }
 0x13e   :  { %v778_v43 = vmax.f32 %v589_v60, %v765_v24  ;;  %v577_v44 = vmax.f32 %v526_v37, 0.0  ;;  %v1093_v46 = vadd.f32 %v1092_v41, %v1091_v39  ;;  %v1163_v48 = vpop.f32.mrb[35].mxu1 }
 0x13f   :  { %v766_v51 = vmax.f32 %v715_v40, 0.0  ;;  %v1164_v53 = vadd.f32 %v1163_v48, %v1162_v42 }
 0x140   :  { %792 = vst.msk [vmem:[%s2063_s3 + $0x10] sm:$0xff] %vm789_vm0, %v778_v43  ;;  %v590_v8 = vmax.f32 %v1933_v22, %v577_v44  ;;  %v531_v54 = vadd.f32 %v1093_v46, %v1916_v49  ;;  %v1094_v55 = vpop.f32.mrb[36].mxu0 }
 0x141   :  { %v720_v56 = vadd.f32 %v1164_v53, %v1916_v49  ;;  %v1095_v57 = vpop.f32.mrb[37].mxu0  ;;  %v1165_v58 = vpop.f32.mrb[36].mxu1 }
 0x142   :  { %v779_v61 = vmax.f32 %v590_v8, %v766_v51  ;;  %v578_v63 = vmax.f32 %v531_v54, 0.0  ;;  %v1096_v0 = vadd.f32 %v1095_v57, %v1094_v55  ;;  %v1166_v3 = vpop.f32.mrb[37].mxu1 }
 0x143   :  { %v767_v4 = vmax.f32 %v720_v56, 0.0  ;;  %v1167_v5 = vadd.f32 %v1166_v3, %v1165_v58 }
 0x144   :  { %793 = vst.msk [vmem:[%s2063_s3 + $0x18] sm:$0xff] %vm789_vm0, %v779_v61  ;;  %v591_v22 = vmax.f32 %v1937_v35, %v578_v63  ;;  %v536_v6 = vadd.f32 %v1096_v0, %v1916_v49  ;;  %v1097_v7 = vpop.f32.mrb[38].mxu0 }
 0x145   :  { %v725_v10 = vadd.f32 %v1167_v5, %v1916_v49  ;;  %v1098_v11 = vpop.f32.mrb[39].mxu0  ;;  %v1168_v13 = vpop.f32.mrb[38].mxu1 }
 0x146   :  { %v780_v14 = vmax.f32 %v591_v22, %v767_v4  ;;  %v579_v15 = vmax.f32 %v536_v6, 0.0  ;;  %v1099_v18 = vadd.f32 %v1098_v11, %v1097_v7  ;;  %v1169_v19 = vpop.f32.mrb[39].mxu1 }
 0x147   :  { %v768_v20 = vmax.f32 %v725_v10, 0.0  ;;  %v1170_v21 = vadd.f32 %v1169_v19, %v1168_v13 }
 0x148   :  { %794 = vst.msk [vmem:[%s2063_s3 + $0x20] sm:$0xff] %vm789_vm0, %v780_v14  ;;  %v592_v35 = vmax.f32 %v1941_v38, %v579_v15  ;;  %v541_v23 = vadd.f32 %v1099_v18, %v1916_v49  ;;  %v1100_v25 = vpop.f32.mrb[40].mxu0 }
 0x149   :  { %v730_v26 = vadd.f32 %v1170_v21, %v1916_v49  ;;  %v1101_v28 = vpop.f32.mrb[41].mxu0  ;;  %v1171_v29 = vpop.f32.mrb[40].mxu1 }
 0x14a   :  { %v781_v30 = vmax.f32 %v592_v35, %v768_v20  ;;  %v580_v47 = vmax.f32 %v541_v23, 0.0  ;;  %v1102_v32 = vadd.f32 %v1101_v28, %v1100_v25  ;;  %v1172_v33 = vpop.f32.mrb[41].mxu1 }
 0x14b   :  { %v769_v34 = vmax.f32 %v730_v26, 0.0  ;;  %v1173_v16 = vadd.f32 %v1172_v33, %v1171_v29 }
 0x14c   :  { %795 = vst.msk [vmem:[%s2063_s3 + $0x28] sm:$0xff] %vm789_vm0, %v781_v30  ;;  %v593_v38 = vmax.f32 %v1945_v52, %v580_v47  ;;  %v546_v45 = vadd.f32 %v1102_v32, %v1916_v49  ;;  %v1103_v59 = vpop.f32.mrb[42].mxu0 }
 0x14d   :  { %v735_v62 = vadd.f32 %v1173_v16, %v1916_v49  ;;  %v1104_v9 = vpop.f32.mrb[43].mxu0  ;;  %v1174_v12 = vpop.f32.mrb[42].mxu1 }
 0x14e   :  { %v782_v24 = vmax.f32 %v593_v38, %v769_v34  ;;  %v581_v36 = vmax.f32 %v546_v45, 0.0  ;;  %v1105_v60 = vadd.f32 %v1104_v9, %v1103_v59  ;;  %v1175_v37 = vpop.f32.mrb[43].mxu1 }
 0x14f   :  { %v770_v39 = vmax.f32 %v735_v62, 0.0  ;;  %v1176_v40 = vadd.f32 %v1175_v37, %v1174_v12 }
 0x150   :  { %796 = vst.msk [vmem:[%s2063_s3 + $0x30] sm:$0xff] %vm789_vm0, %v782_v24  ;;  %v594_v52 = vmax.f32 %v1949_v2, %v581_v36  ;;  %v551_v41 = vadd.f32 %v1105_v60, %v1916_v49  ;;  %v1106_v42 = vpop.f32.mrb[44].mxu0 }
 0x151   :  { %v740_v43 = vadd.f32 %v1176_v40, %v1916_v49  ;;  %v1107_v44 = vpop.f32.mrb[45].mxu0  ;;  %v1177_v46 = vpop.f32.mrb[44].mxu1 }
 0x152   :  { %v783_v48 = vmax.f32 %v594_v52, %v770_v39  ;;  %v582_v51 = vmax.f32 %v551_v41, 0.0  ;;  %v1108_v53 = vadd.f32 %v1107_v44, %v1106_v42  ;;  %v1178_v8 = vpop.f32.mrb[45].mxu1 }
 0x153   :  { %v771_v54 = vmax.f32 %v740_v43, 0.0  ;;  %v1179_v55 = vadd.f32 %v1178_v8, %v1177_v46 }
 0x154   :  { %797 = vst.msk [vmem:[%s2063_s3 + $0x38] sm:$0xff] %vm789_vm0, %v783_v48  ;;  %v595_v2 = vmax.f32 %v1953_v17, %v582_v51  ;;  %v556_v56 = vadd.f32 %v1108_v53, %v1916_v49  ;;  %v1109_v57 = vpop.f32.mrb[46].mxu0 }
 0x155   :  { %v745_v58 = vadd.f32 %v1179_v55, %v1916_v49  ;;  %v1110_v61 = vpop.f32.mrb[47].mxu0  ;;  %v1180_v63 = vpop.f32.mrb[46].mxu1 }
 0x156   :  { %v784_v0 = vmax.f32 %v595_v2, %v771_v54  ;;  %v583_v3 = vmax.f32 %v556_v56, 0.0  ;;  %v1111_v4 = vadd.f32 %v1110_v61, %v1109_v57  ;;  %v1181_v5 = vpop.f32.mrb[47].mxu1 }
 0x157   :  { %v772_v22 = vmax.f32 %v745_v58, 0.0  ;;  %v1182_v6 = vadd.f32 %v1181_v5, %v1180_v63 }
 0x158   :  { %798 = vst.msk [vmem:[%s2063_s3 + $0x40] sm:$0xff] %vm789_vm0, %v784_v0  ;;  %v596_v17 = vmax.f32 %v1957_v31, %v583_v3  ;;  %v561_v7 = vadd.f32 %v1111_v4, %v1916_v49  ;;  %v1112_v10 = vpop.f32.mrb[48].mxu0 }
 0x159   :  { %v750_v11 = vadd.f32 %v1182_v6, %v1916_v49  ;;  %v1113_v13 = vpop.f32.mrb[49].mxu0  ;;  %v1183_v14 = vpop.f32.mrb[48].mxu1 }
 0x15a   :  { %v785_v15 = vmax.f32 %v596_v17, %v772_v22  ;;  %v584_v18 = vmax.f32 %v561_v7, 0.0  ;;  %v1114_v19 = vadd.f32 %v1113_v13, %v1112_v10  ;;  %v1184_v20 = vpop.f32.mrb[49].mxu1 }
 0x15b   :  { %v773_v21 = vmax.f32 %v750_v11, 0.0  ;;  %v1185_v35 = vadd.f32 %v1184_v20, %v1183_v14 }
 0x15c   :  { %799 = vst.msk [vmem:[%s2063_s3 + $0x48] sm:$0xff] %vm789_vm0, %v785_v15  ;;  %v597_v31 = vmax.f32 %v1961_v27, %v584_v18  ;;  %v566_v23 = vadd.f32 %v1114_v19, %v1916_v49  ;;  %v1115_v25 = vpop.f32.mrb[50].mxu0 }
 0x15d   :  { %v755_v26 = vadd.f32 %v1185_v35, %v1916_v49  ;;  %v1116_v28 = vpop.f32.mrb[51].mxu0  ;;  %v1186_v29 = vpop.f32.mrb[50].mxu1 }
 0x15e   :  { %v786_v30 = vmax.f32 %v597_v31, %v773_v21  ;;  %v585_v47 = vmax.f32 %v566_v23, 0.0  ;;  %v1117_v32 = vadd.f32 %v1116_v28, %v1115_v25  ;;  %v1187_v33 = vpop.f32.mrb[51].mxu1 }
 0x15f   :  { %v774_v34 = vmax.f32 %v755_v26, 0.0  ;;  %v1188_v16 = vadd.f32 %v1187_v33, %v1186_v29 }
 0x160   :  { %800 = vst.msk [vmem:[%s2063_s3 + $0x50] sm:$0xff] %vm789_vm0, %v786_v30  ;;  %v598_v27 = vmax.f32 %v1965_v50, %v585_v47  ;;  %v571_v38 = vadd.f32 %v1117_v32, %v1916_v49 }
 0x161   :  { %v760_v45 = vadd.f32 %v1188_v16, %v1916_v49 }
 0x162   :  { %v787_v59 = vmax.f32 %v598_v27, %v774_v34  ;;  %v586_v62 = vmax.f32 %v571_v38, 0.0 }
 0x163   :  { %v775_v9 = vmax.f32 %v760_v45, 0.0 }
 0x164   :  { %801 = vst.msk [vmem:[%s2063_s3 + $0x58] sm:$0xff] %vm789_vm0, %v787_v59  ;;  %v599_v12 = vmax.f32 %v1969_v1, %v586_v62 }
 0x166   :  { %v788_v24 = vmax.f32 %v599_v12, %v775_v9 }
 0x168   :  { %803 = vst.msk [vmem:[%s2063_s3 + $0x60] sm:$0x3] %vm802_vm1, %v788_v24 }

// kernel: production_cnn2_forward.5
= control target key start
LH: loop header
LB: loop body
LE: loop exit
PB: predicated region body
PF: predicated region fallthrough
CT: control target
= control target key end

     0   :  { %v9990_v36 = vmov 1983009808   ;;  %v40_v38 = vlaneseq  ;;  %vm4469_vm0 = vcmask 261120   ;;  %s13016_s0 = inlined_call_operand.vmem [shape: f32[2,1568], index: 0, kind: input, shape index: {}]   ;;  %s13017_s1 = inlined_call_operand.vmem [shape: bf16[1568,784], index: 1, kind: input, shape index: {}]   ;;  %s13018_s2 = inlined_call_operand.vmem [shape: f32[1,784], index: 2, kind: input, shape index: {}]   ;;  %s13019_s3 = inlined_call_operand.vmem [shape: bf16[784,392], index: 3, kind: input, shape index: {}]   ;;  %s13020_s4 = inlined_call_operand.vmem [shape: f32[1,392], index: 4, kind: input, shape index: {}]   ;;  %s13021_s5 = inlined_call_operand.vmem [shape: bf16[392,10], index: 5, kind: input, shape index: {}]   ;;  %s13022_s6 = inlined_call_operand.vmem [shape: f32[1,10], index: 6, kind: input, shape index: {}]   ;;  %s13023_s7 = inlined_call_operand.hbm [shape: f32[2,10], index: 7, kind: output, shape index: {}]  }
   0x1   :  { %v8663_v0 = vld [vmem:[%s13017_s1 + $0x4] ss:$28 sps:$4 sm:$0xff]   ;;  %v8669_v4 = vld [vmem:[%s13017_s1 + $0x3c] ss:$28 sps:$4 sm:$0xff]   ;;  %v8675_v8 = vld [vmem:[%s13017_s1 + $0x74] ss:$28 sps:$4 sm:$0xff]   ;;  %v38_v37 = vunpack.c.l.s4 %v9990_v36 }
   0x2   :  { %v8665_v1 = vld [vmem:[%s13017_s1 + $0x384] ss:$28 sps:$4 sm:$0xff]   ;;  %4473 = vmatprep.subr.bf16.mxu1 %v8663_v0  ;;  %v8671_v5 = vld [vmem:[%s13017_s1 + $0x3bc] ss:$28 sps:$4 sm:$0xff]   ;;  %v8677_v9 = vld [vmem:[%s13017_s1 + $0x3f4] ss:$28 sps:$4 sm:$0xff]  }
   0x3   :  { %v8667_v2 = vld [vmem:[%s13017_s1] ss:$28 sps:$4 sm:$0xff]   ;;  %4514 = vmatprep.subr.bf16.mxu0 %v8665_v1  ;;  %v8673_v6 = vld [vmem:[%s13017_s1 + $0x38] ss:$28 sps:$4 sm:$0xff]   ;;  %v8679_v10 = vld [vmem:[%s13017_s1 + $0x70] ss:$28 sps:$4 sm:$0xff]   ;;  %v39_v42 = vunpack.c.0.s8 %v38_v37 }
   0x4   :  { %v8668_v3 = vld [vmem:[%s13017_s1 + $0x380] ss:$28 sps:$4 sm:$0xff]   ;;  %4474 = vmatpush1.bf16.msra.mxu1 %v8667_v2  ;;  %v8674_v7 = vld [vmem:[%s13017_s1 + $0x3b8] ss:$28 sps:$4 sm:$0xff]   ;;  %v8680_v11 = vld [vmem:[%s13017_s1 + $0x3f0] ss:$28 sps:$4 sm:$0xff]  }
   0x5   :  { %4515 = vmatpush1.bf16.msra.mxu0 %v8668_v3  ;;  %4475 = vmatprep.subr.bf16.mxu1 %v8669_v4  ;;  %v8681_v12 = vld [vmem:[%s13017_s1 + $0xac] ss:$28 sps:$4 sm:$0xff]   ;;  %v8687_v16 = vld [vmem:[%s13017_s1 + $0xe4] ss:$28 sps:$4 sm:$0xff]   ;;  %v8693_v20 = vld [vmem:[%s13017_s1 + $0x11c] ss:$28 sps:$4 sm:$0xff]  }
   0x6   :  { %4516 = vmatprep.subr.bf16.mxu0 %v8671_v5  ;;  %v8683_v13 = vld [vmem:[%s13017_s1 + $0x42c] ss:$28 sps:$4 sm:$0xff]   ;;  %v8689_v17 = vld [vmem:[%s13017_s1 + $0x464] ss:$28 sps:$4 sm:$0xff]   ;;  %v8695_v21 = vld [vmem:[%s13017_s1 + $0x49c] ss:$28 sps:$4 sm:$0xff]  }
   0x7   :  { %v8685_v14 = vld [vmem:[%s13017_s1 + $0xa8] ss:$28 sps:$4 sm:$0xff]   ;;  %v8691_v18 = vld [vmem:[%s13017_s1 + $0xe0] ss:$28 sps:$4 sm:$0xff]   ;;  %v8697_v22 = vld [vmem:[%s13017_s1 + $0x118] ss:$28 sps:$4 sm:$0xff]  }
   0x8   :  { %4476 = vmatpush1.bf16.msra.mxu1 %v8673_v6  ;;  %v8686_v15 = vld [vmem:[%s13017_s1 + $0x428] ss:$28 sps:$4 sm:$0xff]   ;;  %v8692_v19 = vld [vmem:[%s13017_s1 + $0x460] ss:$28 sps:$4 sm:$0xff]   ;;  %v8698_v23 = vld [vmem:[%s13017_s1 + $0x498] ss:$28 sps:$4 sm:$0xff]  }
   0x9   :  { %4517 = vmatpush1.bf16.msra.mxu0 %v8674_v7  ;;  %4477 = vmatprep.subr.bf16.mxu1 %v8675_v8  ;;  %v8699_v24 = vld [vmem:[%s13017_s1 + $0x154] ss:$28 sps:$4 sm:$0xff]   ;;  %v8705_v28 = vld [vmem:[%s13017_s1 + $0x18c] ss:$28 sps:$4 sm:$0xff]   ;;  %v8711_v32 = vld [vmem:[%s13017_s1 + $0x1c4] ss:$28 sps:$4 sm:$0xff]  }
   0xa   :  { %4518 = vmatprep.subr.bf16.mxu0 %v8677_v9  ;;  %v8701_v25 = vld [vmem:[%s13017_s1 + $0x4d4] ss:$28 sps:$4 sm:$0xff]   ;;  %v8707_v29 = vld [vmem:[%s13017_s1 + $0x50c] ss:$28 sps:$4 sm:$0xff]   ;;  %v8713_v33 = vld [vmem:[%s13017_s1 + $0x544] ss:$28 sps:$4 sm:$0xff]  }
   0xb   :  { %v8703_v26 = vld [vmem:[%s13017_s1 + $0x150] ss:$28 sps:$4 sm:$0xff]   ;;  %v8709_v30 = vld [vmem:[%s13017_s1 + $0x188] ss:$28 sps:$4 sm:$0xff]   ;;  %v8715_v34 = vld [vmem:[%s13017_s1 + $0x1c0] ss:$28 sps:$4 sm:$0xff]  }
   0xc   :  { %4478 = vmatpush1.bf16.msra.mxu1 %v8679_v10  ;;  %v8704_v27 = vld [vmem:[%s13017_s1 + $0x4d0] ss:$28 sps:$4 sm:$0xff]   ;;  %v8710_v31 = vld [vmem:[%s13017_s1 + $0x508] ss:$28 sps:$4 sm:$0xff]   ;;  %v8716_v35 = vld [vmem:[%s13017_s1 + $0x540] ss:$28 sps:$4 sm:$0xff]  }
   0xd   :  { %4519 = vmatpush1.bf16.msra.mxu0 %v8680_v11  ;;  %4479 = vmatprep.subr.bf16.mxu1 %v8681_v12  ;;  %v8717_v39 = vld [vmem:[%s13017_s1 + $0x1fc] ss:$28 sps:$4 sm:$0xff]   ;;  %v10152_v43 = vshrl.u32 %v40_v38, 7  ;;  %v8723_v45 = vld [vmem:[%s13017_s1 + $0x234] ss:$28 sps:$4 sm:$0xff]   ;;  %v28_v52 = vld [vmem:[%s13016_s0] sm:$0xff] }
   0xe   :  { %4520 = vmatprep.subr.bf16.mxu0 %v8683_v13  ;;  %v8719_v40 = vld [vmem:[%s13017_s1 + $0x57c] ss:$28 sps:$4 sm:$0xff]   ;;  %v8725_v46 = vld [vmem:[%s13017_s1 + $0x5b4] ss:$28 sps:$4 sm:$0xff]   ;;  %v8729_v50 = vld [vmem:[%s13017_s1 + $0x26c] ss:$28 sps:$4 sm:$0xff]   ;;  %v36_v55 = vcombine.high %v28_v52, %v28_v52 }
   0xf   :  { %v8721_v41 = vld [vmem:[%s13017_s1 + $0x1f8] ss:$28 sps:$4 sm:$0xff]   ;;  %v8727_v47 = vld [vmem:[%s13017_s1 + $0x230] ss:$28 sps:$4 sm:$0xff]   ;;  %v10170_v49 = vsub.s32 %v39_v42, %v10152_v43  ;;  %v8733_v53 = vld [vmem:[%s13017_s1 + $0x268] ss:$28 sps:$4 sm:$0xff]  }
  0x10   :  { %4480 = vmatpush1.bf16.msra.mxu1 %v8685_v14  ;;  %v8722_v44 = vld [vmem:[%s13017_s1 + $0x578] ss:$28 sps:$4 sm:$0xff]   ;;  %v8728_v48 = vld [vmem:[%s13017_s1 + $0x5b0] ss:$28 sps:$4 sm:$0xff]   ;;  %v8734_v56 = vld [vmem:[%s13017_s1 + $0x5e8] ss:$28 sps:$4 sm:$0xff]  }
  0x11   :  { %4521 = vmatpush1.bf16.msra.mxu0 %v8686_v15  ;;  %4481 = vmatprep.subr.bf16.mxu1 %v8687_v16  ;;  %v8731_v51 = vld [vmem:[%s13017_s1 + $0x5ec] ss:$28 sps:$4 sm:$0xff]   ;;  %v43_v54 = vrot.slane %v28_v52, %v10170_v49  ;;  %v8735_v57 = vld [vmem:[%s13017_s1 + $0x2a4] ss:$28 sps:$4 sm:$0xff]   ;;  %v50_v60 = vrot.slane %v36_v55, %v10170_v49  ;;  %v8741_v1 = vld [vmem:[%s13017_s1 + $0x2dc] ss:$28 sps:$4 sm:$0xff]  }
  0x12   :  { %4522 = vmatprep.subr.bf16.mxu0 %v8689_v17  ;;  %v8737_v58 = vld [vmem:[%s13017_s1 + $0x624] ss:$28 sps:$4 sm:$0xff]   ;;  %v8743_v2 = vld [vmem:[%s13017_s1 + $0x65c] ss:$28 sps:$4 sm:$0xff]   ;;  %v8747_v6 = vld [vmem:[%s13017_s1 + $0x314] ss:$28 sps:$4 sm:$0xff]  }
  0x13   :  { %v51_v59 = vcombine.high %v43_v54, %v43_v54  ;;  %v8739_v61 = vld [vmem:[%s13017_s1 + $0x2a0] ss:$28 sps:$4 sm:$0xff]   ;;  %v52_v63 = vcombine.high %v50_v60, %v50_v60  ;;  %v8745_v4 = vld [vmem:[%s13017_s1 + $0x2d8] ss:$28 sps:$4 sm:$0xff]   ;;  %v8751_v8 = vld [vmem:[%s13017_s1 + $0x310] ss:$28 sps:$4 sm:$0xff]   ;;  %v10252_v17 = vpack.c.bf16 %v43_v54, %v43_v54 }
  0x14   :  { %4482 = vmatpush1.bf16.msra.mxu1 %v8691_v18  ;;  %v8740_v0 = vld [vmem:[%s13017_s1 + $0x620] ss:$28 sps:$4 sm:$0xff]   ;;  %v8746_v5 = vld [vmem:[%s13017_s1 + $0x658] ss:$28 sps:$4 sm:$0xff]   ;;  %v8752_v9 = vld [vmem:[%s13017_s1 + $0x690] ss:$28 sps:$4 sm:$0xff]   ;;  %v10254_v18 = vpack.c.bf16 %v50_v60, %v50_v60 }
  0x15   :  { %4523 = vmatpush1.bf16.msra.mxu0 %v8692_v19  ;;  %4483 = vmatprep.subr.bf16.mxu1 %v8693_v20  ;;  %v10198_v62 = vpack.c.bf16 %v51_v59, %v51_v59  ;;  %v10209_v3 = vpack.c.bf16 %v52_v63, %v52_v63  ;;  %v8749_v7 = vld [vmem:[%s13017_s1 + $0x694] ss:$28 sps:$4 sm:$0xff]   ;;  %v8753_v10 = vld [vmem:[%s13017_s1 + $0x34c] ss:$28 sps:$4 sm:$0xff]   ;;  %v8762_v14 = vld [vmem:[%s13017_s1 + $0x704] ss:$28 sps:$4 sm:$0xff]  }
  0x16   :  { %4524 = vmatprep.subr.bf16.mxu0 %v8695_v21  ;;  %v8755_v11 = vld [vmem:[%s13017_s1 + $0x6cc] ss:$28 sps:$4 sm:$0xff]   ;;  %v8760_v16 = vld [vmem:[%s13017_s1 + $0x700] ss:$28 sps:$4 sm:$0xff]   ;;  %v8790_v38 = vld [vmem:[%s13017_s1 + $0x818] ss:$28 sps:$4 sm:$0xff]  }
  0x17   :  { %4505 = vmatprep.mubr.bf16.mxu1 %v10198_v62  ;;  %4546 = vmatprep.mubr.bf16.mxu0 %v10209_v3  ;;  %v8757_v12 = vld [vmem:[%s13017_s1 + $0x348] ss:$28 sps:$4 sm:$0xff]   ;;  %v8768_v20 = vld [vmem:[%s13017_s1 + $0x73c] ss:$28 sps:$4 sm:$0xff]   ;;  %v8822_v63 = vld [vmem:[%s13017_s1 + $0x934] ss:$28 sps:$4 sm:$0xff]  }
  0x18   :  { %4484 = vmatpush1.bf16.msra.mxu1 %v8697_v22  ;;  %v8758_v13 = vld [vmem:[%s13017_s1 + $0x6c8] ss:$28 sps:$4 sm:$0xff]   ;;  %v8766_v22 = vld [vmem:[%s13017_s1 + $0x738] ss:$28 sps:$4 sm:$0xff]  }
  0x19   :  { %4525 = vmatpush1.bf16.msra.mxu0 %v8698_v23  ;;  %4485 = vmatprep.subr.bf16.mxu1 %v8699_v24  ;;  %v8765_v15 = vld [vmem:[%s13017_s1 + $0xc] ss:$28 sps:$4 sm:$0xff]   ;;  %v8771_v21 = vld [vmem:[%s13017_s1 + $0x44] ss:$28 sps:$4 sm:$0xff]   ;;  %v8774_v24 = vld [vmem:[%s13017_s1 + $0x774] ss:$28 sps:$4 sm:$0xff]  }
  0x1a   :  { %4526 = vmatprep.subr.bf16.mxu0 %v8701_v25  ;;  %v8763_v19 = vld [vmem:[%s13017_s1 + $0x8] ss:$28 sps:$4 sm:$0xff]   ;;  %v8769_v23 = vld [vmem:[%s13017_s1 + $0x40] ss:$28 sps:$4 sm:$0xff]   ;;  %v8814_v60 = vld [vmem:[%s13017_s1 + $0x8f8] ss:$28 sps:$4 sm:$0xff]  }
  0x1b   :  { %v8777_v25 = vld [vmem:[%s13017_s1 + $0x7c] ss:$28 sps:$4 sm:$0xff]   ;;  %v8795_v37 = vld [vmem:[%s13017_s1 + $0x124] ss:$28 sps:$4 sm:$0xff]   ;;  %v10331_v42 = vld [vmem:[%s13016_s0 + $0x8] sm:$0xff] }
  0x1c   :  { %4486 = vmatpush1.bf16.msra.mxu1 %v8703_v26  ;;  %v8772_v26 = vld [vmem:[%s13017_s1 + $0x770] ss:$28 sps:$4 sm:$0xff]   ;;  %v8792_v36 = vld [vmem:[%s13017_s1 + $0x81c] ss:$28 sps:$4 sm:$0xff]   ;;  %v8802_v52 = vld [vmem:[%s13017_s1 + $0x888] ss:$28 sps:$4 sm:$0xff]  }
  0x1d   :  { %4527 = vmatpush1.bf16.msra.mxu0 %v8704_v27  ;;  %4487 = vmatprep.subr.bf16.mxu1 %v8705_v28  ;;  %v8775_v27 = vld [vmem:[%s13017_s1 + $0x78] ss:$28 sps:$4 sm:$0xff]   ;;  %v8780_v28 = vld [vmem:[%s13017_s1 + $0x7ac] ss:$28 sps:$4 sm:$0xff]   ;;  %v8810_v54 = vld [vmem:[%s13017_s1 + $0x8c4] ss:$28 sps:$4 sm:$0xff]  }
  0x1e   :  { %4528 = vmatprep.subr.bf16.mxu0 %v8707_v29  ;;  %v8783_v29 = vld [vmem:[%s13017_s1 + $0xb4] ss:$28 sps:$4 sm:$0xff]   ;;  %v8813_v55 = vld [vmem:[%s13017_s1 + $0x1cc] ss:$28 sps:$4 sm:$0xff]   ;;  %v8819_v59 = vld [vmem:[%s13017_s1 + $0x204] ss:$28 sps:$4 sm:$0xff]  }
  0x20   :  { %4488 = vmatpush1.bf16.msra.mxu1 %v8709_v30  ;;  %v8778_v30 = vld [vmem:[%s13017_s1 + $0x7a8] ss:$28 sps:$4 sm:$0xff]  }
  0x21   :  { %4529 = vmatpush1.bf16.msra.mxu0 %v8710_v31  ;;  %4489 = vmatprep.subr.bf16.mxu1 %v8711_v32  ;;  %v8781_v31 = vld [vmem:[%s13017_s1 + $0xb0] ss:$28 sps:$4 sm:$0xff]   ;;  %v8786_v32 = vld [vmem:[%s13017_s1 + $0x7e4] ss:$28 sps:$4 sm:$0xff]  }
  0x22   :  { %4530 = vmatprep.subr.bf16.mxu0 %v8713_v33  ;;  %v8789_v33 = vld [vmem:[%s13017_s1 + $0xec] ss:$28 sps:$4 sm:$0xff]  }
  0x24   :  { %4490 = vmatpush1.bf16.msra.mxu1 %v8715_v34  ;;  %v8784_v34 = vld [vmem:[%s13017_s1 + $0x7e0] ss:$28 sps:$4 sm:$0xff]  }
  0x25   :  { %4531 = vmatpush1.bf16.msra.mxu0 %v8716_v35  ;;  %4491 = vmatprep.subr.bf16.mxu1 %v8717_v39  ;;  %v8787_v35 = vld [vmem:[%s13017_s1 + $0xe8] ss:$28 sps:$4 sm:$0xff]   ;;  %v8793_v39 = vld [vmem:[%s13017_s1 + $0x120] ss:$28 sps:$4 sm:$0xff]  }
  0x26   :  { %4532 = vmatprep.subr.bf16.mxu0 %v8719_v40  ;;  %v8798_v40 = vld [vmem:[%s13017_s1 + $0x854] ss:$28 sps:$4 sm:$0xff]  }
  0x28   :  { %4492 = vmatpush1.bf16.msra.mxu1 %v8721_v41  ;;  %v8801_v41 = vld [vmem:[%s13017_s1 + $0x15c] ss:$28 sps:$4 sm:$0xff]  }
  0x29   :  { %4533 = vmatpush1.bf16.msra.mxu0 %v8722_v44  ;;  %4493 = vmatprep.subr.bf16.mxu1 %v8723_v45  ;;  %v10335_v44 = vrot.slane %v10331_v42, %v10170_v49  ;;  %v8796_v45 = vld [vmem:[%s13017_s1 + $0x850] ss:$28 sps:$4 sm:$0xff]  }
  0x2a   :  { %4534 = vmatprep.subr.bf16.mxu0 %v8725_v46  ;;  %v8799_v46 = vld [vmem:[%s13017_s1 + $0x158] ss:$28 sps:$4 sm:$0xff]  }
  0x2c   :  { %4494 = vmatpush1.bf16.msra.mxu1 %v8727_v47  ;;  %v68_v47 = vcombine.high %v10335_v44, %v10335_v44 }
  0x2d   :  { %4535 = vmatpush1.bf16.msra.mxu0 %v8728_v48  ;;  %4495 = vmatprep.subr.bf16.mxu1 %v8729_v50  ;;  %v8804_v48 = vld [vmem:[%s13017_s1 + $0x88c] ss:$28 sps:$4 sm:$0xff]   ;;  %v8807_v50 = vld [vmem:[%s13017_s1 + $0x194] ss:$28 sps:$4 sm:$0xff]  }
  0x2e   :  { %4536 = vmatprep.subr.bf16.mxu0 %v8731_v51  ;;  %v10351_v51 = vpack.c.bf16 %v68_v47, %v68_v47  ;;  %v8877_v47 = vld [vmem:[%s13017_s1 + $0x430] ss:$28 sps:$4 sm:$0xff]  }
  0x30   :  { %4496 = vmatpush1.bf16.msra.mxu1 %v8733_v53  ;;  %v8805_v53 = vld [vmem:[%s13017_s1 + $0x190] ss:$28 sps:$4 sm:$0xff]  }
  0x31   :  { %4537 = vmatpush1.bf16.msra.mxu0 %v8734_v56  ;;  %4497 = vmatprep.subr.bf16.mxu1 %v8735_v57  ;;  %v8808_v56 = vld [vmem:[%s13017_s1 + $0x8c0] ss:$28 sps:$4 sm:$0xff]   ;;  %v8811_v57 = vld [vmem:[%s13017_s1 + $0x1c8] ss:$28 sps:$4 sm:$0xff]  }
  0x32   :  { %4538 = vmatprep.subr.bf16.mxu0 %v8737_v58  ;;  %v8816_v58 = vld [vmem:[%s13017_s1 + $0x8fc] ss:$28 sps:$4 sm:$0xff]  }
  0x34   :  { %4498 = vmatpush1.bf16.msra.mxu1 %v8739_v61  ;;  %v8817_v61 = vld [vmem:[%s13017_s1 + $0x200] ss:$28 sps:$4 sm:$0xff]  }
  0x35   :  { %4539 = vmatpush1.bf16.msra.mxu0 %v8740_v0  ;;  %4499 = vmatprep.subr.bf16.mxu1 %v8741_v1  ;;  %v8825_v0 = vld [vmem:[%s13017_s1 + $0x23c] ss:$28 sps:$4 sm:$0xff]   ;;  %v8820_v1 = vld [vmem:[%s13017_s1 + $0x930] ss:$28 sps:$4 sm:$0xff]  }
  0x36   :  { %4540 = vmatprep.subr.bf16.mxu0 %v8743_v2  ;;  %v8823_v2 = vld [vmem:[%s13017_s1 + $0x238] ss:$28 sps:$4 sm:$0xff]  }
  0x38   :  { %4500 = vmatpush1.bf16.msra.mxu1 %v8745_v4  ;;  %v8828_v4 = vld [vmem:[%s13017_s1 + $0x96c] ss:$28 sps:$4 sm:$0xff]  }
  0x39   :  { %4541 = vmatpush1.bf16.msra.mxu0 %v8746_v5  ;;  %4501 = vmatprep.subr.bf16.mxu1 %v8747_v6  ;;  %v8831_v5 = vld [vmem:[%s13017_s1 + $0x274] ss:$28 sps:$4 sm:$0xff]   ;;  %v8826_v6 = vld [vmem:[%s13017_s1 + $0x968] ss:$28 sps:$4 sm:$0xff]  }
  0x3a   :  { %4542 = vmatprep.subr.bf16.mxu0 %v8749_v7  ;;  %v8829_v7 = vld [vmem:[%s13017_s1 + $0x270] ss:$28 sps:$4 sm:$0xff]  }
  0x3c   :  { %4502 = vmatpush1.bf16.msra.mxu1 %v8751_v8  ;;  %v8834_v8 = vld [vmem:[%s13017_s1 + $0x9a4] ss:$28 sps:$4 sm:$0xff]  }
  0x3d   :  { %4543 = vmatpush1.bf16.msra.mxu0 %v8752_v9  ;;  %4503 = vmatprep.subr.bf16.mxu1 %v8753_v10  ;;  %v8837_v9 = vld [vmem:[%s13017_s1 + $0x2ac] ss:$28 sps:$4 sm:$0xff]   ;;  %v8832_v10 = vld [vmem:[%s13017_s1 + $0x9a0] ss:$28 sps:$4 sm:$0xff]  }
  0x3e   :  { %4544 = vmatprep.subr.bf16.mxu0 %v8755_v11  ;;  %v8835_v11 = vld [vmem:[%s13017_s1 + $0x2a8] ss:$28 sps:$4 sm:$0xff]  }
  0x40   :  { %4504 = vmatpush1.bf16.msra.mxu1 %v8757_v12  ;;  %v8840_v12 = vld [vmem:[%s13017_s1 + $0x9dc] ss:$28 sps:$4 sm:$0xff]  }
  0x41   :  { %4545 = vmatpush1.bf16.msra.mxu0 %v8758_v13  ;;  %4760 = vmatprep.subr.bf16.mxu1 %v8765_v15  ;;  %v8843_v13 = vld [vmem:[%s13017_s1 + $0x2e4] ss:$28 sps:$4 sm:$0xff]  }
  0x42   :  { %4555 = vmatprep.subr.bf16.mxu0 %v8762_v14  ;;  %v8838_v14 = vld [vmem:[%s13017_s1 + $0x9d8] ss:$28 sps:$4 sm:$0xff]   ;;  %v8841_v15 = vld [vmem:[%s13017_s1 + $0x2e0] ss:$28 sps:$4 sm:$0xff]  }
  0x43   :  { %4506 = vmatmul.mubr.bf16.vlgmr.msra.gmra.mrb[0].mxu1 %v10252_v17 }
  0x44   :  { %4547 = vmatmul.mubr.bf16.vlgmr.msra.gmra.mrb[0].mxu0 %v10254_v18  ;;  %4761 = vmatpush1.bf16.msra.mxu1 %v8763_v19  ;;  %v8849_v19 = vld [vmem:[%s13017_s1 + $0x31c] ss:$28 sps:$4 sm:$0xff]  }
  0x45   :  { %4556 = vmatpush1.bf16.msra.mxu0 %v8760_v16  ;;  %4762 = vmatprep.subr.bf16.mxu1 %v8771_v21  ;;  %v8846_v16 = vld [vmem:[%s13017_s1 + $0xa14] ss:$28 sps:$4 sm:$0xff]  }
  0x46   :  { %4557 = vmatprep.subr.bf16.mxu0 %v8768_v20  ;;  %4792 = vmatprep.mubr.bf16.mxu1 %v10198_v62  ;;  %v53_v20 = vcombine.high %v10331_v42, %v10331_v42  ;;  %v8844_v21 = vld [vmem:[%s13017_s1 + $0xa10] ss:$28 sps:$4 sm:$0xff]   ;;  %v8871_v42 = vld [vmem:[%s13017_s1 + $0x3f8] ss:$28 sps:$4 sm:$0xff]  }
  0x47   :  { %4587 = vmatprep.mubr.bf16.mxu0 %v10351_v51 }
  0x48   :  { %4763 = vmatpush1.bf16.msra.mxu1 %v8769_v23  ;;  %v8852_v23 = vld [vmem:[%s13017_s1 + $0xa4c] ss:$28 sps:$4 sm:$0xff]  }
  0x49   :  { %4558 = vmatpush1.bf16.msra.mxu0 %v8766_v22  ;;  %4764 = vmatprep.subr.bf16.mxu1 %v8777_v25  ;;  %v8847_v22 = vld [vmem:[%s13017_s1 + $0x318] ss:$28 sps:$4 sm:$0xff]   ;;  %v10453_v25 = vrot.slane %v53_v20, %v10170_v49  ;;  %v8922_v20 = vld [vmem:[%s13017_s1 + $0xce8] ss:$28 sps:$4 sm:$0xff]  }
  0x4a   :  { %4559 = vmatprep.subr.bf16.mxu0 %v8774_v24  ;;  %v8855_v24 = vld [vmem:[%s13017_s1 + $0x354] ss:$28 sps:$4 sm:$0xff]  }
  0x4c   :  { %4765 = vmatpush1.bf16.msra.mxu1 %v8775_v27  ;;  %v8853_v27 = vld [vmem:[%s13017_s1 + $0x350] ss:$28 sps:$4 sm:$0xff]  }
  0x4d   :  { %4560 = vmatpush1.bf16.msra.mxu0 %v8772_v26  ;;  %4766 = vmatprep.subr.bf16.mxu1 %v8783_v29  ;;  %v8850_v26 = vld [vmem:[%s13017_s1 + $0xa48] ss:$28 sps:$4 sm:$0xff]  }
  0x4e   :  { %4561 = vmatprep.subr.bf16.mxu0 %v8780_v28  ;;  %v8858_v28 = vld [vmem:[%s13017_s1 + $0xa84] ss:$28 sps:$4 sm:$0xff]   ;;  %v8861_v29 = vld [vmem:[%s13017_s1 + $0x38c] ss:$28 sps:$4 sm:$0xff]  }
  0x50   :  { %4767 = vmatpush1.bf16.msra.mxu1 %v8781_v31  ;;  %v10471_v31 = vpack.c.bf16 %v10335_v44, %v10335_v44  ;;  %v8876_v44 = vld [vmem:[%s13017_s1 + $0xb2c] ss:$28 sps:$4 sm:$0xff]  }
  0x51   :  { %4562 = vmatpush1.bf16.msra.mxu0 %v8778_v30  ;;  %4768 = vmatprep.subr.bf16.mxu1 %v8789_v33  ;;  %v69_v30 = vcombine.high %v10453_v25, %v10453_v25  ;;  %v8859_v33 = vld [vmem:[%s13017_s1 + $0x388] ss:$28 sps:$4 sm:$0xff]  }
  0x52   :  { %4563 = vmatprep.subr.bf16.mxu0 %v8786_v32  ;;  %v8856_v32 = vld [vmem:[%s13017_s1 + $0xa80] ss:$28 sps:$4 sm:$0xff]  }
  0x54   :  { %4769 = vmatpush1.bf16.msra.mxu1 %v8787_v35  ;;  %v8867_v35 = vld [vmem:[%s13017_s1 + $0x3c4] ss:$28 sps:$4 sm:$0xff]  }
  0x55   :  { %4564 = vmatpush1.bf16.msra.mxu0 %v8784_v34  ;;  %4770 = vmatprep.subr.bf16.mxu1 %v8795_v37  ;;  %v8864_v34 = vld [vmem:[%s13017_s1 + $0xabc] ss:$28 sps:$4 sm:$0xff]  }
  0x56   :  { %4565 = vmatprep.subr.bf16.mxu0 %v8792_v36  ;;  %v10485_v36 = vpack.c.bf16 %v69_v30, %v69_v30  ;;  %v8862_v37 = vld [vmem:[%s13017_s1 + $0xab8] ss:$28 sps:$4 sm:$0xff]   ;;  %v8937_v30 = vld [vmem:[%s13017_s1 + $0x660] ss:$28 sps:$4 sm:$0xff]  }
  0x58   :  { %4771 = vmatpush1.bf16.msra.mxu1 %v8793_v39  ;;  %v8870_v39 = vld [vmem:[%s13017_s1 + $0xaf4] ss:$28 sps:$4 sm:$0xff]  }
  0x59   :  { %4566 = vmatpush1.bf16.msra.mxu0 %v8790_v38  ;;  %4772 = vmatprep.subr.bf16.mxu1 %v8801_v41  ;;  %v8865_v38 = vld [vmem:[%s13017_s1 + $0x3c0] ss:$28 sps:$4 sm:$0xff]   ;;  %v8868_v41 = vld [vmem:[%s13017_s1 + $0xaf0] ss:$28 sps:$4 sm:$0xff]  }
  0x5a   :  { %4567 = vmatprep.subr.bf16.mxu0 %v8798_v40  ;;  %v8873_v40 = vld [vmem:[%s13017_s1 + $0x3fc] ss:$28 sps:$4 sm:$0xff]  }
  0x5c   :  { %4773 = vmatpush1.bf16.msra.mxu1 %v8799_v46  ;;  %v8874_v46 = vld [vmem:[%s13017_s1 + $0xb28] ss:$28 sps:$4 sm:$0xff]  }
  0x5d   :  { %4568 = vmatpush1.bf16.msra.mxu0 %v8796_v45  ;;  %4774 = vmatprep.subr.bf16.mxu1 %v8807_v50  ;;  %v8879_v45 = vld [vmem:[%s13017_s1 + $0x434] ss:$28 sps:$4 sm:$0xff]   ;;  %v8885_v50 = vld [vmem:[%s13017_s1 + $0x46c] ss:$28 sps:$4 sm:$0xff]  }
  0x5e   :  { %4569 = vmatprep.subr.bf16.mxu0 %v8804_v48  ;;  %v8882_v48 = vld [vmem:[%s13017_s1 + $0xb64] ss:$28 sps:$4 sm:$0xff]  }
  0x60   :  { %4775 = vmatpush1.bf16.msra.mxu1 %v8805_v53  ;;  %v8883_v53 = vld [vmem:[%s13017_s1 + $0x468] ss:$28 sps:$4 sm:$0xff]  }
  0x61   :  { %4570 = vmatpush1.bf16.msra.mxu0 %v8802_v52  ;;  %4776 = vmatprep.subr.bf16.mxu1 %v8813_v55  ;;  %v8880_v52 = vld [vmem:[%s13017_s1 + $0xb60] ss:$28 sps:$4 sm:$0xff]  }
  0x62   :  { %4571 = vmatprep.subr.bf16.mxu0 %v8810_v54  ;;  %v8888_v54 = vld [vmem:[%s13017_s1 + $0xb9c] ss:$28 sps:$4 sm:$0xff]   ;;  %v8891_v55 = vld [vmem:[%s13017_s1 + $0x4a4] ss:$28 sps:$4 sm:$0xff]  }
  0x64   :  { %4777 = vmatpush1.bf16.msra.mxu1 %v8811_v57  ;;  %v8889_v57 = vld [vmem:[%s13017_s1 + $0x4a0] ss:$28 sps:$4 sm:$0xff]  }
  0x65   :  { %4572 = vmatpush1.bf16.msra.mxu0 %v8808_v56  ;;  %4778 = vmatprep.subr.bf16.mxu1 %v8819_v59  ;;  %v8886_v56 = vld [vmem:[%s13017_s1 + $0xb98] ss:$28 sps:$4 sm:$0xff]  }
  0x66   :  { %4573 = vmatprep.subr.bf16.mxu0 %v8816_v58  ;;  %v8894_v58 = vld [vmem:[%s13017_s1 + $0xbd4] ss:$28 sps:$4 sm:$0xff]   ;;  %v8897_v59 = vld [vmem:[%s13017_s1 + $0x4dc] ss:$28 sps:$4 sm:$0xff]  }
  0x68   :  { %4779 = vmatpush1.bf16.msra.mxu1 %v8817_v61  ;;  %v8895_v61 = vld [vmem:[%s13017_s1 + $0x4d8] ss:$28 sps:$4 sm:$0xff]  }
  0x69   :  { %4574 = vmatpush1.bf16.msra.mxu0 %v8814_v60  ;;  %4780 = vmatprep.subr.bf16.mxu1 %v8825_v0  ;;  %v8892_v60 = vld [vmem:[%s13017_s1 + $0xbd0] ss:$28 sps:$4 sm:$0xff]  }
  0x6a   :  { %4575 = vmatprep.subr.bf16.mxu0 %v8822_v63  ;;  %v8900_v63 = vld [vmem:[%s13017_s1 + $0xc0c] ss:$28 sps:$4 sm:$0xff]   ;;  %v8903_v0 = vld [vmem:[%s13017_s1 + $0x514] ss:$28 sps:$4 sm:$0xff]  }
  0x6c   :  { %4781 = vmatpush1.bf16.msra.mxu1 %v8823_v2  ;;  %v8901_v2 = vld [vmem:[%s13017_s1 + $0x510] ss:$28 sps:$4 sm:$0xff]  }
  0x6d   :  { %4576 = vmatpush1.bf16.msra.mxu0 %v8820_v1  ;;  %4782 = vmatprep.subr.bf16.mxu1 %v8831_v5  ;;  %v8898_v1 = vld [vmem:[%s13017_s1 + $0xc08] ss:$28 sps:$4 sm:$0xff]  }
  0x6e   :  { %4577 = vmatprep.subr.bf16.mxu0 %v8828_v4  ;;  %v8906_v4 = vld [vmem:[%s13017_s1 + $0xc44] ss:$28 sps:$4 sm:$0xff]   ;;  %v8909_v5 = vld [vmem:[%s13017_s1 + $0x54c] ss:$28 sps:$4 sm:$0xff]  }
  0x70   :  { %4783 = vmatpush1.bf16.msra.mxu1 %v8829_v7  ;;  %v8907_v7 = vld [vmem:[%s13017_s1 + $0x548] ss:$28 sps:$4 sm:$0xff]  }
  0x71   :  { %4578 = vmatpush1.bf16.msra.mxu0 %v8826_v6  ;;  %4784 = vmatprep.subr.bf16.mxu1 %v8837_v9  ;;  %v8904_v6 = vld [vmem:[%s13017_s1 + $0xc40] ss:$28 sps:$4 sm:$0xff]  }
  0x72   :  { %4579 = vmatprep.subr.bf16.mxu0 %v8834_v8  ;;  %v8912_v8 = vld [vmem:[%s13017_s1 + $0xc7c] ss:$28 sps:$4 sm:$0xff]   ;;  %v8915_v9 = vld [vmem:[%s13017_s1 + $0x584] ss:$28 sps:$4 sm:$0xff]  }
  0x74   :  { %4785 = vmatpush1.bf16.msra.mxu1 %v8835_v11  ;;  %v8913_v11 = vld [vmem:[%s13017_s1 + $0x580] ss:$28 sps:$4 sm:$0xff]  }
  0x75   :  { %4580 = vmatpush1.bf16.msra.mxu0 %v8832_v10  ;;  %4786 = vmatprep.subr.bf16.mxu1 %v8843_v13  ;;  %v8910_v10 = vld [vmem:[%s13017_s1 + $0xc78] ss:$28 sps:$4 sm:$0xff]  }
  0x76   :  { %4581 = vmatprep.subr.bf16.mxu0 %v8840_v12  ;;  %v8918_v12 = vld [vmem:[%s13017_s1 + $0xcb4] ss:$28 sps:$4 sm:$0xff]   ;;  %v8921_v13 = vld [vmem:[%s13017_s1 + $0x5bc] ss:$28 sps:$4 sm:$0xff]  }
  0x78   :  { %4787 = vmatpush1.bf16.msra.mxu1 %v8841_v15  ;;  %v8919_v15 = vld [vmem:[%s13017_s1 + $0x5b8] ss:$28 sps:$4 sm:$0xff]  }
  0x79   :  { %4582 = vmatpush1.bf16.msra.mxu0 %v8838_v14  ;;  %4788 = vmatprep.subr.bf16.mxu1 %v8849_v19  ;;  %v8916_v14 = vld [vmem:[%s13017_s1 + $0xcb0] ss:$28 sps:$4 sm:$0xff]  }
  0x7a   :  { %4583 = vmatprep.subr.bf16.mxu0 %v8846_v16  ;;  %v8924_v16 = vld [vmem:[%s13017_s1 + $0xcec] ss:$28 sps:$4 sm:$0xff]   ;;  %v8927_v19 = vld [vmem:[%s13017_s1 + $0x5f4] ss:$28 sps:$4 sm:$0xff]  }
  0x7c   :  { %4789 = vmatpush1.bf16.msra.mxu1 %v8847_v22  ;;  %v8930_v22 = vld [vmem:[%s13017_s1 + $0xd24] ss:$28 sps:$4 sm:$0xff]  }
  0x7d   :  { %4584 = vmatpush1.bf16.msra.mxu0 %v8844_v21  ;;  %4790 = vmatprep.subr.bf16.mxu1 %v8855_v24  ;;  %v8925_v21 = vld [vmem:[%s13017_s1 + $0x5f0] ss:$28 sps:$4 sm:$0xff]   ;;  %v8928_v24 = vld [vmem:[%s13017_s1 + $0xd20] ss:$28 sps:$4 sm:$0xff]  }
  0x7e   :  { %4585 = vmatprep.subr.bf16.mxu0 %v8852_v23  ;;  %v8933_v23 = vld [vmem:[%s13017_s1 + $0x62c] ss:$28 sps:$4 sm:$0xff]  }
  0x80   :  { %4791 = vmatpush1.bf16.msra.mxu1 %v8853_v27  ;;  %v8936_v27 = vld [vmem:[%s13017_s1 + $0xd5c] ss:$28 sps:$4 sm:$0xff]  }
  0x81   :  { %4586 = vmatpush1.bf16.msra.mxu0 %v8850_v26  ;;  %4801 = vmatprep.subr.bf16.mxu1 %v8861_v29  ;;  %v8931_v26 = vld [vmem:[%s13017_s1 + $0x628] ss:$28 sps:$4 sm:$0xff]   ;;  %v8934_v29 = vld [vmem:[%s13017_s1 + $0xd58] ss:$28 sps:$4 sm:$0xff]  }
  0x82   :  { %4596 = vmatprep.subr.bf16.mxu0 %v8858_v28  ;;  %v8939_v28 = vld [vmem:[%s13017_s1 + $0x664] ss:$28 sps:$4 sm:$0xff]  }
  0x83   :  { %4793 = vmatmul.mubr.bf16.vlgmr.msra.gmra.mrb[4].mxu1 %v10252_v17 }
  0x84   :  { %4588 = vmatmul.mubr.bf16.vlgmr.msra.gmra.mrb[0].mxu0 %v10471_v31  ;;  %4802 = vmatpush1.bf16.msra.mxu1 %v8859_v33  ;;  %v8945_v33 = vld [vmem:[%s13017_s1 + $0x69c] ss:$28 sps:$4 sm:$0xff]  }
  0x85   :  { %4597 = vmatpush1.bf16.msra.mxu0 %v8856_v32  ;;  %4803 = vmatprep.subr.bf16.mxu1 %v8867_v35  ;;  %v8942_v32 = vld [vmem:[%s13017_s1 + $0xd94] ss:$28 sps:$4 sm:$0xff]  }
  0x86   :  { %4598 = vmatprep.subr.bf16.mxu0 %v8864_v34  ;;  %4628 = vmatprep.mubr.bf16.mxu0 %v10485_v36  ;;  %v8940_v34 = vld [vmem:[%s13017_s1 + $0xd90] ss:$28 sps:$4 sm:$0xff]  }
  0x87   :  { %4833 = vmatprep.mubr.bf16.mxu1 %v10209_v3  ;;  %v10653_v35 = vld [vmem:[%s13016_s0 + $0x10] sm:$0xff] }
  0x88   :  { %4804 = vmatpush1.bf16.msra.mxu1 %v8865_v38  ;;  %v8948_v38 = vld [vmem:[%s13017_s1 + $0xdcc] ss:$28 sps:$4 sm:$0xff]  }
  0x89   :  { %4599 = vmatpush1.bf16.msra.mxu0 %v8862_v37  ;;  %4805 = vmatprep.subr.bf16.mxu1 %v8873_v40  ;;  %v8943_v37 = vld [vmem:[%s13017_s1 + $0x698] ss:$28 sps:$4 sm:$0xff]   ;;  %v10666_v40 = vrot.slane %v10653_v35, %v10170_v49 }
  0x8a   :  { %4600 = vmatprep.subr.bf16.mxu0 %v8870_v39  ;;  %v8951_v39 = vld [vmem:[%s13017_s1 + $0x6d4] ss:$28 sps:$4 sm:$0xff]  }
  0x8c   :  { %4806 = vmatpush1.bf16.msra.mxu1 %v8871_v42  ;;  %v8949_v42 = vld [vmem:[%s13017_s1 + $0x6d0] ss:$28 sps:$4 sm:$0xff]  }
  0x8d   :  { %4601 = vmatpush1.bf16.msra.mxu0 %v8868_v41  ;;  %4807 = vmatprep.subr.bf16.mxu1 %v8879_v45  ;;  %v8946_v41 = vld [vmem:[%s13017_s1 + $0xdc8] ss:$28 sps:$4 sm:$0xff]  }
  0x8e   :  { %4602 = vmatprep.subr.bf16.mxu0 %v8876_v44  ;;  %v8955_v44 = vld [vmem:[%s13017_s1 + $0xe04] ss:$28 sps:$4 sm:$0xff]   ;;  %v8958_v45 = vld [vmem:[%s13017_s1 + $0x70c] ss:$28 sps:$4 sm:$0xff]  }
  0x90   :  { %4808 = vmatpush1.bf16.msra.mxu1 %v8877_v47  ;;  %v8953_v47 = vld [vmem:[%s13017_s1 + $0xe00] ss:$28 sps:$4 sm:$0xff]  }
  0x91   :  { %4603 = vmatpush1.bf16.msra.mxu0 %v8874_v46  ;;  %4809 = vmatprep.subr.bf16.mxu1 %v8885_v50  ;;  %v85_v46 = vcombine.high %v10666_v40, %v10666_v40  ;;  %v8956_v50 = vld [vmem:[%s13017_s1 + $0x708] ss:$28 sps:$4 sm:$0xff]  }
  0x92   :  { %4604 = vmatprep.subr.bf16.mxu0 %v8882_v48  ;;  %v10687_v48 = vpack.c.bf16 %v10453_v25, %v10453_v25  ;;  %v8959_v25 = vld [vmem:[%s13017_s1 + $0xe38] ss:$28 sps:$4 sm:$0xff]  }
  0x94   :  { %4810 = vmatpush1.bf16.msra.mxu1 %v8883_v53  ;;  %v8964_v53 = vld [vmem:[%s13017_s1 + $0x744] ss:$28 sps:$4 sm:$0xff]  }
  0x95   :  { %4605 = vmatpush1.bf16.msra.mxu0 %v8880_v52  ;;  %4811 = vmatprep.subr.bf16.mxu1 %v8891_v55  ;;  %v8961_v52 = vld [vmem:[%s13017_s1 + $0xe3c] ss:$28 sps:$4 sm:$0xff]  }
  0x96   :  { %4606 = vmatprep.subr.bf16.mxu0 %v8888_v54  ;;  %v10698_v54 = vpack.c.bf16 %v85_v46, %v85_v46  ;;  %v8962_v55 = vld [vmem:[%s13017_s1 + $0x740] ss:$28 sps:$4 sm:$0xff]  }
  0x97   :  { %v9033_v46 = vld [vmem:[%s13017_s1 + $0x10dc] ss:$28 sps:$4 sm:$0xff]  }
  0x98   :  { %4812 = vmatpush1.bf16.msra.mxu1 %v8889_v57  ;;  %v8970_v57 = vld [vmem:[%s13017_s1 + $0x77c] ss:$28 sps:$4 sm:$0xff]  }
  0x99   :  { %4607 = vmatpush1.bf16.msra.mxu0 %v8886_v56  ;;  %4813 = vmatprep.subr.bf16.mxu1 %v8897_v59  ;;  %v8967_v56 = vld [vmem:[%s13017_s1 + $0xe74] ss:$28 sps:$4 sm:$0xff]  }
  0x9a   :  { %4608 = vmatprep.subr.bf16.mxu0 %v8894_v58  ;;  %v8965_v58 = vld [vmem:[%s13017_s1 + $0xe70] ss:$28 sps:$4 sm:$0xff]   ;;  %v8968_v59 = vld [vmem:[%s13017_s1 + $0x778] ss:$28 sps:$4 sm:$0xff]  }
  0x9c   :  { %4814 = vmatpush1.bf16.msra.mxu1 %v8895_v61  ;;  %v8976_v61 = vld [vmem:[%s13017_s1 + $0x7b4] ss:$28 sps:$4 sm:$0xff]  }
  0x9d   :  { %4609 = vmatpush1.bf16.msra.mxu0 %v8892_v60  ;;  %4815 = vmatprep.subr.bf16.mxu1 %v8903_v0  ;;  %v8973_v60 = vld [vmem:[%s13017_s1 + $0xeac] ss:$28 sps:$4 sm:$0xff]  }
  0x9e   :  { %4610 = vmatprep.subr.bf16.mxu0 %v8900_v63  ;;  %v8971_v63 = vld [vmem:[%s13017_s1 + $0xea8] ss:$28 sps:$4 sm:$0xff]   ;;  %v8974_v0 = vld [vmem:[%s13017_s1 + $0x7b0] ss:$28 sps:$4 sm:$0xff]  }
  0xa0   :  { %4816 = vmatpush1.bf16.msra.mxu1 %v8901_v2  ;;  %v8982_v2 = vld [vmem:[%s13017_s1 + $0x7ec] ss:$28 sps:$4 sm:$0xff]  }
  0xa1   :  { %4611 = vmatpush1.bf16.msra.mxu0 %v8898_v1  ;;  %4817 = vmatprep.subr.bf16.mxu1 %v8909_v5  ;;  %v8979_v1 = vld [vmem:[%s13017_s1 + $0xee4] ss:$28 sps:$4 sm:$0xff]  }
  0xa2   :  { %4612 = vmatprep.subr.bf16.mxu0 %v8906_v4  ;;  %v8977_v4 = vld [vmem:[%s13017_s1 + $0xee0] ss:$28 sps:$4 sm:$0xff]   ;;  %v8980_v5 = vld [vmem:[%s13017_s1 + $0x7e8] ss:$28 sps:$4 sm:$0xff]  }
  0xa4   :  { %4818 = vmatpush1.bf16.msra.mxu1 %v8907_v7  ;;  %v8988_v7 = vld [vmem:[%s13017_s1 + $0x824] ss:$28 sps:$4 sm:$0xff]  }
  0xa5   :  { %4613 = vmatpush1.bf16.msra.mxu0 %v8904_v6  ;;  %4819 = vmatprep.subr.bf16.mxu1 %v8915_v9  ;;  %v8985_v6 = vld [vmem:[%s13017_s1 + $0xf1c] ss:$28 sps:$4 sm:$0xff]  }
  0xa6   :  { %4614 = vmatprep.subr.bf16.mxu0 %v8912_v8  ;;  %v8983_v8 = vld [vmem:[%s13017_s1 + $0xf18] ss:$28 sps:$4 sm:$0xff]   ;;  %v8986_v9 = vld [vmem:[%s13017_s1 + $0x820] ss:$28 sps:$4 sm:$0xff]  }
  0xa8   :  { %4820 = vmatpush1.bf16.msra.mxu1 %v8913_v11  ;;  %v8994_v11 = vld [vmem:[%s13017_s1 + $0x85c] ss:$28 sps:$4 sm:$0xff]  }
  0xa9   :  { %4615 = vmatpush1.bf16.msra.mxu0 %v8910_v10  ;;  %4821 = vmatprep.subr.bf16.mxu1 %v8921_v13  ;;  %v8991_v10 = vld [vmem:[%s13017_s1 + $0xf54] ss:$28 sps:$4 sm:$0xff]  }
  0xaa   :  { %4616 = vmatprep.subr.bf16.mxu0 %v8918_v12  ;;  %v8989_v12 = vld [vmem:[%s13017_s1 + $0xf50] ss:$28 sps:$4 sm:$0xff]   ;;  %v8992_v13 = vld [vmem:[%s13017_s1 + $0x858] ss:$28 sps:$4 sm:$0xff]  }
  0xac   :  { %4822 = vmatpush1.bf16.msra.mxu1 %v8919_v15  ;;  %v9000_v15 = vld [vmem:[%s13017_s1 + $0x894] ss:$28 sps:$4 sm:$0xff]  }
  0xad   :  { %4617 = vmatpush1.bf16.msra.mxu0 %v8916_v14  ;;  %4823 = vmatprep.subr.bf16.mxu1 %v8927_v19  ;;  %v8997_v14 = vld [vmem:[%s13017_s1 + $0xf8c] ss:$28 sps:$4 sm:$0xff]  }
  0xae   :  { %4618 = vmatprep.subr.bf16.mxu0 %v8924_v16  ;;  %v8995_v16 = vld [vmem:[%s13017_s1 + $0xf88] ss:$28 sps:$4 sm:$0xff]   ;;  %v8998_v19 = vld [vmem:[%s13017_s1 + $0x890] ss:$28 sps:$4 sm:$0xff]  }
  0xb0   :  { %4824 = vmatpush1.bf16.msra.mxu1 %v8925_v21  ;;  %v9006_v21 = vld [vmem:[%s13017_s1 + $0x8cc] ss:$28 sps:$4 sm:$0xff]  }
  0xb1   :  { %4619 = vmatpush1.bf16.msra.mxu0 %v8922_v20  ;;  %4825 = vmatprep.subr.bf16.mxu1 %v8933_v23  ;;  %v9003_v20 = vld [vmem:[%s13017_s1 + $0xfc4] ss:$28 sps:$4 sm:$0xff]  }
  0xb2   :  { %4620 = vmatprep.subr.bf16.mxu0 %v8930_v22  ;;  %v9001_v22 = vld [vmem:[%s13017_s1 + $0xfc0] ss:$28 sps:$4 sm:$0xff]   ;;  %v9004_v23 = vld [vmem:[%s13017_s1 + $0x8c8] ss:$28 sps:$4 sm:$0xff]  }
  0xb4   :  { %4826 = vmatpush1.bf16.msra.mxu1 %v8931_v26  ;;  %v9012_v26 = vld [vmem:[%s13017_s1 + $0x904] ss:$28 sps:$4 sm:$0xff]  }
  0xb5   :  { %4621 = vmatpush1.bf16.msra.mxu0 %v8928_v24  ;;  %4827 = vmatprep.subr.bf16.mxu1 %v8939_v28  ;;  %v9009_v24 = vld [vmem:[%s13017_s1 + $0xffc] ss:$28 sps:$4 sm:$0xff]  }
  0xb6   :  { %4622 = vmatprep.subr.bf16.mxu0 %v8936_v27  ;;  %v9007_v27 = vld [vmem:[%s13017_s1 + $0xff8] ss:$28 sps:$4 sm:$0xff]   ;;  %v9010_v28 = vld [vmem:[%s13017_s1 + $0x900] ss:$28 sps:$4 sm:$0xff]  }
  0xb8   :  { %4828 = vmatpush1.bf16.msra.mxu1 %v8937_v30  ;;  %v9018_v30 = vld [vmem:[%s13017_s1 + $0x93c] ss:$28 sps:$4 sm:$0xff]  }
  0xb9   :  { %4623 = vmatpush1.bf16.msra.mxu0 %v8934_v29  ;;  %4829 = vmatprep.subr.bf16.mxu1 %v8945_v33  ;;  %v9015_v29 = vld [vmem:[%s13017_s1 + $0x1034] ss:$28 sps:$4 sm:$0xff]  }
  0xba   :  { %4624 = vmatprep.subr.bf16.mxu0 %v8942_v32  ;;  %v9013_v32 = vld [vmem:[%s13017_s1 + $0x1030] ss:$28 sps:$4 sm:$0xff]   ;;  %v9016_v33 = vld [vmem:[%s13017_s1 + $0x938] ss:$28 sps:$4 sm:$0xff]  }
  0xbc   :  { %4830 = vmatpush1.bf16.msra.mxu1 %v8943_v37  ;;  %v9024_v37 = vld [vmem:[%s13017_s1 + $0x974] ss:$28 sps:$4 sm:$0xff]  }
  0xbd   :  { %4625 = vmatpush1.bf16.msra.mxu0 %v8940_v34  ;;  %4831 = vmatprep.subr.bf16.mxu1 %v8951_v39  ;;  %v9021_v34 = vld [vmem:[%s13017_s1 + $0x106c] ss:$28 sps:$4 sm:$0xff]  }
  0xbe   :  { %4626 = vmatprep.subr.bf16.mxu0 %v8948_v38  ;;  %v9019_v38 = vld [vmem:[%s13017_s1 + $0x1068] ss:$28 sps:$4 sm:$0xff]   ;;  %v9022_v39 = vld [vmem:[%s13017_s1 + $0x970] ss:$28 sps:$4 sm:$0xff]  }
  0xc0   :  { %4832 = vmatpush1.bf16.msra.mxu1 %v8949_v42  ;;  %v9030_v42 = vld [vmem:[%s13017_s1 + $0x9ac] ss:$28 sps:$4 sm:$0xff]  }
  0xc1   :  { %4627 = vmatpush1.bf16.msra.mxu0 %v8946_v41  ;;  %4842 = vmatprep.subr.bf16.mxu1 %v8958_v45  ;;  %v9027_v41 = vld [vmem:[%s13017_s1 + $0x10a4] ss:$28 sps:$4 sm:$0xff]  }
  0xc2   :  { %4637 = vmatprep.subr.bf16.mxu0 %v8955_v44  ;;  %v9025_v44 = vld [vmem:[%s13017_s1 + $0x10a0] ss:$28 sps:$4 sm:$0xff]   ;;  %v9028_v45 = vld [vmem:[%s13017_s1 + $0x9a8] ss:$28 sps:$4 sm:$0xff]  }
  0xc3   :  { %4834 = vmatmul.mubr.bf16.vlgmr.msra.gmra.mrb[4].mxu1 %v10254_v18 }
  0xc4   :  { %4629 = vmatmul.mubr.bf16.vlgmr.msra.gmra.mrb[0].mxu0 %v10687_v48  ;;  %4843 = vmatpush1.bf16.msra.mxu1 %v8956_v50  ;;  %v9031_v50 = vld [vmem:[%s13017_s1 + $0x10d8] ss:$28 sps:$4 sm:$0xff]  }
  0xc5   :  { %4638 = vmatpush1.bf16.msra.mxu0 %v8953_v47  ;;  %4844 = vmatprep.subr.bf16.mxu1 %v8964_v53  ;;  %v9036_v47 = vld [vmem:[%s13017_s1 + $0x9e4] ss:$28 sps:$4 sm:$0xff]   ;;  %v9039_v53 = vld [vmem:[%s13017_s1 + $0x1114] ss:$28 sps:$4 sm:$0xff]  }
  0xc6   :  { %4639 = vmatprep.subr.bf16.mxu0 %v8961_v52  ;;  %4669 = vmatprep.mubr.bf16.mxu0 %v10698_v54  ;;  %v9034_v52 = vld [vmem:[%s13017_s1 + $0x9e0] ss:$28 sps:$4 sm:$0xff]  }
  0xc7   :  { %4874 = vmatprep.mubr.bf16.mxu1 %v10351_v51 }
  0xc8   :  { %4845 = vmatpush1.bf16.msra.mxu1 %v8962_v55  ;;  %v70_v55 = vcombine.high %v10653_v35, %v10653_v35  ;;  %v9048_v35 = vld [vmem:[%s13017_s1 + $0xa54] ss:$28 sps:$4 sm:$0xff]  }
  0xc9   :  { %4640 = vmatpush1.bf16.msra.mxu0 %v8959_v25  ;;  %4846 = vmatprep.subr.bf16.mxu1 %v8970_v57  ;;  %v9042_v25 = vld [vmem:[%s13017_s1 + $0xa1c] ss:$28 sps:$4 sm:$0xff]  }
  0xca   :  { %4641 = vmatprep.subr.bf16.mxu0 %v8967_v56  ;;  %v9037_v56 = vld [vmem:[%s13017_s1 + $0x1110] ss:$28 sps:$4 sm:$0xff]   ;;  %v9040_v57 = vld [vmem:[%s13017_s1 + $0xa18] ss:$28 sps:$4 sm:$0xff]  }
  0xcc   :  { %4847 = vmatpush1.bf16.msra.mxu1 %v8968_v59  ;;  %v10875_v59 = vrot.slane %v70_v55, %v10170_v49  ;;  %v9054_v49 = vld [vmem:[%s13017_s1 + $0xa8c] ss:$28 sps:$4 sm:$0xff]   ;;  %v9106_v55 = vld [vmem:[%s13017_s1 + $0xc80] ss:$28 sps:$4 sm:$0xff]  }
  0xcd   :  { %4642 = vmatpush1.bf16.msra.mxu0 %v8965_v58  ;;  %4848 = vmatprep.subr.bf16.mxu1 %v8976_v61  ;;  %v9045_v58 = vld [vmem:[%s13017_s1 + $0x114c] ss:$28 sps:$4 sm:$0xff]  }
  0xce   :  { %4643 = vmatprep.subr.bf16.mxu0 %v8973_v60  ;;  %v9043_v60 = vld [vmem:[%s13017_s1 + $0x1148] ss:$28 sps:$4 sm:$0xff]   ;;  %v9046_v61 = vld [vmem:[%s13017_s1 + $0xa50] ss:$28 sps:$4 sm:$0xff]  }
  0xd0   :  { %4849 = vmatpush1.bf16.msra.mxu1 %v8974_v0  ;;  %v86_v0 = vcombine.high %v10875_v59, %v10875_v59 }
  0xd1   :  { %4644 = vmatpush1.bf16.msra.mxu0 %v8971_v63  ;;  %4850 = vmatprep.subr.bf16.mxu1 %v8982_v2  ;;  %v9051_v63 = vld [vmem:[%s13017_s1 + $0x1184] ss:$28 sps:$4 sm:$0xff]  }
  0xd2   :  { %4645 = vmatprep.subr.bf16.mxu0 %v8979_v1  ;;  %v10893_v1 = vpack.c.bf16 %v10666_v40, %v10666_v40  ;;  %v9049_v2 = vld [vmem:[%s13017_s1 + $0x1180] ss:$28 sps:$4 sm:$0xff]  }
  0xd3   :  { %v9060_v40 = vld [vmem:[%s13017_s1 + $0xac4] ss:$28 sps:$4 sm:$0xff]  }
  0xd4   :  { %4851 = vmatpush1.bf16.msra.mxu1 %v8980_v5  ;;  %v9057_v5 = vld [vmem:[%s13017_s1 + $0x11bc] ss:$28 sps:$4 sm:$0xff]  }
  0xd5   :  { %4646 = vmatpush1.bf16.msra.mxu0 %v8977_v4  ;;  %4852 = vmatprep.subr.bf16.mxu1 %v8988_v7  ;;  %v9052_v4 = vld [vmem:[%s13017_s1 + $0xa88] ss:$28 sps:$4 sm:$0xff]   ;;  %v9055_v7 = vld [vmem:[%s13017_s1 + $0x11b8] ss:$28 sps:$4 sm:$0xff]  }
  0xd6   :  { %4647 = vmatprep.subr.bf16.mxu0 %v8985_v6  ;;  %v10907_v6 = vpack.c.bf16 %v86_v0, %v86_v0  ;;  %v9123_v0 = vld [vmem:[%s13017_s1 + $0x1424] ss:$28 sps:$4 sm:$0xff]  }
  0xd8   :  { %4853 = vmatpush1.bf16.msra.mxu1 %v8986_v9  ;;  %v9063_v9 = vld [vmem:[%s13017_s1 + $0x11f4] ss:$28 sps:$4 sm:$0xff]  }
  0xd9   :  { %4648 = vmatpush1.bf16.msra.mxu0 %v8983_v8  ;;  %4854 = vmatprep.subr.bf16.mxu1 %v8994_v11  ;;  %v9058_v8 = vld [vmem:[%s13017_s1 + $0xac0] ss:$28 sps:$4 sm:$0xff]   ;;  %v9061_v11 = vld [vmem:[%s13017_s1 + $0x11f0] ss:$28 sps:$4 sm:$0xff]  }
  0xda   :  { %4649 = vmatprep.subr.bf16.mxu0 %v8991_v10  ;;  %v9066_v10 = vld [vmem:[%s13017_s1 + $0xafc] ss:$28 sps:$4 sm:$0xff]  }
  0xdc   :  { %4855 = vmatpush1.bf16.msra.mxu1 %v8992_v13  ;;  %v9069_v13 = vld [vmem:[%s13017_s1 + $0x122c] ss:$28 sps:$4 sm:$0xff]  }
  0xdd   :  { %4650 = vmatpush1.bf16.msra.mxu0 %v8989_v12  ;;  %4856 = vmatprep.subr.bf16.mxu1 %v9000_v15  ;;  %v9064_v12 = vld [vmem:[%s13017_s1 + $0xaf8] ss:$28 sps:$4 sm:$0xff]   ;;  %v9067_v15 = vld [vmem:[%s13017_s1 + $0x1228] ss:$28 sps:$4 sm:$0xff]  }
  0xde   :  { %4651 = vmatprep.subr.bf16.mxu0 %v8997_v14  ;;  %v9072_v14 = vld [vmem:[%s13017_s1 + $0xb34] ss:$28 sps:$4 sm:$0xff]  }
  0xe0   :  { %4857 = vmatpush1.bf16.msra.mxu1 %v8998_v19  ;;  %v9075_v19 = vld [vmem:[%s13017_s1 + $0x1264] ss:$28 sps:$4 sm:$0xff]  }
  0xe1   :  { %4652 = vmatpush1.bf16.msra.mxu0 %v8995_v16  ;;  %4858 = vmatprep.subr.bf16.mxu1 %v9006_v21  ;;  %v9070_v16 = vld [vmem:[%s13017_s1 + $0xb30] ss:$28 sps:$4 sm:$0xff]   ;;  %v9073_v21 = vld [vmem:[%s13017_s1 + $0x1260] ss:$28 sps:$4 sm:$0xff]  }
  0xe2   :  { %4653 = vmatprep.subr.bf16.mxu0 %v9003_v20  ;;  %v9078_v20 = vld [vmem:[%s13017_s1 + $0xb6c] ss:$28 sps:$4 sm:$0xff]  }
  0xe4   :  { %4859 = vmatpush1.bf16.msra.mxu1 %v9004_v23  ;;  %v9081_v23 = vld [vmem:[%s13017_s1 + $0x129c] ss:$28 sps:$4 sm:$0xff]  }
  0xe5   :  { %4654 = vmatpush1.bf16.msra.mxu0 %v9001_v22  ;;  %4860 = vmatprep.subr.bf16.mxu1 %v9012_v26  ;;  %v9076_v22 = vld [vmem:[%s13017_s1 + $0xb68] ss:$28 sps:$4 sm:$0xff]   ;;  %v9079_v26 = vld [vmem:[%s13017_s1 + $0x1298] ss:$28 sps:$4 sm:$0xff]  }
  0xe6   :  { %4655 = vmatprep.subr.bf16.mxu0 %v9009_v24  ;;  %v9084_v24 = vld [vmem:[%s13017_s1 + $0xba4] ss:$28 sps:$4 sm:$0xff]  }
  0xe8   :  { %4861 = vmatpush1.bf16.msra.mxu1 %v9010_v28  ;;  %v9087_v28 = vld [vmem:[%s13017_s1 + $0x12d4] ss:$28 sps:$4 sm:$0xff]  }
  0xe9   :  { %4656 = vmatpush1.bf16.msra.mxu0 %v9007_v27  ;;  %4862 = vmatprep.subr.bf16.mxu1 %v9018_v30  ;;  %v9082_v27 = vld [vmem:[%s13017_s1 + $0xba0] ss:$28 sps:$4 sm:$0xff]  }
  0xea   :  { %4657 = vmatprep.subr.bf16.mxu0 %v9015_v29  ;;  %v9090_v29 = vld [vmem:[%s13017_s1 + $0xbdc] ss:$28 sps:$4 sm:$0xff]  }
  0xec   :  { %4863 = vmatpush1.bf16.msra.mxu1 %v9016_v33  ;;  %v9085_v33 = vld [vmem:[%s13017_s1 + $0x12d0] ss:$28 sps:$4 sm:$0xff]  }
  0xed   :  { %4658 = vmatpush1.bf16.msra.mxu0 %v9013_v32  ;;  %4864 = vmatprep.subr.bf16.mxu1 %v9024_v37 }
  0xee   :  { %4659 = vmatprep.subr.bf16.mxu0 %v9021_v34  ;;  %v9088_v34 = vld [vmem:[%s13017_s1 + $0xbd8] ss:$28 sps:$4 sm:$0xff]  }
  0xf0   :  { %4865 = vmatpush1.bf16.msra.mxu1 %v9022_v39  ;;  %v9096_v39 = vld [vmem:[%s13017_s1 + $0xc14] ss:$28 sps:$4 sm:$0xff]  }
  0xf1   :  { %4660 = vmatpush1.bf16.msra.mxu0 %v9019_v38  ;;  %4866 = vmatprep.subr.bf16.mxu1 %v9030_v42  ;;  %v9093_v38 = vld [vmem:[%s13017_s1 + $0x130c] ss:$28 sps:$4 sm:$0xff]  }
  0xf2   :  { %4661 = vmatprep.subr.bf16.mxu0 %v9027_v41  ;;  %v9091_v42 = vld [vmem:[%s13017_s1 + $0x1308] ss:$28 sps:$4 sm:$0xff]  }
  0xf4   :  { %4867 = vmatpush1.bf16.msra.mxu1 %v9028_v45  ;;  %v9099_v45 = vld [vmem:[%s13017_s1 + $0x1344] ss:$28 sps:$4 sm:$0xff]  }
  0xf5   :  { %4662 = vmatpush1.bf16.msra.mxu0 %v9025_v44  ;;  %4868 = vmatprep.subr.bf16.mxu1 %v9036_v47  ;;  %v9094_v44 = vld [vmem:[%s13017_s1 + $0xc10] ss:$28 sps:$4 sm:$0xff]   ;;  %v9097_v47 = vld [vmem:[%s13017_s1 + $0x1340] ss:$28 sps:$4 sm:$0xff]  }
  0xf6   :  { %4663 = vmatprep.subr.bf16.mxu0 %v9033_v46  ;;  %v9102_v46 = vld [vmem:[%s13017_s1 + $0xc4c] ss:$28 sps:$4 sm:$0xff]  }
  0xf8   :  { %4869 = vmatpush1.bf16.msra.mxu1 %v9034_v52  ;;  %v9105_v52 = vld [vmem:[%s13017_s1 + $0x137c] ss:$28 sps:$4 sm:$0xff]  }
  0xf9   :  { %4664 = vmatpush1.bf16.msra.mxu0 %v9031_v50  ;;  %4870 = vmatprep.subr.bf16.mxu1 %v9042_v25  ;;  %v9100_v50 = vld [vmem:[%s13017_s1 + $0xc48] ss:$28 sps:$4 sm:$0xff]   ;;  %v9103_v25 = vld [vmem:[%s13017_s1 + $0x1378] ss:$28 sps:$4 sm:$0xff]  }
  0xfa   :  { %4665 = vmatprep.subr.bf16.mxu0 %v9039_v53  ;;  %v9108_v53 = vld [vmem:[%s13017_s1 + $0xc84] ss:$28 sps:$4 sm:$0xff]  }
  0xfc   :  { %4871 = vmatpush1.bf16.msra.mxu1 %v9040_v57  ;;  %v9114_v57 = vld [vmem:[%s13017_s1 + $0xcbc] ss:$28 sps:$4 sm:$0xff]  }
  0xfd   :  { %4666 = vmatpush1.bf16.msra.mxu0 %v9037_v56  ;;  %4872 = vmatprep.subr.bf16.mxu1 %v9048_v35  ;;  %v9111_v56 = vld [vmem:[%s13017_s1 + $0x13b4] ss:$28 sps:$4 sm:$0xff]  }
  0xfe   :  { %4667 = vmatprep.subr.bf16.mxu0 %v9045_v58  ;;  %v9109_v58 = vld [vmem:[%s13017_s1 + $0x13b0] ss:$28 sps:$4 sm:$0xff]   ;;  %v9112_v35 = vld [vmem:[%s13017_s1 + $0xcb8] ss:$28 sps:$4 sm:$0xff]  }
 0x100   :  { %4873 = vmatpush1.bf16.msra.mxu1 %v9046_v61  ;;  %v9120_v61 = vld [vmem:[%s13017_s1 + $0xcf4] ss:$28 sps:$4 sm:$0xff]  }
 0x101   :  { %4668 = vmatpush1.bf16.msra.mxu0 %v9043_v60  ;;  %4883 = vmatprep.subr.bf16.mxu1 %v9054_v49  ;;  %v9117_v60 = vld [vmem:[%s13017_s1 + $0x13ec] ss:$28 sps:$4 sm:$0xff]  }
 0x102   :  { %4678 = vmatprep.subr.bf16.mxu0 %v9051_v63  ;;  %v9115_v63 = vld [vmem:[%s13017_s1 + $0x13e8] ss:$28 sps:$4 sm:$0xff]   ;;  %v9118_v49 = vld [vmem:[%s13017_s1 + $0xcf0] ss:$28 sps:$4 sm:$0xff]  }
 0x103   :  { %4875 = vmatmul.mubr.bf16.vlgmr.msra.gmra.mrb[4].mxu1 %v10471_v31 }
 0x104   :  { %4670 = vmatmul.mubr.bf16.vlgmr.msra.gmra.mrb[0].mxu0 %v10893_v1  ;;  %4884 = vmatpush1.bf16.msra.mxu1 %v9052_v4  ;;  %v9121_v4 = vld [vmem:[%s13017_s1 + $0x1420] ss:$28 sps:$4 sm:$0xff]  }
 0x105   :  { %4679 = vmatpush1.bf16.msra.mxu0 %v9049_v2  ;;  %4885 = vmatprep.subr.bf16.mxu1 %v9060_v40  ;;  %v9126_v2 = vld [vmem:[%s13017_s1 + $0xd2c] ss:$28 sps:$4 sm:$0xff]   ;;  %v9129_v40 = vld [vmem:[%s13017_s1 + $0x145c] ss:$28 sps:$4 sm:$0xff]  }
 0x106   :  { %4680 = vmatprep.subr.bf16.mxu0 %v9057_v5  ;;  %4710 = vmatprep.mubr.bf16.mxu0 %v10907_v6  ;;  %v9124_v5 = vld [vmem:[%s13017_s1 + $0xd28] ss:$28 sps:$4 sm:$0xff]  }
 0x107   :  { %4915 = vmatprep.mubr.bf16.mxu1 %v10485_v36 }
 0x108   :  { %4886 = vmatpush1.bf16.msra.mxu1 %v9058_v8  ;;  %v9127_v8 = vld [vmem:[%s13017_s1 + $0x1458] ss:$28 sps:$4 sm:$0xff]  }
 0x109   :  { %4681 = vmatpush1.bf16.msra.mxu0 %v9055_v7  ;;  %4887 = vmatprep.subr.bf16.mxu1 %v9066_v10  ;;  %v9132_v7 = vld [vmem:[%s13017_s1 + $0xd64] ss:$28 sps:$4 sm:$0xff]   ;;  %v9135_v10 = vld [vmem:[%s13017_s1 + $0x1494] ss:$28 sps:$4 sm:$0xff]  }
 0x10a   :  { %4682 = vmatprep.subr.bf16.mxu0 %v9063_v9  ;;  %v9130_v9 = vld [vmem:[%s13017_s1 + $0xd60] ss:$28 sps:$4 sm:$0xff]  }
 0x10c   :  { %4888 = vmatpush1.bf16.msra.mxu1 %v9064_v12  ;;  %v9133_v12 = vld [vmem:[%s13017_s1 + $0x1490] ss:$28 sps:$4 sm:$0xff]  }
 0x10d   :  { %4683 = vmatpush1.bf16.msra.mxu0 %v9061_v11  ;;  %4889 = vmatprep.subr.bf16.mxu1 %v9072_v14  ;;  %v9138_v11 = vld [vmem:[%s13017_s1 + $0xd9c] ss:$28 sps:$4 sm:$0xff]   ;;  %v9141_v14 = vld [vmem:[%s13017_s1 + $0x14cc] ss:$28 sps:$4 sm:$0xff]  }
 0x10e   :  { %4684 = vmatprep.subr.bf16.mxu0 %v9069_v13  ;;  %v9136_v13 = vld [vmem:[%s13017_s1 + $0xd98] ss:$28 sps:$4 sm:$0xff]  }
 0x110   :  { %4890 = vmatpush1.bf16.msra.mxu1 %v9070_v16  ;;  %v9139_v16 = vld [vmem:[%s13017_s1 + $0x14c8] ss:$28 sps:$4 sm:$0xff]  }
 0x111   :  { %4685 = vmatpush1.bf16.msra.mxu0 %v9067_v15  ;;  %4891 = vmatprep.subr.bf16.mxu1 %v9078_v20  ;;  %v9144_v15 = vld [vmem:[%s13017_s1 + $0xdd4] ss:$28 sps:$4 sm:$0xff]   ;;  %v9148_v20 = vld [vmem:[%s13017_s1 + $0x1504] ss:$28 sps:$4 sm:$0xff]  }
 0x112   :  { %4686 = vmatprep.subr.bf16.mxu0 %v9075_v19  ;;  %v9142_v19 = vld [vmem:[%s13017_s1 + $0xdd0] ss:$28 sps:$4 sm:$0xff]  }
 0x114   :  { %4892 = vmatpush1.bf16.msra.mxu1 %v9076_v22  ;;  %v9146_v22 = vld [vmem:[%s13017_s1 + $0x1500] ss:$28 sps:$4 sm:$0xff]  }
 0x115   :  { %4687 = vmatpush1.bf16.msra.mxu0 %v9073_v21  ;;  %4893 = vmatprep.subr.bf16.mxu1 %v9084_v24  ;;  %v9151_v21 = vld [vmem:[%s13017_s1 + $0xe0c] ss:$28 sps:$4 sm:$0xff]   ;;  %v11105_v24 = vpack.c.bf16 %v10875_v59, %v10875_v59  ;;  %v9152_v59 = vld [vmem:[%s13017_s1 + $0xe40] ss:$28 sps:$4 sm:$0xff]  }
 0x116   :  { %4688 = vmatprep.subr.bf16.mxu0 %v9081_v23  ;;  %v10973_v30 = vpop.f32.mrb[0].mxu1  ;;  %v9149_v23 = vld [vmem:[%s13017_s1 + $0xe08] ss:$28 sps:$4 sm:$0xff]  }
 0x117   :  { %v10975_v32 = vpop.f32.mrb[1].mxu1 }
 0x118   :  { %4894 = vmatpush1.bf16.msra.mxu1 %v9082_v27  ;;  %v4511_v37 = vpop.f32.mrb[2].mxu1  ;;  %v9157_v27 = vld [vmem:[%s13017_s1 + $0x153c] ss:$28 sps:$4 sm:$0xff]  }
 0x119   :  { %4689 = vmatpush1.bf16.msra.mxu0 %v9079_v26  ;;  %4895 = vmatprep.subr.bf16.mxu1 %v9090_v29  ;;  %v4512_v41 = vpop.f32.mrb[3].mxu1  ;;  %v9154_v26 = vld [vmem:[%s13017_s1 + $0xe44] ss:$28 sps:$4 sm:$0xff]   ;;  %v9160_v29 = vld [vmem:[%s13017_s1 + $0xe7c] ss:$28 sps:$4 sm:$0xff]  }
 0x11a   :  { %4690 = vmatprep.subr.bf16.mxu0 %v9087_v28  ;;  %v9155_v28 = vld [vmem:[%s13017_s1 + $0x1538] ss:$28 sps:$4 sm:$0xff]   ;;  %v9161_v41 = vld [vmem:[%s13017_s1 + $0x10] ss:$28 sps:$4 sm:$0xff]  }
 0x11b   :  { %v9158_v37 = vld [vmem:[%s13017_s1 + $0xe78] ss:$28 sps:$4 sm:$0xff]  }
 0x11c   :  { %4896 = vmatpush1.bf16.msra.mxu1 %v9088_v34  ;;  %v9991_v34 = vmov 0  }
 0x11d   :  { %4691 = vmatpush1.bf16.msra.mxu0 %v9085_v33  ;;  %4897 = vmatprep.subr.bf16.mxu1 %v9096_v39  ;;  %v9163_v33 = vld [vmem:[%s13017_s1 + $0x14] ss:$28 sps:$4 sm:$0xff]  }
 0x11e   :  { %4692 = vmatprep.subr.bf16.mxu0 %v9093_v38  ;;  %v7473_v38 = vld.sshfl [vmem:[%s13016_s0 + $0x18] sm:$0x3 pattern:$0x76325410]  ;;  %v9166_v39 = vld [vmem:[%s13017_s1 + $0xeb4] ss:$28 sps:$4 sm:$0xff]  }
 0x120   :  { %4898 = vmatpush1.bf16.msra.mxu1 %v9094_v44  ;;  %v9164_v44 = vld [vmem:[%s13017_s1 + $0xeb0] ss:$28 sps:$4 sm:$0xff]  }
 0x121   :  { %4693 = vmatpush1.bf16.msra.mxu0 %v9091_v42  ;;  %4899 = vmatprep.subr.bf16.mxu1 %v9102_v46  ;;  %v11141_v42 = vpack.c.bf16 %v7473_v38, %v7473_v38  ;;  %v9172_v46 = vld [vmem:[%s13017_s1 + $0xeec] ss:$28 sps:$4 sm:$0xff]   ;;  %v9230_v38 = vld [vmem:[%s13017_s1 + $0x1118] ss:$28 sps:$4 sm:$0xff]  }
 0x122   :  { %4694 = vmatprep.subr.bf16.mxu0 %v9099_v45  ;;  %v9169_v45 = vld [vmem:[%s13017_s1 + $0x4c] ss:$28 sps:$4 sm:$0xff]  }
 0x124   :  { %4900 = vmatpush1.bf16.msra.mxu1 %v9100_v50  ;;  %v9170_v50 = vld [vmem:[%s13017_s1 + $0xee8] ss:$28 sps:$4 sm:$0xff]  }
 0x125   :  { %4695 = vmatpush1.bf16.msra.mxu0 %v9097_v47  ;;  %4901 = vmatprep.subr.bf16.mxu1 %v9108_v53  ;;  %v9167_v47 = vld [vmem:[%s13017_s1 + $0x48] ss:$28 sps:$4 sm:$0xff]  }
 0x126   :  { %4696 = vmatprep.subr.bf16.mxu0 %v9105_v52  ;;  %v9175_v52 = vld [vmem:[%s13017_s1 + $0x84] ss:$28 sps:$4 sm:$0xff]  }
 0x127   :  { %v9178_v53 = vld [vmem:[%s13017_s1 + $0xf24] ss:$28 sps:$4 sm:$0xff]  }
 0x128   :  { %4902 = vmatpush1.bf16.msra.mxu1 %v9106_v55  ;;  %v9176_v55 = vld [vmem:[%s13017_s1 + $0xf20] ss:$28 sps:$4 sm:$0xff]  }
 0x129   :  { %4697 = vmatpush1.bf16.msra.mxu0 %v9103_v25  ;;  %4903 = vmatprep.subr.bf16.mxu1 %v9114_v57  ;;  %v9173_v25 = vld [vmem:[%s13017_s1 + $0x80] ss:$28 sps:$4 sm:$0xff]  }
 0x12a   :  { %4698 = vmatprep.subr.bf16.mxu0 %v9111_v56  ;;  %v9181_v56 = vld [vmem:[%s13017_s1 + $0xbc] ss:$28 sps:$4 sm:$0xff]  }
 0x12b   :  { %v9184_v57 = vld [vmem:[%s13017_s1 + $0xf5c] ss:$28 sps:$4 sm:$0xff]  }
 0x12c   :  { %4904 = vmatpush1.bf16.msra.mxu1 %v9112_v35  ;;  %v9182_v35 = vld [vmem:[%s13017_s1 + $0xf58] ss:$28 sps:$4 sm:$0xff]  }
 0x12d   :  { %4699 = vmatpush1.bf16.msra.mxu0 %v9109_v58  ;;  %4905 = vmatprep.subr.bf16.mxu1 %v9120_v61  ;;  %v9179_v58 = vld [vmem:[%s13017_s1 + $0xb8] ss:$28 sps:$4 sm:$0xff]  }
 0x12e   :  { %4700 = vmatprep.subr.bf16.mxu0 %v9117_v60  ;;  %v9187_v60 = vld [vmem:[%s13017_s1 + $0xf4] ss:$28 sps:$4 sm:$0xff]  }
 0x12f   :  { %v9190_v61 = vld [vmem:[%s13017_s1 + $0xf94] ss:$28 sps:$4 sm:$0xff]  }
 0x130   :  { %4906 = vmatpush1.bf16.msra.mxu1 %v9118_v49  ;;  %v9188_v49 = vld [vmem:[%s13017_s1 + $0xf90] ss:$28 sps:$4 sm:$0xff]  }
 0x131   :  { %4701 = vmatpush1.bf16.msra.mxu0 %v9115_v63  ;;  %4907 = vmatprep.subr.bf16.mxu1 %v9126_v2  ;;  %v9185_v63 = vld [vmem:[%s13017_s1 + $0xf0] ss:$28 sps:$4 sm:$0xff]  }
 0x132   :  { %4702 = vmatprep.subr.bf16.mxu0 %v9123_v0  ;;  %v9193_v0 = vld [vmem:[%s13017_s1 + $0x12c] ss:$28 sps:$4 sm:$0xff]  }
 0x133   :  { %v9196_v2 = vld [vmem:[%s13017_s1 + $0xfcc] ss:$28 sps:$4 sm:$0xff]  }
 0x134   :  { %4908 = vmatpush1.bf16.msra.mxu1 %v9124_v5  ;;  %v9194_v5 = vld [vmem:[%s13017_s1 + $0xfc8] ss:$28 sps:$4 sm:$0xff]  }
 0x135   :  { %4703 = vmatpush1.bf16.msra.mxu0 %v9121_v4  ;;  %4909 = vmatprep.subr.bf16.mxu1 %v9132_v7  ;;  %v9191_v4 = vld [vmem:[%s13017_s1 + $0x128] ss:$28 sps:$4 sm:$0xff]  }
 0x136   :  { %4704 = vmatprep.subr.bf16.mxu0 %v9129_v40  ;;  %v9199_v40 = vld [vmem:[%s13017_s1 + $0x164] ss:$28 sps:$4 sm:$0xff]  }
 0x137   :  { %v9202_v7 = vld [vmem:[%s13017_s1 + $0x1004] ss:$28 sps:$4 sm:$0xff]  }
 0x138   :  { %4910 = vmatpush1.bf16.msra.mxu1 %v9130_v9  ;;  %v9200_v9 = vld [vmem:[%s13017_s1 + $0x1000] ss:$28 sps:$4 sm:$0xff]  }
 0x139   :  { %4705 = vmatpush1.bf16.msra.mxu0 %v9127_v8  ;;  %4911 = vmatprep.subr.bf16.mxu1 %v9138_v11  ;;  %v9197_v8 = vld [vmem:[%s13017_s1 + $0x160] ss:$28 sps:$4 sm:$0xff]  }
 0x13a   :  { %4706 = vmatprep.subr.bf16.mxu0 %v9135_v10  ;;  %v9205_v10 = vld [vmem:[%s13017_s1 + $0x19c] ss:$28 sps:$4 sm:$0xff]  }
 0x13b   :  { %v9208_v11 = vld [vmem:[%s13017_s1 + $0x103c] ss:$28 sps:$4 sm:$0xff]  }
 0x13c   :  { %4912 = vmatpush1.bf16.msra.mxu1 %v9136_v13  ;;  %v9206_v13 = vld [vmem:[%s13017_s1 + $0x1038] ss:$28 sps:$4 sm:$0xff]  }
 0x13d   :  { %4707 = vmatpush1.bf16.msra.mxu0 %v9133_v12  ;;  %4913 = vmatprep.subr.bf16.mxu1 %v9144_v15  ;;  %v9203_v12 = vld [vmem:[%s13017_s1 + $0x198] ss:$28 sps:$4 sm:$0xff]  }
 0x13e   :  { %4708 = vmatprep.subr.bf16.mxu0 %v9141_v14  ;;  %v9211_v14 = vld [vmem:[%s13017_s1 + $0x1d4] ss:$28 sps:$4 sm:$0xff]  }
 0x13f   :  { %v9214_v15 = vld [vmem:[%s13017_s1 + $0x1074] ss:$28 sps:$4 sm:$0xff]  }
 0x140   :  { %4914 = vmatpush1.bf16.msra.mxu1 %v9142_v19  ;;  %v9212_v19 = vld [vmem:[%s13017_s1 + $0x1070] ss:$28 sps:$4 sm:$0xff]  }
 0x141   :  { %4709 = vmatpush1.bf16.msra.mxu0 %v9139_v16  ;;  %4924 = vmatprep.subr.bf16.mxu1 %v9151_v21  ;;  %v9209_v16 = vld [vmem:[%s13017_s1 + $0x1d0] ss:$28 sps:$4 sm:$0xff]  }
 0x142   :  { %4719 = vmatprep.subr.bf16.mxu0 %v9148_v20  ;;  %v9217_v20 = vld [vmem:[%s13017_s1 + $0x20c] ss:$28 sps:$4 sm:$0xff]  }
 0x143   :  { %4916 = vmatmul.mubr.bf16.vlgmr.msra.gmra.mrb[4].mxu1 %v10687_v48  ;;  %v9220_v21 = vld [vmem:[%s13017_s1 + $0x10ac] ss:$28 sps:$4 sm:$0xff]  }
 0x144   :  { %4711 = vmatmul.mubr.bf16.vlgmr.msra.gmra.mrb[0].mxu0 %v11105_v24  ;;  %4925 = vmatpush1.bf16.msra.mxu1 %v9149_v23  ;;  %v9218_v23 = vld [vmem:[%s13017_s1 + $0x10a8] ss:$28 sps:$4 sm:$0xff]  }
 0x145   :  { %4720 = vmatpush1.bf16.msra.mxu0 %v9146_v22  ;;  %4926 = vmatprep.subr.bf16.mxu1 %v9154_v26  ;;  %v9215_v22 = vld [vmem:[%s13017_s1 + $0x208] ss:$28 sps:$4 sm:$0xff]  }
 0x146   :  { %4721 = vmatprep.subr.bf16.mxu0 %v9157_v27  ;;  %4751 = vmatprep.mubr.bf16.mxu0 %v9991_v34  ;;  %v9223_v26 = vld [vmem:[%s13017_s1 + $0x244] ss:$28 sps:$4 sm:$0xff]  }
 0x147   :  { %4956 = vmatprep.mubr.bf16.mxu1 %v10698_v54  ;;  %v9226_v27 = vld [vmem:[%s13017_s1 + $0x10e4] ss:$28 sps:$4 sm:$0xff]  }
 0x148   :  { %4927 = vmatpush1.bf16.msra.mxu1 %v9152_v59  ;;  %v9221_v59 = vld [vmem:[%s13017_s1 + $0x240] ss:$28 sps:$4 sm:$0xff]  }
 0x149   :  { %4722 = vmatpush1.bf16.msra.mxu0 %v9155_v28  ;;  %4928 = vmatprep.subr.bf16.mxu1 %v9160_v29  ;;  %v9224_v28 = vld [vmem:[%s13017_s1 + $0x10e0] ss:$28 sps:$4 sm:$0xff]  }
 0x14a   :  { %5047 = vmatprep.subr.bf16.mxu0 %v9163_v33  ;;  %v9229_v29 = vld [vmem:[%s13017_s1 + $0x27c] ss:$28 sps:$4 sm:$0xff]  }
 0x14b   :  { %v9232_v33 = vld [vmem:[%s13017_s1 + $0x111c] ss:$28 sps:$4 sm:$0xff]  }
 0x14c   :  { %4929 = vmatpush1.bf16.msra.mxu1 %v9158_v37  ;;  %v9227_v37 = vld [vmem:[%s13017_s1 + $0x278] ss:$28 sps:$4 sm:$0xff]  }
 0x14d   :  { %4930 = vmatprep.subr.bf16.mxu1 %v9166_v39  ;;  %v9235_v39 = vld [vmem:[%s13017_s1 + $0x2b4] ss:$28 sps:$4 sm:$0xff]  }
 0x150   :  { %8160 = vmatmul.mubr.msk.bf16.vlgmr.msra.gmra.mrb[0].mxu0 %vm4469_vm0, %v11141_v42  ;;  %4931 = vmatpush1.bf16.msra.mxu1 %v9164_v44  ;;  %v9233_v44 = vld [vmem:[%s13017_s1 + $0x2b0] ss:$28 sps:$4 sm:$0xff]  }
 0x151   :  { %5048 = vmatpush1.bf16.msra.mxu0 %v9161_v41  ;;  %4932 = vmatprep.subr.bf16.mxu1 %v9172_v46  ;;  %v9238_v41 = vld [vmem:[%s13017_s1 + $0x1154] ss:$28 sps:$4 sm:$0xff]   ;;  %v9241_v46 = vld [vmem:[%s13017_s1 + $0x2ec] ss:$28 sps:$4 sm:$0xff]  }
 0x152   :  { %5049 = vmatprep.subr.bf16.mxu0 %v9169_v45  ;;  %5079 = vmatprep.mubr.bf16.mxu0 %v10198_v62  ;;  %v9236_v45 = vld [vmem:[%s13017_s1 + $0x1150] ss:$28 sps:$4 sm:$0xff]  }
 0x154   :  { %4933 = vmatpush1.bf16.msra.mxu1 %v9170_v50  ;;  %v9239_v50 = vld [vmem:[%s13017_s1 + $0x2e8] ss:$28 sps:$4 sm:$0xff]  }
 0x155   :  { %5050 = vmatpush1.bf16.msra.mxu0 %v9167_v47  ;;  %4934 = vmatprep.subr.bf16.mxu1 %v9178_v53  ;;  %v9244_v47 = vld [vmem:[%s13017_s1 + $0x118c] ss:$28 sps:$4 sm:$0xff]   ;;  %v9247_v53 = vld [vmem:[%s13017_s1 + $0x324] ss:$28 sps:$4 sm:$0xff]  }
 0x156   :  { %5051 = vmatprep.subr.bf16.mxu0 %v9175_v52  ;;  %v9242_v52 = vld [vmem:[%s13017_s1 + $0x1188] ss:$28 sps:$4 sm:$0xff]  }
 0x158   :  { %4935 = vmatpush1.bf16.msra.mxu1 %v9176_v55  ;;  %v9245_v55 = vld [vmem:[%s13017_s1 + $0x320] ss:$28 sps:$4 sm:$0xff]  }
 0x159   :  { %5052 = vmatpush1.bf16.msra.mxu0 %v9173_v25  ;;  %4936 = vmatprep.subr.bf16.mxu1 %v9184_v57  ;;  %v9250_v25 = vld [vmem:[%s13017_s1 + $0x11c4] ss:$28 sps:$4 sm:$0xff]   ;;  %v9253_v57 = vld [vmem:[%s13017_s1 + $0x35c] ss:$28 sps:$4 sm:$0xff]  }
 0x15a   :  { %5053 = vmatprep.subr.bf16.mxu0 %v9181_v56  ;;  %v9248_v56 = vld [vmem:[%s13017_s1 + $0x11c0] ss:$28 sps:$4 sm:$0xff]  }
 0x15c   :  { %4937 = vmatpush1.bf16.msra.mxu1 %v9182_v35  ;;  %v9251_v35 = vld [vmem:[%s13017_s1 + $0x358] ss:$28 sps:$4 sm:$0xff]  }
 0x15d   :  { %5054 = vmatpush1.bf16.msra.mxu0 %v9179_v58  ;;  %4938 = vmatprep.subr.bf16.mxu1 %v9190_v61  ;;  %v9256_v58 = vld [vmem:[%s13017_s1 + $0x11fc] ss:$28 sps:$4 sm:$0xff]   ;;  %v9259_v61 = vld [vmem:[%s13017_s1 + $0x394] ss:$28 sps:$4 sm:$0xff]  }
 0x15e   :  { %5055 = vmatprep.subr.bf16.mxu0 %v9187_v60  ;;  %v9254_v60 = vld [vmem:[%s13017_s1 + $0x11f8] ss:$28 sps:$4 sm:$0xff]  }
 0x160   :  { %4939 = vmatpush1.bf16.msra.mxu1 %v9188_v49  ;;  %v9257_v49 = vld [vmem:[%s13017_s1 + $0x390] ss:$28 sps:$4 sm:$0xff]  }
 0x161   :  { %5056 = vmatpush1.bf16.msra.mxu0 %v9185_v63  ;;  %4940 = vmatprep.subr.bf16.mxu1 %v9196_v2  ;;  %v9262_v63 = vld [vmem:[%s13017_s1 + $0x1234] ss:$28 sps:$4 sm:$0xff]   ;;  %v9265_v2 = vld [vmem:[%s13017_s1 + $0x3cc] ss:$28 sps:$4 sm:$0xff]  }
 0x162   :  { %5057 = vmatprep.subr.bf16.mxu0 %v9193_v0  ;;  %v9260_v0 = vld [vmem:[%s13017_s1 + $0x1230] ss:$28 sps:$4 sm:$0xff]  }
 0x164   :  { %4941 = vmatpush1.bf16.msra.mxu1 %v9194_v5  ;;  %v9263_v5 = vld [vmem:[%s13017_s1 + $0x3c8] ss:$28 sps:$4 sm:$0xff]  }
 0x165   :  { %5058 = vmatpush1.bf16.msra.mxu0 %v9191_v4  ;;  %4942 = vmatprep.subr.bf16.mxu1 %v9202_v7  ;;  %v9268_v4 = vld [vmem:[%s13017_s1 + $0x126c] ss:$28 sps:$4 sm:$0xff]   ;;  %v9271_v7 = vld [vmem:[%s13017_s1 + $0x404] ss:$28 sps:$4 sm:$0xff]  }
 0x166   :  { %5059 = vmatprep.subr.bf16.mxu0 %v9199_v40  ;;  %v9266_v40 = vld [vmem:[%s13017_s1 + $0x1268] ss:$28 sps:$4 sm:$0xff]  }
 0x168   :  { %4943 = vmatpush1.bf16.msra.mxu1 %v9200_v9  ;;  %v9269_v9 = vld [vmem:[%s13017_s1 + $0x400] ss:$28 sps:$4 sm:$0xff]  }
 0x169   :  { %5060 = vmatpush1.bf16.msra.mxu0 %v9197_v8  ;;  %4944 = vmatprep.subr.bf16.mxu1 %v9208_v11  ;;  %v9274_v8 = vld [vmem:[%s13017_s1 + $0x12a4] ss:$28 sps:$4 sm:$0xff]   ;;  %v9277_v11 = vld [vmem:[%s13017_s1 + $0x43c] ss:$28 sps:$4 sm:$0xff]  }
 0x16a   :  { %5061 = vmatprep.subr.bf16.mxu0 %v9205_v10  ;;  %v9272_v10 = vld [vmem:[%s13017_s1 + $0x12a0] ss:$28 sps:$4 sm:$0xff]  }
 0x16c   :  { %4945 = vmatpush1.bf16.msra.mxu1 %v9206_v13  ;;  %v9275_v13 = vld [vmem:[%s13017_s1 + $0x438] ss:$28 sps:$4 sm:$0xff]  }
 0x16d   :  { %5062 = vmatpush1.bf16.msra.mxu0 %v9203_v12  ;;  %4946 = vmatprep.subr.bf16.mxu1 %v9214_v15  ;;  %v9280_v12 = vld [vmem:[%s13017_s1 + $0x12dc] ss:$28 sps:$4 sm:$0xff]   ;;  %v9283_v15 = vld [vmem:[%s13017_s1 + $0x474] ss:$28 sps:$4 sm:$0xff]  }
 0x16e   :  { %5063 = vmatprep.subr.bf16.mxu0 %v9211_v14  ;;  %v9278_v14 = vld [vmem:[%s13017_s1 + $0x12d8] ss:$28 sps:$4 sm:$0xff]  }
 0x170   :  { %4947 = vmatpush1.bf16.msra.mxu1 %v9212_v19  ;;  %v9281_v19 = vld [vmem:[%s13017_s1 + $0x470] ss:$28 sps:$4 sm:$0xff]  }
 0x171   :  { %5064 = vmatpush1.bf16.msra.mxu0 %v9209_v16  ;;  %4948 = vmatprep.subr.bf16.mxu1 %v9220_v21  ;;  %v9286_v16 = vld [vmem:[%s13017_s1 + $0x1314] ss:$28 sps:$4 sm:$0xff]   ;;  %v9289_v21 = vld [vmem:[%s13017_s1 + $0x4ac] ss:$28 sps:$4 sm:$0xff]  }
 0x172   :  { %5065 = vmatprep.subr.bf16.mxu0 %v9217_v20  ;;  %v9284_v20 = vld [vmem:[%s13017_s1 + $0x1310] ss:$28 sps:$4 sm:$0xff]  }
 0x174   :  { %4949 = vmatpush1.bf16.msra.mxu1 %v9218_v23  ;;  %v9287_v23 = vld [vmem:[%s13017_s1 + $0x4a8] ss:$28 sps:$4 sm:$0xff]  }
 0x175   :  { %5066 = vmatpush1.bf16.msra.mxu0 %v9215_v22  ;;  %4950 = vmatprep.subr.bf16.mxu1 %v9226_v27  ;;  %v9292_v22 = vld [vmem:[%s13017_s1 + $0x134c] ss:$28 sps:$4 sm:$0xff]   ;;  %v9295_v27 = vld [vmem:[%s13017_s1 + $0x4e4] ss:$28 sps:$4 sm:$0xff]  }
 0x176   :  { %5067 = vmatprep.subr.bf16.mxu0 %v9223_v26  ;;  %v9290_v26 = vld [vmem:[%s13017_s1 + $0x1348] ss:$28 sps:$4 sm:$0xff]  }
 0x178   :  { %4951 = vmatpush1.bf16.msra.mxu1 %v9224_v28  ;;  %v9293_v28 = vld [vmem:[%s13017_s1 + $0x4e0] ss:$28 sps:$4 sm:$0xff]  }
 0x179   :  { %5068 = vmatpush1.bf16.msra.mxu0 %v9221_v59  ;;  %4952 = vmatprep.subr.bf16.mxu1 %v9232_v33  ;;  %v9298_v59 = vld [vmem:[%s13017_s1 + $0x1384] ss:$28 sps:$4 sm:$0xff]   ;;  %v9301_v33 = vld [vmem:[%s13017_s1 + $0x51c] ss:$28 sps:$4 sm:$0xff]  }
 0x17a   :  { %5069 = vmatprep.subr.bf16.mxu0 %v9229_v29  ;;  %v9296_v29 = vld [vmem:[%s13017_s1 + $0x1380] ss:$28 sps:$4 sm:$0xff]  }
 0x17c   :  { %4953 = vmatpush1.bf16.msra.mxu1 %v9230_v38  ;;  %v9299_v38 = vld [vmem:[%s13017_s1 + $0x518] ss:$28 sps:$4 sm:$0xff]  }
 0x17d   :  { %5070 = vmatpush1.bf16.msra.mxu0 %v9227_v37  ;;  %4954 = vmatprep.subr.bf16.mxu1 %v9238_v41  ;;  %v9304_v37 = vld [vmem:[%s13017_s1 + $0x13bc] ss:$28 sps:$4 sm:$0xff]   ;;  %v9307_v41 = vld [vmem:[%s13017_s1 + $0x554] ss:$28 sps:$4 sm:$0xff]  }
 0x17e   :  { %5071 = vmatprep.subr.bf16.mxu0 %v9235_v39  ;;  %v9302_v39 = vld [vmem:[%s13017_s1 + $0x13b8] ss:$28 sps:$4 sm:$0xff]  }
 0x180   :  { %4955 = vmatpush1.bf16.msra.mxu1 %v9236_v45  ;;  %v9305_v45 = vld [vmem:[%s13017_s1 + $0x550] ss:$28 sps:$4 sm:$0xff]  }
 0x181   :  { %5072 = vmatpush1.bf16.msra.mxu0 %v9233_v44  ;;  %4965 = vmatprep.subr.bf16.mxu1 %v9244_v47  ;;  %v9310_v44 = vld [vmem:[%s13017_s1 + $0x13f4] ss:$28 sps:$4 sm:$0xff]   ;;  %v9313_v47 = vld [vmem:[%s13017_s1 + $0x58c] ss:$28 sps:$4 sm:$0xff]  }
 0x182   :  { %5073 = vmatprep.subr.bf16.mxu0 %v9241_v46  ;;  %v9308_v46 = vld [vmem:[%s13017_s1 + $0x13f0] ss:$28 sps:$4 sm:$0xff]  }
 0x183   :  { %4957 = vmatmul.mubr.bf16.vlgmr.msra.gmra.mrb[4].mxu1 %v10893_v1 }
 0x184   :  { %4966 = vmatpush1.bf16.msra.mxu1 %v9242_v52  ;;  %4997 = vmatprep.mubr.bf16.mxu1 %v10907_v6  ;;  %v9311_v52 = vld [vmem:[%s13017_s1 + $0x588] ss:$28 sps:$4 sm:$0xff]  }
 0x185   :  { %5074 = vmatpush1.bf16.msra.mxu0 %v9239_v50  ;;  %4967 = vmatprep.subr.bf16.mxu1 %v9250_v25  ;;  %v9316_v50 = vld [vmem:[%s13017_s1 + $0x142c] ss:$28 sps:$4 sm:$0xff]   ;;  %v9319_v25 = vld [vmem:[%s13017_s1 + $0x5c4] ss:$28 sps:$4 sm:$0xff]  }
 0x186   :  { %5075 = vmatprep.subr.bf16.mxu0 %v9247_v53  ;;  %v9314_v53 = vld [vmem:[%s13017_s1 + $0x1428] ss:$28 sps:$4 sm:$0xff]  }
 0x188   :  { %4968 = vmatpush1.bf16.msra.mxu1 %v9248_v56  ;;  %v9317_v56 = vld [vmem:[%s13017_s1 + $0x5c0] ss:$28 sps:$4 sm:$0xff]  }
 0x189   :  { %5076 = vmatpush1.bf16.msra.mxu0 %v9245_v55  ;;  %4969 = vmatprep.subr.bf16.mxu1 %v9256_v58  ;;  %v9322_v55 = vld [vmem:[%s13017_s1 + $0x1464] ss:$28 sps:$4 sm:$0xff]   ;;  %v9325_v58 = vld [vmem:[%s13017_s1 + $0x5fc] ss:$28 sps:$4 sm:$0xff]  }
 0x18a   :  { %5077 = vmatprep.subr.bf16.mxu0 %v9253_v57  ;;  %v9320_v57 = vld [vmem:[%s13017_s1 + $0x1460] ss:$28 sps:$4 sm:$0xff]  }
 0x18c   :  { %4970 = vmatpush1.bf16.msra.mxu1 %v9254_v60  ;;  %v9323_v60 = vld [vmem:[%s13017_s1 + $0x5f8] ss:$28 sps:$4 sm:$0xff]  }
 0x18d   :  { %5078 = vmatpush1.bf16.msra.mxu0 %v9251_v35  ;;  %4971 = vmatprep.subr.bf16.mxu1 %v9262_v63  ;;  %v9328_v35 = vld [vmem:[%s13017_s1 + $0x149c] ss:$28 sps:$4 sm:$0xff]   ;;  %v9331_v63 = vld [vmem:[%s13017_s1 + $0x634] ss:$28 sps:$4 sm:$0xff]  }
 0x18e   :  { %5088 = vmatprep.subr.bf16.mxu0 %v9259_v61  ;;  %v9326_v61 = vld [vmem:[%s13017_s1 + $0x1498] ss:$28 sps:$4 sm:$0xff]  }
 0x190   :  { %5080 = vmatmul.mubr.bf16.vlgmr.msra.gmra.mrb[4].mxu0 %v10252_v17  ;;  %4972 = vmatpush1.bf16.msra.mxu1 %v9260_v0  ;;  %v9329_v0 = vld [vmem:[%s13017_s1 + $0x630] ss:$28 sps:$4 sm:$0xff]  }
 0x191   :  { %5089 = vmatpush1.bf16.msra.mxu0 %v9257_v49  ;;  %4973 = vmatprep.subr.bf16.mxu1 %v9268_v4  ;;  %v9334_v49 = vld [vmem:[%s13017_s1 + $0x14d4] ss:$28 sps:$4 sm:$0xff]   ;;  %v9337_v4 = vld [vmem:[%s13017_s1 + $0x66c] ss:$28 sps:$4 sm:$0xff]  }
 0x192   :  { %5090 = vmatprep.subr.bf16.mxu0 %v9265_v2  ;;  %5120 = vmatprep.mubr.bf16.mxu0 %v10209_v3  ;;  %v9332_v2 = vld [vmem:[%s13017_s1 + $0x14d0] ss:$28 sps:$4 sm:$0xff]  }
 0x194   :  { %4974 = vmatpush1.bf16.msra.mxu1 %v9266_v40  ;;  %v9335_v40 = vld [vmem:[%s13017_s1 + $0x668] ss:$28 sps:$4 sm:$0xff]  }
 0x195   :  { %5091 = vmatpush1.bf16.msra.mxu0 %v9263_v5  ;;  %4975 = vmatprep.subr.bf16.mxu1 %v9274_v8  ;;  %v9340_v5 = vld [vmem:[%s13017_s1 + $0x150c] ss:$28 sps:$4 sm:$0xff]   ;;  %v9343_v8 = vld [vmem:[%s13017_s1 + $0x6a4] ss:$28 sps:$4 sm:$0xff]  }
 0x196   :  { %5092 = vmatprep.subr.bf16.mxu0 %v9271_v7  ;;  %v9338_v7 = vld [vmem:[%s13017_s1 + $0x1508] ss:$28 sps:$4 sm:$0xff]  }
 0x198   :  { %4976 = vmatpush1.bf16.msra.mxu1 %v9272_v10  ;;  %v9341_v10 = vld [vmem:[%s13017_s1 + $0x6a0] ss:$28 sps:$4 sm:$0xff]  }
 0x199   :  { %5093 = vmatpush1.bf16.msra.mxu0 %v9269_v9  ;;  %4977 = vmatprep.subr.bf16.mxu1 %v9280_v12  ;;  %v9346_v9 = vld [vmem:[%s13017_s1 + $0x1544] ss:$28 sps:$4 sm:$0xff]   ;;  %v9349_v12 = vld [vmem:[%s13017_s1 + $0x6dc] ss:$28 sps:$4 sm:$0xff]  }
 0x19a   :  { %5094 = vmatprep.subr.bf16.mxu0 %v9277_v11  ;;  %v9344_v11 = vld [vmem:[%s13017_s1 + $0x1540] ss:$28 sps:$4 sm:$0xff]  }
 0x19c   :  { %4978 = vmatpush1.bf16.msra.mxu1 %v9278_v14  ;;  %v9347_v14 = vld [vmem:[%s13017_s1 + $0x6d8] ss:$28 sps:$4 sm:$0xff]  }
 0x19d   :  { %5095 = vmatpush1.bf16.msra.mxu0 %v9275_v13  ;;  %4979 = vmatprep.subr.bf16.mxu1 %v9286_v16  ;;  %v9353_v13 = vld [vmem:[%s13017_s1 + $0x1d8] ss:$28 sps:$4 sm:$0xff]   ;;  %v9350_v16 = vld [vmem:[%s13017_s1 + $0x710] ss:$28 sps:$4 sm:$0xff]  }
 0x19e   :  { %5096 = vmatprep.subr.bf16.mxu0 %v9283_v15  ;;  %v9352_v15 = vld [vmem:[%s13017_s1 + $0x714] ss:$28 sps:$4 sm:$0xff]  }
 0x1a0   :  { %4980 = vmatpush1.bf16.msra.mxu1 %v9284_v20  ;;  %v9357_v20 = vld [vmem:[%s13017_s1 + $0x74c] ss:$28 sps:$4 sm:$0xff]  }
 0x1a1   :  { %5097 = vmatpush1.bf16.msra.mxu0 %v9281_v19  ;;  %4981 = vmatprep.subr.bf16.mxu1 %v9292_v22  ;;  %v9354_v19 = vld [vmem:[%s13017_s1 + $0x18] ss:$28 sps:$4 sm:$0xff]   ;;  %v9355_v22 = vld [vmem:[%s13017_s1 + $0x748] ss:$28 sps:$4 sm:$0xff]  }
 0x1a2   :  { %5098 = vmatprep.subr.bf16.mxu0 %v9289_v21  ;;  %v9358_v21 = vld [vmem:[%s13017_s1 + $0x210] ss:$28 sps:$4 sm:$0xff]  }
 0x1a4   :  { %4982 = vmatpush1.bf16.msra.mxu1 %v9290_v26  ;;  %v9362_v26 = vld [vmem:[%s13017_s1 + $0x784] ss:$28 sps:$4 sm:$0xff]  }
 0x1a5   :  { %5099 = vmatpush1.bf16.msra.mxu0 %v9287_v23  ;;  %4983 = vmatprep.subr.bf16.mxu1 %v9298_v59  ;;  %v9359_v23 = vld [vmem:[%s13017_s1 + $0x50] ss:$28 sps:$4 sm:$0xff]   ;;  %v9360_v59 = vld [vmem:[%s13017_s1 + $0x780] ss:$28 sps:$4 sm:$0xff]  }
 0x1a6   :  { %5100 = vmatprep.subr.bf16.mxu0 %v9295_v27  ;;  %v9363_v27 = vld [vmem:[%s13017_s1 + $0x248] ss:$28 sps:$4 sm:$0xff]  }
 0x1a8   :  { %4984 = vmatpush1.bf16.msra.mxu1 %v9296_v29  ;;  %v9367_v29 = vld [vmem:[%s13017_s1 + $0x7bc] ss:$28 sps:$4 sm:$0xff]  }
 0x1a9   :  { %5101 = vmatpush1.bf16.msra.mxu0 %v9293_v28  ;;  %4985 = vmatprep.subr.bf16.mxu1 %v9304_v37  ;;  %v9364_v28 = vld [vmem:[%s13017_s1 + $0x88] ss:$28 sps:$4 sm:$0xff]   ;;  %v9369_v37 = vld [vmem:[%s13017_s1 + $0xc0] ss:$28 sps:$4 sm:$0xff]  }
 0x1aa   :  { %5102 = vmatprep.subr.bf16.mxu0 %v9301_v33  ;;  %v9368_v33 = vld [vmem:[%s13017_s1 + $0x280] ss:$28 sps:$4 sm:$0xff]  }
 0x1ac   :  { %4986 = vmatpush1.bf16.msra.mxu1 %v9302_v39  ;;  %v9373_v39 = vld [vmem:[%s13017_s1 + $0x2b8] ss:$28 sps:$4 sm:$0xff]  }
 0x1ad   :  { %5103 = vmatpush1.bf16.msra.mxu0 %v9299_v38  ;;  %4987 = vmatprep.subr.bf16.mxu1 %v9310_v44  ;;  %v9372_v38 = vld [vmem:[%s13017_s1 + $0x7f4] ss:$28 sps:$4 sm:$0xff]  }
 0x1ae   :  { %5104 = vmatprep.subr.bf16.mxu0 %v9307_v41  ;;  %v9370_v41 = vld [vmem:[%s13017_s1 + $0x7f0] ss:$28 sps:$4 sm:$0xff]   ;;  %v9374_v44 = vld [vmem:[%s13017_s1 + $0xf8] ss:$28 sps:$4 sm:$0xff]  }
 0x1b0   :  { %4988 = vmatpush1.bf16.msra.mxu1 %v9308_v46  ;;  %v9378_v46 = vld [vmem:[%s13017_s1 + $0x2f0] ss:$28 sps:$4 sm:$0xff]  }
 0x1b1   :  { %5105 = vmatpush1.bf16.msra.mxu0 %v9305_v45  ;;  %4989 = vmatprep.subr.bf16.mxu1 %v9316_v50  ;;  %v9377_v45 = vld [vmem:[%s13017_s1 + $0x82c] ss:$28 sps:$4 sm:$0xff]  }
 0x1b2   :  { %5106 = vmatprep.subr.bf16.mxu0 %v9313_v47  ;;  %v9375_v47 = vld [vmem:[%s13017_s1 + $0x828] ss:$28 sps:$4 sm:$0xff]   ;;  %v9379_v50 = vld [vmem:[%s13017_s1 + $0x130] ss:$28 sps:$4 sm:$0xff]  }
 0x1b4   :  { %4990 = vmatpush1.bf16.msra.mxu1 %v9314_v53  ;;  %v9383_v53 = vld [vmem:[%s13017_s1 + $0x328] ss:$28 sps:$4 sm:$0xff]  }
 0x1b5   :  { %5107 = vmatpush1.bf16.msra.mxu0 %v9311_v52  ;;  %4991 = vmatprep.subr.bf16.mxu1 %v9322_v55  ;;  %v9382_v52 = vld [vmem:[%s13017_s1 + $0x864] ss:$28 sps:$4 sm:$0xff]  }
 0x1b6   :  { %5108 = vmatprep.subr.bf16.mxu0 %v9319_v25  ;;  %v9380_v25 = vld [vmem:[%s13017_s1 + $0x860] ss:$28 sps:$4 sm:$0xff]   ;;  %v9384_v55 = vld [vmem:[%s13017_s1 + $0x168] ss:$28 sps:$4 sm:$0xff]  }
 0x1b8   :  { %4992 = vmatpush1.bf16.msra.mxu1 %v9320_v57  ;;  %v9388_v57 = vld [vmem:[%s13017_s1 + $0x360] ss:$28 sps:$4 sm:$0xff]  }
 0x1b9   :  { %5109 = vmatpush1.bf16.msra.mxu0 %v9317_v56  ;;  %4993 = vmatprep.subr.bf16.mxu1 %v9328_v35  ;;  %v9387_v56 = vld [vmem:[%s13017_s1 + $0x89c] ss:$28 sps:$4 sm:$0xff]  }
 0x1ba   :  { %5110 = vmatprep.subr.bf16.mxu0 %v9325_v58  ;;  %v9385_v58 = vld [vmem:[%s13017_s1 + $0x898] ss:$28 sps:$4 sm:$0xff]   ;;  %v9389_v35 = vld [vmem:[%s13017_s1 + $0x1a0] ss:$28 sps:$4 sm:$0xff]  }
 0x1bc   :  { %4994 = vmatpush1.bf16.msra.mxu1 %v9326_v61  ;;  %v9393_v61 = vld [vmem:[%s13017_s1 + $0x558] ss:$28 sps:$4 sm:$0xff]  }
 0x1bd   :  { %5111 = vmatpush1.bf16.msra.mxu0 %v9323_v60  ;;  %4995 = vmatprep.subr.bf16.mxu1 %v9334_v49  ;;  %v9392_v60 = vld [vmem:[%s13017_s1 + $0x8d4] ss:$28 sps:$4 sm:$0xff]  }
 0x1be   :  { %5112 = vmatprep.subr.bf16.mxu0 %v9331_v63  ;;  %v9390_v63 = vld [vmem:[%s13017_s1 + $0x8d0] ss:$28 sps:$4 sm:$0xff]   ;;  %v9394_v49 = vld [vmem:[%s13017_s1 + $0x398] ss:$28 sps:$4 sm:$0xff]  }
 0x1c0   :  { %4996 = vmatpush1.bf16.msra.mxu1 %v9332_v2  ;;  %v9398_v2 = vld [vmem:[%s13017_s1 + $0x590] ss:$28 sps:$4 sm:$0xff]  }
 0x1c1   :  { %5113 = vmatpush1.bf16.msra.mxu0 %v9329_v0  ;;  %5006 = vmatprep.subr.bf16.mxu1 %v9340_v5  ;;  %v9397_v0 = vld [vmem:[%s13017_s1 + $0x90c] ss:$28 sps:$4 sm:$0xff]  }
 0x1c2   :  { %5114 = vmatprep.subr.bf16.mxu0 %v9337_v4  ;;  %v9395_v4 = vld [vmem:[%s13017_s1 + $0x908] ss:$28 sps:$4 sm:$0xff]   ;;  %v9399_v5 = vld [vmem:[%s13017_s1 + $0x3d0] ss:$28 sps:$4 sm:$0xff]  }
 0x1c3   :  { %4998 = vmatmul.mubr.bf16.vlgmr.msra.gmra.mrb[4].mxu1 %v11105_v24 }
 0x1c4   :  { %5007 = vmatpush1.bf16.msra.mxu1 %v9338_v7  ;;  %5038 = vmatprep.mubr.bf16.mxu1 %v9991_v34  ;;  %v9403_v7 = vld [vmem:[%s13017_s1 + $0x5c8] ss:$28 sps:$4 sm:$0xff]  }
 0x1c5   :  { %5115 = vmatpush1.bf16.msra.mxu0 %v9335_v40  ;;  %5008 = vmatprep.subr.bf16.mxu1 %v9346_v9  ;;  %v9402_v40 = vld [vmem:[%s13017_s1 + $0x944] ss:$28 sps:$4 sm:$0xff]   ;;  %v9407_v9 = vld [vmem:[%s13017_s1 + $0x97c] ss:$28 sps:$4 sm:$0xff]  }
 0x1c6   :  { %5116 = vmatprep.subr.bf16.mxu0 %v9343_v8  ;;  %v9404_v8 = vld [vmem:[%s13017_s1 + $0x408] ss:$28 sps:$4 sm:$0xff]  }
 0x1c8   :  { %5009 = vmatpush1.bf16.msra.mxu1 %v9344_v11  ;;  %v9409_v11 = vld [vmem:[%s13017_s1 + $0x440] ss:$28 sps:$4 sm:$0xff]  }
 0x1c9   :  { %5117 = vmatpush1.bf16.msra.mxu0 %v9341_v10  ;;  %8389 = vmatprep.subr.bf16.mxu1 %v9353_v13  ;;  %v9408_v10 = vld [vmem:[%s13017_s1 + $0x600] ss:$28 sps:$4 sm:$0xff]   ;;  %v9413_v13 = vld [vmem:[%s13017_s1 + $0x638] ss:$28 sps:$4 sm:$0xff]  }
 0x1ca   :  { %5118 = vmatprep.subr.bf16.mxu0 %v9349_v12  ;;  %v9412_v12 = vld [vmem:[%s13017_s1 + $0x9b4] ss:$28 sps:$4 sm:$0xff]  }
 0x1cd   :  { %5119 = vmatpush1.bf16.msra.mxu0 %v9347_v14  ;;  %v9410_v14 = vld [vmem:[%s13017_s1 + $0x9b0] ss:$28 sps:$4 sm:$0xff]  }
 0x1ce   :  { %5129 = vmatprep.subr.bf16.mxu0 %v9352_v15  ;;  %v9414_v15 = vld [vmem:[%s13017_s1 + $0x478] ss:$28 sps:$4 sm:$0xff]  }
 0x1cf   :  { %8161 = vmatmul.mubr.msk.bf16.vlgmr.msra.gmra.mrb[4].mxu1 %vm4469_vm0, %v11141_v42 }
 0x1d0   :  { %5121 = vmatmul.mubr.bf16.vlgmr.msra.gmra.mrb[4].mxu0 %v10254_v18  ;;  %8390 = vmatpush3.bf16.msra.mxu1 %v9354_v19  ;;  %v9418_v19 = vld [vmem:[%s13017_s1 + $0x670] ss:$28 sps:$4 sm:$0xff]  }
 0x1d1   :  { %5130 = vmatpush1.bf16.msra.mxu0 %v9350_v16  ;;  %8391 = vmatprep.subr.bf16.mxu1 %v9358_v21  ;;  %v9417_v16 = vld [vmem:[%s13017_s1 + $0x9ec] ss:$28 sps:$4 sm:$0xff]  }
 0x1d2   :  { %5131 = vmatprep.subr.bf16.mxu0 %v9357_v20  ;;  %5366 = vmatprep.mubr.bf16.mxu1 %v10198_v62  ;;  %v9365_v62 = vld [vmem:[%s13017_s1 + $0x7b8] ss:$28 sps:$4 sm:$0xff]   ;;  %v9415_v20 = vld [vmem:[%s13017_s1 + $0x9e8] ss:$28 sps:$4 sm:$0xff]   ;;  %v9419_v21 = vld [vmem:[%s13017_s1 + $0x4b0] ss:$28 sps:$4 sm:$0xff]  }
 0x1d3   :  { %5161 = vmatprep.mubr.bf16.mxu0 %v10351_v51 }
 0x1d4   :  { %8392 = vmatpush3.bf16.msra.mxu1 %v9359_v23  ;;  %v9423_v23 = vld [vmem:[%s13017_s1 + $0x6a8] ss:$28 sps:$4 sm:$0xff]  }
 0x1d5   :  { %5132 = vmatpush1.bf16.msra.mxu0 %v9355_v22  ;;  %8393 = vmatprep.subr.bf16.mxu1 %v9363_v27  ;;  %v9422_v22 = vld [vmem:[%s13017_s1 + $0xa24] ss:$28 sps:$4 sm:$0xff]  }
 0x1d6   :  { %5133 = vmatprep.subr.bf16.mxu0 %v9362_v26  ;;  %v9420_v26 = vld [vmem:[%s13017_s1 + $0xa20] ss:$28 sps:$4 sm:$0xff]   ;;  %v9424_v27 = vld [vmem:[%s13017_s1 + $0x4e8] ss:$28 sps:$4 sm:$0xff]  }
 0x1d8   :  { %8394 = vmatpush3.bf16.msra.mxu1 %v9364_v28  ;;  %v9428_v28 = vld [vmem:[%s13017_s1 + $0x6e0] ss:$28 sps:$4 sm:$0xff]  }
 0x1d9   :  { %5134 = vmatpush1.bf16.msra.mxu0 %v9360_v59  ;;  %8395 = vmatprep.subr.bf16.mxu1 %v9368_v33  ;;  %v9427_v59 = vld [vmem:[%s13017_s1 + $0xa5c] ss:$28 sps:$4 sm:$0xff]  }
 0x1da   :  { %5135 = vmatprep.subr.bf16.mxu0 %v9367_v29  ;;  %v9425_v29 = vld [vmem:[%s13017_s1 + $0xa58] ss:$28 sps:$4 sm:$0xff]   ;;  %v9429_v33 = vld [vmem:[%s13017_s1 + $0x520] ss:$28 sps:$4 sm:$0xff]  }
 0x1dc   :  { %8396 = vmatpush3.bf16.msra.mxu1 %v9369_v37  ;;  %v9433_v37 = vld [vmem:[%s13017_s1 + $0x8d8] ss:$28 sps:$4 sm:$0xff]  }
 0x1dd   :  { %5136 = vmatpush1.bf16.msra.mxu0 %v9365_v62  ;;  %8397 = vmatprep.subr.bf16.mxu1 %v9373_v39  ;;  %v9432_v62 = vld [vmem:[%s13017_s1 + $0xa94] ss:$28 sps:$4 sm:$0xff]  }
 0x1de   :  { %5137 = vmatprep.subr.bf16.mxu0 %v9372_v38  ;;  %v9430_v38 = vld [vmem:[%s13017_s1 + $0xa90] ss:$28 sps:$4 sm:$0xff]   ;;  %v9434_v39 = vld [vmem:[%s13017_s1 + $0x718] ss:$28 sps:$4 sm:$0xff]  }
 0x1e0   :  { %8398 = vmatpush3.bf16.msra.mxu1 %v9374_v44  ;;  %v9438_v44 = vld [vmem:[%s13017_s1 + $0x910] ss:$28 sps:$4 sm:$0xff]  }
 0x1e1   :  { %5138 = vmatpush1.bf16.msra.mxu0 %v9370_v41  ;;  %8399 = vmatprep.subr.bf16.mxu1 %v9378_v46  ;;  %v9437_v41 = vld [vmem:[%s13017_s1 + $0xacc] ss:$28 sps:$4 sm:$0xff]  }
 0x1e2   :  { %5139 = vmatprep.subr.bf16.mxu0 %v9377_v45  ;;  %v9435_v45 = vld [vmem:[%s13017_s1 + $0xac8] ss:$28 sps:$4 sm:$0xff]   ;;  %v9439_v46 = vld [vmem:[%s13017_s1 + $0x750] ss:$28 sps:$4 sm:$0xff]  }
 0x1e4   :  { %8400 = vmatpush3.bf16.msra.mxu1 %v9379_v50  ;;  %v9443_v50 = vld [vmem:[%s13017_s1 + $0x948] ss:$28 sps:$4 sm:$0xff]  }
 0x1e5   :  { %5140 = vmatpush1.bf16.msra.mxu0 %v9375_v47  ;;  %8401 = vmatprep.subr.bf16.mxu1 %v9383_v53  ;;  %v9442_v47 = vld [vmem:[%s13017_s1 + $0xb04] ss:$28 sps:$4 sm:$0xff]   ;;  %v9447_v53 = vld [vmem:[%s13017_s1 + $0xb3c] ss:$28 sps:$4 sm:$0xff]  }
 0x1e6   :  { %5141 = vmatprep.subr.bf16.mxu0 %v9382_v52  ;;  %v9440_v52 = vld [vmem:[%s13017_s1 + $0xb00] ss:$28 sps:$4 sm:$0xff]  }
 0x1e8   :  { %8402 = vmatpush3.bf16.msra.mxu1 %v9384_v55  ;;  %v9449_v55 = vld [vmem:[%s13017_s1 + $0x7c0] ss:$28 sps:$4 sm:$0xff]  }
 0x1e9   :  { %5142 = vmatpush1.bf16.msra.mxu0 %v9380_v25  ;;  %8403 = vmatprep.subr.bf16.mxu1 %v9388_v57  ;;  %v9448_v25 = vld [vmem:[%s13017_s1 + $0x980] ss:$28 sps:$4 sm:$0xff]   ;;  %v9452_v57 = vld [vmem:[%s13017_s1 + $0xb74] ss:$28 sps:$4 sm:$0xff]  }
 0x1ea   :  { %5143 = vmatprep.subr.bf16.mxu0 %v9387_v56  ;;  %v908_v56 = vsub.s32 0, %v10152_v43 }
 0x1ec   :  { %8404 = vmatpush3.bf16.msra.mxu1 %v9389_v35  ;;  %v11782_v35 = vld [vmem:[%s13018_s2] sm:$0x7f] }
 0x1ed   :  { %5144 = vmatpush1.bf16.msra.mxu0 %v9385_v58  ;;  %8411 = vmatprep.subr.bf16.mxu1 %v9393_v61  ;;  %v9453_v58 = vld [vmem:[%s13017_s1 + $0x9b8] ss:$28 sps:$4 sm:$0xff]   ;;  %v9450_v61 = vld [vmem:[%s13017_s1 + $0xb70] ss:$28 sps:$4 sm:$0xff]  }
 0x1ee   :  { %5145 = vmatprep.subr.bf16.mxu0 %v9392_v60  ;;  %v912_v60 = vsub.s32 1, %v10152_v43 }
 0x1ef   :  { %5367 = vmatmul.mubr.bf16.vlgmr.msra.gmra.mrb[8].mxu1 %v10252_v17  ;;  %v9400_v17 = vld [vmem:[%s13017_s1 + $0x940] ss:$28 sps:$4 sm:$0xff]  }
 0x1f0   :  { %8412 = vmatpush3.bf16.msra.mxu1 %v9394_v49  ;;  %5406 = vmatprep.mubr.bf16.mxu1 %v10209_v3  ;;  %v9405_v3 = vld [vmem:[%s13017_s1 + $0x978] ss:$28 sps:$4 sm:$0xff]   ;;  %v909_v49 = vrot.slane %v11782_v35, %v908_v56 }
 0x1f1   :  { %5146 = vmatpush1.bf16.msra.mxu0 %v9390_v63  ;;  %8413 = vmatprep.subr.bf16.mxu1 %v9398_v2  ;;  %v9454_v63 = vld [vmem:[%s13017_s1 + $0x7f8] ss:$28 sps:$4 sm:$0xff]   ;;  %v9458_v2 = vld [vmem:[%s13017_s1 + $0x9f0] ss:$28 sps:$4 sm:$0xff]  }
 0x1f2   :  { %5147 = vmatprep.subr.bf16.mxu0 %v9397_v0  ;;  %v9457_v0 = vld [vmem:[%s13017_s1 + $0xbac] ss:$28 sps:$4 sm:$0xff]  }
 0x1f4   :  { %8414 = vmatpush3.bf16.msra.mxu1 %v9399_v5  ;;  %v9455_v5 = vld [vmem:[%s13017_s1 + $0xba8] ss:$28 sps:$4 sm:$0xff]  }
 0x1f5   :  { %5148 = vmatpush1.bf16.msra.mxu0 %v9395_v4  ;;  %8415 = vmatprep.subr.bf16.mxu1 %v9403_v7  ;;  %v913_v4 = vrot.slane %v11782_v35, %v912_v60  ;;  %v9462_v7 = vld [vmem:[%s13017_s1 + $0xbe4] ss:$28 sps:$4 sm:$0xff]  }
 0x1f6   :  { %5149 = vmatprep.subr.bf16.mxu0 %v9402_v40  ;;  %v9459_v40 = vld [vmem:[%s13017_s1 + $0x830] ss:$28 sps:$4 sm:$0xff]  }
 0x1f8   :  { %8416 = vmatpush3.bf16.msra.mxu1 %v9404_v8  ;;  %v4508_v8 = vadd.f32 %v10973_v30, %v909_v49  ;;  %v9467_v30 = vld [vmem:[%s13017_s1 + $0xc1c] ss:$28 sps:$4 sm:$0xff]  }
 0x1f9   :  { %5150 = vmatpush1.bf16.msra.mxu0 %v9400_v17  ;;  %8417 = vmatprep.subr.bf16.mxu1 %v9408_v10  ;;  %v9463_v17 = vld [vmem:[%s13017_s1 + $0xa28] ss:$28 sps:$4 sm:$0xff]  }
 0x1fa   :  { %5151 = vmatprep.subr.bf16.mxu0 %v9407_v9  ;;  %v4510_v9 = vadd.f32 %v10975_v32, %v913_v4  ;;  %v9468_v32 = vld [vmem:[%s13017_s1 + $0xa60] ss:$28 sps:$4 sm:$0xff]  }
 0x1fc   :  { %8418 = vmatpush3.bf16.msra.mxu1 %v9409_v11  ;;  %v9464_v11 = vld [vmem:[%s13017_s1 + $0x868] ss:$28 sps:$4 sm:$0xff]  }
 0x1fd   :  { %5152 = vmatpush1.bf16.msra.mxu0 %v9405_v3  ;;  %8419 = vmatprep.subr.bf16.mxu1 %v9413_v13  ;;  %v9460_v3 = vld [vmem:[%s13017_s1 + $0xbe0] ss:$28 sps:$4 sm:$0xff]  }
 0x1fe   :  { %5153 = vmatprep.subr.bf16.mxu0 %v9412_v12 }
 0x200   :  { %8420 = vmatpush3.bf16.msra.mxu1 %v9414_v15 }
 0x201   :  { %5154 = vmatpush1.bf16.msra.mxu0 %v9410_v14  ;;  %8421 = vmatprep.subr.bf16.mxu1 %v9418_v19  ;;  %v9465_v19 = vld [vmem:[%s13017_s1 + $0xc18] ss:$28 sps:$4 sm:$0xff]  }
 0x202   :  { %5155 = vmatprep.subr.bf16.mxu0 %v9417_v16 }
 0x204   :  { %8422 = vmatpush3.bf16.msra.mxu1 %v9419_v21  ;;  %v9472_v21 = vld [vmem:[%s13017_s1 + $0xc54] ss:$28 sps:$4 sm:$0xff]  }
 0x205   :  { %5156 = vmatpush1.bf16.msra.mxu0 %v9415_v20  ;;  %8423 = vmatprep.subr.bf16.mxu1 %v9423_v23  ;;  %v9469_v20 = vld [vmem:[%s13017_s1 + $0x8a0] ss:$28 sps:$4 sm:$0xff]   ;;  %v9470_v23 = vld [vmem:[%s13017_s1 + $0xc50] ss:$28 sps:$4 sm:$0xff]  }
 0x206   :  { %5157 = vmatprep.subr.bf16.mxu0 %v9422_v22  ;;  %v9473_v22 = vld [vmem:[%s13017_s1 + $0xc58] ss:$28 sps:$4 sm:$0xff]  }
 0x208   :  { %8424 = vmatpush3.bf16.msra.mxu1 %v9424_v27  ;;  %v9477_v27 = vld [vmem:[%s13017_s1 + $0xc8c] ss:$28 sps:$4 sm:$0xff]  }
 0x209   :  { %5158 = vmatpush1.bf16.msra.mxu0 %v9420_v26  ;;  %8425 = vmatprep.subr.bf16.mxu1 %v9428_v28  ;;  %v9474_v26 = vld [vmem:[%s13017_s1 + $0xa98] ss:$28 sps:$4 sm:$0xff]   ;;  %v9475_v28 = vld [vmem:[%s13017_s1 + $0xc88] ss:$28 sps:$4 sm:$0xff]  }
 0x20a   :  { %5159 = vmatprep.subr.bf16.mxu0 %v9427_v59  ;;  %v9478_v59 = vld [vmem:[%s13017_s1 + $0xc90] ss:$28 sps:$4 sm:$0xff]  }
 0x20c   :  { %8426 = vmatpush3.bf16.msra.mxu1 %v9429_v33  ;;  %v9482_v33 = vld [vmem:[%s13017_s1 + $0xcc4] ss:$28 sps:$4 sm:$0xff]  }
 0x20d   :  { %5160 = vmatpush1.bf16.msra.mxu0 %v9425_v29  ;;  %8433 = vmatprep.subr.bf16.mxu1 %v9433_v37  ;;  %v9479_v29 = vld [vmem:[%s13017_s1 + $0xad0] ss:$28 sps:$4 sm:$0xff]   ;;  %v9484_v37 = vld [vmem:[%s13017_s1 + $0xb08] ss:$28 sps:$4 sm:$0xff]  }
 0x20e   :  { %5170 = vmatprep.subr.bf16.mxu0 %v9432_v62  ;;  %v9480_v62 = vld [vmem:[%s13017_s1 + $0xcc0] ss:$28 sps:$4 sm:$0xff]  }
 0x20f   :  { %5407 = vmatmul.mubr.bf16.vlgmr.msra.gmra.mrb[12].mxu1 %v10254_v18  ;;  %v9444_v18 = vld [vmem:[%s13017_s1 + $0x788] ss:$28 sps:$4 sm:$0xff]  }
 0x210   :  { %5162 = vmatmul.mubr.bf16.vlgmr.msra.gmra.mrb[4].mxu0 %v10471_v31  ;;  %8434 = vmatpush3.bf16.msra.mxu1 %v9434_v39  ;;  %v9485_v39 = vld [vmem:[%s13017_s1 + $0xcf8] ss:$28 sps:$4 sm:$0xff]  }
 0x211   :  { %5171 = vmatpush1.bf16.msra.mxu0 %v9430_v38  ;;  %8435 = vmatprep.subr.bf16.mxu1 %v9438_v44  ;;  %v9487_v38 = vld [vmem:[%s13017_s1 + $0xcfc] ss:$28 sps:$4 sm:$0xff]   ;;  %v9492_v44 = vld [vmem:[%s13017_s1 + $0xd34] ss:$28 sps:$4 sm:$0xff]  }
 0x212   :  { %5172 = vmatprep.subr.bf16.mxu0 %v9437_v41  ;;  %5446 = vmatprep.mubr.bf16.mxu1 %v10351_v51  ;;  %v9445_v51 = vld [vmem:[%s13017_s1 + $0xb38] ss:$28 sps:$4 sm:$0xff]   ;;  %v9489_v41 = vld [vmem:[%s13017_s1 + $0xb40] ss:$28 sps:$4 sm:$0xff]  }
 0x213   :  { %5202 = vmatprep.mubr.bf16.mxu0 %v10485_v36 }
 0x214   :  { %8436 = vmatpush3.bf16.msra.mxu1 %v9439_v46  ;;  %v9490_v46 = vld [vmem:[%s13017_s1 + $0xd30] ss:$28 sps:$4 sm:$0xff]  }
 0x215   :  { %5173 = vmatpush1.bf16.msra.mxu0 %v9435_v45  ;;  %8437 = vmatprep.subr.bf16.mxu1 %v9443_v50  ;;  %v9493_v45 = vld [vmem:[%s13017_s1 + $0xd38] ss:$28 sps:$4 sm:$0xff]   ;;  %v9497_v50 = vld [vmem:[%s13017_s1 + $0xd6c] ss:$28 sps:$4 sm:$0xff]  }
 0x216   :  { %5174 = vmatprep.subr.bf16.mxu0 %v9442_v47  ;;  %v9494_v47 = vld [vmem:[%s13017_s1 + $0xb78] ss:$28 sps:$4 sm:$0xff]  }
 0x218   :  { %8438 = vmatpush3.bf16.msra.mxu1 %v9444_v18  ;;  %v9495_v18 = vld [vmem:[%s13017_s1 + $0xd68] ss:$28 sps:$4 sm:$0xff]  }
 0x219   :  { %5175 = vmatpush1.bf16.msra.mxu0 %v9440_v52  ;;  %8439 = vmatprep.subr.bf16.mxu1 %v9448_v25  ;;  %v9498_v52 = vld [vmem:[%s13017_s1 + $0xd70] ss:$28 sps:$4 sm:$0xff]   ;;  %v9502_v25 = vld [vmem:[%s13017_s1 + $0xda4] ss:$28 sps:$4 sm:$0xff]  }
 0x21a   :  { %5176 = vmatprep.subr.bf16.mxu0 %v9447_v53  ;;  %v9499_v53 = vld [vmem:[%s13017_s1 + $0xbb0] ss:$28 sps:$4 sm:$0xff]  }
 0x21c   :  { %8440 = vmatpush3.bf16.msra.mxu1 %v9449_v55 }
 0x21d   :  { %5177 = vmatpush1.bf16.msra.mxu0 %v9445_v51  ;;  %8441 = vmatprep.subr.bf16.mxu1 %v9453_v58  ;;  %v9503_v51 = vld [vmem:[%s13017_s1 + $0xda8] ss:$28 sps:$4 sm:$0xff]  }
 0x21e   :  { %5178 = vmatprep.subr.bf16.mxu0 %v9452_v57 }
 0x220   :  { %8442 = vmatpush3.bf16.msra.mxu1 %v9454_v63 }
 0x221   :  { %5179 = vmatpush1.bf16.msra.mxu0 %v9450_v61  ;;  %8443 = vmatprep.subr.bf16.mxu1 %v9458_v2 }
 0x222   :  { %5180 = vmatprep.subr.bf16.mxu0 %v9457_v0 }
 0x223   :  { %v4753_v10 = vpop.f32.mrb[0].mxu0 }
 0x224   :  { %v11823_v12 = vadd.f32 %v4753_v10, %v4508_v8  ;;  %v4755_v13 = vpop.f32.mrb[1].mxu0  ;;  %8444 = vmatpush3.bf16.msra.mxu1 %v9459_v40 }
 0x225   :  { %v11831_v14 = vadd.f32 %v4755_v13, %v4510_v9  ;;  %5181 = vmatpush1.bf16.msra.mxu0 %v9455_v5  ;;  %v4757_v15 = vpop.f32.mrb[2].mxu0  ;;  %8445 = vmatprep.subr.bf16.mxu1 %v9463_v17 }
 0x226   :  { %v4758_v16 = vpop.f32.mrb[3].mxu0  ;;  %5182 = vmatprep.subr.bf16.mxu0 %v9462_v7 }
 0x228   :  { %8446 = vmatpush3.bf16.msra.mxu1 %v9464_v11 }
 0x229   :  { %5183 = vmatpush1.bf16.msra.mxu0 %v9460_v3  ;;  %8447 = vmatprep.subr.bf16.mxu1 %v9468_v32 }
 0x22a   :  { %5184 = vmatprep.subr.bf16.mxu0 %v9467_v30 }
 0x22c   :  { %8448 = vmatpush3.bf16.msra.mxu1 %v9469_v20 }
 0x22d   :  { %5185 = vmatpush1.bf16.msra.mxu0 %v9465_v19  ;;  %8455 = vmatprep.subr.bf16.mxu1 %v9473_v22 }
 0x22e   :  { %5186 = vmatprep.subr.bf16.mxu0 %v9472_v21 }
 0x22f   :  { %5447 = vmatmul.mubr.bf16.vlgmr.msra.gmra.mrb[16].mxu1 %v10471_v31  ;;  %v9483_v31 = vld [vmem:[%s13017_s1 + $0xcc8] ss:$28 sps:$4 sm:$0xff]  }
 0x230   :  { %8456 = vmatpush3.bf16.msra.mxu1 %v9474_v26  ;;  %5486 = vmatprep.mubr.bf16.mxu1 %v10485_v36  ;;  %v9488_v36 = vld [vmem:[%s13017_s1 + $0xd00] ss:$28 sps:$4 sm:$0xff]  }
 0x231   :  { %5187 = vmatpush1.bf16.msra.mxu0 %v9470_v23  ;;  %8457 = vmatprep.subr.bf16.mxu1 %v9478_v59 }
 0x232   :  { %5188 = vmatprep.subr.bf16.mxu0 %v9477_v27 }
 0x234   :  { %8458 = vmatpush3.bf16.msra.mxu1 %v9479_v29 }
 0x235   :  { %5189 = vmatpush1.bf16.msra.mxu0 %v9475_v28  ;;  %8459 = vmatprep.subr.bf16.mxu1 %v9483_v31 }
 0x236   :  { %5190 = vmatprep.subr.bf16.mxu0 %v9482_v33 }
 0x238   :  { %8460 = vmatpush3.bf16.msra.mxu1 %v9484_v37 }
 0x239   :  { %5191 = vmatpush1.bf16.msra.mxu0 %v9480_v62  ;;  %8461 = vmatprep.subr.bf16.mxu1 %v9488_v36 }
 0x23a   :  { %5192 = vmatprep.subr.bf16.mxu0 %v9487_v38 }
 0x23c   :  { %8462 = vmatpush3.bf16.msra.mxu1 %v9489_v41 }
 0x23d   :  { %5193 = vmatpush1.bf16.msra.mxu0 %v9485_v39  ;;  %8463 = vmatprep.subr.bf16.mxu1 %v9493_v45 }
 0x23e   :  { %5194 = vmatprep.subr.bf16.mxu0 %v9492_v44 }
 0x240   :  { %8464 = vmatpush3.bf16.msra.mxu1 %v9494_v47 }
 0x241   :  { %5195 = vmatpush1.bf16.msra.mxu0 %v9490_v46  ;;  %8465 = vmatprep.subr.bf16.mxu1 %v9498_v52 }
 0x242   :  { %5196 = vmatprep.subr.bf16.mxu0 %v9497_v50 }
 0x243   :  { %12 = vsyncpa [#allocation3], 0  ;;  %v9500_v55 = vld [vmem:[%s13017_s1 + $0xda0] ss:$28 sps:$4 sm:$0xff]   ;;  %v9504_v57 = vld [vmem:[%s13017_s1 + $0xbe8] ss:$28 sps:$4 sm:$0xff]  }
 0x244   :  { %8466 = vmatpush3.bf16.msra.mxu1 %v9499_v53  ;;  %v9507_v58 = vld [vmem:[%s13017_s1 + $0xddc] ss:$28 sps:$4 sm:$0xff]   ;;  %v9512_v0 = vld [vmem:[%s13017_s1 + $0xe14] ss:$28 sps:$4 sm:$0xff]   ;;  %v9517_v40 = vld [vmem:[%s13017_s1 + $0xe4c] ss:$28 sps:$4 sm:$0xff]  }
 0x245   :  { %5197 = vmatpush1.bf16.msra.mxu0 %v9495_v18  ;;  %8467 = vmatprep.subr.bf16.mxu1 %v9503_v51  ;;  %v9508_v61 = vld [vmem:[%s13017_s1 + $0xde0] ss:$28 sps:$4 sm:$0xff]   ;;  %v9505_v63 = vld [vmem:[%s13017_s1 + $0xdd8] ss:$28 sps:$4 sm:$0xff]   ;;  %v9510_v4 = vld [vmem:[%s13017_s1 + $0xe10] ss:$28 sps:$4 sm:$0xff]  }
 0x246   :  { %5198 = vmatprep.subr.bf16.mxu0 %v9502_v25  ;;  %v9509_v49 = vld [vmem:[%s13017_s1 + $0xc20] ss:$28 sps:$4 sm:$0xff]   ;;  %v9513_v2 = vld [vmem:[%s13017_s1 + $0xfd8] ss:$28 sps:$4 sm:$0xff]   ;;  %v9518_v7 = vld [vmem:[%s13017_s1 + $0x1010] ss:$28 sps:$4 sm:$0xff]  }
 0x247   :  { %v9514_v5 = vld [vmem:[%s13017_s1 + $0xe18] ss:$28 sps:$4 sm:$0xff]   ;;  %v9515_v17 = vld [vmem:[%s13017_s1 + $0xe48] ss:$28 sps:$4 sm:$0xff]   ;;  %v9519_v8 = vld [vmem:[%s13017_s1 + $0xe50] ss:$28 sps:$4 sm:$0xff]  }
 0x248   :  { %8468 = vmatpush3.bf16.msra.mxu1 %v9504_v57  ;;  %v9522_v9 = vld [vmem:[%s13017_s1 + $0xe84] ss:$28 sps:$4 sm:$0xff]   ;;  %v9527_v11 = vld [vmem:[%s13017_s1 + $0xebc] ss:$28 sps:$4 sm:$0xff]   ;;  %v9532_v32 = vld [vmem:[%s13017_s1 + $0xef4] ss:$28 sps:$4 sm:$0xff]  }
 0x249   :  { %5199 = vmatpush1.bf16.msra.mxu0 %v9500_v55  ;;  %8469 = vmatprep.subr.bf16.mxu1 %v9508_v61  ;;  %v9520_v10 = vld [vmem:[%s13017_s1 + $0xe80] ss:$28 sps:$4 sm:$0xff]   ;;  %v9524_v3 = vld [vmem:[%s13017_s1 + $0xe88] ss:$28 sps:$4 sm:$0xff]   ;;  %v9525_v13 = vld [vmem:[%s13017_s1 + $0xeb8] ss:$28 sps:$4 sm:$0xff]  }
 0x24a   :  { %5200 = vmatprep.subr.bf16.mxu0 %v9507_v58  ;;  %v9529_v30 = vld [vmem:[%s13017_s1 + $0xec0] ss:$28 sps:$4 sm:$0xff]   ;;  %v9533_v15 = vld [vmem:[%s13017_s1 + $0x10b8] ss:$28 sps:$4 sm:$0xff]   ;;  %v9530_v16 = vld [vmem:[%s13017_s1 + $0xef0] ss:$28 sps:$4 sm:$0xff]  }
 0x24b   :  { %v9534_v19 = vld [vmem:[%s13017_s1 + $0xef8] ss:$28 sps:$4 sm:$0xff]   ;;  %v9537_v20 = vld [vmem:[%s13017_s1 + $0xf2c] ss:$28 sps:$4 sm:$0xff]   ;;  %v9542_v26 = vld [vmem:[%s13017_s1 + $0xf64] ss:$28 sps:$4 sm:$0xff]  }
 0x24c   :  { %8470 = vmatpush3.bf16.msra.mxu1 %v9509_v49  ;;  %v9538_v21 = vld [vmem:[%s13017_s1 + $0x10f0] ss:$28 sps:$4 sm:$0xff]   ;;  %v9535_v22 = vld [vmem:[%s13017_s1 + $0xf28] ss:$28 sps:$4 sm:$0xff]   ;;  %v9540_v59 = vld [vmem:[%s13017_s1 + $0xf60] ss:$28 sps:$4 sm:$0xff]  }
 0x24d   :  { %5201 = vmatpush1.bf16.msra.mxu0 %v9505_v63  ;;  %8477 = vmatprep.subr.bf16.mxu1 %v9513_v2  ;;  %v9539_v23 = vld [vmem:[%s13017_s1 + $0xf30] ss:$28 sps:$4 sm:$0xff]   ;;  %v9543_v27 = vld [vmem:[%s13017_s1 + $0x1128] ss:$28 sps:$4 sm:$0xff]   ;;  %v9547_v29 = vld [vmem:[%s13017_s1 + $0xf9c] ss:$28 sps:$4 sm:$0xff]  }
 0x24e   :  { %5211 = vmatprep.subr.bf16.mxu0 %v9512_v0  ;;  %v9544_v28 = vld [vmem:[%s13017_s1 + $0xf68] ss:$28 sps:$4 sm:$0xff]   ;;  %v9548_v33 = vld [vmem:[%s13017_s1 + $0x1160] ss:$28 sps:$4 sm:$0xff]   ;;  %v9545_v31 = vld [vmem:[%s13017_s1 + $0xf98] ss:$28 sps:$4 sm:$0xff]  }
 0x24f   :  { %5487 = vmatmul.mubr.bf16.vlgmr.msra.gmra.mrb[20].mxu1 %v10687_v48  ;;  %v9549_v62 = vld [vmem:[%s13017_s1 + $0xfa0] ss:$28 sps:$4 sm:$0xff]   ;;  %v9552_v37 = vld [vmem:[%s13017_s1 + $0xfd4] ss:$28 sps:$4 sm:$0xff]   ;;  %v9557_v41 = vld [vmem:[%s13017_s1 + $0x100c] ss:$28 sps:$4 sm:$0xff]  }
 0x250   :  { %5203 = vmatmul.mubr.bf16.vlgmr.msra.gmra.mrb[4].mxu0 %v10687_v48  ;;  %8478 = vmatpush3.bf16.msra.mxu1 %v9514_v5  ;;  %v9523_v48 = vld [vmem:[%s13017_s1 + $0x1048] ss:$28 sps:$4 sm:$0xff]   ;;  %v9553_v38 = vld [vmem:[%s13017_s1 + $0x1358] ss:$28 sps:$4 sm:$0xff]   ;;  %v9550_v36 = vld [vmem:[%s13017_s1 + $0xfd0] ss:$28 sps:$4 sm:$0xff]  }
 0x251   :  { %5212 = vmatpush1.bf16.msra.mxu0 %v9510_v4  ;;  %8479 = vmatprep.subr.bf16.mxu1 %v9518_v7  ;;  %v9554_v39 = vld [vmem:[%s13017_s1 + $0x1198] ss:$28 sps:$4 sm:$0xff]   ;;  %v9558_v44 = vld [vmem:[%s13017_s1 + $0x1390] ss:$28 sps:$4 sm:$0xff]   ;;  %v9555_v45 = vld [vmem:[%s13017_s1 + $0x1008] ss:$28 sps:$4 sm:$0xff]  }
 0x252   :  { %5213 = vmatprep.subr.bf16.mxu0 %v9517_v40  ;;  %5526 = vmatprep.mubr.bf16.mxu1 %v10698_v54  ;;  %v9559_v46 = vld [vmem:[%s13017_s1 + $0x11d0] ss:$28 sps:$4 sm:$0xff]   ;;  %v9562_v47 = vld [vmem:[%s13017_s1 + $0x1044] ss:$28 sps:$4 sm:$0xff]   ;;  %v9567_v53 = vld [vmem:[%s13017_s1 + $0x107c] ss:$28 sps:$4 sm:$0xff]  }
 0x253   :  { %5243 = vmatprep.mubr.bf16.mxu0 %v10698_v54  ;;  %v9528_v54 = vld [vmem:[%s13017_s1 + $0x1080] ss:$28 sps:$4 sm:$0xff]   ;;  %v9563_v50 = vld [vmem:[%s13017_s1 + $0x13c8] ss:$28 sps:$4 sm:$0xff]   ;;  %v9565_v51 = vld [vmem:[%s13017_s1 + $0x1078] ss:$28 sps:$4 sm:$0xff]  }
 0x254   :  { %8480 = vmatpush3.bf16.msra.mxu1 %v9519_v8  ;;  %v9560_v52 = vld [vmem:[%s13017_s1 + $0x1040] ss:$28 sps:$4 sm:$0xff]   ;;  %v9564_v18 = vld [vmem:[%s13017_s1 + $0x1208] ss:$28 sps:$4 sm:$0xff]   ;;  %v9572_v57 = vld [vmem:[%s13017_s1 + $0x10b4] ss:$28 sps:$4 sm:$0xff]  }
 0x255   :  { %5214 = vmatpush1.bf16.msra.mxu0 %v9515_v17  ;;  %8481 = vmatprep.subr.bf16.mxu1 %v9523_v48  ;;  %v9568_v25 = vld [vmem:[%s13017_s1 + $0x1400] ss:$28 sps:$4 sm:$0xff]   ;;  %v9573_v58 = vld [vmem:[%s13017_s1 + $0x1438] ss:$28 sps:$4 sm:$0xff]   ;;  %v9570_v61 = vld [vmem:[%s13017_s1 + $0x10b0] ss:$28 sps:$4 sm:$0xff]  }
 0x256   :  { %5215 = vmatprep.subr.bf16.mxu0 %v9522_v9  ;;  %v9569_v55 = vld [vmem:[%s13017_s1 + $0x1240] ss:$28 sps:$4 sm:$0xff]   ;;  %v9574_v63 = vld [vmem:[%s13017_s1 + $0x1278] ss:$28 sps:$4 sm:$0xff]   ;;  %v9577_v49 = vld [vmem:[%s13017_s1 + $0x10ec] ss:$28 sps:$4 sm:$0xff]  }
 0x257   :  { %v9578_v0 = vld [vmem:[%s13017_s1 + $0x1470] ss:$28 sps:$4 sm:$0xff]   ;;  %v9575_v2 = vld [vmem:[%s13017_s1 + $0x10e8] ss:$28 sps:$4 sm:$0xff]   ;;  %v9580_v7 = vld [vmem:[%s13017_s1 + $0x1120] ss:$28 sps:$4 sm:$0xff]  }
 0x258   :  { %8482 = vmatpush3.bf16.msra.mxu1 %v9524_v3  ;;  %v9579_v4 = vld [vmem:[%s13017_s1 + $0x12b0] ss:$28 sps:$4 sm:$0xff]   ;;  %v9582_v5 = vld [vmem:[%s13017_s1 + $0x1124] ss:$28 sps:$4 sm:$0xff]   ;;  %v9587_v8 = vld [vmem:[%s13017_s1 + $0x115c] ss:$28 sps:$4 sm:$0xff]  }
 0x259   :  { %5216 = vmatpush1.bf16.msra.mxu0 %v9520_v10  ;;  %8483 = vmatprep.subr.bf16.mxu1 %v9528_v54  ;;  %v9583_v40 = vld [vmem:[%s13017_s1 + $0x14a8] ss:$28 sps:$4 sm:$0xff]   ;;  %v9588_v9 = vld [vmem:[%s13017_s1 + $0x14e0] ss:$28 sps:$4 sm:$0xff]   ;;  %v9585_v48 = vld [vmem:[%s13017_s1 + $0x1158] ss:$28 sps:$4 sm:$0xff]  }
 0x25a   :  { %5217 = vmatprep.subr.bf16.mxu0 %v9527_v11  ;;  %v9584_v17 = vld [vmem:[%s13017_s1 + $0x12e8] ss:$28 sps:$4 sm:$0xff]   ;;  %v9589_v10 = vld [vmem:[%s13017_s1 + $0x1320] ss:$28 sps:$4 sm:$0xff]   ;;  %v9592_v3 = vld [vmem:[%s13017_s1 + $0x1194] ss:$28 sps:$4 sm:$0xff]  }
 0x25b   :  { %v9590_v11 = vld [vmem:[%s13017_s1 + $0x1190] ss:$28 sps:$4 sm:$0xff]   ;;  %v9593_v54 = vld [vmem:[%s13017_s1 + $0x1518] ss:$28 sps:$4 sm:$0xff]   ;;  %vm9993_vm1 = vmmov 0   ;;  %vm6826_vm2 = vcmask 130048  }
 0x25c   :  { %8484 = vmatpush3.bf16.msra.mxu1 %v9529_v30  ;;  %v9596_v30 = vld [vmem:[%s13017_s1 + $0x11cc] ss:$28 sps:$4 sm:$0xff]   ;;  %vm7369_vm3 = vcmask 64512   ;;  %vm7373_vm4 = vcmask 1043456   ;;  %s9994_s27 = smov [#allocation2]   ;;  %vm7457_vm5 = vcmask 74752  }
 0x25d   :  { %5218 = vmatpush1.bf16.msra.mxu0 %v9525_v13  ;;  %8485 = vmatprep.subr.bf16.mxu1 %v9533_v15  ;;  %v9992_v13 = vmov 0.0   ;;  %v9597_v15 = vld [vmem:[%s13017_s1 + $0x1550] ss:$28 sps:$4 sm:$0xff]  }
 0x25e   :  { %5219 = vmatprep.subr.bf16.mxu0 %v9532_v32  ;;  %v9594_v32 = vld [vmem:[%s13017_s1 + $0x11c8] ss:$28 sps:$4 sm:$0xff]  }
 0x260   :  { %8486 = vmatpush3.bf16.msra.mxu1 %v9534_v19  ;;  %v5615_v19 = vmax.f32 %v11831_v14, 0.0 }
 0x261   :  { %5220 = vmatpush1.bf16.msra.mxu0 %v9530_v16  ;;  %8487 = vmatprep.subr.bf16.mxu1 %v9538_v21  ;;  %v9600_v16 = vld [vmem:[%s13017_s1 + $0x1204] ss:$28 sps:$4 sm:$0xff]  }
 0x262   :  { %5221 = vmatprep.subr.bf16.mxu0 %v9537_v20  ;;  %v9598_v20 = vld [vmem:[%s13017_s1 + $0x1200] ss:$28 sps:$4 sm:$0xff]   ;;  %v12175_v14 = vpack.c.bf16 %v5615_v19, %v5615_v19 }
 0x263   :  { %v9601_v21 = vld [vmem:[%s13019_s3] ss:$16 sps:$4 sm:$0xff]  }
 0x264   :  { %8488 = vmatpush3.bf16.msra.mxu1 %v9539_v23  ;;  %v9604_v23 = vld [vmem:[%s13017_s1 + $0x1238] ss:$28 sps:$4 sm:$0xff]   ;;  %v9670_v19 = vld [vmem:[%s13017_s1 + $0x14a0] ss:$28 sps:$4 sm:$0xff]  }
 0x265   :  { %5222 = vmatpush1.bf16.msra.mxu0 %v9535_v22  ;;  %8489 = vmatprep.subr.bf16.mxu1 %v9543_v27  ;;  %v9606_v22 = vld [vmem:[%s13017_s1 + $0x123c] ss:$28 sps:$4 sm:$0xff]   ;;  %v9612_v27 = vld [vmem:[%s13017_s1 + $0x1274] ss:$28 sps:$4 sm:$0xff]  }
 0x266   :  { %5223 = vmatprep.subr.bf16.mxu0 %v9542_v26  ;;  %v9607_v26 = vld [vmem:[%s13019_s3 + $0x20] ss:$16 sps:$4 sm:$0xff]  }
 0x268   :  { %8490 = vmatpush3.bf16.msra.mxu1 %v9544_v28  ;;  %v9610_v28 = vld [vmem:[%s13017_s1 + $0x1270] ss:$28 sps:$4 sm:$0xff]  }
 0x269   :  { %5224 = vmatpush1.bf16.msra.mxu0 %v9540_v59  ;;  %8491 = vmatprep.subr.bf16.mxu1 %v9548_v33  ;;  %v9615_v59 = vld [vmem:[%s13019_s3 + $0x44] ss:$16 sps:$4 sm:$0xff]   ;;  %v9618_v33 = vld [vmem:[%s13017_s1 + $0x12ac] ss:$28 sps:$4 sm:$0xff]  }
 0x26a   :  { %5225 = vmatprep.subr.bf16.mxu0 %v9547_v29  ;;  %v9613_v29 = vld [vmem:[%s13019_s3 + $0x40] ss:$16 sps:$4 sm:$0xff]  }
 0x26c   :  { %8492 = vmatpush3.bf16.msra.mxu1 %v9549_v62  ;;  %v9616_v62 = vld [vmem:[%s13017_s1 + $0x12a8] ss:$28 sps:$4 sm:$0xff]  }
 0x26d   :  { %5226 = vmatpush1.bf16.msra.mxu0 %v9545_v31  ;;  %8499 = vmatprep.subr.bf16.mxu1 %v9553_v38  ;;  %v9621_v31 = vld [vmem:[%s13019_s3 + $0x64] ss:$16 sps:$4 sm:$0xff]  }
 0x26e   :  { %5227 = vmatprep.subr.bf16.mxu0 %v9552_v37  ;;  %v9619_v37 = vld [vmem:[%s13019_s3 + $0x60] ss:$16 sps:$4 sm:$0xff]  }
 0x26f   :  { %5527 = vmatmul.mubr.bf16.vlgmr.msra.gmra.mrb[24].mxu1 %v10893_v1  ;;  %v9624_v38 = vld [vmem:[%s13017_s1 + $0x12e4] ss:$28 sps:$4 sm:$0xff]  }
 0x270   :  { %8500 = vmatpush3.bf16.msra.mxu1 %v9554_v39  ;;  %5566 = vmatprep.mubr.bf16.mxu1 %v10907_v6 }
 0x271   :  { %5228 = vmatpush1.bf16.msra.mxu0 %v9550_v36  ;;  %8501 = vmatprep.subr.bf16.mxu1 %v9558_v44  ;;  %v9627_v36 = vld [vmem:[%s13019_s3 + $0x84] ss:$16 sps:$4 sm:$0xff]  }
 0x272   :  { %5229 = vmatprep.subr.bf16.mxu0 %v9557_v41 }
 0x274   :  { %8502 = vmatpush3.bf16.msra.mxu1 %v9559_v46  ;;  %v9625_v46 = vld [vmem:[%s13019_s3 + $0x80] ss:$16 sps:$4 sm:$0xff]  }
 0x275   :  { %5230 = vmatpush1.bf16.msra.mxu0 %v9555_v45  ;;  %8503 = vmatprep.subr.bf16.mxu1 %v9563_v50  ;;  %v9622_v45 = vld [vmem:[%s13017_s1 + $0x12e0] ss:$28 sps:$4 sm:$0xff]  }
 0x276   :  { %5231 = vmatprep.subr.bf16.mxu0 %v9562_v47  ;;  %v9630_v50 = vld [vmem:[%s13017_s1 + $0x131c] ss:$28 sps:$4 sm:$0xff]  }
 0x278   :  { %8504 = vmatpush3.bf16.msra.mxu1 %v9564_v18  ;;  %v9628_v18 = vld [vmem:[%s13017_s1 + $0x1318] ss:$28 sps:$4 sm:$0xff]  }
 0x279   :  { %5232 = vmatpush1.bf16.msra.mxu0 %v9560_v52  ;;  %8505 = vmatprep.subr.bf16.mxu1 %v9568_v25  ;;  %v9633_v52 = vld [vmem:[%s13019_s3 + $0xa4] ss:$16 sps:$4 sm:$0xff]  }
 0x27a   :  { %5233 = vmatprep.subr.bf16.mxu0 %v9567_v53  ;;  %v9631_v53 = vld [vmem:[%s13019_s3 + $0xa0] ss:$16 sps:$4 sm:$0xff]  }
 0x27b   :  { %v9636_v25 = vld [vmem:[%s13017_s1 + $0x1354] ss:$28 sps:$4 sm:$0xff]  }
 0x27c   :  { %8506 = vmatpush3.bf16.msra.mxu1 %v9569_v55  ;;  %v9634_v55 = vld [vmem:[%s13017_s1 + $0x1350] ss:$28 sps:$4 sm:$0xff]  }
 0x27d   :  { %5234 = vmatpush1.bf16.msra.mxu0 %v9565_v51  ;;  %8507 = vmatprep.subr.bf16.mxu1 %v9573_v58  ;;  %v9639_v51 = vld [vmem:[%s13019_s3 + $0xc4] ss:$16 sps:$4 sm:$0xff]   ;;  %v9642_v58 = vld [vmem:[%s13017_s1 + $0x138c] ss:$28 sps:$4 sm:$0xff]  }
 0x27e   :  { %5235 = vmatprep.subr.bf16.mxu0 %v9572_v57  ;;  %v9637_v57 = vld [vmem:[%s13019_s3 + $0xc0] ss:$16 sps:$4 sm:$0xff]  }
 0x280   :  { %8508 = vmatpush3.bf16.msra.mxu1 %v9574_v63  ;;  %v9640_v63 = vld [vmem:[%s13017_s1 + $0x1388] ss:$28 sps:$4 sm:$0xff]  }
 0x281   :  { %5236 = vmatpush1.bf16.msra.mxu0 %v9570_v61  ;;  %8509 = vmatprep.subr.bf16.mxu1 %v9578_v0  ;;  %v9645_v61 = vld [vmem:[%s13019_s3 + $0xe4] ss:$16 sps:$4 sm:$0xff]  }
 0x282   :  { %5237 = vmatprep.subr.bf16.mxu0 %v9577_v49  ;;  %v9643_v49 = vld [vmem:[%s13019_s3 + $0xe0] ss:$16 sps:$4 sm:$0xff]  }
 0x283   :  { %v9648_v0 = vld [vmem:[%s13017_s1 + $0x13c4] ss:$28 sps:$4 sm:$0xff]  }
 0x284   :  { %8510 = vmatpush3.bf16.msra.mxu1 %v9579_v4  ;;  %v9646_v4 = vld [vmem:[%s13017_s1 + $0x13c0] ss:$28 sps:$4 sm:$0xff]  }
 0x285   :  { %5238 = vmatpush1.bf16.msra.mxu0 %v9575_v2  ;;  %8511 = vmatprep.subr.bf16.mxu1 %v9583_v40  ;;  %v9651_v2 = vld [vmem:[%s13019_s3 + $0x104] ss:$16 sps:$4 sm:$0xff]   ;;  %v9654_v40 = vld [vmem:[%s13017_s1 + $0x13fc] ss:$28 sps:$4 sm:$0xff]  }
 0x286   :  { %5239 = vmatprep.subr.bf16.mxu0 %v9582_v5  ;;  %v9649_v5 = vld [vmem:[%s13019_s3 + $0x100] ss:$16 sps:$4 sm:$0xff]  }
 0x288   :  { %8512 = vmatpush3.bf16.msra.mxu1 %v9584_v17  ;;  %v9652_v17 = vld [vmem:[%s13017_s1 + $0x13f8] ss:$28 sps:$4 sm:$0xff]  }
 0x289   :  { %5240 = vmatpush1.bf16.msra.mxu0 %v9580_v7  ;;  %8513 = vmatprep.subr.bf16.mxu1 %v9588_v9  ;;  %v9657_v7 = vld [vmem:[%s13019_s3 + $0x124] ss:$16 sps:$4 sm:$0xff]  }
 0x28a   :  { %5241 = vmatprep.subr.bf16.mxu0 %v9587_v8  ;;  %v9655_v8 = vld [vmem:[%s13019_s3 + $0x120] ss:$16 sps:$4 sm:$0xff]  }
 0x28b   :  { %v9660_v9 = vld [vmem:[%s13017_s1 + $0x1434] ss:$28 sps:$4 sm:$0xff]  }
 0x28c   :  { %8514 = vmatpush3.bf16.msra.mxu1 %v9589_v10  ;;  %v9658_v10 = vld [vmem:[%s13017_s1 + $0x1430] ss:$28 sps:$4 sm:$0xff]  }
 0x28d   :  { %5242 = vmatpush1.bf16.msra.mxu0 %v9585_v48  ;;  %8546 = vmatprep.subr.bf16.mxu1 %v9992_v13  ;;  %v9663_v48 = vld [vmem:[%s13019_s3 + $0x144] ss:$16 sps:$4 sm:$0xff]  }
 0x28e   :  { %5252 = vmatprep.subr.bf16.mxu0 %v9592_v3  ;;  %v9661_v3 = vld [vmem:[%s13019_s3 + $0x140] ss:$16 sps:$4 sm:$0xff]  }
 0x28f   :  { %5567 = vmatmul.mubr.bf16.vlgmr.msra.gmra.mrb[28].mxu1 %v11105_v24 }
 0x290   :  { %5244 = vmatmul.mubr.bf16.vlgmr.msra.gmra.mrb[4].mxu0 %v10893_v1  ;;  %8547 = vmatpush3.bf16.msra.mxu1 %v9593_v54  ;;  %v9603_v1 = vld [vmem:[%s13019_s3 + $0x4] ss:$16 sps:$4 sm:$0xff]  }
 0x291   :  { %5253 = vmatpush1.bf16.msra.mxu0 %v9590_v11  ;;  %8548 = vmatprep.subr.bf16.mxu1 %v9992_v13  ;;  %v9666_v11 = vld [vmem:[%s13017_s1 + $0x146c] ss:$28 sps:$4 sm:$0xff]   ;;  %v9669_v54 = vld [vmem:[%s13019_s3 + $0x164] ss:$16 sps:$4 sm:$0xff]  }
 0x292   :  { %5254 = vmatprep.subr.bf16.mxu0 %v9596_v30  ;;  %8550 = vmatprep.mubr.msk.bf16.mxu1 %vm9993_vm1, %v9992_v13  ;;  %v9664_v13 = vld [vmem:[%s13017_s1 + $0x1468] ss:$28 sps:$4 sm:$0xff]   ;;  %v9667_v30 = vld [vmem:[%s13019_s3 + $0x160] ss:$16 sps:$4 sm:$0xff]  }
 0x293   :  { %5284 = vmatprep.mubr.bf16.mxu0 %v10907_v6  ;;  %v9609_v6 = vld [vmem:[%s13019_s3 + $0x24] ss:$16 sps:$4 sm:$0xff]  }
 0x294   :  { %8549 = vmatpush3.bf16.msra.mxu1 %v9597_v15  ;;  %v9675_v15 = vld [vmem:[%s13019_s3 + $0x184] ss:$16 sps:$4 sm:$0xff]  }
 0x295   :  { %5255 = vmatpush1.bf16.msra.mxu0 %v9594_v32  ;;  %6830 = vmatprep.subr.bf16.mxu1 %v9603_v1  ;;  %v9672_v32 = vld [vmem:[%s13017_s1 + $0x14a4] ss:$28 sps:$4 sm:$0xff]  }
 0x296   :  { %5256 = vmatprep.subr.bf16.mxu0 %v9600_v16 }
 0x297   :  { %8551 = vmatmul.mubr.msk.bf16.vlgmr.msra.gmra.mrb[32].mxu1 %vm4469_vm0, %v11141_v42 }
 0x298   :  { %6831 = vmatpush1.bf16.msra.mxu1 %v9601_v21  ;;  %6862 = vmatprep.mubr.bf16.mxu1 %v12175_v14 }
 0x299   :  { %5257 = vmatpush1.bf16.msra.mxu0 %v9598_v20  ;;  %6832 = vmatprep.subr.bf16.mxu1 %v9609_v6  ;;  %v9673_v20 = vld [vmem:[%s13019_s3 + $0x180] ss:$16 sps:$4 sm:$0xff]   ;;  %v9678_v6 = vld [vmem:[%s13017_s1 + $0x14dc] ss:$28 sps:$4 sm:$0xff]  }
 0x29a   :  { %5258 = vmatprep.subr.bf16.mxu0 %v9606_v22 }
 0x29c   :  { %6833 = vmatpush1.bf16.msra.mxu1 %v9607_v26 }
 0x29d   :  { %5259 = vmatpush1.bf16.msra.mxu0 %v9604_v23  ;;  %6834 = vmatprep.subr.bf16.mxu1 %v9615_v59  ;;  %v9681_v23 = vld [vmem:[%s13019_s3 + $0x1a4] ss:$16 sps:$4 sm:$0xff]  }
 0x29e   :  { %5260 = vmatprep.subr.bf16.mxu0 %v9612_v27  ;;  %v920_v27 = vsub.s32 3, %v10152_v43  ;;  %v9676_v59 = vld [vmem:[%s13017_s1 + $0x14d8] ss:$28 sps:$4 sm:$0xff]  }
 0x2a0   :  { %6835 = vmatpush1.bf16.msra.mxu1 %v9613_v29  ;;  %v9684_v29 = vld [vmem:[%s13017_s1 + $0x1514] ss:$28 sps:$4 sm:$0xff]  }
 0x2a1   :  { %5261 = vmatpush1.bf16.msra.mxu0 %v9610_v28  ;;  %6836 = vmatprep.subr.bf16.mxu1 %v9621_v31  ;;  %v9679_v28 = vld [vmem:[%s13019_s3 + $0x1a0] ss:$16 sps:$4 sm:$0xff]   ;;  %v921_v31 = vrot.slane %v11782_v35, %v920_v27  ;;  %v9693_v35 = vld [vmem:[%s13017_s1 + $0x154c] ss:$28 sps:$4 sm:$0xff]  }
 0x2a2   :  { %5262 = vmatprep.subr.bf16.mxu0 %v9618_v33  ;;  %v12216_v39 = vpop.f32.mrb[4].mxu1  ;;  %v9687_v33 = vld [vmem:[%s13019_s3 + $0x1c4] ss:$16 sps:$4 sm:$0xff]  }
 0x2a3   :  { %v12218_v41 = vpop.f32.mrb[5].mxu1 }
 0x2a4   :  { %6837 = vmatpush1.bf16.msra.mxu1 %v9619_v37  ;;  %v5044_v44 = vpop.f32.mrb[6].mxu1  ;;  %v9685_v37 = vld [vmem:[%s13019_s3 + $0x1c0] ss:$16 sps:$4 sm:$0xff]  }
 0x2a5   :  { %5263 = vmatpush1.bf16.msra.mxu0 %v9616_v62  ;;  %v5045_v47 = vpop.f32.mrb[7].mxu1  ;;  %6838 = vmatprep.subr.bf16.mxu1 %v9627_v36  ;;  %v9682_v62 = vld [vmem:[%s13017_s1 + $0x1510] ss:$28 sps:$4 sm:$0xff]   ;;  %v8559_v36 = vadd.f32 %v12218_v41, %v921_v31  ;;  %v9696_v41 = vld [vmem:[%s13019_s3 + $0x204] ss:$16 sps:$4 sm:$0xff]  }
 0x2a6   :  { %5264 = vmatprep.subr.bf16.mxu0 %v9624_v38  ;;  %v9690_v38 = vld [vmem:[%s13019_s3 + $0x1e4] ss:$16 sps:$4 sm:$0xff]   ;;  %v9688_v44 = vld [vmem:[%s13019_s3 + $0x1e0] ss:$16 sps:$4 sm:$0xff]   ;;  %v9745_v31 = vld [vmem:[%s13019_s3 + $0x108] ss:$16 sps:$4 sm:$0xff]  }
 0x2a7   :  { %v5617_v47 = vmax.f32 %v8559_v36, 0.0  ;;  %v9754_v36 = vld [vmem:[%s13019_s3 + $0x340] ss:$16 sps:$4 sm:$0xff]  }
 0x2a8   :  { %6839 = vmatpush1.bf16.msra.mxu1 %v9625_v46  ;;  %v5614_v46 = vmax.f32 %v11823_v12, 0.0 }
 0x2a9   :  { %5265 = vmatpush1.bf16.msra.mxu0 %v9622_v45  ;;  %6840 = vmatprep.subr.bf16.mxu1 %v9633_v52  ;;  %v9691_v45 = vld [vmem:[%s13017_s1 + $0x1548] ss:$28 sps:$4 sm:$0xff]  }
 0x2aa   :  { %5266 = vmatprep.subr.bf16.mxu0 %v9630_v50  ;;  %v9694_v50 = vld [vmem:[%s13019_s3 + $0x200] ss:$16 sps:$4 sm:$0xff]   ;;  %v12377_v12 = vpack.c.bf16 %v5614_v46, %v5614_v46  ;;  %v9702_v52 = vld [vmem:[%s13019_s3 + $0x224] ss:$16 sps:$4 sm:$0xff]   ;;  %v9757_v46 = vld [vmem:[%s13019_s3 + $0x148] ss:$16 sps:$4 sm:$0xff]  }
 0x2ac   :  { %6841 = vmatpush1.bf16.msra.mxu1 %v9631_v53  ;;  %v9697_v53 = vld [vmem:[%s13019_s3 + $0x8] ss:$16 sps:$4 sm:$0xff]  }
 0x2ad   :  { %5267 = vmatpush1.bf16.msra.mxu0 %v9628_v18  ;;  %6842 = vmatprep.subr.bf16.mxu1 %v9639_v51  ;;  %v12382_v18 = vpack.c.bf16 %v5617_v47, %v5617_v47  ;;  %v9705_v51 = vld [vmem:[%s13019_s3 + $0x2c] ss:$16 sps:$4 sm:$0xff]   ;;  %v9768_v47 = vld [vmem:[%s13019_s3 + $0x384] ss:$16 sps:$4 sm:$0xff]  }
 0x2ae   :  { %5268 = vmatprep.subr.bf16.mxu0 %v9636_v25  ;;  %v9700_v25 = vld [vmem:[%s13019_s3 + $0x220] ss:$16 sps:$4 sm:$0xff]  }
 0x2b0   :  { %6843 = vmatpush1.bf16.msra.mxu1 %v9637_v57  ;;  %v932_v57 = vsub.s32 6, %v10152_v43 }
 0x2b1   :  { %5269 = vmatpush1.bf16.msra.mxu0 %v9634_v55  ;;  %6844 = vmatprep.subr.bf16.mxu1 %v9645_v61  ;;  %v9708_v55 = vld [vmem:[%s13019_s3 + $0x244] ss:$16 sps:$4 sm:$0xff]   ;;  %v9706_v61 = vld [vmem:[%s13019_s3 + $0x240] ss:$16 sps:$4 sm:$0xff]  }
 0x2b2   :  { %5270 = vmatprep.subr.bf16.mxu0 %v9642_v58  ;;  %v9703_v58 = vld [vmem:[%s13019_s3 + $0x28] ss:$16 sps:$4 sm:$0xff]  }
 0x2b4   :  { %6845 = vmatpush1.bf16.msra.mxu1 %v9643_v49  ;;  %v12417_v49 = vld [vmem:[%s13018_s2] sm:$0x7f] }
 0x2b5   :  { %5271 = vmatpush1.bf16.msra.mxu0 %v9640_v63  ;;  %6846 = vmatprep.subr.bf16.mxu1 %v9651_v2  ;;  %v9711_v63 = vld [vmem:[%s13019_s3 + $0x4c] ss:$16 sps:$4 sm:$0xff]   ;;  %v9712_v2 = vld [vmem:[%s13019_s3 + $0x260] ss:$16 sps:$4 sm:$0xff]  }
 0x2b6   :  { %5272 = vmatprep.subr.bf16.mxu0 %v9648_v0  ;;  %v933_v0 = vrot.slane %v12417_v49, %v932_v57  ;;  %v916_v57 = vsub.s32 2, %v10152_v43 }
 0x2b8   :  { %6847 = vmatpush1.bf16.msra.mxu1 %v9649_v5  ;;  %v9720_v5 = vld [vmem:[%s13019_s3 + $0x284] ss:$16 sps:$4 sm:$0xff]  }
 0x2b9   :  { %5273 = vmatpush1.bf16.msra.mxu0 %v9646_v4  ;;  %6848 = vmatprep.subr.bf16.mxu1 %v9657_v7  ;;  %v9717_v4 = vld [vmem:[%s13019_s3 + $0x6c] ss:$16 sps:$4 sm:$0xff]  }
 0x2ba   :  { %5274 = vmatprep.subr.bf16.mxu0 %v9654_v40 }
 0x2bc   :  { %6849 = vmatpush1.bf16.msra.mxu1 %v9655_v8  ;;  %v9715_v8 = vld [vmem:[%s13019_s3 + $0x68] ss:$16 sps:$4 sm:$0xff]  }
 0x2bd   :  { %5275 = vmatpush1.bf16.msra.mxu0 %v9652_v17  ;;  %6850 = vmatprep.subr.bf16.mxu1 %v9663_v48 }
 0x2be   :  { %5276 = vmatprep.subr.bf16.mxu0 %v9660_v9  ;;  %v9718_v9 = vld [vmem:[%s13019_s3 + $0x280] ss:$16 sps:$4 sm:$0xff]  }
 0x2c0   :  { %6851 = vmatpush1.bf16.msra.mxu1 %v9661_v3  ;;  %v9723_v3 = vld [vmem:[%s13019_s3 + $0x8c] ss:$16 sps:$4 sm:$0xff]  }
 0x2c1   :  { %5277 = vmatpush1.bf16.msra.mxu0 %v9658_v10  ;;  %6852 = vmatprep.subr.bf16.mxu1 %v9669_v54 }
 0x2c2   :  { %5278 = vmatprep.subr.bf16.mxu0 %v9666_v11  ;;  %v8405_v16 = vpop.f32.mrb[8].mxu1  ;;  %v9726_v11 = vld [vmem:[%s13019_s3 + $0x2a4] ss:$16 sps:$4 sm:$0xff]  }
 0x2c3   :  { %v8406_v1 = vpop.f32.mrb[9].mxu1 }
 0x2c4   :  { %6853 = vmatpush1.bf16.msra.mxu1 %v9667_v30  ;;  %v12322_v21 = vadd.f32 %v8406_v1, %v8405_v16  ;;  %v8408_v22 = vpop.f32.mrb[10].mxu1  ;;  %v9721_v30 = vld [vmem:[%s13019_s3 + $0x88] ss:$16 sps:$4 sm:$0xff]   ;;  %v9732_v16 = vld [vmem:[%s13019_s3 + $0x2c4] ss:$16 sps:$4 sm:$0xff]  }
 0x2c5   :  { %5279 = vmatpush1.bf16.msra.mxu0 %v9664_v13  ;;  %6854 = vmatprep.subr.bf16.mxu1 %v9675_v15  ;;  %v8409_v26 = vpop.f32.mrb[11].mxu1  ;;  %v9729_v15 = vld [vmem:[%s13019_s3 + $0xac] ss:$16 sps:$4 sm:$0xff]   ;;  %v9727_v1 = vld [vmem:[%s13019_s3 + $0xa8] ss:$16 sps:$4 sm:$0xff]  }
 0x2c6   :  { %5280 = vmatprep.subr.bf16.mxu0 %v9672_v32  ;;  %v5369_v40 = vadd.f32 %v12322_v21, %v933_v0  ;;  %v9724_v32 = vld [vmem:[%s13019_s3 + $0x2a0] ss:$16 sps:$4 sm:$0xff]   ;;  %v9738_v21 = vld [vmem:[%s13019_s3 + $0x2e4] ss:$16 sps:$4 sm:$0xff]   ;;  %v9733_v22 = vld [vmem:[%s13019_s3 + $0xc8] ss:$16 sps:$4 sm:$0xff]  }
 0x2c7   :  { %v9744_v26 = vld [vmem:[%s13019_s3 + $0x304] ss:$16 sps:$4 sm:$0xff]   ;;  %v9769_v0 = vld [vmem:[%s13019_s3 + $0x188] ss:$16 sps:$4 sm:$0xff]  }
 0x2c8   :  { %6855 = vmatpush1.bf16.msra.mxu1 %v9673_v20  ;;  %v9735_v20 = vld [vmem:[%s13019_s3 + $0xcc] ss:$16 sps:$4 sm:$0xff]  }
 0x2c9   :  { %5281 = vmatpush1.bf16.msra.mxu0 %v9670_v19  ;;  %6856 = vmatprep.subr.bf16.mxu1 %v9681_v23  ;;  %v9730_v19 = vld [vmem:[%s13019_s3 + $0x2c0] ss:$16 sps:$4 sm:$0xff]   ;;  %v9741_v23 = vld [vmem:[%s13019_s3 + $0xec] ss:$16 sps:$4 sm:$0xff]  }
 0x2ca   :  { %5282 = vmatprep.subr.bf16.mxu0 %v9678_v6  ;;  %v9736_v6 = vld [vmem:[%s13019_s3 + $0x2e0] ss:$16 sps:$4 sm:$0xff]  }
 0x2cc   :  { %6857 = vmatpush1.bf16.msra.mxu1 %v9679_v28  ;;  %v9742_v28 = vld [vmem:[%s13019_s3 + $0x300] ss:$16 sps:$4 sm:$0xff]  }
 0x2cd   :  { %5283 = vmatpush1.bf16.msra.mxu0 %v9676_v59  ;;  %6858 = vmatprep.subr.bf16.mxu1 %v9687_v33  ;;  %v9739_v59 = vld [vmem:[%s13019_s3 + $0xe8] ss:$16 sps:$4 sm:$0xff]   ;;  %v9750_v33 = vld [vmem:[%s13019_s3 + $0x324] ss:$16 sps:$4 sm:$0xff]  }
 0x2ce   :  { %5293 = vmatprep.subr.bf16.mxu0 %v9684_v29  ;;  %v9747_v29 = vld [vmem:[%s13019_s3 + $0x10c] ss:$16 sps:$4 sm:$0xff]  }
 0x2d0   :  { %5285 = vmatmul.mubr.bf16.vlgmr.msra.gmra.mrb[4].mxu0 %v11105_v24  ;;  %6859 = vmatpush1.bf16.msra.mxu1 %v9685_v37  ;;  %v9699_v24 = vld [vmem:[%s13019_s3 + $0xc] ss:$16 sps:$4 sm:$0xff]  }
 0x2d1   :  { %5294 = vmatpush1.bf16.msra.mxu0 %v9682_v62  ;;  %6860 = vmatprep.subr.bf16.mxu1 %v9690_v38  ;;  %v9748_v62 = vld [vmem:[%s13019_s3 + $0x320] ss:$16 sps:$4 sm:$0xff]   ;;  %v9753_v37 = vld [vmem:[%s13019_s3 + $0x12c] ss:$16 sps:$4 sm:$0xff]   ;;  %v9756_v38 = vld [vmem:[%s13019_s3 + $0x344] ss:$16 sps:$4 sm:$0xff]  }
 0x2d2   :  { %5295 = vmatprep.subr.bf16.mxu0 %v9693_v35  ;;  %5325 = vmatprep.mubr.bf16.mxu0 %v9991_v34  ;;  %v9751_v35 = vld [vmem:[%s13019_s3 + $0x128] ss:$16 sps:$4 sm:$0xff]  }
 0x2d4   :  { %6861 = vmatpush1.bf16.msra.mxu1 %v9688_v44  ;;  %v9759_v44 = vld [vmem:[%s13019_s3 + $0x14c] ss:$16 sps:$4 sm:$0xff]  }
 0x2d5   :  { %5296 = vmatpush1.bf16.msra.mxu0 %v9691_v45  ;;  %6871 = vmatprep.subr.bf16.mxu1 %v9696_v41  ;;  %v9762_v45 = vld [vmem:[%s13019_s3 + $0x364] ss:$16 sps:$4 sm:$0xff]   ;;  %v9760_v41 = vld [vmem:[%s13019_s3 + $0x360] ss:$16 sps:$4 sm:$0xff]  }
 0x2d6   :  { %6994 = vmatprep.subr.bf16.mxu0 %v9699_v24  ;;  %v9765_v24 = vld [vmem:[%s13019_s3 + $0x16c] ss:$16 sps:$4 sm:$0xff]  }
 0x2d7   :  { %6863 = vmatmul.mubr.bf16.vlgmr.msra.gmra.mrb[36].mxu1 %v12377_v12 }
 0x2d8   :  { %6872 = vmatpush1.bf16.msra.mxu1 %v9694_v50  ;;  %6903 = vmatprep.mubr.bf16.mxu1 %v12382_v18 }
 0x2d9   :  { %6873 = vmatprep.subr.bf16.mxu1 %v9702_v52 }
 0x2dc   :  { %8162 = vmatmul.mubr.msk.bf16.vlgmr.msra.gmra.mrb[4].mxu0 %vm4469_vm0, %v11141_v42  ;;  %6874 = vmatpush1.bf16.msra.mxu1 %v9700_v25  ;;  %v9714_v42 = vld [vmem:[%s13019_s3 + $0x264] ss:$16 sps:$4 sm:$0xff]   ;;  %v9766_v25 = vld [vmem:[%s13019_s3 + $0x380] ss:$16 sps:$4 sm:$0xff]  }
 0x2dd   :  { %6995 = vmatpush1.bf16.msra.mxu0 %v9697_v53  ;;  %7026 = vmatprep.mubr.bf16.mxu0 %v12175_v14  ;;  %v9709_v14 = vld [vmem:[%s13019_s3 + $0x48] ss:$16 sps:$4 sm:$0xff]  }
 0x2de   :  { %6996 = vmatprep.subr.bf16.mxu0 %v9705_v51  ;;  %6875 = vmatprep.subr.bf16.mxu1 %v9708_v55  ;;  %v9763_v53 = vld [vmem:[%s13019_s3 + $0x168] ss:$16 sps:$4 sm:$0xff]  }
 0x2e0   :  { %6876 = vmatpush1.bf16.msra.mxu1 %v9706_v61  ;;  %v9774_v61 = vld [vmem:[%s13019_s3 + $0x3a4] ss:$16 sps:$4 sm:$0xff]  }
 0x2e1   :  { %6997 = vmatpush1.bf16.msra.mxu0 %v9703_v58  ;;  %6877 = vmatprep.subr.bf16.mxu1 %v9714_v42  ;;  %v9771_v58 = vld [vmem:[%s13019_s3 + $0x18c] ss:$16 sps:$4 sm:$0xff]  }
 0x2e2   :  { %6998 = vmatprep.subr.bf16.mxu0 %v9711_v63  ;;  %v8427_v7 = vpop.f32.mrb[12].mxu1 }
 0x2e3   :  { %v8428_v17 = vpop.f32.mrb[13].mxu1 }
 0x2e4   :  { %6878 = vmatpush1.bf16.msra.mxu1 %v9712_v2  ;;  %v8429_v48 = vadd.f32 %v8428_v17, %v8427_v7  ;;  %v8430_v10 = vpop.f32.mrb[14].mxu1  ;;  %v917_v2 = vrot.slane %v12417_v49, %v916_v57  ;;  %v9778_v7 = vld [vmem:[%s13019_s3 + $0x3c0] ss:$16 sps:$4 sm:$0xff]  }
 0x2e5   :  { %6999 = vmatpush1.bf16.msra.mxu0 %v9709_v14  ;;  %6879 = vmatprep.subr.bf16.mxu1 %v9720_v5  ;;  %v8431_v54 = vpop.f32.mrb[15].mxu1  ;;  %v9772_v14 = vld [vmem:[%s13019_s3 + $0x3a0] ss:$16 sps:$4 sm:$0xff]   ;;  %v9780_v5 = vld [vmem:[%s13019_s3 + $0x3c4] ss:$16 sps:$4 sm:$0xff]  }
 0x2e6   :  { %7000 = vmatprep.subr.bf16.mxu0 %v9717_v4  ;;  %v12445_v13 = vadd.f32 %v8429_v48, %v5369_v40  ;;  %v9777_v4 = vld [vmem:[%s13019_s3 + $0x1ac] ss:$16 sps:$4 sm:$0xff]   ;;  %v9775_v40 = vld [vmem:[%s13019_s3 + $0x1a8] ss:$16 sps:$4 sm:$0xff]   ;;  %v8558_v17 = vadd.f32 %v12216_v39, %v917_v2  ;;  %v9784_v39 = vld [vmem:[%s13019_s3 + $0x3e0] ss:$16 sps:$4 sm:$0xff]  }
 0x2e7   :  { %v9781_v48 = vld [vmem:[%s13019_s3 + $0x1c8] ss:$16 sps:$4 sm:$0xff]   ;;  %v9819_v2 = vld [vmem:[%s13019_s3 + $0x32c] ss:$16 sps:$4 sm:$0xff]  }
 0x2e8   :  { %6880 = vmatpush1.bf16.msra.mxu1 %v9718_v9  ;;  %v9786_v9 = vld [vmem:[%s13019_s3 + $0x3e4] ss:$16 sps:$4 sm:$0xff]   ;;  %v5616_v10 = vmax.f32 %v8558_v17, 0.0  ;;  %v9787_v54 = vld [vmem:[%s13019_s3 + $0x1e8] ss:$16 sps:$4 sm:$0xff]  }
 0x2e9   :  { %7001 = vmatpush1.bf16.msra.mxu0 %v9715_v8  ;;  %6881 = vmatprep.subr.bf16.mxu1 %v9726_v11  ;;  %v9783_v8 = vld [vmem:[%s13019_s3 + $0x1cc] ss:$16 sps:$4 sm:$0xff]   ;;  %v9840_v11 = vld [vmem:[%s13019_s3 + $0x404] ss:$16 sps:$4 sm:$0xff]   ;;  %v9898_v17 = vld [vmem:[%s13019_s3 + $0x540] ss:$16 sps:$4 sm:$0xff]  }
 0x2ea   :  { %7002 = vmatprep.subr.bf16.mxu0 %v9723_v3  ;;  %v9789_v3 = vld [vmem:[%s13019_s3 + $0x1ec] ss:$16 sps:$4 sm:$0xff]  }
 0x2ec   :  { %6882 = vmatpush1.bf16.msra.mxu1 %v9724_v32  ;;  %v9792_v32 = vld [vmem:[%s13019_s3 + $0x20c] ss:$16 sps:$4 sm:$0xff]  }
 0x2ed   :  { %7003 = vmatpush1.bf16.msra.mxu0 %v9721_v30  ;;  %6883 = vmatprep.subr.bf16.mxu1 %v9732_v16  ;;  %v12593_v30 = vpack.c.bf16 %v5616_v10, %v5616_v10  ;;  %v9790_v16 = vld [vmem:[%s13019_s3 + $0x208] ss:$16 sps:$4 sm:$0xff]  }
 0x2ee   :  { %7004 = vmatprep.subr.bf16.mxu0 %v9729_v15  ;;  %v9846_v15 = vld [vmem:[%s13019_s3 + $0x424] ss:$16 sps:$4 sm:$0xff]  }
 0x2f0   :  { %6884 = vmatpush1.bf16.msra.mxu1 %v9730_v19  ;;  %v9844_v19 = vld [vmem:[%s13019_s3 + $0x420] ss:$16 sps:$4 sm:$0xff]  }
 0x2f1   :  { %7005 = vmatpush1.bf16.msra.mxu0 %v9727_v1  ;;  %6885 = vmatprep.subr.bf16.mxu1 %v9738_v21  ;;  %v9795_v1 = vld [vmem:[%s13019_s3 + $0x22c] ss:$16 sps:$4 sm:$0xff]   ;;  %v9793_v21 = vld [vmem:[%s13019_s3 + $0x228] ss:$16 sps:$4 sm:$0xff]  }
 0x2f2   :  { %7006 = vmatprep.subr.bf16.mxu0 %v9735_v20  ;;  %v9852_v20 = vld [vmem:[%s13019_s3 + $0x444] ss:$16 sps:$4 sm:$0xff]  }
 0x2f4   :  { %6886 = vmatpush1.bf16.msra.mxu1 %v9736_v6  ;;  %v9850_v6 = vld [vmem:[%s13019_s3 + $0x440] ss:$16 sps:$4 sm:$0xff]  }
 0x2f5   :  { %7007 = vmatpush1.bf16.msra.mxu0 %v9733_v22  ;;  %6887 = vmatprep.subr.bf16.mxu1 %v9744_v26  ;;  %v9798_v22 = vld [vmem:[%s13019_s3 + $0x24c] ss:$16 sps:$4 sm:$0xff]   ;;  %v9856_v26 = vld [vmem:[%s13019_s3 + $0x460] ss:$16 sps:$4 sm:$0xff]  }
 0x2f6   :  { %7008 = vmatprep.subr.bf16.mxu0 %v9741_v23  ;;  %v9801_v23 = vld [vmem:[%s13019_s3 + $0x26c] ss:$16 sps:$4 sm:$0xff]  }
 0x2f8   :  { %6888 = vmatpush1.bf16.msra.mxu1 %v9742_v28  ;;  %v9864_v28 = vld [vmem:[%s13019_s3 + $0x484] ss:$16 sps:$4 sm:$0xff]  }
 0x2f9   :  { %7009 = vmatpush1.bf16.msra.mxu0 %v9739_v59  ;;  %6889 = vmatprep.subr.bf16.mxu1 %v9750_v33 }
 0x2fa   :  { %7010 = vmatprep.subr.bf16.mxu0 %v9747_v29 }
 0x2fc   :  { %6890 = vmatpush1.bf16.msra.mxu1 %v9748_v62 }
 0x2fd   :  { %7011 = vmatpush1.bf16.msra.mxu0 %v9745_v31  ;;  %6891 = vmatprep.subr.bf16.mxu1 %v9756_v38  ;;  %v9799_v31 = vld [vmem:[%s13019_s3 + $0x268] ss:$16 sps:$4 sm:$0xff]  }
 0x2fe   :  { %7012 = vmatprep.subr.bf16.mxu0 %v9753_v37  ;;  %v9804_v37 = vld [vmem:[%s13019_s3 + $0x28c] ss:$16 sps:$4 sm:$0xff]  }
 0x300   :  { %6892 = vmatpush1.bf16.msra.mxu1 %v9754_v36 }
 0x301   :  { %7013 = vmatpush1.bf16.msra.mxu0 %v9751_v35  ;;  %6893 = vmatprep.subr.bf16.mxu1 %v9762_v45  ;;  %v9862_v35 = vld [vmem:[%s13019_s3 + $0x480] ss:$16 sps:$4 sm:$0xff]   ;;  %v9802_v45 = vld [vmem:[%s13019_s3 + $0x288] ss:$16 sps:$4 sm:$0xff]  }
 0x302   :  { %7014 = vmatprep.subr.bf16.mxu0 %v9759_v44  ;;  %v8449_v50 = vpop.f32.mrb[16].mxu1  ;;  %v9870_v44 = vld [vmem:[%s13019_s3 + $0x4a4] ss:$16 sps:$4 sm:$0xff]  }
 0x303   :  { %v8450_v52 = vpop.f32.mrb[17].mxu1 }
 0x304   :  { %6894 = vmatpush1.bf16.msra.mxu1 %v9760_v41  ;;  %v8451_v51 = vadd.f32 %v8450_v52, %v8449_v50  ;;  %v8452_v55 = vpop.f32.mrb[18].mxu1  ;;  %v9868_v41 = vld [vmem:[%s13019_s3 + $0x4a0] ss:$16 sps:$4 sm:$0xff]   ;;  %v9810_v50 = vld [vmem:[%s13019_s3 + $0x2cc] ss:$16 sps:$4 sm:$0xff]  }
 0x305   :  { %7015 = vmatpush1.bf16.msra.mxu0 %v9757_v46  ;;  %6895 = vmatprep.subr.bf16.mxu1 %v9768_v47  ;;  %v8453_v63 = vpop.f32.mrb[19].mxu1  ;;  %v9807_v46 = vld [vmem:[%s13019_s3 + $0x2ac] ss:$16 sps:$4 sm:$0xff]   ;;  %v9805_v47 = vld [vmem:[%s13019_s3 + $0x2a8] ss:$16 sps:$4 sm:$0xff]  }
 0x306   :  { %7016 = vmatprep.subr.bf16.mxu0 %v9765_v24  ;;  %v12545_v42 = vadd.f32 %v8451_v51, %v12445_v13  ;;  %v9838_v13 = vld [vmem:[%s13019_s3 + $0x400] ss:$16 sps:$4 sm:$0xff]   ;;  %v9876_v24 = vld [vmem:[%s13019_s3 + $0x4c4] ss:$16 sps:$4 sm:$0xff]   ;;  %v9813_v51 = vld [vmem:[%s13019_s3 + $0x2ec] ss:$16 sps:$4 sm:$0xff]  }
 0x307   :  { %v9874_v52 = vld [vmem:[%s13019_s3 + $0x4c0] ss:$16 sps:$4 sm:$0xff]   ;;  %v9816_v63 = vld [vmem:[%s13019_s3 + $0x30c] ss:$16 sps:$4 sm:$0xff]  }
 0x308   :  { %6896 = vmatpush1.bf16.msra.mxu1 %v9766_v25  ;;  %v9808_v25 = vld [vmem:[%s13019_s3 + $0x2c8] ss:$16 sps:$4 sm:$0xff]   ;;  %v9880_v55 = vld [vmem:[%s13019_s3 + $0x4e0] ss:$16 sps:$4 sm:$0xff]  }
 0x309   :  { %7017 = vmatpush1.bf16.msra.mxu0 %v9763_v53  ;;  %6897 = vmatprep.subr.bf16.mxu1 %v9774_v61  ;;  %v9882_v53 = vld [vmem:[%s13019_s3 + $0x4e4] ss:$16 sps:$4 sm:$0xff]   ;;  %v9811_v61 = vld [vmem:[%s13019_s3 + $0x2e8] ss:$16 sps:$4 sm:$0xff]  }
 0x30a   :  { %7018 = vmatprep.subr.bf16.mxu0 %v9771_v58  ;;  %v9888_v58 = vld [vmem:[%s13019_s3 + $0x504] ss:$16 sps:$4 sm:$0xff]  }
 0x30c   :  { %6898 = vmatpush1.bf16.msra.mxu1 %v9772_v14  ;;  %v9814_v14 = vld [vmem:[%s13019_s3 + $0x308] ss:$16 sps:$4 sm:$0xff]  }
 0x30d   :  { %7019 = vmatpush1.bf16.msra.mxu0 %v9769_v0  ;;  %6899 = vmatprep.subr.bf16.mxu1 %v9780_v5  ;;  %v9894_v0 = vld [vmem:[%s13019_s3 + $0x524] ss:$16 sps:$4 sm:$0xff]  }
 0x30e   :  { %7020 = vmatprep.subr.bf16.mxu0 %v9777_v4  ;;  %v9892_v4 = vld [vmem:[%s13019_s3 + $0x520] ss:$16 sps:$4 sm:$0xff]   ;;  %v9900_v5 = vld [vmem:[%s13019_s3 + $0x544] ss:$16 sps:$4 sm:$0xff]  }
 0x310   :  { %6900 = vmatpush1.bf16.msra.mxu1 %v9778_v7  ;;  %v9822_v7 = vld [vmem:[%s13019_s3 + $0x34c] ss:$16 sps:$4 sm:$0xff]  }
 0x311   :  { %7021 = vmatpush1.bf16.msra.mxu0 %v9775_v40  ;;  %6901 = vmatprep.subr.bf16.mxu1 %v9786_v9  ;;  %v9817_v40 = vld [vmem:[%s13019_s3 + $0x328] ss:$16 sps:$4 sm:$0xff]  }
 0x312   :  { %7022 = vmatprep.subr.bf16.mxu0 %v9783_v8  ;;  %v9906_v8 = vld [vmem:[%s13019_s3 + $0x564] ss:$16 sps:$4 sm:$0xff]   ;;  %v9820_v9 = vld [vmem:[%s13019_s3 + $0x348] ss:$16 sps:$4 sm:$0xff]  }
 0x314   :  { %6902 = vmatpush1.bf16.msra.mxu1 %v9784_v39  ;;  %v9904_v39 = vld [vmem:[%s13019_s3 + $0x560] ss:$16 sps:$4 sm:$0xff]  }
 0x315   :  { %7023 = vmatpush1.bf16.msra.mxu0 %v9781_v48  ;;  %6912 = vmatprep.subr.bf16.mxu1 %v9840_v11  ;;  %v9825_v48 = vld [vmem:[%s13019_s3 + $0x36c] ss:$16 sps:$4 sm:$0xff]  }
 0x316   :  { %7024 = vmatprep.subr.bf16.mxu0 %v9789_v3  ;;  %v9912_v3 = vld [vmem:[%s13019_s3 + $0x584] ss:$16 sps:$4 sm:$0xff]  }
 0x317   :  { %6904 = vmatmul.mubr.bf16.vlgmr.msra.gmra.mrb[36].mxu1 %v12593_v30 }
 0x318   :  { %6913 = vmatpush1.bf16.msra.mxu1 %v9838_v13  ;;  %v9823_v13 = vld [vmem:[%s13019_s3 + $0x368] ss:$16 sps:$4 sm:$0xff]  }
 0x319   :  { %7025 = vmatpush1.bf16.msra.mxu0 %v9787_v54  ;;  %6914 = vmatprep.subr.bf16.mxu1 %v9846_v15  ;;  %v9828_v15 = vld [vmem:[%s13019_s3 + $0x38c] ss:$16 sps:$4 sm:$0xff]  }
 0x31a   :  { %7035 = vmatprep.subr.bf16.mxu0 %v9792_v32 }
 0x31c   :  { %7027 = vmatmul.mubr.bf16.vlgmr.msra.gmra.mrb[8].mxu0 %v12377_v12  ;;  %6915 = vmatpush1.bf16.msra.mxu1 %v9844_v19  ;;  %v9858_v12 = vld [vmem:[%s13019_s3 + $0x464] ss:$16 sps:$4 sm:$0xff]  }
 0x31d   :  { %7036 = vmatpush1.bf16.msra.mxu0 %v9790_v16  ;;  %7067 = vmatprep.mubr.bf16.mxu0 %v12382_v18  ;;  %v9796_v18 = vld [vmem:[%s13019_s3 + $0x248] ss:$16 sps:$4 sm:$0xff]  }
 0x31e   :  { %7037 = vmatprep.subr.bf16.mxu0 %v9795_v1  ;;  %6916 = vmatprep.subr.bf16.mxu1 %v9852_v20  ;;  %v9910_v1 = vld [vmem:[%s13019_s3 + $0x580] ss:$16 sps:$4 sm:$0xff]   ;;  %v9918_v20 = vld [vmem:[%s13019_s3 + $0x5a4] ss:$16 sps:$4 sm:$0xff]  }
 0x320   :  { %6917 = vmatpush1.bf16.msra.mxu1 %v9850_v6  ;;  %v9916_v6 = vld [vmem:[%s13019_s3 + $0x5a0] ss:$16 sps:$4 sm:$0xff]  }
 0x321   :  { %7038 = vmatpush1.bf16.msra.mxu0 %v9793_v21  ;;  %6918 = vmatprep.subr.bf16.mxu1 %v9858_v12  ;;  %v9826_v21 = vld [vmem:[%s13019_s3 + $0x388] ss:$16 sps:$4 sm:$0xff]   ;;  %v9924_v12 = vld [vmem:[%s13019_s3 + $0x5c4] ss:$16 sps:$4 sm:$0xff]  }
 0x322   :  { %7039 = vmatprep.subr.bf16.mxu0 %v9798_v22  ;;  %v8471_v59 = vpop.f32.mrb[20].mxu1  ;;  %v9831_v22 = vld [vmem:[%s13019_s3 + $0x3ac] ss:$16 sps:$4 sm:$0xff]  }
 0x323   :  { %v8472_v29 = vpop.f32.mrb[21].mxu1 }
 0x324   :  { %v8473_v33 = vadd.f32 %v8472_v29, %v8471_v59  ;;  %v8474_v62 = vpop.f32.mrb[22].mxu1  ;;  %6919 = vmatpush1.bf16.msra.mxu1 %v9856_v26  ;;  %v9922_v26 = vld [vmem:[%s13019_s3 + $0x5c0] ss:$16 sps:$4 sm:$0xff]   ;;  %v9930_v59 = vld [vmem:[%s13019_s3 + $0x5e4] ss:$16 sps:$4 sm:$0xff]  }
 0x325   :  { %7040 = vmatpush1.bf16.msra.mxu0 %v9796_v18  ;;  %v8475_v38 = vpop.f32.mrb[23].mxu1  ;;  %6920 = vmatprep.subr.bf16.mxu1 %v9864_v28  ;;  %v9829_v18 = vld [vmem:[%s13019_s3 + $0x3a8] ss:$16 sps:$4 sm:$0xff]   ;;  %v9837_v29 = vld [vmem:[%s13019_s3 + $0x3ec] ss:$16 sps:$4 sm:$0xff]  }
 0x326   :  { %7041 = vmatprep.subr.bf16.mxu0 %v9801_v23  ;;  %v12650_v36 = vadd.f32 %v8473_v33, %v12545_v42  ;;  %v9886_v42 = vld [vmem:[%s13019_s3 + $0x500] ss:$16 sps:$4 sm:$0xff]   ;;  %v9834_v23 = vld [vmem:[%s13019_s3 + $0x3cc] ss:$16 sps:$4 sm:$0xff]   ;;  %v9832_v28 = vld [vmem:[%s13019_s3 + $0x3c8] ss:$16 sps:$4 sm:$0xff]  }
 0x327   :  { %v9928_v33 = vld [vmem:[%s13019_s3 + $0x5e0] ss:$16 sps:$4 sm:$0xff]   ;;  %v9835_v62 = vld [vmem:[%s13019_s3 + $0x3e8] ss:$16 sps:$4 sm:$0xff]  }
 0x328   :  { %6921 = vmatpush1.bf16.msra.mxu1 %v9862_v35  ;;  %v9841_v38 = vld [vmem:[%s13019_s3 + $0x408] ss:$16 sps:$4 sm:$0xff]   ;;  %v9849_v35 = vld [vmem:[%s13019_s3 + $0x42c] ss:$16 sps:$4 sm:$0xff]  }
 0x329   :  { %7042 = vmatpush1.bf16.msra.mxu0 %v9799_v31  ;;  %6922 = vmatprep.subr.bf16.mxu1 %v9870_v44  ;;  %v9936_v31 = vld [vmem:[%s13019_s3 + $0x604] ss:$16 sps:$4 sm:$0xff]   ;;  %v9855_v44 = vld [vmem:[%s13019_s3 + $0x44c] ss:$16 sps:$4 sm:$0xff]  }
 0x32a   :  { %7043 = vmatprep.subr.bf16.mxu0 %v9804_v37  ;;  %v9843_v37 = vld [vmem:[%s13019_s3 + $0x40c] ss:$16 sps:$4 sm:$0xff]  }
 0x32c   :  { %6923 = vmatpush1.bf16.msra.mxu1 %v9868_v41 }
 0x32d   :  { %7044 = vmatpush1.bf16.msra.mxu0 %v9802_v45  ;;  %6924 = vmatprep.subr.bf16.mxu1 %v9876_v24  ;;  %v9853_v45 = vld [vmem:[%s13019_s3 + $0x448] ss:$16 sps:$4 sm:$0xff]  }
 0x32e   :  { %7045 = vmatprep.subr.bf16.mxu0 %v9807_v46 }
 0x330   :  { %6925 = vmatpush1.bf16.msra.mxu1 %v9874_v52 }
 0x331   :  { %7046 = vmatpush1.bf16.msra.mxu0 %v9805_v47  ;;  %6926 = vmatprep.subr.bf16.mxu1 %v9882_v53  ;;  %v9867_v53 = vld [vmem:[%s13019_s3 + $0x48c] ss:$16 sps:$4 sm:$0xff]  }
 0x332   :  { %7047 = vmatprep.subr.bf16.mxu0 %v9810_v50  ;;  %v9859_v50 = vld [vmem:[%s13019_s3 + $0x468] ss:$16 sps:$4 sm:$0xff]  }
 0x334   :  { %6927 = vmatpush1.bf16.msra.mxu1 %v9880_v55  ;;  %v9873_v55 = vld [vmem:[%s13019_s3 + $0x4ac] ss:$16 sps:$4 sm:$0xff]  }
 0x335   :  { %7048 = vmatpush1.bf16.msra.mxu0 %v9808_v25  ;;  %6928 = vmatprep.subr.bf16.mxu1 %v9888_v58 }
 0x336   :  { %7049 = vmatprep.subr.bf16.mxu0 %v9813_v51  ;;  %v9865_v51 = vld [vmem:[%s13019_s3 + $0x488] ss:$16 sps:$4 sm:$0xff]  }
 0x338   :  { %6929 = vmatpush1.bf16.msra.mxu1 %v9886_v42  ;;  %v9871_v42 = vld [vmem:[%s13019_s3 + $0x4a8] ss:$16 sps:$4 sm:$0xff]  }
 0x339   :  { %7050 = vmatpush1.bf16.msra.mxu0 %v9811_v61  ;;  %6930 = vmatprep.subr.bf16.mxu1 %v9894_v0 }
 0x33a   :  { %7051 = vmatprep.subr.bf16.mxu0 %v9816_v63 }
 0x33c   :  { %6931 = vmatpush1.bf16.msra.mxu1 %v9892_v4  ;;  %v9877_v4 = vld [vmem:[%s13019_s3 + $0x4c8] ss:$16 sps:$4 sm:$0xff]  }
 0x33d   :  { %7052 = vmatpush1.bf16.msra.mxu0 %v9814_v14  ;;  %6932 = vmatprep.subr.bf16.mxu1 %v9900_v5  ;;  %v9879_v14 = vld [vmem:[%s13019_s3 + $0x4cc] ss:$16 sps:$4 sm:$0xff]  }
 0x33e   :  { %7053 = vmatprep.subr.bf16.mxu0 %v9819_v2  ;;  %v9885_v5 = vld [vmem:[%s13019_s3 + $0x4ec] ss:$16 sps:$4 sm:$0xff]  }
 0x340   :  { %6933 = vmatpush1.bf16.msra.mxu1 %v9898_v17  ;;  %v9889_v17 = vld [vmem:[%s13019_s3 + $0x508] ss:$16 sps:$4 sm:$0xff]  }
 0x341   :  { %7054 = vmatpush1.bf16.msra.mxu0 %v9817_v40  ;;  %6934 = vmatprep.subr.bf16.mxu1 %v9906_v8  ;;  %v9883_v40 = vld [vmem:[%s13019_s3 + $0x4e8] ss:$16 sps:$4 sm:$0xff]   ;;  %v9897_v8 = vld [vmem:[%s13019_s3 + $0x52c] ss:$16 sps:$4 sm:$0xff]  }
 0x342   :  { %7055 = vmatprep.subr.bf16.mxu0 %v9822_v7  ;;  %v8493_v10 = vpop.f32.mrb[24].mxu1  ;;  %v9891_v7 = vld [vmem:[%s13019_s3 + $0x50c] ss:$16 sps:$4 sm:$0xff]  }
 0x343   :  { %v8494_v11 = vpop.f32.mrb[25].mxu1 }
 0x344   :  { %v8495_v54 = vadd.f32 %v8494_v11, %v8493_v10  ;;  %v8496_v32 = vpop.f32.mrb[26].mxu1  ;;  %6935 = vmatpush1.bf16.msra.mxu1 %v9904_v39  ;;  %v9901_v39 = vld [vmem:[%s13019_s3 + $0x548] ss:$16 sps:$4 sm:$0xff]   ;;  %v9909_v10 = vld [vmem:[%s13019_s3 + $0x56c] ss:$16 sps:$4 sm:$0xff]  }
 0x345   :  { %7056 = vmatpush1.bf16.msra.mxu0 %v9820_v9  ;;  %v8497_v16 = vpop.f32.mrb[27].mxu1  ;;  %6936 = vmatprep.subr.bf16.mxu1 %v9912_v3  ;;  %v9895_v9 = vld [vmem:[%s13019_s3 + $0x528] ss:$16 sps:$4 sm:$0xff]   ;;  %v9915_v11 = vld [vmem:[%s13019_s3 + $0x58c] ss:$16 sps:$4 sm:$0xff]  }
 0x346   :  { %7057 = vmatprep.subr.bf16.mxu0 %v9825_v48  ;;  %v5529_v19 = vadd.f32 %v8495_v54, %v12650_v36  ;;  %v9847_v36 = vld [vmem:[%s13019_s3 + $0x428] ss:$16 sps:$4 sm:$0xff]   ;;  %v9903_v48 = vld [vmem:[%s13019_s3 + $0x54c] ss:$16 sps:$4 sm:$0xff]  }
 0x347   :  { %v9907_v3 = vld [vmem:[%s13019_s3 + $0x568] ss:$16 sps:$4 sm:$0xff]  }
 0x348   :  { %6937 = vmatpush1.bf16.msra.mxu1 %v9910_v1  ;;  %v9913_v54 = vld [vmem:[%s13019_s3 + $0x588] ss:$16 sps:$4 sm:$0xff]   ;;  %v9933_v1 = vld [vmem:[%s13019_s3 + $0x5ec] ss:$16 sps:$4 sm:$0xff]  }
 0x349   :  { %7058 = vmatpush1.bf16.msra.mxu0 %v9823_v13  ;;  %6938 = vmatprep.subr.bf16.mxu1 %v9918_v20  ;;  %v9921_v13 = vld [vmem:[%s13019_s3 + $0x5ac] ss:$16 sps:$4 sm:$0xff]   ;;  %v9919_v32 = vld [vmem:[%s13019_s3 + $0x5a8] ss:$16 sps:$4 sm:$0xff]  }
 0x34a   :  { %7059 = vmatprep.subr.bf16.mxu0 %v9828_v15  ;;  %v9927_v15 = vld [vmem:[%s13019_s3 + $0x5cc] ss:$16 sps:$4 sm:$0xff]   ;;  %v9925_v16 = vld [vmem:[%s13019_s3 + $0x5c8] ss:$16 sps:$4 sm:$0xff]  }
 0x34b   :  { %v9939_v20 = vld [vmem:[%s13019_s3 + $0x60c] ss:$16 sps:$4 sm:$0xff]  }
 0x34c   :  { %6939 = vmatpush1.bf16.msra.mxu1 %v9916_v6 }
 0x34d   :  { %7060 = vmatpush1.bf16.msra.mxu0 %v9826_v21  ;;  %6940 = vmatprep.subr.bf16.mxu1 %v9924_v12  ;;  %v924_v21 = vsub.s32 4, %v10152_v43 }
 0x34e   :  { %7061 = vmatprep.subr.bf16.mxu0 %v9831_v22  ;;  %v928_v22 = vsub.s32 5, %v10152_v43 }
 0x34f   :  { %v925_v6 = vrot.slane %v12417_v49, %v924_v21  ;;  %v9962_v21 = vld [vmem:[%s13021_s5 + $0xb0] sm:$0xff]  }
 0x350   :  { %6941 = vmatpush1.bf16.msra.mxu1 %v9922_v26  ;;  %v929_v12 = vrot.slane %v12417_v49, %v928_v22  ;;  %v9940_v49 = vld [vmem:[%s13021_s5 + $0x40] sm:$0xff]  }
 0x351   :  { %7062 = vmatpush1.bf16.msra.mxu0 %v9829_v18  ;;  %6942 = vmatprep.subr.bf16.mxu1 %v9930_v59 }
 0x352   :  { %7063 = vmatprep.subr.bf16.mxu0 %v9834_v23 }
 0x354   :  { %6943 = vmatpush1.bf16.msra.mxu1 %v9928_v33 }
 0x355   :  { %7064 = vmatpush1.bf16.msra.mxu0 %v9832_v28  ;;  %6953 = vmatprep.subr.bf16.mxu1 %v9936_v31 }
 0x356   :  { %7065 = vmatprep.subr.bf16.mxu0 %v9837_v29 }
 0x359   :  { %7066 = vmatpush1.bf16.msra.mxu0 %v9835_v62 }
 0x35a   :  { %7076 = vmatprep.subr.bf16.mxu0 %v9843_v37  ;;  %v9934_v37 = vld [vmem:[%s13019_s3 + $0x600] ss:$16 sps:$4 sm:$0xff]  }
 0x35c   :  { %7068 = vmatmul.mubr.bf16.vlgmr.msra.gmra.mrb[8].mxu0 %v12593_v30  ;;  %v9861_v30 = vld [vmem:[%s13019_s3 + $0x46c] ss:$16 sps:$4 sm:$0xff]  }
 0x35d   :  { %7077 = vmatpush1.bf16.msra.mxu0 %v9841_v38  ;;  %v9937_v38 = vld [vmem:[%s13019_s3 + $0x608] ss:$16 sps:$4 sm:$0xff]  }
 0x35e   :  { %7078 = vmatprep.subr.bf16.mxu0 %v9849_v35 }
 0x361   :  { %7079 = vmatpush1.bf16.msra.mxu0 %v9847_v36 }
 0x362   :  { %7080 = vmatprep.subr.bf16.mxu0 %v9855_v44  ;;  %v8515_v46 = vpop.f32.mrb[28].mxu1  ;;  %v9941_v44 = vld [vmem:[%s13021_s5] sm:$0xff]  }
 0x363   :  { %v8516_v41 = vpop.f32.mrb[29].mxu1 }
 0x364   :  { %v8517_v24 = vadd.f32 %v8516_v41, %v8515_v46  ;;  %v8518_v47 = vpop.f32.mrb[30].mxu1  ;;  %v9943_v46 = vld [vmem:[%s13021_s5 + $0x8] sm:$0xff]   ;;  %v9944_v41 = vld [vmem:[%s13021_s5 + $0x50] sm:$0xff]  }
 0x365   :  { %7081 = vmatpush1.bf16.msra.mxu0 %v9853_v45  ;;  %v8519_v52 = vpop.f32.mrb[31].mxu1  ;;  %v9946_v47 = vld [vmem:[%s13021_s5 + $0x58] sm:$0xff]  }
 0x366   :  { %7082 = vmatprep.subr.bf16.mxu0 %v9861_v30  ;;  %v5569_v25 = vadd.f32 %v8517_v24, %v5529_v19  ;;  %v9931_v19 = vld [vmem:[%s13019_s3 + $0x5e8] ss:$16 sps:$4 sm:$0xff]   ;;  %v9945_v24 = vld [vmem:[%s13021_s5 + $0x10] sm:$0xff]   ;;  %v9948_v52 = vld [vmem:[%s13021_s5 + $0x60] sm:$0xff]  }
 0x367   :  { %v9942_v30 = vld [vmem:[%s13021_s5 + $0x48] sm:$0xff]  }
 0x369   :  { %7083 = vmatpush1.bf16.msra.mxu0 %v9859_v50  ;;  %v9947_v50 = vld [vmem:[%s13021_s5 + $0x18] sm:$0xff]  }
 0x36a   :  { %7084 = vmatprep.subr.bf16.mxu0 %v9867_v53  ;;  %v5608_v58 = vpop.f32.mrb[32].mxu1  ;;  %v9949_v53 = vld [vmem:[%s13021_s5 + $0x20] sm:$0xff]  }
 0x36b   :  { %v12825_v61 = vadd.f32 %v5608_v58, %v5569_v25  ;;  %v8552_v63 = vpop.f32.mrb[33].mxu1  ;;  %v9950_v25 = vld [vmem:[%s13021_s5 + $0x68] sm:$0xff]   ;;  %v9953_v58 = vld [vmem:[%s13021_s5 + $0x30] sm:$0xff]  }
 0x36c   :  { %v5611_v0 = vpop.f32.mrb[34].mxu1  ;;  %v9955_v63 = vld [vmem:[%s13021_s5 + $0x38] sm:$0xff]  }
 0x36d   :  { %7085 = vmatpush1.bf16.msra.mxu0 %v9865_v51  ;;  %v8553_v2 = vpop.f32.mrb[35].mxu1  ;;  %v5620_v36 = vmax.f32 %v12825_v61, 0.0  ;;  %v9951_v51 = vld [vmem:[%s13021_s5 + $0x28] sm:$0xff]   ;;  %v9954_v61 = vld [vmem:[%s13021_s5 + $0x78] sm:$0xff]  }
 0x36e   :  { %7086 = vmatprep.subr.bf16.mxu0 %v9873_v55  ;;  %v9952_v55 = vld [vmem:[%s13021_s5 + $0x70] sm:$0xff]  }
 0x36f   :  { %v5627_v45 = vpack.c.bf16 %v5620_v36, %v5620_v36 }
 0x371   :  { %7087 = vmatpush1.bf16.msra.mxu0 %v9871_v42  ;;  %v5824_v42 = vld [vmem:[%s13020_s4] sm:$0xf] }
 0x372   :  { %7088 = vmatprep.subr.bf16.mxu0 %v9879_v14  ;;  %v5829_v0 = vrot.slane %v5824_v42, %v908_v56  ;;  %v5833_v14 = vrot.slane %v5824_v42, %v912_v60  ;;  %v5841_v2 = vrot.slane %v5824_v42, %v920_v27  ;;  %v9956_v60 = vld [vmem:[%s13021_s5 + $0x80] sm:$0xff]   ;;  %v5837_v22 = vrot.slane %v5824_v42, %v916_v57 }
 0x375   :  { %7089 = vmatpush1.bf16.msra.mxu0 %v9877_v4 }
 0x376   :  { %7090 = vmatprep.subr.bf16.mxu0 %v9885_v5 }
 0x379   :  { %7091 = vmatpush1.bf16.msra.mxu0 %v9883_v40 }
 0x37a   :  { %7092 = vmatprep.subr.bf16.mxu0 %v9891_v7 }
 0x37d   :  { %7093 = vmatpush1.bf16.msra.mxu0 %v9889_v17 }
 0x37e   :  { %7094 = vmatprep.subr.bf16.mxu0 %v9897_v8 }
 0x381   :  { %7095 = vmatpush1.bf16.msra.mxu0 %v9895_v9 }
 0x382   :  { %7096 = vmatprep.subr.bf16.mxu0 %v9903_v48 }
 0x385   :  { %7097 = vmatpush1.bf16.msra.mxu0 %v9901_v39 }
 0x386   :  { %7098 = vmatprep.subr.bf16.mxu0 %v9909_v10 }
 0x389   :  { %7099 = vmatpush1.bf16.msra.mxu0 %v9907_v3 }
 0x38a   :  { %7100 = vmatprep.subr.bf16.mxu0 %v9915_v11 }
 0x38d   :  { %7101 = vmatpush1.bf16.msra.mxu0 %v9913_v54 }
 0x38e   :  { %7102 = vmatprep.subr.bf16.mxu0 %v9921_v13 }
 0x391   :  { %7103 = vmatpush1.bf16.msra.mxu0 %v9919_v32 }
 0x392   :  { %7104 = vmatprep.subr.bf16.mxu0 %v9927_v15  ;;  %v9957_v15 = vld [vmem:[%s13021_s5 + $0x88] sm:$0xff]  }
 0x395   :  { %7105 = vmatpush1.bf16.msra.mxu0 %v9925_v16  ;;  %v9958_v16 = vld [vmem:[%s13021_s5 + $0x90] sm:$0xff]  }
 0x396   :  { %7106 = vmatprep.subr.bf16.mxu0 %v9933_v1  ;;  %v9959_v1 = vld [vmem:[%s13021_s5 + $0x98] sm:$0xff]  }
 0x399   :  { %7107 = vmatpush1.bf16.msra.mxu0 %v9931_v19  ;;  %v9960_v19 = vld [vmem:[%s13021_s5 + $0xa0] sm:$0xff]  }
 0x39a   :  { %7117 = vmatprep.subr.bf16.mxu0 %v9939_v20  ;;  %v9961_v20 = vld [vmem:[%s13021_s5 + $0xa8] sm:$0xff]  }
 0x3af   :  { %v5327_v18 = vpop.f32.mrb[4].mxu0 }
 0x3b0   :  { %v8560_v23 = vadd.f32 %v5327_v18, %v925_v6  ;;  %v5329_v26 = vpop.f32.mrb[5].mxu0  ;;  %v9963_v6 = vld [vmem:[%s13021_s5 + $0xb8] sm:$0xff]   ;;  %v9964_v18 = vld [vmem:[%s13021_s5 + $0xc0] ss:$0 sps:$4 sm:$0xff]   ;;  %s7465_s5 = sshll.u32 %s9994_s27, 4  ;;  %s7466_s5 = int_to_ptr.vmem [resolvable:$true] %s7465_s5 }
 0x3b1   :  { %v8561_v59 = vadd.f32 %v5329_v26, %v929_v12  ;;  %v5331_v28 = vpop.f32.mrb[6].mxu0  ;;  %v7375_v43 = vsel %vm7373_vm4, %v9964_v18, 0  ;;  %s9966_s28 = scalar_lea.vmem %s7466_s5, 32  ;;  %p9971_p1 = scmp.lt.s32.totalorder %s7466_s5, %s7466_s5 }
 0x3b2   :  { %v5618_v29 = vmax.f32 %v8560_v23, 0.0  ;;  %v5332_v33 = vpop.f32.mrb[7].mxu0  ;;  %p9967_p0 = scmp.ne.s32.totalorder %s7466_s5, %s9966_s28  ;;  %p9972_p2 = scmp.lt.s32.totalorder %s9966_s28, %s9966_s28 }
 0x3b3   :  { %v5619_v31 = vmax.f32 %v8561_v59, 0.0 }
 0x3b4   :  { %v5625_v35 = vpack.c.bf16 %v5618_v29, %v5618_v29  ;;  %p9973_p3 = por %p9972_p2, %p9971_p1 }
 0x3b5   :  { %v5626_v62 = vpack.c.bf16 %v5619_v31, %v5619_v31  ;;  %v8362_v31 = vld [vmem:[%s13022_s6] ss:$0 sm:$0xff] }
 0x3b6   :  { %p9974_p4 = pnand %p9973_p3, %p9967_p0 }
 0x3b7   :  { %6944 = vmatprep.mubr.bf16.mxu1 %v5626_v62  ;;  %7108 = vmatprep.mubr.bf16.mxu0 %v5626_v62 }
 0x3b8   :  { %6945 = vmatmul.mubr.bf16.vlgmr.msra.gmra.mrb[36].mxu1 %v5625_v35  ;;  %7109 = vmatmul.mubr.bf16.vlgmr.msra.gmra.mrb[8].mxu0 %v5625_v35 }
 0x3b9   :  { %6954 = vmatpush1.bf16.msra.mxu1 %v9934_v37  ;;  %7118 = vmatpush1.bf16.msra.mxu0 %v9937_v38 }
 0x3ba   :  { %6985 = vmatprep.mubr.bf16.mxu1 %v9991_v34  ;;  %7149 = vmatprep.mubr.bf16.mxu0 %v9991_v34 }
 0x3bb   :  { %8524 = vmatprep.subr.bf16.mxu1 %v9940_v49 }
 0x3c4   :  { %8360 = vmatmul.mubr.msk.bf16.vlgmr.msra.gmra.mrb[36].mxu1 %vm6826_vm2, %v5627_v45  ;;  %8361 = vmatmul.mubr.msk.bf16.vlgmr.msra.gmra.mrb[8].mxu0 %vm6826_vm2, %v5627_v45 }
 0x3c5   :  { %8525 = vmatpush3.bf16.msra.mxu1 %v9941_v44 }
 0x3c6   :  { %8526 = vmatprep.subr.bf16.mxu1 %v9942_v30 }
 0x3c9   :  { %8527 = vmatpush3.bf16.msra.mxu1 %v9943_v46 }
 0x3ca   :  { %8528 = vmatprep.subr.bf16.mxu1 %v9944_v41 }
 0x3cd   :  { %8529 = vmatpush3.bf16.msra.mxu1 %v9945_v24 }
 0x3ce   :  { %8530 = vmatprep.subr.bf16.mxu1 %v9946_v47 }
 0x3d1   :  { %8531 = vmatpush3.bf16.msra.mxu1 %v9947_v50 }
 0x3d2   :  { %8532 = vmatprep.subr.bf16.mxu1 %v9948_v52 }
 0x3d5   :  { %8533 = vmatpush3.bf16.msra.mxu1 %v9949_v53 }
 0x3d6   :  { %8534 = vmatprep.subr.bf16.mxu1 %v9950_v25 }
 0x3d9   :  { %8535 = vmatpush3.bf16.msra.mxu1 %v9951_v51 }
 0x3da   :  { %8536 = vmatprep.subr.bf16.mxu1 %v9952_v55 }
 0x3dd   :  { %8537 = vmatpush3.bf16.msra.mxu1 %v9953_v58 }
 0x3de   :  { %8538 = vmatprep.subr.bf16.mxu1 %v9954_v61 }
 0x3e1   :  { %8539 = vmatpush3.bf16.msra.mxu1 %v9955_v63 }
 0x3e2   :  { %7417 = vmatprep.subr.bf16.mxu1 %v9991_v34 }
 0x497   :  { %v6987_v4 = vpop.f32.mrb[36].mxu1  ;;  %v7151_v5 = vpop.f32.mrb[8].mxu0 }
 0x498   :  { %v8562_v40 = vadd.f32 %v6987_v4, %v5829_v0  ;;  %v6989_v7 = vpop.f32.mrb[37].mxu1  ;;  %v7153_v17 = vpop.f32.mrb[9].mxu0  ;;  %v8564_v12 = vadd.f32 %v7151_v5, %v5837_v22 }
 0x499   :  { %v8563_v8 = vadd.f32 %v6989_v7, %v5833_v14  ;;  %v8565_v9 = vadd.f32 %v7153_v17, %v5841_v2  ;;  %v6991_v48 = vpop.f32.mrb[38].mxu1  ;;  %v7155_v39 = vpop.f32.mrb[10].mxu0 }
 0x49a   :  { %v7158_v10 = vmax.f32 %v8562_v40, 0.0  ;;  %v6992_v3 = vpop.f32.mrb[39].mxu1  ;;  %v7156_v11 = vpop.f32.mrb[11].mxu0  ;;  %v7160_v23 = vmax.f32 %v8564_v12, 0.0 }
 0x49b   :  { %v7159_v54 = vmax.f32 %v8563_v8, 0.0  ;;  %v7161_v56 = vmax.f32 %v8565_v9, 0.0 }
 0x49c   :  { %v7162_v27 = vpack.c.bf16 %v7158_v10, %v7158_v10  ;;  %v7164_v57 = vpack.c.bf16 %v7160_v23, %v7160_v23 }
 0x49d   :  { %v7163_v13 = vpack.c.bf16 %v7159_v54, %v7159_v54  ;;  %v7165_v32 = vpack.c.bf16 %v7161_v56, %v7161_v56 }
 0x49f   :  { %7409 = vmatprep.mubr.bf16.mxu1 %v7163_v13 }
 0x4a0   :  { %7410 = vmatmul.mubr.bf16.vlgmr.msra.gmra.mrb[40].mxu1 %v7162_v27 }
 0x4a1   :  { %7418 = vmatpush1.bf16.msra.mxu1 %v9956_v60  ;;  %8388 = vmatprep.mubr.msk.bf16.mxu1 %vm7369_vm3, %v7165_v32 }
 0x4a2   :  { %7419 = vmatprep.subr.bf16.mxu1 %v9991_v34 }
 0x4a5   :  { %7420 = vmatpush1.bf16.msra.mxu1 %v9957_v15 }
 0x4a6   :  { %7421 = vmatprep.subr.bf16.mxu1 %v9991_v34 }
 0x4a9   :  { %7422 = vmatpush1.bf16.msra.mxu1 %v9958_v16 }
 0x4aa   :  { %7423 = vmatprep.subr.bf16.mxu1 %v9991_v34 }
 0x4ad   :  { %7424 = vmatpush1.bf16.msra.mxu1 %v9959_v1 }
 0x4ae   :  { %7425 = vmatprep.subr.bf16.mxu1 %v9991_v34 }
 0x4b1   :  { %7426 = vmatpush1.bf16.msra.mxu1 %v9960_v19 }
 0x4b2   :  { %7427 = vmatprep.subr.bf16.mxu1 %v9991_v34 }
 0x4b5   :  { %7428 = vmatpush1.bf16.msra.mxu1 %v9961_v20 }
 0x4b6   :  { %7429 = vmatprep.subr.bf16.mxu1 %v9991_v34 }
 0x4b9   :  { %7430 = vmatpush1.bf16.msra.mxu1 %v9962_v21 }
 0x4ba   :  { %7431 = vmatprep.subr.bf16.mxu1 %v9991_v34 }
 0x4bd   :  { %7432 = vmatpush1.bf16.msra.mxu1 %v9963_v6 }
 0x4be   :  { %7433 = vmatprep.subr.bf16.mxu1 %v9991_v34 }
 0x4c1   :  { %7434 = vmatpush1.bf16.msra.mxu1 %v7375_v43 }
 0x4c4   :  { %7450 = vmatmul.mubr.bf16.vlgmr.msra.gmra.mrb[44].mxu1 %v7164_v57 }
 0x573   :  { %v8540_v26 = vpop.f32.mrb[40].mxu1 }
 0x574   :  { %v8541_v59 = vpop.f32.mrb[41].mxu1 }
 0x575   :  { %v8542_v28 = vadd.f32 %v8541_v59, %v8540_v26  ;;  %v8543_v29 = vpop.f32.mrb[42].mxu1 }
 0x576   :  { %v8544_v33 = vpop.f32.mrb[43].mxu1 }
 0x577   :  { %v7412_v62 = vadd.f32 %v8542_v28, %v8362_v31 }
 0x597   :  { %v7451_v37 = vpop.f32.mrb[44].mxu1 }
 0x598   :  { %v7452_v38 = vadd.f32 %v7451_v37, %v7412_v62  ;;  %v7453_v34 = vpop.f32.mrb[45].mxu1 }
 0x599   :  { %v7454_v35 = vpop.f32.mrb[46].mxu1 }
 0x59a   :  { %v7455_v49 = vpop.f32.mrb[47].mxu1  ;;  %7458 = vst.msk [vmem:[#allocation2] sm:$0x3] %vm7457_vm5, %v7452_v38 }
 0x59b   :  { %9977 = shalt.err (!%p9974_p4)
}
 0x59c   :  { %s9978_s3 = scalar_lea.hbm %s13023_s7, 32 }
 0x59d   :  { %p9979_p5 = scmp.ne.s32.totalorder %s13023_s7, %s9978_s3  ;;  %p9982_p6 = scmp.lt.u32.totalorder %s9978_s3, %s13023_s7 }
 0x59f   :  { %p9984_p7 = pnand %p9982_p6, %p9979_p5 }
 0x5a1   :  { %9987 = shalt.err (!%p9984_p7)
}
 0x5a2   :  { %7468 = dma.vmem_to_hbm [thread:$0]  %s7466_s5, 32, %s13023_s7, [#allocation3]  }
 0x5a3   :  { %9988 = dma.done.wait [#allocation3], 32  }
 0x5a4   :  { %9989 = vsyncadd [#allocation3], 4294967264 }
 0x5a5   :  { %7472 = vsyncpa [#allocation3], 1 }

</bundles_post_ra>
